<compile_context>
chip_gen: v6e
topology: v6e:2x2x1
jax: 0.10.0
libtpu: 0.0.40
codegen_flags: <defaults>
</compile_context>

<pallas_src>
import jax
import jax.numpy as jnp
from jax import lax
from jax.experimental import pallas as pl
from jax.experimental.pallas import tpu as pltpu

HIDDEN = 32            # per-sample channel count (architecture constant)
GROUP = 4              # batch elements packed onto the 128-lane dim
CP = GROUP * HIDDEN    # 128 packed lanes
NEG_SLOPE = 0.1


def _leaky_relu(x):
    return jnp.where(x >= 0, x, NEG_SLOPE * x)


def _shift_rows(h, s, row):
    """tap[l] = h[l + s] with zero padding outside [0, Lh).  `s` is static."""
    Lh = h.shape[0]
    if s == 0:
        return h
    if abs(s) >= Lh:
        return jnp.zeros_like(h)
    if Lh >= 8:
        # sublane rotate on the XLU + iota mask on the VPU: no padded copy.
        if s > 0:
            r = pltpu.roll(h, Lh - s, axis=0)            # r[l] = h[(l + s) mod Lh]
            return jnp.where(row >= Lh - s, 0.0, r)
        r = pltpu.roll(h, -s, axis=0)                     # r[l] = h[(l + s) mod Lh]
        return jnp.where(row < -s, 0.0, r)
    # tiny tail tiles (< 8 rows): zero-pad + static slice.
    z = jnp.zeros((abs(s), h.shape[1]), h.dtype)
    if s > 0:
        return jnp.concatenate([h[s:, :], z], axis=0)
    return jnp.concatenate([z, h[: Lh + s, :]], axis=0)


def _conv_same(h, wmat, b, k_size, row):
    """'same' 1-D conv over packed activations as ONE wide-K bf16 MXU matmul.

    h    : (Lh, 128) f32   -- 4 batches x 32 channels on the lane dim
    wmat : (k_size*128, 128) bf16 block-diagonal packed weight
    b    : (1, 128) f32 packed bias
    row  : (Lh, 128) int32 iota (hoisted by the caller, reused across convs)
    """
    pad = (k_size - 1) // 2
    taps = [_shift_rows(h, k - pad, row).astype(jnp.bfloat16) for k in range(k_size)]
    lhs = jnp.concatenate(taps, axis=1)                   # (Lh, k_size*128) bf16
    # TODO(synk): on v5e prefer the per-tap K=128 accumulate form (same MXU pushes,
    #             fewer copies through the single vst slot).
    return jnp.dot(lhs, wmat, preferred_element_type=jnp.float32) + b


def nnet_kernel(x2_ref, halo_ref, w12i_ref, w12p_ref, w12n_ref, b12_ref,
                w3_ref, b3_ref, wblk_ref, bblk_ref, wf_ref, bf_ref,
                o_ref, h1_scr):
    t = pl.program_id(1)
    nt = pl.num_programs(1)
    x2t = x2_ref[0]                                       # (LT, 16*CP) bf16
    LT = x2t.shape[0]
    Lo = h1_scr.shape[0]

    # ---- front stage (per Lo tile): fused Conv1d(5,p2) o Conv1d(16,s16) + LReLU ----
    # interior taps (x[16j+0..15]) multiply the packed input directly: no LHS copy.
    acc = jnp.dot(x2t, w12i_ref[...], preferred_element_type=jnp.float32)

    # edge taps: x[16j-2], x[16j-1] from row j-1; x[16j+16], x[16j+17] from row j+1.
    # Rows outside the tile come from the tiny halo input (zeros at sequence ends).
    row2 = lax.broadcasted_iota(jnp.int32, (LT, 2 * CP), 0)
    halo = halo_ref[0, 0]                                 # (8, 2*CP) f32
    pc = x2t[:, 14 * CP:16 * CP].astype(jnp.float32)      # cols for x[16j-2], x[16j-1]
    prev = jnp.where(row2 == 0, halo[0:1, :], pltpu.roll(pc, 1, axis=0))
    nc = x2t[:, 0:2 * CP].astype(jnp.float32)             # cols for x[16j+16], x[16j+17]
    nxt = jnp.where(row2 == LT - 1, halo[1:2, :], pltpu.roll(nc, LT - 1, axis=0))
    acc = acc + jnp.dot(prev.astype(jnp.bfloat16), w12p_ref[...],
                        preferred_element_type=jnp.float32)
    acc = acc + jnp.dot(nxt.astype(jnp.bfloat16), w12n_ref[...],
                        preferred_element_type=jnp.float32)
    h_tile = _leaky_relu(acc + b12_ref[...])              # (LT, 128) f32

    start = pl.multiple_of(t * LT, LT)
    h1_scr[pl.ds(start, LT), :] = h_tile                  # persistent across the t axis

    # ---- back stage (last tile only): conv3 + 6 blocks + final on the resident h1 ----
    @pl.when(t == nt - 1)
    def _():
        row = lax.broadcasted_iota(jnp.int32, (Lo, CP), 0)
        h = _conv_same(h1_scr[...], w3_ref[...], b3_ref[...], 7, row)   # Conv1d(7, pad=3)

        for blk in range(6):
            Lh = h.shape[0]
            Lp = Lh // 2
            # MaxPool1d(2,2): one max, one store, one even-strided read.
            m = jnp.maximum(h, _shift_rows(h, 1, row))
            h1_scr[pl.ds(0, Lh), :] = m
            h = h1_scr[pl.ds(0, Lp, stride=2), :]
            # Dropout(p=0.1, inplace=True): identity at inference time.
            row = lax.broadcasted_iota(jnp.int32, (Lp, CP), 0)          # reused below
            h = _leaky_relu(_conv_same(h, wblk_ref[2 * blk], bblk_ref[2 * blk], 5, row))
            h = _leaky_relu(_conv_same(h, wblk_ref[2 * blk + 1], bblk_ref[2 * blk + 1], 5, row))

        # final: Conv1d(32, out_channels, 1) + Sigmoid
        y = jnp.dot(h.astype(jnp.bfloat16), wf_ref[...],
                    preferred_element_type=jnp.float32) + bf_ref[...]
        o_ref[0] = jax.nn.sigmoid(y)


# ---------------------------------------------------------------------------
# Wrapper-side weight / activation packing
# ---------------------------------------------------------------------------

def _pack_conv(w):
    """(Cout, Cin, K) torch weight -> (K*GROUP*Cin, GROUP*Cout) block-diag bf16 weight."""
    cout, cin, k = w.shape
    eye = jnp.eye(GROUP, dtype=jnp.float32)
    taps = [jnp.kron(eye, w[:, :, i].T) for i in range(k)]   # each (G*Cin, G*Cout)
    return jnp.concatenate(taps, axis=0).astype(jnp.bfloat16)


def _pack_bias(b):
    return jnp.tile(b, GROUP)[None, :].astype(jnp.float32)    # (1, G*Cout)


def _fuse_conv12(w1, b1, w2, b2):
    """Compose Conv1d(k=5,pad=2) with Conv1d(k=16,stride=16) into one 20-tap stride-16 conv.

    out2[j] = sum_r W_eff[:, :, r] @ x[16j + r - 2] + b_eff  (zero pad outside [0, L)).
    Composition is done in f32; the bf16 cast happens only at packing time.
    """
    cout, _, k2 = w2.shape
    _, cin, k1 = w1.shape
    w_eff = jnp.zeros((cout, cin, k1 + k2 - 1), jnp.float32)
    for k in range(k1):
        for t in range(k2):
            w_eff = w_eff.at[:, :, t + k].add(w2[:, :, t] @ w1[:, :, k])
    b_eff = w2.sum(axis=2) @ b1 + b2
    return w_eff, b_eff


def _const_spec(shape):
    zeros = (0,) * len(shape)
    return pl.BlockSpec(shape, lambda g, t, z=zeros: z)


def nnet_forward(x_ncl, params, *, lt_max=512):
    """x_ncl: (B, 32, L) with L a multiple of 1024. Returns (B, out_channels, L // 1024)."""
    B, C, L = x_ncl.shape
    assert C == HIDDEN, "architecture requires in_channels == hidden == 32"
    assert L % 1024 == 0 and L >= 1024
    out_ch = params["final_w"].shape[0]
    Lo, Lf = L // 16, L // 1024
    NG = -(-B // GROUP)                         # ceil(B / GROUP)
    Bp = NG * GROUP

    # inner Lo tile for the front-stage pipeline (Lo is always a multiple of 64)
    LT = Lo
    if Lo > lt_max:
        for cand in (512, 256, 128, 64):
            if cand <= lt_max and Lo % cand == 0:
                LT = cand
                break
    NT = Lo // LT

    # ---- pack GROUP batches onto the lane dim and fold the conv2 stride into lanes ----
    x = jnp.transpose(x_ncl, (0, 2, 1)).astype(jnp.float32)        # (B, L, 32)
    if Bp != B:
        x = jnp.concatenate([x, jnp.zeros((Bp - B, L, C), jnp.float32)], axis=0)
    x2f = (x.reshape(NG, GROUP, L, C)
             .transpose(0, 2, 1, 3)                                 # (NG, L, G, 32)
             .reshape(NG, Lo, 16 * CP))                             # (NG, L/16, 2048) f32
    # TODO(synk): fuse this relayout into the producer of x (extra HBM round trip in XLA).

    # per-tile halo rows for the fused-conv edge taps (+/-1 row of x2, tiny)
    two_c = 2 * CP
    prev_rows = x2f[:, LT - 1::LT, 14 * CP:16 * CP]                 # (NG, NT, 2C)
    prev = jnp.concatenate(
        [jnp.zeros((NG, 1, two_c), jnp.float32), prev_rows[:, :NT - 1]], axis=1)
    next_rows = x2f[:, ::LT, 0:two_c]                               # (NG, NT, 2C)
    nxt = jnp.concatenate(
        [next_rows[:, 1:], jnp.zeros((NG, 1, two_c), jnp.float32)], axis=1)
    halo = jnp.zeros((NG, NT, 8, two_c), jnp.float32)
    halo = halo.at[:, :, 0, :].set(prev).at[:, :, 1, :].set(nxt)

    x2 = x2f.astype(jnp.bfloat16)          # bf16 MXU operand: halves the dominant HBM read

    # ---- pack weights (block-diagonal over the GROUP packed batches, bf16) ----
    w12e, b12e = _fuse_conv12(params["conv1_w"], params["conv1_b"],
                              params["conv2_w"], params["conv2_b"])
    w12 = _pack_conv(w12e)                                           # (20*128, 128) bf16
    b12 = _pack_bias(b12e)                                           # (1, 128) f32
    w12i = w12[2 * CP:18 * CP]                                       # interior taps (x2 cols)
    w12p = w12[0:2 * CP]                                             # taps x[16j-2], x[16j-1]
    w12n = w12[18 * CP:20 * CP]                                      # taps x[16j+16], x[16j+17]
    w3, b3 = _pack_conv(params["conv3_w"]), _pack_bias(params["conv3_b"])
    wblk = jnp.stack([_pack_conv(params[f"block{i}_c{j}_w"])
                      for i in range(6) for j in range(2)])          # (12, 640, 128) bf16
    bblk = jnp.stack([_pack_bias(params[f"block{i}_c{j}_b"])
                      for i in range(6) for j in range(2)])          # (12, 1, 128) f32
    wf = jnp.kron(jnp.eye(GROUP, dtype=jnp.float32),
                  params["final_w"][:, :, 0].T).astype(jnp.bfloat16)  # (128, G*out_ch)
    bf = jnp.tile(params["final_b"], GROUP)[None, :].astype(jnp.float32)

    args = (x2, halo, w12i, w12p, w12n, b12, w3, b3, wblk, bblk, wf, bf)
    in_specs = [
        pl.BlockSpec((1, LT, 16 * CP), lambda g, t: (g, t, 0)),
        pl.BlockSpec((1, 1, 8, two_c), lambda g, t: (g, t, 0, 0)),
    ] + [_const_spec(a.shape) for a in args[2:]]

    # VMEM budget hint (input tile double buffer + scratch + weights + back-stage transients)
    est = (2 * LT * 16 * CP * 2
           + Lo * CP * 4
           + sum(int(a.size) * a.dtype.itemsize for a in args[1:])
           + 10 * Lo * CP * 4)
    try:
        vmem_cap = int(pltpu.get_tpu_info().vmem_capacity_bytes)
    except Exception:
        vmem_cap = 64 * 1024 * 1024            # conservative (v7x physical per-TC)
    vmem_limit = int(min(vmem_cap - 4 * 1024 * 1024,
                         max(32 * 1024 * 1024, (est * 3) // 2)))

    out = pl.pallas_call(
        nnet_kernel,
        out_shape=jax.ShapeDtypeStruct((NG, Lf, GROUP * out_ch), jnp.float32),
        grid_spec=pltpu.PrefetchScalarGridSpec(
            num_scalar_prefetch=0,
            grid=(NG, NT),
            in_specs=in_specs,
            out_specs=pl.BlockSpec((1, Lf, GROUP * out_ch), lambda g, t: (g, 0, 0)),
            scratch_shapes=[pltpu.VMEM((Lo, CP), jnp.float32)],
        ),
        # batch groups are independent -> shard across TensorCores; the Lo-tile axis
        # carries the h1 scratch and revisits the output block -> "arbitrary".
        compiler_params=pltpu.CompilerParams(
            dimension_semantics=("parallel", "arbitrary"),
            vmem_limit_bytes=vmem_limit,
        ),
    )(*args)

    # unpack (NG, Lf, GROUP*out_ch) -> (B, out_ch, Lf)
    out = (out.reshape(NG, Lf, GROUP, out_ch)
              .transpose(0, 2, 3, 1)
              .reshape(Bp, out_ch, Lf))
    return out[:B]


# ---------------------------------------------------------------------------
# Parameters + pure-JAX reference (PyTorch semantics, eval mode)
# ---------------------------------------------------------------------------

def init_params(key, in_channels=HIDDEN, out_channels=4):
    """Deterministic synthetic parameters (PyTorch Conv1d shapes)."""
    specs = [("conv1", in_channels, in_channels, 5),
             ("conv2", HIDDEN, HIDDEN, 16),
             ("conv3", HIDDEN, HIDDEN, 7)]
    for i in range(6):
        specs.append((f"block{i}_c0", HIDDEN, HIDDEN, 5))
        specs.append((f"block{i}_c1", HIDDEN, HIDDEN, 5))
    specs.append(("final", HIDDEN, out_channels, 1))
    params = {}
    for name, cin, cout, k in specs:
        key, kw, kb = jax.random.split(key, 3)
        bound = 1.0 / (cin * k) ** 0.5
        params[name + "_w"] = jax.random.uniform(kw, (cout, cin, k), jnp.float32,
                                                 -bound, bound)
        params[name + "_b"] = jax.random.uniform(kb, (cout,), jnp.float32,
                                                 -bound, bound)
    return params


def reference_forward(x, params):
    """Pure-JAX reference matching the PyTorch module (eval mode)."""
    def conv(h, name, stride=1, pad=0):
        w, b = params[name + "_w"], params[name + "_b"]
        y = lax.conv_general_dilated(h, w, window_strides=(stride,),
                                     padding=[(pad, pad)],
                                     dimension_numbers=("NCH", "OIH", "NCH"))
        return y + b[None, :, None]

    lrelu = lambda v: jnp.where(v >= 0, v, NEG_SLOPE * v)
    h = conv(x, "conv1", 1, 2)
    h = conv(h, "conv2", 16, 0)
    h = lrelu(h)
    h = conv(h, "conv3", 1, 3)
    for i in range(6):
        B_, C_, L_ = h.shape
        h = jnp.max(h.reshape(B_, C_, L_ // 2, 2), axis=-1)   # MaxPool1d(2,2)
        h = lrelu(conv(h, f"block{i}_c0", 1, 2))
        h = lrelu(conv(h, f"block{i}_c1", 1, 2))
    h = conv(h, "final", 1, 0)
    return jax.nn.sigmoid(h)


if __name__ == "__main__":
    B, C_IN, L = 2, HIDDEN, 2048          # small shapes; L must be a multiple of 1024
    OUT_CH = 4

    key = jax.random.PRNGKey(0)
    kx, kp = jax.random.split(key)
    x = jax.random.normal(kx, (B, C_IN, L), dtype=jnp.float32)
    params = init_params(kp, C_IN, OUT_CH)

    y = nnet_forward(x, params)
    y = jax.block_until_ready(y)

    assert y.shape == (B, OUT_CH, L // 1024), y.shape

    y_ref = reference_forward(x, params)
    max_err = float(jnp.max(jnp.abs(y - y_ref)))
    # Matmul operands are bf16 (f32 accumulation); the only other reassociation vs.
    # the reference is the conv1∘conv2 weight pre-composition.  2e-2 post-sigmoid is
    # a comfortable bound for operand rounding (this is not an algorithmic error).
    assert max_err < 2e-2, f"mismatch vs reference: {max_err}"

    print("KERNEL_OK")
</pallas_src>

<mosaic_0001>
module attributes {stable_mosaic.version = 11 : i64} {
  func.func @nnet_kernel(%arg0: i32, %arg1: i32, %arg2: memref<1x128x2048xbf16, #tpu.memory_space<vmem>>, %arg3: memref<1x1x8x256xf32, #tpu.memory_space<vmem>>, %arg4: memref<2048x128xbf16, #tpu.memory_space<vmem>>, %arg5: memref<256x128xbf16, #tpu.memory_space<vmem>>, %arg6: memref<256x128xbf16, #tpu.memory_space<vmem>>, %arg7: memref<1x128xf32, #tpu.memory_space<vmem>>, %arg8: memref<896x128xbf16, #tpu.memory_space<vmem>>, %arg9: memref<1x128xf32, #tpu.memory_space<vmem>>, %arg10: memref<12x640x128xbf16, #tpu.memory_space<vmem>>, %arg11: memref<12x1x128xf32, #tpu.memory_space<vmem>>, %arg12: memref<128x16xbf16, #tpu.memory_space<vmem>>, %arg13: memref<1x16xf32, #tpu.memory_space<vmem>>, %arg14: memref<1x2x16xf32, #tpu.memory_space<vmem>>, %arg15: memref<128x128xf32, #tpu.memory_space<vmem>>) attributes {dimension_semantics = [#tpu.dimension_semantics<parallel>, #tpu.dimension_semantics<arbitrary>], iteration_bounds = array<i64: 1, 1>, scalar_prefetch = 0 : i64, scratch_operands = 1 : i64, tpu.core_type = #tpu.core_type<tc>, window_params = [{transform_indices = @transform_0, window_bounds = array<i64: 1, 128, 2048>}, {transform_indices = @transform_1, window_bounds = array<i64: 1, 1, 8, 256>}, {pipeline_mode = #tpu.pipeline_mode<synchronous>, transform_indices = @transform_2, window_bounds = array<i64: 2048, 128>}, {pipeline_mode = #tpu.pipeline_mode<synchronous>, transform_indices = @transform_3, window_bounds = array<i64: 256, 128>}, {pipeline_mode = #tpu.pipeline_mode<synchronous>, transform_indices = @transform_4, window_bounds = array<i64: 256, 128>}, {pipeline_mode = #tpu.pipeline_mode<synchronous>, transform_indices = @transform_5, window_bounds = array<i64: 1, 128>}, {pipeline_mode = #tpu.pipeline_mode<synchronous>, transform_indices = @transform_6, window_bounds = array<i64: 896, 128>}, {pipeline_mode = #tpu.pipeline_mode<synchronous>, transform_indices = @transform_7, window_bounds = array<i64: 1, 128>}, {pipeline_mode = #tpu.pipeline_mode<synchronous>, transform_indices = @transform_8, window_bounds = array<i64: 12, 640, 128>}, {pipeline_mode = #tpu.pipeline_mode<synchronous>, transform_indices = @transform_9, window_bounds = array<i64: 12, 1, 128>}, {pipeline_mode = #tpu.pipeline_mode<synchronous>, transform_indices = @transform_10, window_bounds = array<i64: 128, 16>}, {pipeline_mode = #tpu.pipeline_mode<synchronous>, transform_indices = @transform_11, window_bounds = array<i64: 1, 16>}, {transform_indices = @transform_12, window_bounds = array<i64: 1, 2, 16>}]} {
    %c0 = arith.constant 0 : index
    %c0_0 = arith.constant 0 : index
    %c0_1 = arith.constant 0 : index
    %0 = vector.load %arg2[%c0, %c0_0, %c0_1] : memref<1x128x2048xbf16, #tpu.memory_space<vmem>>, vector<1x128x2048xbf16>
    %1 = vector.shape_cast %0 : vector<1x128x2048xbf16> to vector<128x2048xbf16>
    %c0_2 = arith.constant 0 : index
    %c0_3 = arith.constant 0 : index
    %2 = vector.load %arg4[%c0_2, %c0_3] : memref<2048x128xbf16, #tpu.memory_space<vmem>>, vector<2048x128xbf16>
    %cst = arith.constant dense<0.000000e+00> : vector<128x128xf32>
    %3 = tpu.matmul %1, %2, %cst {dimension_numbers = #tpu.dot_dimension_numbers<[1], [0], [0], [1], [0, 0, 1, 1], [], []>} : vector<128x2048xbf16>, vector<2048x128xbf16>, vector<128x128xf32> -> vector<128x128xf32>
    %4 = tpu.iota {dimensions = array<i32: 0>} : vector<128x256xi32>
    %c0_4 = arith.constant 0 : index
    %c0_5 = arith.constant 0 : index
    %c0_6 = arith.constant 0 : index
    %c0_7 = arith.constant 0 : index
    %5 = vector.load %arg3[%c0_4, %c0_5, %c0_6, %c0_7] : memref<1x1x8x256xf32, #tpu.memory_space<vmem>>, vector<1x1x8x256xf32>
    %6 = vector.shape_cast %5 : vector<1x1x8x256xf32> to vector<8x256xf32>
    %7 = vector.extract_strided_slice %1 {offsets = [0, 1792], sizes = [128, 256], strides = [1, 1]} : vector<128x2048xbf16> to vector<128x256xbf16>
    %8 = arith.extf %7 : vector<128x256xbf16> to vector<128x256xf32>
    %c0_i32 = arith.constant 0 : i32
    %9 = vector.broadcast %c0_i32 : i32 to vector<128x256xi32>
    %10 = arith.cmpi eq, %4, %9 : vector<128x256xi32>
    %11 = vector.extract_strided_slice %6 {offsets = [0, 0], sizes = [1, 256], strides = [1, 1]} : vector<8x256xf32> to vector<1x256xf32>
    %c1_i32 = arith.constant 1 : i32
    %12 = tpu.dynamic_rotate %8 by %c1_i32 dim 0 : vector<128x256xf32>, i32 -> vector<128x256xf32>
    %13 = vector.shape_cast %11 : vector<1x256xf32> to vector<1x256xf32>
    %14 = vector.broadcast %13 : vector<1x256xf32> to vector<128x256xf32>
    %15 = arith.select %10, %14, %12 : vector<128x256xi1>, vector<128x256xf32>
    %16 = vector.extract_strided_slice %1 {offsets = [0, 0], sizes = [128, 256], strides = [1, 1]} : vector<128x2048xbf16> to vector<128x256xbf16>
    %17 = arith.extf %16 : vector<128x256xbf16> to vector<128x256xf32>
    %c127_i32 = arith.constant 127 : i32
    %18 = vector.broadcast %c127_i32 : i32 to vector<128x256xi32>
    %19 = arith.cmpi eq, %4, %18 : vector<128x256xi32>
    %20 = vector.extract_strided_slice %6 {offsets = [1, 0], sizes = [1, 256], strides = [1, 1]} : vector<8x256xf32> to vector<1x256xf32>
    %c127_i32_8 = arith.constant 127 : i32
    %21 = tpu.dynamic_rotate %17 by %c127_i32_8 dim 0 : vector<128x256xf32>, i32 -> vector<128x256xf32>
    %22 = vector.shape_cast %20 : vector<1x256xf32> to vector<1x256xf32>
    %23 = vector.broadcast %22 : vector<1x256xf32> to vector<128x256xf32>
    %24 = arith.select %19, %23, %21 : vector<128x256xi1>, vector<128x256xf32>
    %25 = arith.truncf %15 : vector<128x256xf32> to vector<128x256xbf16>
    %c0_9 = arith.constant 0 : index
    %c0_10 = arith.constant 0 : index
    %26 = vector.load %arg5[%c0_9, %c0_10] : memref<256x128xbf16, #tpu.memory_space<vmem>>, vector<256x128xbf16>
    %cst_11 = arith.constant dense<0.000000e+00> : vector<128x128xf32>
    %27 = tpu.matmul %25, %26, %cst_11 {dimension_numbers = #tpu.dot_dimension_numbers<[1], [0], [0], [1], [0, 0, 1, 1], [], []>} : vector<128x256xbf16>, vector<256x128xbf16>, vector<128x128xf32> -> vector<128x128xf32>
    %28 = arith.addf %3, %27 : vector<128x128xf32>
    %29 = arith.truncf %24 : vector<128x256xf32> to vector<128x256xbf16>
    %c0_12 = arith.constant 0 : index
    %c0_13 = arith.constant 0 : index
    %30 = vector.load %arg6[%c0_12, %c0_13] : memref<256x128xbf16, #tpu.memory_space<vmem>>, vector<256x128xbf16>
    %cst_14 = arith.constant dense<0.000000e+00> : vector<128x128xf32>
    %31 = tpu.matmul %29, %30, %cst_14 {dimension_numbers = #tpu.dot_dimension_numbers<[1], [0], [0], [1], [0, 0, 1, 1], [], []>} : vector<128x256xbf16>, vector<256x128xbf16>, vector<128x128xf32> -> vector<128x128xf32>
    %32 = arith.addf %28, %31 : vector<128x128xf32>
    %c0_15 = arith.constant 0 : index
    %c0_16 = arith.constant 0 : index
    %33 = vector.load %arg7[%c0_15, %c0_16] : memref<1x128xf32, #tpu.memory_space<vmem>>, vector<1x128xf32>
    %34 = vector.broadcast %33 : vector<1x128xf32> to vector<128x128xf32>
    %35 = arith.addf %32, %34 : vector<128x128xf32>
    %cst_17 = arith.constant 0.000000e+00 : f32
    %36 = vector.broadcast %cst_17 : f32 to vector<128x128xf32>
    %37 = arith.cmpf oge, %35, %36 : vector<128x128xf32>
    %cst_18 = arith.constant 1.000000e-01 : f32
    %38 = vector.broadcast %cst_18 : f32 to vector<128x128xf32>
    %39 = arith.mulf %38, %35 : vector<128x128xf32>
    %40 = arith.select %37, %35, %39 : vector<128x128xi1>, vector<128x128xf32>
    %c128_i32 = arith.constant 128 : i32
    %41 = arith.muli %arg1, %c128_i32 : i32
    %42 = tpu.assume_multiple %41, 128 : i32
    %43 = arith.index_cast %42 : i32 to index
    %c0_19 = arith.constant 0 : index
    %44 = vector.load %arg15[%43, %c0_19] : memref<128x128xf32, #tpu.memory_space<vmem>>, vector<128x128xf32>
    tpu.vector_store %arg15[%43, %c0_19], %40 {strides = array<i32>} : memref<128x128xf32, #tpu.memory_space<vmem>>, vector<128x128xf32>,
    %c0_i32_20 = arith.constant 0 : i32
    %45 = arith.cmpi eq, %arg1, %c0_i32_20 : i32
    %46 = arith.extui %45 : i1 to i32
    %c0_i32_21 = arith.constant 0 : i32
    %47 = arith.cmpi ne, %46, %c0_i32_21 : i32
    scf.if %47 {
      %48 = tpu.iota {dimensions = array<i32: 0>} : vector<128x128xi32>
      %c0_22 = arith.constant 0 : index
      %c0_23 = arith.constant 0 : index
      %49 = vector.load %arg15[%c0_22, %c0_23] : memref<128x128xf32, #tpu.memory_space<vmem>>, vector<128x128xf32>
      %c0_24 = arith.constant 0 : index
      %c0_25 = arith.constant 0 : index
      %50 = vector.load %arg8[%c0_24, %c0_25] : memref<896x128xbf16, #tpu.memory_space<vmem>>, vector<896x128xbf16>
      %c0_26 = arith.constant 0 : index
      %c0_27 = arith.constant 0 : index
      %51 = vector.load %arg9[%c0_26, %c0_27] : memref<1x128xf32, #tpu.memory_space<vmem>>, vector<1x128xf32>
      %c3_i32 = arith.constant 3 : i32
      %52 = tpu.dynamic_rotate %49 by %c3_i32 dim 0 : vector<128x128xf32>, i32 -> vector<128x128xf32>
      %c3_i32_28 = arith.constant 3 : i32
      %53 = vector.broadcast %c3_i32_28 : i32 to vector<128x128xi32>
      %54 = arith.cmpi slt, %48, %53 : vector<128x128xi32>
      %cst_29 = arith.constant 0.000000e+00 : f32
      %55 = vector.broadcast %cst_29 : f32 to vector<128x128xf32>
      %56 = arith.select %54, %55, %52 : vector<128x128xi1>, vector<128x128xf32>
      %57 = arith.truncf %56 : vector<128x128xf32> to vector<128x128xbf16>
      %c2_i32 = arith.constant 2 : i32
      %58 = tpu.dynamic_rotate %49 by %c2_i32 dim 0 : vector<128x128xf32>, i32 -> vector<128x128xf32>
      %c2_i32_30 = arith.constant 2 : i32
      %59 = vector.broadcast %c2_i32_30 : i32 to vector<128x128xi32>
      %60 = arith.cmpi slt, %48, %59 : vector<128x128xi32>
      %cst_31 = arith.constant 0.000000e+00 : f32
      %61 = vector.broadcast %cst_31 : f32 to vector<128x128xf32>
      %62 = arith.select %60, %61, %58 : vector<128x128xi1>, vector<128x128xf32>
      %63 = arith.truncf %62 : vector<128x128xf32> to vector<128x128xbf16>
      %c1_i32_32 = arith.constant 1 : i32
      %64 = tpu.dynamic_rotate %49 by %c1_i32_32 dim 0 : vector<128x128xf32>, i32 -> vector<128x128xf32>
      %c1_i32_33 = arith.constant 1 : i32
      %65 = vector.broadcast %c1_i32_33 : i32 to vector<128x128xi32>
      %66 = arith.cmpi slt, %48, %65 : vector<128x128xi32>
      %cst_34 = arith.constant 0.000000e+00 : f32
      %67 = vector.broadcast %cst_34 : f32 to vector<128x128xf32>
      %68 = arith.select %66, %67, %64 : vector<128x128xi1>, vector<128x128xf32>
      %69 = arith.truncf %68 : vector<128x128xf32> to vector<128x128xbf16>
      %70 = arith.truncf %49 : vector<128x128xf32> to vector<128x128xbf16>
      %c127_i32_35 = arith.constant 127 : i32
      %71 = tpu.dynamic_rotate %49 by %c127_i32_35 dim 0 : vector<128x128xf32>, i32 -> vector<128x128xf32>
      %c127_i32_36 = arith.constant 127 : i32
      %72 = vector.broadcast %c127_i32_36 : i32 to vector<128x128xi32>
      %73 = arith.cmpi sge, %48, %72 : vector<128x128xi32>
      %cst_37 = arith.constant 0.000000e+00 : f32
      %74 = vector.broadcast %cst_37 : f32 to vector<128x128xf32>
      %75 = arith.select %73, %74, %71 : vector<128x128xi1>, vector<128x128xf32>
      %76 = arith.truncf %75 : vector<128x128xf32> to vector<128x128xbf16>
      %c126_i32 = arith.constant 126 : i32
      %77 = tpu.dynamic_rotate %49 by %c126_i32 dim 0 : vector<128x128xf32>, i32 -> vector<128x128xf32>
      %c126_i32_38 = arith.constant 126 : i32
      %78 = vector.broadcast %c126_i32_38 : i32 to vector<128x128xi32>
      %79 = arith.cmpi sge, %48, %78 : vector<128x128xi32>
      %cst_39 = arith.constant 0.000000e+00 : f32
      %80 = vector.broadcast %cst_39 : f32 to vector<128x128xf32>
      %81 = arith.select %79, %80, %77 : vector<128x128xi1>, vector<128x128xf32>
      %82 = arith.truncf %81 : vector<128x128xf32> to vector<128x128xbf16>
      %c125_i32 = arith.constant 125 : i32
      %83 = tpu.dynamic_rotate %49 by %c125_i32 dim 0 : vector<128x128xf32>, i32 -> vector<128x128xf32>
      %c125_i32_40 = arith.constant 125 : i32
      %84 = vector.broadcast %c125_i32_40 : i32 to vector<128x128xi32>
      %85 = arith.cmpi sge, %48, %84 : vector<128x128xi32>
      %cst_41 = arith.constant 0.000000e+00 : f32
      %86 = vector.broadcast %cst_41 : f32 to vector<128x128xf32>
      %87 = arith.select %85, %86, %83 : vector<128x128xi1>, vector<128x128xf32>
      %88 = arith.truncf %87 : vector<128x128xf32> to vector<128x128xbf16>
      %89 = tpu.concatenate %57, %63, %69, %70, %76, %82, %88 in 1 : vector<128x128xbf16>, vector<128x128xbf16>, vector<128x128xbf16>, vector<128x128xbf16>, vector<128x128xbf16>, vector<128x128xbf16>, vector<128x128xbf16> -> vector<128x896xbf16>
      %cst_42 = arith.constant dense<0.000000e+00> : vector<128x128xf32>
      %90 = tpu.matmul %89, %50, %cst_42 {dimension_numbers = #tpu.dot_dimension_numbers<[1], [0], [0], [1], [0, 0, 1, 1], [], []>} : vector<128x896xbf16>, vector<896x128xbf16>, vector<128x128xf32> -> vector<128x128xf32>
      %91 = vector.broadcast %51 : vector<1x128xf32> to vector<128x128xf32>
      %92 = arith.addf %90, %91 : vector<128x128xf32>
      %c127_i32_43 = arith.constant 127 : i32
      %93 = tpu.dynamic_rotate %92 by %c127_i32_43 dim 0 : vector<128x128xf32>, i32 -> vector<128x128xf32>
      %c127_i32_44 = arith.constant 127 : i32
      %94 = vector.broadcast %c127_i32_44 : i32 to vector<128x128xi32>
      %95 = arith.cmpi sge, %48, %94 : vector<128x128xi32>
      %cst_45 = arith.constant 0.000000e+00 : f32
      %96 = vector.broadcast %cst_45 : f32 to vector<128x128xf32>
      %97 = arith.select %95, %96, %93 : vector<128x128xi1>, vector<128x128xf32>
      %98 = arith.maximumf %92, %97 : vector<128x128xf32>
      %c0_46 = arith.constant 0 : index
      %c0_47 = arith.constant 0 : index
      %99 = vector.load %arg15[%c0_46, %c0_47] : memref<128x128xf32, #tpu.memory_space<vmem>>, vector<128x128xf32>
      tpu.vector_store %arg15[%c0_46, %c0_47], %98 {strides = array<i32>} : memref<128x128xf32, #tpu.memory_space<vmem>>, vector<128x128xf32>,
      %c0_48 = arith.constant 0 : index
      %c0_49 = arith.constant 0 : index
      %100 = tpu.strided_load %arg15[%c0_48, %c0_49] {strides = array<i32: 2, 1>} : memref<128x128xf32, #tpu.memory_space<vmem>>, vector<64x128xf32>
      %101 = tpu.iota {dimensions = array<i32: 0>} : vector<64x128xi32>
      %c0_50 = arith.constant 0 : index
      %c0_51 = arith.constant 0 : index
      %c0_52 = arith.constant 0 : index
      %102 = vector.load %arg10[%c0_50, %c0_51, %c0_52] : memref<12x640x128xbf16, #tpu.memory_space<vmem>>, vector<1x640x128xbf16>
      %103 = vector.shape_cast %102 : vector<1x640x128xbf16> to vector<640x128xbf16>
      %c0_53 = arith.constant 0 : index
      %c0_54 = arith.constant 0 : index
      %c0_55 = arith.constant 0 : index
      %104 = vector.load %arg11[%c0_53, %c0_54, %c0_55] : memref<12x1x128xf32, #tpu.memory_space<vmem>>, vector<1x1x128xf32>
      %105 = vector.shape_cast %104 : vector<1x1x128xf32> to vector<1x128xf32>
      %c2_i32_56 = arith.constant 2 : i32
      %106 = tpu.dynamic_rotate %100 by %c2_i32_56 dim 0 : vector<64x128xf32>, i32 -> vector<64x128xf32>
      %c2_i32_57 = arith.constant 2 : i32
      %107 = vector.broadcast %c2_i32_57 : i32 to vector<64x128xi32>
      %108 = arith.cmpi slt, %101, %107 : vector<64x128xi32>
      %cst_58 = arith.constant 0.000000e+00 : f32
      %109 = vector.broadcast %cst_58 : f32 to vector<64x128xf32>
      %110 = arith.select %108, %109, %106 : vector<64x128xi1>, vector<64x128xf32>
      %111 = arith.truncf %110 : vector<64x128xf32> to vector<64x128xbf16>
      %c1_i32_59 = arith.constant 1 : i32
      %112 = tpu.dynamic_rotate %100 by %c1_i32_59 dim 0 : vector<64x128xf32>, i32 -> vector<64x128xf32>
      %c1_i32_60 = arith.constant 1 : i32
      %113 = vector.broadcast %c1_i32_60 : i32 to vector<64x128xi32>
      %114 = arith.cmpi slt, %101, %113 : vector<64x128xi32>
      %cst_61 = arith.constant 0.000000e+00 : f32
      %115 = vector.broadcast %cst_61 : f32 to vector<64x128xf32>
      %116 = arith.select %114, %115, %112 : vector<64x128xi1>, vector<64x128xf32>
      %117 = arith.truncf %116 : vector<64x128xf32> to vector<64x128xbf16>
      %118 = arith.truncf %100 : vector<64x128xf32> to vector<64x128xbf16>
      %c63_i32 = arith.constant 63 : i32
      %119 = tpu.dynamic_rotate %100 by %c63_i32 dim 0 : vector<64x128xf32>, i32 -> vector<64x128xf32>
      %c63_i32_62 = arith.constant 63 : i32
      %120 = vector.broadcast %c63_i32_62 : i32 to vector<64x128xi32>
      %121 = arith.cmpi sge, %101, %120 : vector<64x128xi32>
      %cst_63 = arith.constant 0.000000e+00 : f32
      %122 = vector.broadcast %cst_63 : f32 to vector<64x128xf32>
      %123 = arith.select %121, %122, %119 : vector<64x128xi1>, vector<64x128xf32>
      %124 = arith.truncf %123 : vector<64x128xf32> to vector<64x128xbf16>
      %c62_i32 = arith.constant 62 : i32
      %125 = tpu.dynamic_rotate %100 by %c62_i32 dim 0 : vector<64x128xf32>, i32 -> vector<64x128xf32>
      %c62_i32_64 = arith.constant 62 : i32
      %126 = vector.broadcast %c62_i32_64 : i32 to vector<64x128xi32>
      %127 = arith.cmpi sge, %101, %126 : vector<64x128xi32>
      %cst_65 = arith.constant 0.000000e+00 : f32
      %128 = vector.broadcast %cst_65 : f32 to vector<64x128xf32>
      %129 = arith.select %127, %128, %125 : vector<64x128xi1>, vector<64x128xf32>
      %130 = arith.truncf %129 : vector<64x128xf32> to vector<64x128xbf16>
      %131 = tpu.concatenate %111, %117, %118, %124, %130 in 1 : vector<64x128xbf16>, vector<64x128xbf16>, vector<64x128xbf16>, vector<64x128xbf16>, vector<64x128xbf16> -> vector<64x640xbf16>
      %cst_66 = arith.constant dense<0.000000e+00> : vector<64x128xf32>
      %132 = tpu.matmul %131, %103, %cst_66 {dimension_numbers = #tpu.dot_dimension_numbers<[1], [0], [0], [1], [0, 0, 1, 1], [], []>} : vector<64x640xbf16>, vector<640x128xbf16>, vector<64x128xf32> -> vector<64x128xf32>
      %133 = vector.broadcast %105 : vector<1x128xf32> to vector<64x128xf32>
      %134 = arith.addf %132, %133 : vector<64x128xf32>
      %cst_67 = arith.constant 0.000000e+00 : f32
      %135 = vector.broadcast %cst_67 : f32 to vector<64x128xf32>
      %136 = arith.cmpf oge, %134, %135 : vector<64x128xf32>
      %cst_68 = arith.constant 1.000000e-01 : f32
      %137 = vector.broadcast %cst_68 : f32 to vector<64x128xf32>
      %138 = arith.mulf %137, %134 : vector<64x128xf32>
      %139 = arith.select %136, %134, %138 : vector<64x128xi1>, vector<64x128xf32>
      %c1 = arith.constant 1 : index
      %c0_69 = arith.constant 0 : index
      %c0_70 = arith.constant 0 : index
      %140 = vector.load %arg10[%c1, %c0_69, %c0_70] : memref<12x640x128xbf16, #tpu.memory_space<vmem>>, vector<1x640x128xbf16>
      %141 = vector.shape_cast %140 : vector<1x640x128xbf16> to vector<640x128xbf16>
      %c1_71 = arith.constant 1 : index
      %c0_72 = arith.constant 0 : index
      %c0_73 = arith.constant 0 : index
      %142 = vector.load %arg11[%c1_71, %c0_72, %c0_73] : memref<12x1x128xf32, #tpu.memory_space<vmem>>, vector<1x1x128xf32>
      %143 = vector.shape_cast %142 : vector<1x1x128xf32> to vector<1x128xf32>
      %c2_i32_74 = arith.constant 2 : i32
      %144 = tpu.dynamic_rotate %139 by %c2_i32_74 dim 0 : vector<64x128xf32>, i32 -> vector<64x128xf32>
      %c2_i32_75 = arith.constant 2 : i32
      %145 = vector.broadcast %c2_i32_75 : i32 to vector<64x128xi32>
      %146 = arith.cmpi slt, %101, %145 : vector<64x128xi32>
      %cst_76 = arith.constant 0.000000e+00 : f32
      %147 = vector.broadcast %cst_76 : f32 to vector<64x128xf32>
      %148 = arith.select %146, %147, %144 : vector<64x128xi1>, vector<64x128xf32>
      %149 = arith.truncf %148 : vector<64x128xf32> to vector<64x128xbf16>
      %c1_i32_77 = arith.constant 1 : i32
      %150 = tpu.dynamic_rotate %139 by %c1_i32_77 dim 0 : vector<64x128xf32>, i32 -> vector<64x128xf32>
      %c1_i32_78 = arith.constant 1 : i32
      %151 = vector.broadcast %c1_i32_78 : i32 to vector<64x128xi32>
      %152 = arith.cmpi slt, %101, %151 : vector<64x128xi32>
      %cst_79 = arith.constant 0.000000e+00 : f32
      %153 = vector.broadcast %cst_79 : f32 to vector<64x128xf32>
      %154 = arith.select %152, %153, %150 : vector<64x128xi1>, vector<64x128xf32>
      %155 = arith.truncf %154 : vector<64x128xf32> to vector<64x128xbf16>
      %156 = arith.truncf %139 : vector<64x128xf32> to vector<64x128xbf16>
      %c63_i32_80 = arith.constant 63 : i32
      %157 = tpu.dynamic_rotate %139 by %c63_i32_80 dim 0 : vector<64x128xf32>, i32 -> vector<64x128xf32>
      %c63_i32_81 = arith.constant 63 : i32
      %158 = vector.broadcast %c63_i32_81 : i32 to vector<64x128xi32>
      %159 = arith.cmpi sge, %101, %158 : vector<64x128xi32>
      %cst_82 = arith.constant 0.000000e+00 : f32
      %160 = vector.broadcast %cst_82 : f32 to vector<64x128xf32>
      %161 = arith.select %159, %160, %157 : vector<64x128xi1>, vector<64x128xf32>
      %162 = arith.truncf %161 : vector<64x128xf32> to vector<64x128xbf16>
      %c62_i32_83 = arith.constant 62 : i32
      %163 = tpu.dynamic_rotate %139 by %c62_i32_83 dim 0 : vector<64x128xf32>, i32 -> vector<64x128xf32>
      %c62_i32_84 = arith.constant 62 : i32
      %164 = vector.broadcast %c62_i32_84 : i32 to vector<64x128xi32>
      %165 = arith.cmpi sge, %101, %164 : vector<64x128xi32>
      %cst_85 = arith.constant 0.000000e+00 : f32
      %166 = vector.broadcast %cst_85 : f32 to vector<64x128xf32>
      %167 = arith.select %165, %166, %163 : vector<64x128xi1>, vector<64x128xf32>
      %168 = arith.truncf %167 : vector<64x128xf32> to vector<64x128xbf16>
      %169 = tpu.concatenate %149, %155, %156, %162, %168 in 1 : vector<64x128xbf16>, vector<64x128xbf16>, vector<64x128xbf16>, vector<64x128xbf16>, vector<64x128xbf16> -> vector<64x640xbf16>
      %cst_86 = arith.constant dense<0.000000e+00> : vector<64x128xf32>
      %170 = tpu.matmul %169, %141, %cst_86 {dimension_numbers = #tpu.dot_dimension_numbers<[1], [0], [0], [1], [0, 0, 1, 1], [], []>} : vector<64x640xbf16>, vector<640x128xbf16>, vector<64x128xf32> -> vector<64x128xf32>
      %171 = vector.broadcast %143 : vector<1x128xf32> to vector<64x128xf32>
      %172 = arith.addf %170, %171 : vector<64x128xf32>
      %cst_87 = arith.constant 0.000000e+00 : f32
      %173 = vector.broadcast %cst_87 : f32 to vector<64x128xf32>
      %174 = arith.cmpf oge, %172, %173 : vector<64x128xf32>
      %cst_88 = arith.constant 1.000000e-01 : f32
      %175 = vector.broadcast %cst_88 : f32 to vector<64x128xf32>
      %176 = arith.mulf %175, %172 : vector<64x128xf32>
      %177 = arith.select %174, %172, %176 : vector<64x128xi1>, vector<64x128xf32>
      %c63_i32_89 = arith.constant 63 : i32
      %178 = tpu.dynamic_rotate %177 by %c63_i32_89 dim 0 : vector<64x128xf32>, i32 -> vector<64x128xf32>
      %c63_i32_90 = arith.constant 63 : i32
      %179 = vector.broadcast %c63_i32_90 : i32 to vector<64x128xi32>
      %180 = arith.cmpi sge, %101, %179 : vector<64x128xi32>
      %cst_91 = arith.constant 0.000000e+00 : f32
      %181 = vector.broadcast %cst_91 : f32 to vector<64x128xf32>
      %182 = arith.select %180, %181, %178 : vector<64x128xi1>, vector<64x128xf32>
      %183 = arith.maximumf %177, %182 : vector<64x128xf32>
      %c0_92 = arith.constant 0 : index
      %c0_93 = arith.constant 0 : index
      %184 = vector.load %arg15[%c0_92, %c0_93] : memref<128x128xf32, #tpu.memory_space<vmem>>, vector<64x128xf32>
      tpu.vector_store %arg15[%c0_92, %c0_93], %183 {strides = array<i32>} : memref<128x128xf32, #tpu.memory_space<vmem>>, vector<64x128xf32>,
      %c0_94 = arith.constant 0 : index
      %c0_95 = arith.constant 0 : index
      %185 = tpu.strided_load %arg15[%c0_94, %c0_95] {strides = array<i32: 2, 1>} : memref<128x128xf32, #tpu.memory_space<vmem>>, vector<32x128xf32>
      %186 = tpu.iota {dimensions = array<i32: 0>} : vector<32x128xi32>
      %c2 = arith.constant 2 : index
      %c0_96 = arith.constant 0 : index
      %c0_97 = arith.constant 0 : index
      %187 = vector.load %arg10[%c2, %c0_96, %c0_97] : memref<12x640x128xbf16, #tpu.memory_space<vmem>>, vector<1x640x128xbf16>
      %188 = vector.shape_cast %187 : vector<1x640x128xbf16> to vector<640x128xbf16>
      %c2_98 = arith.constant 2 : index
      %c0_99 = arith.constant 0 : index
      %c0_100 = arith.constant 0 : index
      %189 = vector.load %arg11[%c2_98, %c0_99, %c0_100] : memref<12x1x128xf32, #tpu.memory_space<vmem>>, vector<1x1x128xf32>
      %190 = vector.shape_cast %189 : vector<1x1x128xf32> to vector<1x128xf32>
      %c2_i32_101 = arith.constant 2 : i32
      %191 = tpu.dynamic_rotate %185 by %c2_i32_101 dim 0 : vector<32x128xf32>, i32 -> vector<32x128xf32>
      %c2_i32_102 = arith.constant 2 : i32
      %192 = vector.broadcast %c2_i32_102 : i32 to vector<32x128xi32>
      %193 = arith.cmpi slt, %186, %192 : vector<32x128xi32>
      %cst_103 = arith.constant 0.000000e+00 : f32
      %194 = vector.broadcast %cst_103 : f32 to vector<32x128xf32>
      %195 = arith.select %193, %194, %191 : vector<32x128xi1>, vector<32x128xf32>
      %196 = arith.truncf %195 : vector<32x128xf32> to vector<32x128xbf16>
      %c1_i32_104 = arith.constant 1 : i32
      %197 = tpu.dynamic_rotate %185 by %c1_i32_104 dim 0 : vector<32x128xf32>, i32 -> vector<32x128xf32>
      %c1_i32_105 = arith.constant 1 : i32
      %198 = vector.broadcast %c1_i32_105 : i32 to vector<32x128xi32>
      %199 = arith.cmpi slt, %186, %198 : vector<32x128xi32>
      %cst_106 = arith.constant 0.000000e+00 : f32
      %200 = vector.broadcast %cst_106 : f32 to vector<32x128xf32>
      %201 = arith.select %199, %200, %197 : vector<32x128xi1>, vector<32x128xf32>
      %202 = arith.truncf %201 : vector<32x128xf32> to vector<32x128xbf16>
      %203 = arith.truncf %185 : vector<32x128xf32> to vector<32x128xbf16>
      %c31_i32 = arith.constant 31 : i32
      %204 = tpu.dynamic_rotate %185 by %c31_i32 dim 0 : vector<32x128xf32>, i32 -> vector<32x128xf32>
      %c31_i32_107 = arith.constant 31 : i32
      %205 = vector.broadcast %c31_i32_107 : i32 to vector<32x128xi32>
      %206 = arith.cmpi sge, %186, %205 : vector<32x128xi32>
      %cst_108 = arith.constant 0.000000e+00 : f32
      %207 = vector.broadcast %cst_108 : f32 to vector<32x128xf32>
      %208 = arith.select %206, %207, %204 : vector<32x128xi1>, vector<32x128xf32>
      %209 = arith.truncf %208 : vector<32x128xf32> to vector<32x128xbf16>
      %c30_i32 = arith.constant 30 : i32
      %210 = tpu.dynamic_rotate %185 by %c30_i32 dim 0 : vector<32x128xf32>, i32 -> vector<32x128xf32>
      %c30_i32_109 = arith.constant 30 : i32
      %211 = vector.broadcast %c30_i32_109 : i32 to vector<32x128xi32>
      %212 = arith.cmpi sge, %186, %211 : vector<32x128xi32>
      %cst_110 = arith.constant 0.000000e+00 : f32
      %213 = vector.broadcast %cst_110 : f32 to vector<32x128xf32>
      %214 = arith.select %212, %213, %210 : vector<32x128xi1>, vector<32x128xf32>
      %215 = arith.truncf %214 : vector<32x128xf32> to vector<32x128xbf16>
      %216 = tpu.concatenate %196, %202, %203, %209, %215 in 1 : vector<32x128xbf16>, vector<32x128xbf16>, vector<32x128xbf16>, vector<32x128xbf16>, vector<32x128xbf16> -> vector<32x640xbf16>
      %cst_111 = arith.constant dense<0.000000e+00> : vector<32x128xf32>
      %217 = tpu.matmul %216, %188, %cst_111 {dimension_numbers = #tpu.dot_dimension_numbers<[1], [0], [0], [1], [0, 0, 1, 1], [], []>} : vector<32x640xbf16>, vector<640x128xbf16>, vector<32x128xf32> -> vector<32x128xf32>
      %218 = vector.broadcast %190 : vector<1x128xf32> to vector<32x128xf32>
      %219 = arith.addf %217, %218 : vector<32x128xf32>
      %cst_112 = arith.constant 0.000000e+00 : f32
      %220 = vector.broadcast %cst_112 : f32 to vector<32x128xf32>
      %221 = arith.cmpf oge, %219, %220 : vector<32x128xf32>
      %cst_113 = arith.constant 1.000000e-01 : f32
      %222 = vector.broadcast %cst_113 : f32 to vector<32x128xf32>
      %223 = arith.mulf %222, %219 : vector<32x128xf32>
      %224 = arith.select %221, %219, %223 : vector<32x128xi1>, vector<32x128xf32>
      %c3 = arith.constant 3 : index
      %c0_114 = arith.constant 0 : index
      %c0_115 = arith.constant 0 : index
      %225 = vector.load %arg10[%c3, %c0_114, %c0_115] : memref<12x640x128xbf16, #tpu.memory_space<vmem>>, vector<1x640x128xbf16>
      %226 = vector.shape_cast %225 : vector<1x640x128xbf16> to vector<640x128xbf16>
      %c3_116 = arith.constant 3 : index
      %c0_117 = arith.constant 0 : index
      %c0_118 = arith.constant 0 : index
      %227 = vector.load %arg11[%c3_116, %c0_117, %c0_118] : memref<12x1x128xf32, #tpu.memory_space<vmem>>, vector<1x1x128xf32>
      %228 = vector.shape_cast %227 : vector<1x1x128xf32> to vector<1x128xf32>
      %c2_i32_119 = arith.constant 2 : i32
      %229 = tpu.dynamic_rotate %224 by %c2_i32_119 dim 0 : vector<32x128xf32>, i32 -> vector<32x128xf32>
      %c2_i32_120 = arith.constant 2 : i32
      %230 = vector.broadcast %c2_i32_120 : i32 to vector<32x128xi32>
      %231 = arith.cmpi slt, %186, %230 : vector<32x128xi32>
      %cst_121 = arith.constant 0.000000e+00 : f32
      %232 = vector.broadcast %cst_121 : f32 to vector<32x128xf32>
      %233 = arith.select %231, %232, %229 : vector<32x128xi1>, vector<32x128xf32>
      %234 = arith.truncf %233 : vector<32x128xf32> to vector<32x128xbf16>
      %c1_i32_122 = arith.constant 1 : i32
      %235 = tpu.dynamic_rotate %224 by %c1_i32_122 dim 0 : vector<32x128xf32>, i32 -> vector<32x128xf32>
      %c1_i32_123 = arith.constant 1 : i32
      %236 = vector.broadcast %c1_i32_123 : i32 to vector<32x128xi32>
      %237 = arith.cmpi slt, %186, %236 : vector<32x128xi32>
      %cst_124 = arith.constant 0.000000e+00 : f32
      %238 = vector.broadcast %cst_124 : f32 to vector<32x128xf32>
      %239 = arith.select %237, %238, %235 : vector<32x128xi1>, vector<32x128xf32>
      %240 = arith.truncf %239 : vector<32x128xf32> to vector<32x128xbf16>
      %241 = arith.truncf %224 : vector<32x128xf32> to vector<32x128xbf16>
      %c31_i32_125 = arith.constant 31 : i32
      %242 = tpu.dynamic_rotate %224 by %c31_i32_125 dim 0 : vector<32x128xf32>, i32 -> vector<32x128xf32>
      %c31_i32_126 = arith.constant 31 : i32
      %243 = vector.broadcast %c31_i32_126 : i32 to vector<32x128xi32>
      %244 = arith.cmpi sge, %186, %243 : vector<32x128xi32>
      %cst_127 = arith.constant 0.000000e+00 : f32
      %245 = vector.broadcast %cst_127 : f32 to vector<32x128xf32>
      %246 = arith.select %244, %245, %242 : vector<32x128xi1>, vector<32x128xf32>
      %247 = arith.truncf %246 : vector<32x128xf32> to vector<32x128xbf16>
      %c30_i32_128 = arith.constant 30 : i32
      %248 = tpu.dynamic_rotate %224 by %c30_i32_128 dim 0 : vector<32x128xf32>, i32 -> vector<32x128xf32>
      %c30_i32_129 = arith.constant 30 : i32
      %249 = vector.broadcast %c30_i32_129 : i32 to vector<32x128xi32>
      %250 = arith.cmpi sge, %186, %249 : vector<32x128xi32>
      %cst_130 = arith.constant 0.000000e+00 : f32
      %251 = vector.broadcast %cst_130 : f32 to vector<32x128xf32>
      %252 = arith.select %250, %251, %248 : vector<32x128xi1>, vector<32x128xf32>
      %253 = arith.truncf %252 : vector<32x128xf32> to vector<32x128xbf16>
      %254 = tpu.concatenate %234, %240, %241, %247, %253 in 1 : vector<32x128xbf16>, vector<32x128xbf16>, vector<32x128xbf16>, vector<32x128xbf16>, vector<32x128xbf16> -> vector<32x640xbf16>
      %cst_131 = arith.constant dense<0.000000e+00> : vector<32x128xf32>
      %255 = tpu.matmul %254, %226, %cst_131 {dimension_numbers = #tpu.dot_dimension_numbers<[1], [0], [0], [1], [0, 0, 1, 1], [], []>} : vector<32x640xbf16>, vector<640x128xbf16>, vector<32x128xf32> -> vector<32x128xf32>
      %256 = vector.broadcast %228 : vector<1x128xf32> to vector<32x128xf32>
      %257 = arith.addf %255, %256 : vector<32x128xf32>
      %cst_132 = arith.constant 0.000000e+00 : f32
      %258 = vector.broadcast %cst_132 : f32 to vector<32x128xf32>
      %259 = arith.cmpf oge, %257, %258 : vector<32x128xf32>
      %cst_133 = arith.constant 1.000000e-01 : f32
      %260 = vector.broadcast %cst_133 : f32 to vector<32x128xf32>
      %261 = arith.mulf %260, %257 : vector<32x128xf32>
      %262 = arith.select %259, %257, %261 : vector<32x128xi1>, vector<32x128xf32>
      %c31_i32_134 = arith.constant 31 : i32
      %263 = tpu.dynamic_rotate %262 by %c31_i32_134 dim 0 : vector<32x128xf32>, i32 -> vector<32x128xf32>
      %c31_i32_135 = arith.constant 31 : i32
      %264 = vector.broadcast %c31_i32_135 : i32 to vector<32x128xi32>
      %265 = arith.cmpi sge, %186, %264 : vector<32x128xi32>
      %cst_136 = arith.constant 0.000000e+00 : f32
      %266 = vector.broadcast %cst_136 : f32 to vector<32x128xf32>
      %267 = arith.select %265, %266, %263 : vector<32x128xi1>, vector<32x128xf32>
      %268 = arith.maximumf %262, %267 : vector<32x128xf32>
      %c0_137 = arith.constant 0 : index
      %c0_138 = arith.constant 0 : index
      %269 = vector.load %arg15[%c0_137, %c0_138] : memref<128x128xf32, #tpu.memory_space<vmem>>, vector<32x128xf32>
      tpu.vector_store %arg15[%c0_137, %c0_138], %268 {strides = array<i32>} : memref<128x128xf32, #tpu.memory_space<vmem>>, vector<32x128xf32>,
      %c0_139 = arith.constant 0 : index
      %c0_140 = arith.constant 0 : index
      %270 = tpu.strided_load %arg15[%c0_139, %c0_140] {strides = array<i32: 2, 1>} : memref<128x128xf32, #tpu.memory_space<vmem>>, vector<16x128xf32>
      %271 = tpu.iota {dimensions = array<i32: 0>} : vector<16x128xi32>
      %c4 = arith.constant 4 : index
      %c0_141 = arith.constant 0 : index
      %c0_142 = arith.constant 0 : index
      %272 = vector.load %arg10[%c4, %c0_141, %c0_142] : memref<12x640x128xbf16, #tpu.memory_space<vmem>>, vector<1x640x128xbf16>
      %273 = vector.shape_cast %272 : vector<1x640x128xbf16> to vector<640x128xbf16>
      %c4_143 = arith.constant 4 : index
      %c0_144 = arith.constant 0 : index
      %c0_145 = arith.constant 0 : index
      %274 = vector.load %arg11[%c4_143, %c0_144, %c0_145] : memref<12x1x128xf32, #tpu.memory_space<vmem>>, vector<1x1x128xf32>
      %275 = vector.shape_cast %274 : vector<1x1x128xf32> to vector<1x128xf32>
      %c2_i32_146 = arith.constant 2 : i32
      %276 = tpu.dynamic_rotate %270 by %c2_i32_146 dim 0 : vector<16x128xf32>, i32 -> vector<16x128xf32>
      %c2_i32_147 = arith.constant 2 : i32
      %277 = vector.broadcast %c2_i32_147 : i32 to vector<16x128xi32>
      %278 = arith.cmpi slt, %271, %277 : vector<16x128xi32>
      %cst_148 = arith.constant 0.000000e+00 : f32
      %279 = vector.broadcast %cst_148 : f32 to vector<16x128xf32>
      %280 = arith.select %278, %279, %276 : vector<16x128xi1>, vector<16x128xf32>
      %281 = arith.truncf %280 : vector<16x128xf32> to vector<16x128xbf16>
      %c1_i32_149 = arith.constant 1 : i32
      %282 = tpu.dynamic_rotate %270 by %c1_i32_149 dim 0 : vector<16x128xf32>, i32 -> vector<16x128xf32>
      %c1_i32_150 = arith.constant 1 : i32
      %283 = vector.broadcast %c1_i32_150 : i32 to vector<16x128xi32>
      %284 = arith.cmpi slt, %271, %283 : vector<16x128xi32>
      %cst_151 = arith.constant 0.000000e+00 : f32
      %285 = vector.broadcast %cst_151 : f32 to vector<16x128xf32>
      %286 = arith.select %284, %285, %282 : vector<16x128xi1>, vector<16x128xf32>
      %287 = arith.truncf %286 : vector<16x128xf32> to vector<16x128xbf16>
      %288 = arith.truncf %270 : vector<16x128xf32> to vector<16x128xbf16>
      %c15_i32 = arith.constant 15 : i32
      %289 = tpu.dynamic_rotate %270 by %c15_i32 dim 0 : vector<16x128xf32>, i32 -> vector<16x128xf32>
      %c15_i32_152 = arith.constant 15 : i32
      %290 = vector.broadcast %c15_i32_152 : i32 to vector<16x128xi32>
      %291 = arith.cmpi sge, %271, %290 : vector<16x128xi32>
      %cst_153 = arith.constant 0.000000e+00 : f32
      %292 = vector.broadcast %cst_153 : f32 to vector<16x128xf32>
      %293 = arith.select %291, %292, %289 : vector<16x128xi1>, vector<16x128xf32>
      %294 = arith.truncf %293 : vector<16x128xf32> to vector<16x128xbf16>
      %c14_i32 = arith.constant 14 : i32
      %295 = tpu.dynamic_rotate %270 by %c14_i32 dim 0 : vector<16x128xf32>, i32 -> vector<16x128xf32>
      %c14_i32_154 = arith.constant 14 : i32
      %296 = vector.broadcast %c14_i32_154 : i32 to vector<16x128xi32>
      %297 = arith.cmpi sge, %271, %296 : vector<16x128xi32>
      %cst_155 = arith.constant 0.000000e+00 : f32
      %298 = vector.broadcast %cst_155 : f32 to vector<16x128xf32>
      %299 = arith.select %297, %298, %295 : vector<16x128xi1>, vector<16x128xf32>
      %300 = arith.truncf %299 : vector<16x128xf32> to vector<16x128xbf16>
      %301 = tpu.concatenate %281, %287, %288, %294, %300 in 1 : vector<16x128xbf16>, vector<16x128xbf16>, vector<16x128xbf16>, vector<16x128xbf16>, vector<16x128xbf16> -> vector<16x640xbf16>
      %cst_156 = arith.constant dense<0.000000e+00> : vector<16x128xf32>
      %302 = tpu.matmul %301, %273, %cst_156 {dimension_numbers = #tpu.dot_dimension_numbers<[1], [0], [0], [1], [0, 0, 1, 1], [], []>} : vector<16x640xbf16>, vector<640x128xbf16>, vector<16x128xf32> -> vector<16x128xf32>
      %303 = vector.broadcast %275 : vector<1x128xf32> to vector<16x128xf32>
      %304 = arith.addf %302, %303 : vector<16x128xf32>
      %cst_157 = arith.constant 0.000000e+00 : f32
      %305 = vector.broadcast %cst_157 : f32 to vector<16x128xf32>
      %306 = arith.cmpf oge, %304, %305 : vector<16x128xf32>
      %cst_158 = arith.constant 1.000000e-01 : f32
      %307 = vector.broadcast %cst_158 : f32 to vector<16x128xf32>
      %308 = arith.mulf %307, %304 : vector<16x128xf32>
      %309 = arith.select %306, %304, %308 : vector<16x128xi1>, vector<16x128xf32>
      %c5 = arith.constant 5 : index
      %c0_159 = arith.constant 0 : index
      %c0_160 = arith.constant 0 : index
      %310 = vector.load %arg10[%c5, %c0_159, %c0_160] : memref<12x640x128xbf16, #tpu.memory_space<vmem>>, vector<1x640x128xbf16>
      %311 = vector.shape_cast %310 : vector<1x640x128xbf16> to vector<640x128xbf16>
      %c5_161 = arith.constant 5 : index
      %c0_162 = arith.constant 0 : index
      %c0_163 = arith.constant 0 : index
      %312 = vector.load %arg11[%c5_161, %c0_162, %c0_163] : memref<12x1x128xf32, #tpu.memory_space<vmem>>, vector<1x1x128xf32>
      %313 = vector.shape_cast %312 : vector<1x1x128xf32> to vector<1x128xf32>
      %c2_i32_164 = arith.constant 2 : i32
      %314 = tpu.dynamic_rotate %309 by %c2_i32_164 dim 0 : vector<16x128xf32>, i32 -> vector<16x128xf32>
      %c2_i32_165 = arith.constant 2 : i32
      %315 = vector.broadcast %c2_i32_165 : i32 to vector<16x128xi32>
      %316 = arith.cmpi slt, %271, %315 : vector<16x128xi32>
      %cst_166 = arith.constant 0.000000e+00 : f32
      %317 = vector.broadcast %cst_166 : f32 to vector<16x128xf32>
      %318 = arith.select %316, %317, %314 : vector<16x128xi1>, vector<16x128xf32>
      %319 = arith.truncf %318 : vector<16x128xf32> to vector<16x128xbf16>
      %c1_i32_167 = arith.constant 1 : i32
      %320 = tpu.dynamic_rotate %309 by %c1_i32_167 dim 0 : vector<16x128xf32>, i32 -> vector<16x128xf32>
      %c1_i32_168 = arith.constant 1 : i32
      %321 = vector.broadcast %c1_i32_168 : i32 to vector<16x128xi32>
      %322 = arith.cmpi slt, %271, %321 : vector<16x128xi32>
      %cst_169 = arith.constant 0.000000e+00 : f32
      %323 = vector.broadcast %cst_169 : f32 to vector<16x128xf32>
      %324 = arith.select %322, %323, %320 : vector<16x128xi1>, vector<16x128xf32>
      %325 = arith.truncf %324 : vector<16x128xf32> to vector<16x128xbf16>
      %326 = arith.truncf %309 : vector<16x128xf32> to vector<16x128xbf16>
      %c15_i32_170 = arith.constant 15 : i32
      %327 = tpu.dynamic_rotate %309 by %c15_i32_170 dim 0 : vector<16x128xf32>, i32 -> vector<16x128xf32>
      %c15_i32_171 = arith.constant 15 : i32
      %328 = vector.broadcast %c15_i32_171 : i32 to vector<16x128xi32>
      %329 = arith.cmpi sge, %271, %328 : vector<16x128xi32>
      %cst_172 = arith.constant 0.000000e+00 : f32
      %330 = vector.broadcast %cst_172 : f32 to vector<16x128xf32>
      %331 = arith.select %329, %330, %327 : vector<16x128xi1>, vector<16x128xf32>
      %332 = arith.truncf %331 : vector<16x128xf32> to vector<16x128xbf16>
      %c14_i32_173 = arith.constant 14 : i32
      %333 = tpu.dynamic_rotate %309 by %c14_i32_173 dim 0 : vector<16x128xf32>, i32 -> vector<16x128xf32>
      %c14_i32_174 = arith.constant 14 : i32
      %334 = vector.broadcast %c14_i32_174 : i32 to vector<16x128xi32>
      %335 = arith.cmpi sge, %271, %334 : vector<16x128xi32>
      %cst_175 = arith.constant 0.000000e+00 : f32
      %336 = vector.broadcast %cst_175 : f32 to vector<16x128xf32>
      %337 = arith.select %335, %336, %333 : vector<16x128xi1>, vector<16x128xf32>
      %338 = arith.truncf %337 : vector<16x128xf32> to vector<16x128xbf16>
      %339 = tpu.concatenate %319, %325, %326, %332, %338 in 1 : vector<16x128xbf16>, vector<16x128xbf16>, vector<16x128xbf16>, vector<16x128xbf16>, vector<16x128xbf16> -> vector<16x640xbf16>
      %cst_176 = arith.constant dense<0.000000e+00> : vector<16x128xf32>
      %340 = tpu.matmul %339, %311, %cst_176 {dimension_numbers = #tpu.dot_dimension_numbers<[1], [0], [0], [1], [0, 0, 1, 1], [], []>} : vector<16x640xbf16>, vector<640x128xbf16>, vector<16x128xf32> -> vector<16x128xf32>
      %341 = vector.broadcast %313 : vector<1x128xf32> to vector<16x128xf32>
      %342 = arith.addf %340, %341 : vector<16x128xf32>
      %cst_177 = arith.constant 0.000000e+00 : f32
      %343 = vector.broadcast %cst_177 : f32 to vector<16x128xf32>
      %344 = arith.cmpf oge, %342, %343 : vector<16x128xf32>
      %cst_178 = arith.constant 1.000000e-01 : f32
      %345 = vector.broadcast %cst_178 : f32 to vector<16x128xf32>
      %346 = arith.mulf %345, %342 : vector<16x128xf32>
      %347 = arith.select %344, %342, %346 : vector<16x128xi1>, vector<16x128xf32>
      %c15_i32_179 = arith.constant 15 : i32
      %348 = tpu.dynamic_rotate %347 by %c15_i32_179 dim 0 : vector<16x128xf32>, i32 -> vector<16x128xf32>
      %c15_i32_180 = arith.constant 15 : i32
      %349 = vector.broadcast %c15_i32_180 : i32 to vector<16x128xi32>
      %350 = arith.cmpi sge, %271, %349 : vector<16x128xi32>
      %cst_181 = arith.constant 0.000000e+00 : f32
      %351 = vector.broadcast %cst_181 : f32 to vector<16x128xf32>
      %352 = arith.select %350, %351, %348 : vector<16x128xi1>, vector<16x128xf32>
      %353 = arith.maximumf %347, %352 : vector<16x128xf32>
      %c0_182 = arith.constant 0 : index
      %c0_183 = arith.constant 0 : index
      %354 = vector.load %arg15[%c0_182, %c0_183] : memref<128x128xf32, #tpu.memory_space<vmem>>, vector<16x128xf32>
      tpu.vector_store %arg15[%c0_182, %c0_183], %353 {strides = array<i32>} : memref<128x128xf32, #tpu.memory_space<vmem>>, vector<16x128xf32>,
      %c0_184 = arith.constant 0 : index
      %c0_185 = arith.constant 0 : index
      %355 = tpu.strided_load %arg15[%c0_184, %c0_185] {strides = array<i32: 2, 1>} : memref<128x128xf32, #tpu.memory_space<vmem>>, vector<8x128xf32>
      %356 = tpu.iota {dimensions = array<i32: 0>} : vector<8x128xi32>
      %c6 = arith.constant 6 : index
      %c0_186 = arith.constant 0 : index
      %c0_187 = arith.constant 0 : index
      %357 = vector.load %arg10[%c6, %c0_186, %c0_187] : memref<12x640x128xbf16, #tpu.memory_space<vmem>>, vector<1x640x128xbf16>
      %358 = vector.shape_cast %357 : vector<1x640x128xbf16> to vector<640x128xbf16>
      %c6_188 = arith.constant 6 : index
      %c0_189 = arith.constant 0 : index
      %c0_190 = arith.constant 0 : index
      %359 = vector.load %arg11[%c6_188, %c0_189, %c0_190] : memref<12x1x128xf32, #tpu.memory_space<vmem>>, vector<1x1x128xf32>
      %360 = vector.shape_cast %359 : vector<1x1x128xf32> to vector<1x128xf32>
      %c2_i32_191 = arith.constant 2 : i32
      %361 = tpu.dynamic_rotate %355 by %c2_i32_191 dim 0 : vector<8x128xf32>, i32 -> vector<8x128xf32>
      %c2_i32_192 = arith.constant 2 : i32
      %362 = vector.broadcast %c2_i32_192 : i32 to vector<8x128xi32>
      %363 = arith.cmpi slt, %356, %362 : vector<8x128xi32>
      %cst_193 = arith.constant 0.000000e+00 : f32
      %364 = vector.broadcast %cst_193 : f32 to vector<8x128xf32>
      %365 = arith.select %363, %364, %361 : vector<8x128xi1>, vector<8x128xf32>
      %366 = arith.truncf %365 : vector<8x128xf32> to vector<8x128xbf16>
      %c1_i32_194 = arith.constant 1 : i32
      %367 = tpu.dynamic_rotate %355 by %c1_i32_194 dim 0 : vector<8x128xf32>, i32 -> vector<8x128xf32>
      %c1_i32_195 = arith.constant 1 : i32
      %368 = vector.broadcast %c1_i32_195 : i32 to vector<8x128xi32>
      %369 = arith.cmpi slt, %356, %368 : vector<8x128xi32>
      %cst_196 = arith.constant 0.000000e+00 : f32
      %370 = vector.broadcast %cst_196 : f32 to vector<8x128xf32>
      %371 = arith.select %369, %370, %367 : vector<8x128xi1>, vector<8x128xf32>
      %372 = arith.truncf %371 : vector<8x128xf32> to vector<8x128xbf16>
      %373 = arith.truncf %355 : vector<8x128xf32> to vector<8x128xbf16>
      %c7_i32 = arith.constant 7 : i32
      %374 = tpu.dynamic_rotate %355 by %c7_i32 dim 0 : vector<8x128xf32>, i32 -> vector<8x128xf32>
      %c7_i32_197 = arith.constant 7 : i32
      %375 = vector.broadcast %c7_i32_197 : i32 to vector<8x128xi32>
      %376 = arith.cmpi sge, %356, %375 : vector<8x128xi32>
      %cst_198 = arith.constant 0.000000e+00 : f32
      %377 = vector.broadcast %cst_198 : f32 to vector<8x128xf32>
      %378 = arith.select %376, %377, %374 : vector<8x128xi1>, vector<8x128xf32>
      %379 = arith.truncf %378 : vector<8x128xf32> to vector<8x128xbf16>
      %c6_i32 = arith.constant 6 : i32
      %380 = tpu.dynamic_rotate %355 by %c6_i32 dim 0 : vector<8x128xf32>, i32 -> vector<8x128xf32>
      %c6_i32_199 = arith.constant 6 : i32
      %381 = vector.broadcast %c6_i32_199 : i32 to vector<8x128xi32>
      %382 = arith.cmpi sge, %356, %381 : vector<8x128xi32>
      %cst_200 = arith.constant 0.000000e+00 : f32
      %383 = vector.broadcast %cst_200 : f32 to vector<8x128xf32>
      %384 = arith.select %382, %383, %380 : vector<8x128xi1>, vector<8x128xf32>
      %385 = arith.truncf %384 : vector<8x128xf32> to vector<8x128xbf16>
      %386 = tpu.concatenate %366, %372, %373, %379, %385 in 1 : vector<8x128xbf16>, vector<8x128xbf16>, vector<8x128xbf16>, vector<8x128xbf16>, vector<8x128xbf16> -> vector<8x640xbf16>
      %cst_201 = arith.constant dense<0.000000e+00> : vector<8x128xf32>
      %387 = tpu.matmul %386, %358, %cst_201 {dimension_numbers = #tpu.dot_dimension_numbers<[1], [0], [0], [1], [0, 0, 1, 1], [], []>} : vector<8x640xbf16>, vector<640x128xbf16>, vector<8x128xf32> -> vector<8x128xf32>
      %388 = vector.broadcast %360 : vector<1x128xf32> to vector<8x128xf32>
      %389 = arith.addf %387, %388 : vector<8x128xf32>
      %cst_202 = arith.constant 0.000000e+00 : f32
      %390 = vector.broadcast %cst_202 : f32 to vector<8x128xf32>
      %391 = arith.cmpf oge, %389, %390 : vector<8x128xf32>
      %cst_203 = arith.constant 1.000000e-01 : f32
      %392 = vector.broadcast %cst_203 : f32 to vector<8x128xf32>
      %393 = arith.mulf %392, %389 : vector<8x128xf32>
      %394 = arith.select %391, %389, %393 : vector<8x128xi1>, vector<8x128xf32>
      %c7 = arith.constant 7 : index
      %c0_204 = arith.constant 0 : index
      %c0_205 = arith.constant 0 : index
      %395 = vector.load %arg10[%c7, %c0_204, %c0_205] : memref<12x640x128xbf16, #tpu.memory_space<vmem>>, vector<1x640x128xbf16>
      %396 = vector.shape_cast %395 : vector<1x640x128xbf16> to vector<640x128xbf16>
      %c7_206 = arith.constant 7 : index
      %c0_207 = arith.constant 0 : index
      %c0_208 = arith.constant 0 : index
      %397 = vector.load %arg11[%c7_206, %c0_207, %c0_208] : memref<12x1x128xf32, #tpu.memory_space<vmem>>, vector<1x1x128xf32>
      %398 = vector.shape_cast %397 : vector<1x1x128xf32> to vector<1x128xf32>
      %c2_i32_209 = arith.constant 2 : i32
      %399 = tpu.dynamic_rotate %394 by %c2_i32_209 dim 0 : vector<8x128xf32>, i32 -> vector<8x128xf32>
      %c2_i32_210 = arith.constant 2 : i32
      %400 = vector.broadcast %c2_i32_210 : i32 to vector<8x128xi32>
      %401 = arith.cmpi slt, %356, %400 : vector<8x128xi32>
      %cst_211 = arith.constant 0.000000e+00 : f32
      %402 = vector.broadcast %cst_211 : f32 to vector<8x128xf32>
      %403 = arith.select %401, %402, %399 : vector<8x128xi1>, vector<8x128xf32>
      %404 = arith.truncf %403 : vector<8x128xf32> to vector<8x128xbf16>
      %c1_i32_212 = arith.constant 1 : i32
      %405 = tpu.dynamic_rotate %394 by %c1_i32_212 dim 0 : vector<8x128xf32>, i32 -> vector<8x128xf32>
      %c1_i32_213 = arith.constant 1 : i32
      %406 = vector.broadcast %c1_i32_213 : i32 to vector<8x128xi32>
      %407 = arith.cmpi slt, %356, %406 : vector<8x128xi32>
      %cst_214 = arith.constant 0.000000e+00 : f32
      %408 = vector.broadcast %cst_214 : f32 to vector<8x128xf32>
      %409 = arith.select %407, %408, %405 : vector<8x128xi1>, vector<8x128xf32>
      %410 = arith.truncf %409 : vector<8x128xf32> to vector<8x128xbf16>
      %411 = arith.truncf %394 : vector<8x128xf32> to vector<8x128xbf16>
      %c7_i32_215 = arith.constant 7 : i32
      %412 = tpu.dynamic_rotate %394 by %c7_i32_215 dim 0 : vector<8x128xf32>, i32 -> vector<8x128xf32>
      %c7_i32_216 = arith.constant 7 : i32
      %413 = vector.broadcast %c7_i32_216 : i32 to vector<8x128xi32>
      %414 = arith.cmpi sge, %356, %413 : vector<8x128xi32>
      %cst_217 = arith.constant 0.000000e+00 : f32
      %415 = vector.broadcast %cst_217 : f32 to vector<8x128xf32>
      %416 = arith.select %414, %415, %412 : vector<8x128xi1>, vector<8x128xf32>
      %417 = arith.truncf %416 : vector<8x128xf32> to vector<8x128xbf16>
      %c6_i32_218 = arith.constant 6 : i32
      %418 = tpu.dynamic_rotate %394 by %c6_i32_218 dim 0 : vector<8x128xf32>, i32 -> vector<8x128xf32>
      %c6_i32_219 = arith.constant 6 : i32
      %419 = vector.broadcast %c6_i32_219 : i32 to vector<8x128xi32>
      %420 = arith.cmpi sge, %356, %419 : vector<8x128xi32>
      %cst_220 = arith.constant 0.000000e+00 : f32
      %421 = vector.broadcast %cst_220 : f32 to vector<8x128xf32>
      %422 = arith.select %420, %421, %418 : vector<8x128xi1>, vector<8x128xf32>
      %423 = arith.truncf %422 : vector<8x128xf32> to vector<8x128xbf16>
      %424 = tpu.concatenate %404, %410, %411, %417, %423 in 1 : vector<8x128xbf16>, vector<8x128xbf16>, vector<8x128xbf16>, vector<8x128xbf16>, vector<8x128xbf16> -> vector<8x640xbf16>
      %cst_221 = arith.constant dense<0.000000e+00> : vector<8x128xf32>
      %425 = tpu.matmul %424, %396, %cst_221 {dimension_numbers = #tpu.dot_dimension_numbers<[1], [0], [0], [1], [0, 0, 1, 1], [], []>} : vector<8x640xbf16>, vector<640x128xbf16>, vector<8x128xf32> -> vector<8x128xf32>
      %426 = vector.broadcast %398 : vector<1x128xf32> to vector<8x128xf32>
      %427 = arith.addf %425, %426 : vector<8x128xf32>
      %cst_222 = arith.constant 0.000000e+00 : f32
      %428 = vector.broadcast %cst_222 : f32 to vector<8x128xf32>
      %429 = arith.cmpf oge, %427, %428 : vector<8x128xf32>
      %cst_223 = arith.constant 1.000000e-01 : f32
      %430 = vector.broadcast %cst_223 : f32 to vector<8x128xf32>
      %431 = arith.mulf %430, %427 : vector<8x128xf32>
      %432 = arith.select %429, %427, %431 : vector<8x128xi1>, vector<8x128xf32>
      %c7_i32_224 = arith.constant 7 : i32
      %433 = tpu.dynamic_rotate %432 by %c7_i32_224 dim 0 : vector<8x128xf32>, i32 -> vector<8x128xf32>
      %c7_i32_225 = arith.constant 7 : i32
      %434 = vector.broadcast %c7_i32_225 : i32 to vector<8x128xi32>
      %435 = arith.cmpi sge, %356, %434 : vector<8x128xi32>
      %cst_226 = arith.constant 0.000000e+00 : f32
      %436 = vector.broadcast %cst_226 : f32 to vector<8x128xf32>
      %437 = arith.select %435, %436, %433 : vector<8x128xi1>, vector<8x128xf32>
      %438 = arith.maximumf %432, %437 : vector<8x128xf32>
      %c0_227 = arith.constant 0 : index
      %c0_228 = arith.constant 0 : index
      %439 = vector.load %arg15[%c0_227, %c0_228] : memref<128x128xf32, #tpu.memory_space<vmem>>, vector<8x128xf32>
      tpu.vector_store %arg15[%c0_227, %c0_228], %438 {strides = array<i32>} : memref<128x128xf32, #tpu.memory_space<vmem>>, vector<8x128xf32>,
      %c0_229 = arith.constant 0 : index
      %c0_230 = arith.constant 0 : index
      %440 = tpu.strided_load %arg15[%c0_229, %c0_230] {strides = array<i32: 2, 1>} : memref<128x128xf32, #tpu.memory_space<vmem>>, vector<4x128xf32>
      %c8 = arith.constant 8 : index
      %c0_231 = arith.constant 0 : index
      %c0_232 = arith.constant 0 : index
      %441 = vector.load %arg10[%c8, %c0_231, %c0_232] : memref<12x640x128xbf16, #tpu.memory_space<vmem>>, vector<1x640x128xbf16>
      %442 = vector.shape_cast %441 : vector<1x640x128xbf16> to vector<640x128xbf16>
      %c8_233 = arith.constant 8 : index
      %c0_234 = arith.constant 0 : index
      %c0_235 = arith.constant 0 : index
      %443 = vector.load %arg11[%c8_233, %c0_234, %c0_235] : memref<12x1x128xf32, #tpu.memory_space<vmem>>, vector<1x1x128xf32>
      %444 = vector.shape_cast %443 : vector<1x1x128xf32> to vector<1x128xf32>
      %cst_236 = arith.constant 0.000000e+00 : f32
      %445 = vector.broadcast %cst_236 : f32 to vector<2x128xf32>
      %446 = vector.extract_strided_slice %440 {offsets = [0, 0], sizes = [2, 128], strides = [1, 1]} : vector<4x128xf32> to vector<2x128xf32>
      %447 = tpu.concatenate %445, %446 in 0 : vector<2x128xf32>, vector<2x128xf32> -> vector<4x128xf32>
      %448 = arith.truncf %447 : vector<4x128xf32> to vector<4x128xbf16>
      %cst_237 = arith.constant 0.000000e+00 : f32
      %449 = vector.broadcast %cst_237 : f32 to vector<1x128xf32>
      %450 = vector.extract_strided_slice %440 {offsets = [0, 0], sizes = [3, 128], strides = [1, 1]} : vector<4x128xf32> to vector<3x128xf32>
      %451 = tpu.concatenate %449, %450 in 0 : vector<1x128xf32>, vector<3x128xf32> -> vector<4x128xf32>
      %452 = arith.truncf %451 : vector<4x128xf32> to vector<4x128xbf16>
      %453 = arith.truncf %440 : vector<4x128xf32> to vector<4x128xbf16>
      %cst_238 = arith.constant 0.000000e+00 : f32
      %454 = vector.broadcast %cst_238 : f32 to vector<1x128xf32>
      %455 = vector.extract_strided_slice %440 {offsets = [1, 0], sizes = [3, 128], strides = [1, 1]} : vector<4x128xf32> to vector<3x128xf32>
      %456 = tpu.concatenate %455, %454 in 0 : vector<3x128xf32>, vector<1x128xf32> -> vector<4x128xf32>
      %457 = arith.truncf %456 : vector<4x128xf32> to vector<4x128xbf16>
      %cst_239 = arith.constant 0.000000e+00 : f32
      %458 = vector.broadcast %cst_239 : f32 to vector<2x128xf32>
      %459 = vector.extract_strided_slice %440 {offsets = [2, 0], sizes = [2, 128], strides = [1, 1]} : vector<4x128xf32> to vector<2x128xf32>
      %460 = tpu.concatenate %459, %458 in 0 : vector<2x128xf32>, vector<2x128xf32> -> vector<4x128xf32>
      %461 = arith.truncf %460 : vector<4x128xf32> to vector<4x128xbf16>
      %462 = tpu.concatenate %448, %452, %453, %457, %461 in 1 : vector<4x128xbf16>, vector<4x128xbf16>, vector<4x128xbf16>, vector<4x128xbf16>, vector<4x128xbf16> -> vector<4x640xbf16>
      %cst_240 = arith.constant dense<0.000000e+00> : vector<4x128xf32>
      %463 = tpu.matmul %462, %442, %cst_240 {dimension_numbers = #tpu.dot_dimension_numbers<[1], [0], [0], [1], [0, 0, 1, 1], [], []>} : vector<4x640xbf16>, vector<640x128xbf16>, vector<4x128xf32> -> vector<4x128xf32>
      %464 = vector.broadcast %444 : vector<1x128xf32> to vector<4x128xf32>
      %465 = arith.addf %463, %464 : vector<4x128xf32>
      %cst_241 = arith.constant 0.000000e+00 : f32
      %466 = vector.broadcast %cst_241 : f32 to vector<4x128xf32>
      %467 = arith.cmpf oge, %465, %466 : vector<4x128xf32>
      %cst_242 = arith.constant 1.000000e-01 : f32
      %468 = vector.broadcast %cst_242 : f32 to vector<4x128xf32>
      %469 = arith.mulf %468, %465 : vector<4x128xf32>
      %470 = arith.select %467, %465, %469 : vector<4x128xi1>, vector<4x128xf32>
      %c9 = arith.constant 9 : index
      %c0_243 = arith.constant 0 : index
      %c0_244 = arith.constant 0 : index
      %471 = vector.load %arg10[%c9, %c0_243, %c0_244] : memref<12x640x128xbf16, #tpu.memory_space<vmem>>, vector<1x640x128xbf16>
      %472 = vector.shape_cast %471 : vector<1x640x128xbf16> to vector<640x128xbf16>
      %c9_245 = arith.constant 9 : index
      %c0_246 = arith.constant 0 : index
      %c0_247 = arith.constant 0 : index
      %473 = vector.load %arg11[%c9_245, %c0_246, %c0_247] : memref<12x1x128xf32, #tpu.memory_space<vmem>>, vector<1x1x128xf32>
      %474 = vector.shape_cast %473 : vector<1x1x128xf32> to vector<1x128xf32>
      %cst_248 = arith.constant 0.000000e+00 : f32
      %475 = vector.broadcast %cst_248 : f32 to vector<2x128xf32>
      %476 = vector.extract_strided_slice %470 {offsets = [0, 0], sizes = [2, 128], strides = [1, 1]} : vector<4x128xf32> to vector<2x128xf32>
      %477 = tpu.concatenate %475, %476 in 0 : vector<2x128xf32>, vector<2x128xf32> -> vector<4x128xf32>
      %478 = arith.truncf %477 : vector<4x128xf32> to vector<4x128xbf16>
      %cst_249 = arith.constant 0.000000e+00 : f32
      %479 = vector.broadcast %cst_249 : f32 to vector<1x128xf32>
      %480 = vector.extract_strided_slice %470 {offsets = [0, 0], sizes = [3, 128], strides = [1, 1]} : vector<4x128xf32> to vector<3x128xf32>
      %481 = tpu.concatenate %479, %480 in 0 : vector<1x128xf32>, vector<3x128xf32> -> vector<4x128xf32>
      %482 = arith.truncf %481 : vector<4x128xf32> to vector<4x128xbf16>
      %483 = arith.truncf %470 : vector<4x128xf32> to vector<4x128xbf16>
      %cst_250 = arith.constant 0.000000e+00 : f32
      %484 = vector.broadcast %cst_250 : f32 to vector<1x128xf32>
      %485 = vector.extract_strided_slice %470 {offsets = [1, 0], sizes = [3, 128], strides = [1, 1]} : vector<4x128xf32> to vector<3x128xf32>
      %486 = tpu.concatenate %485, %484 in 0 : vector<3x128xf32>, vector<1x128xf32> -> vector<4x128xf32>
      %487 = arith.truncf %486 : vector<4x128xf32> to vector<4x128xbf16>
      %cst_251 = arith.constant 0.000000e+00 : f32
      %488 = vector.broadcast %cst_251 : f32 to vector<2x128xf32>
      %489 = vector.extract_strided_slice %470 {offsets = [2, 0], sizes = [2, 128], strides = [1, 1]} : vector<4x128xf32> to vector<2x128xf32>
      %490 = tpu.concatenate %489, %488 in 0 : vector<2x128xf32>, vector<2x128xf32> -> vector<4x128xf32>
      %491 = arith.truncf %490 : vector<4x128xf32> to vector<4x128xbf16>
      %492 = tpu.concatenate %478, %482, %483, %487, %491 in 1 : vector<4x128xbf16>, vector<4x128xbf16>, vector<4x128xbf16>, vector<4x128xbf16>, vector<4x128xbf16> -> vector<4x640xbf16>
      %cst_252 = arith.constant dense<0.000000e+00> : vector<4x128xf32>
      %493 = tpu.matmul %492, %472, %cst_252 {dimension_numbers = #tpu.dot_dimension_numbers<[1], [0], [0], [1], [0, 0, 1, 1], [], []>} : vector<4x640xbf16>, vector<640x128xbf16>, vector<4x128xf32> -> vector<4x128xf32>
      %494 = vector.broadcast %474 : vector<1x128xf32> to vector<4x128xf32>
      %495 = arith.addf %493, %494 : vector<4x128xf32>
      %cst_253 = arith.constant 0.000000e+00 : f32
      %496 = vector.broadcast %cst_253 : f32 to vector<4x128xf32>
      %497 = arith.cmpf oge, %495, %496 : vector<4x128xf32>
      %cst_254 = arith.constant 1.000000e-01 : f32
      %498 = vector.broadcast %cst_254 : f32 to vector<4x128xf32>
      %499 = arith.mulf %498, %495 : vector<4x128xf32>
      %500 = arith.select %497, %495, %499 : vector<4x128xi1>, vector<4x128xf32>
      %cst_255 = arith.constant 0.000000e+00 : f32
      %501 = vector.broadcast %cst_255 : f32 to vector<1x128xf32>
      %502 = vector.extract_strided_slice %500 {offsets = [1, 0], sizes = [3, 128], strides = [1, 1]} : vector<4x128xf32> to vector<3x128xf32>
      %503 = tpu.concatenate %502, %501 in 0 : vector<3x128xf32>, vector<1x128xf32> -> vector<4x128xf32>
      %504 = arith.maximumf %500, %503 : vector<4x128xf32>
      %c0_256 = arith.constant 0 : index
      %c0_257 = arith.constant 0 : index
      %505 = vector.load %arg15[%c0_256, %c0_257] : memref<128x128xf32, #tpu.memory_space<vmem>>, vector<4x128xf32>
      tpu.vector_store %arg15[%c0_256, %c0_257], %504 {strides = array<i32>} : memref<128x128xf32, #tpu.memory_space<vmem>>, vector<4x128xf32>,
      %c0_258 = arith.constant 0 : index
      %c0_259 = arith.constant 0 : index
      %506 = tpu.strided_load %arg15[%c0_258, %c0_259] {strides = array<i32: 2, 1>} : memref<128x128xf32, #tpu.memory_space<vmem>>, vector<2x128xf32>
      %c10 = arith.constant 10 : index
      %c0_260 = arith.constant 0 : index
      %c0_261 = arith.constant 0 : index
      %507 = vector.load %arg10[%c10, %c0_260, %c0_261] : memref<12x640x128xbf16, #tpu.memory_space<vmem>>, vector<1x640x128xbf16>
      %508 = vector.shape_cast %507 : vector<1x640x128xbf16> to vector<640x128xbf16>
      %c10_262 = arith.constant 10 : index
      %c0_263 = arith.constant 0 : index
      %c0_264 = arith.constant 0 : index
      %509 = vector.load %arg11[%c10_262, %c0_263, %c0_264] : memref<12x1x128xf32, #tpu.memory_space<vmem>>, vector<1x1x128xf32>
      %510 = vector.shape_cast %509 : vector<1x1x128xf32> to vector<1x128xf32>
      %cst_265 = arith.constant 0.000000e+00 : f32
      %511 = vector.broadcast %cst_265 : f32 to vector<2x128xf32>
      %512 = arith.truncf %511 : vector<2x128xf32> to vector<2x128xbf16>
      %cst_266 = arith.constant 0.000000e+00 : f32
      %513 = vector.broadcast %cst_266 : f32 to vector<1x128xf32>
      %514 = vector.extract_strided_slice %506 {offsets = [0, 0], sizes = [1, 128], strides = [1, 1]} : vector<2x128xf32> to vector<1x128xf32>
      %515 = tpu.concatenate %513, %514 in 0 : vector<1x128xf32>, vector<1x128xf32> -> vector<2x128xf32>
      %516 = arith.truncf %515 : vector<2x128xf32> to vector<2x128xbf16>
      %517 = arith.truncf %506 : vector<2x128xf32> to vector<2x128xbf16>
      %cst_267 = arith.constant 0.000000e+00 : f32
      %518 = vector.broadcast %cst_267 : f32 to vector<1x128xf32>
      %519 = vector.extract_strided_slice %506 {offsets = [1, 0], sizes = [1, 128], strides = [1, 1]} : vector<2x128xf32> to vector<1x128xf32>
      %520 = tpu.concatenate %519, %518 in 0 : vector<1x128xf32>, vector<1x128xf32> -> vector<2x128xf32>
      %521 = arith.truncf %520 : vector<2x128xf32> to vector<2x128xbf16>
      %cst_268 = arith.constant 0.000000e+00 : f32
      %522 = vector.broadcast %cst_268 : f32 to vector<2x128xf32>
      %523 = arith.truncf %522 : vector<2x128xf32> to vector<2x128xbf16>
      %524 = tpu.concatenate %512, %516, %517, %521, %523 in 1 : vector<2x128xbf16>, vector<2x128xbf16>, vector<2x128xbf16>, vector<2x128xbf16>, vector<2x128xbf16> -> vector<2x640xbf16>
      %cst_269 = arith.constant dense<0.000000e+00> : vector<2x128xf32>
      %525 = tpu.matmul %524, %508, %cst_269 {dimension_numbers = #tpu.dot_dimension_numbers<[1], [0], [0], [1], [0, 0, 1, 1], [], []>} : vector<2x640xbf16>, vector<640x128xbf16>, vector<2x128xf32> -> vector<2x128xf32>
      %526 = vector.broadcast %510 : vector<1x128xf32> to vector<2x128xf32>
      %527 = arith.addf %525, %526 : vector<2x128xf32>
      %cst_270 = arith.constant 0.000000e+00 : f32
      %528 = vector.broadcast %cst_270 : f32 to vector<2x128xf32>
      %529 = arith.cmpf oge, %527, %528 : vector<2x128xf32>
      %cst_271 = arith.constant 1.000000e-01 : f32
      %530 = vector.broadcast %cst_271 : f32 to vector<2x128xf32>
      %531 = arith.mulf %530, %527 : vector<2x128xf32>
      %532 = arith.select %529, %527, %531 : vector<2x128xi1>, vector<2x128xf32>
      %c11 = arith.constant 11 : index
      %c0_272 = arith.constant 0 : index
      %c0_273 = arith.constant 0 : index
      %533 = vector.load %arg10[%c11, %c0_272, %c0_273] : memref<12x640x128xbf16, #tpu.memory_space<vmem>>, vector<1x640x128xbf16>
      %534 = vector.shape_cast %533 : vector<1x640x128xbf16> to vector<640x128xbf16>
      %c11_274 = arith.constant 11 : index
      %c0_275 = arith.constant 0 : index
      %c0_276 = arith.constant 0 : index
      %535 = vector.load %arg11[%c11_274, %c0_275, %c0_276] : memref<12x1x128xf32, #tpu.memory_space<vmem>>, vector<1x1x128xf32>
      %536 = vector.shape_cast %535 : vector<1x1x128xf32> to vector<1x128xf32>
      %cst_277 = arith.constant 0.000000e+00 : f32
      %537 = vector.broadcast %cst_277 : f32 to vector<2x128xf32>
      %538 = arith.truncf %537 : vector<2x128xf32> to vector<2x128xbf16>
      %cst_278 = arith.constant 0.000000e+00 : f32
      %539 = vector.broadcast %cst_278 : f32 to vector<1x128xf32>
      %540 = vector.extract_strided_slice %532 {offsets = [0, 0], sizes = [1, 128], strides = [1, 1]} : vector<2x128xf32> to vector<1x128xf32>
      %541 = tpu.concatenate %539, %540 in 0 : vector<1x128xf32>, vector<1x128xf32> -> vector<2x128xf32>
      %542 = arith.truncf %541 : vector<2x128xf32> to vector<2x128xbf16>
      %543 = arith.truncf %532 : vector<2x128xf32> to vector<2x128xbf16>
      %cst_279 = arith.constant 0.000000e+00 : f32
      %544 = vector.broadcast %cst_279 : f32 to vector<1x128xf32>
      %545 = vector.extract_strided_slice %532 {offsets = [1, 0], sizes = [1, 128], strides = [1, 1]} : vector<2x128xf32> to vector<1x128xf32>
      %546 = tpu.concatenate %545, %544 in 0 : vector<1x128xf32>, vector<1x128xf32> -> vector<2x128xf32>
      %547 = arith.truncf %546 : vector<2x128xf32> to vector<2x128xbf16>
      %cst_280 = arith.constant 0.000000e+00 : f32
      %548 = vector.broadcast %cst_280 : f32 to vector<2x128xf32>
      %549 = arith.truncf %548 : vector<2x128xf32> to vector<2x128xbf16>
      %550 = tpu.concatenate %538, %542, %543, %547, %549 in 1 : vector<2x128xbf16>, vector<2x128xbf16>, vector<2x128xbf16>, vector<2x128xbf16>, vector<2x128xbf16> -> vector<2x640xbf16>
      %cst_281 = arith.constant dense<0.000000e+00> : vector<2x128xf32>
      %551 = tpu.matmul %550, %534, %cst_281 {dimension_numbers = #tpu.dot_dimension_numbers<[1], [0], [0], [1], [0, 0, 1, 1], [], []>} : vector<2x640xbf16>, vector<640x128xbf16>, vector<2x128xf32> -> vector<2x128xf32>
      %552 = vector.broadcast %536 : vector<1x128xf32> to vector<2x128xf32>
      %553 = arith.addf %551, %552 : vector<2x128xf32>
      %cst_282 = arith.constant 0.000000e+00 : f32
      %554 = vector.broadcast %cst_282 : f32 to vector<2x128xf32>
      %555 = arith.cmpf oge, %553, %554 : vector<2x128xf32>
      %cst_283 = arith.constant 1.000000e-01 : f32
      %556 = vector.broadcast %cst_283 : f32 to vector<2x128xf32>
      %557 = arith.mulf %556, %553 : vector<2x128xf32>
      %558 = arith.select %555, %553, %557 : vector<2x128xi1>, vector<2x128xf32>
      %559 = arith.truncf %558 : vector<2x128xf32> to vector<2x128xbf16>
      %c0_284 = arith.constant 0 : index
      %c0_285 = arith.constant 0 : index
      %560 = vector.load %arg12[%c0_284, %c0_285] : memref<128x16xbf16, #tpu.memory_space<vmem>>, vector<128x16xbf16>
      %cst_286 = arith.constant dense<0.000000e+00> : vector<2x16xf32>
      %561 = tpu.matmul %559, %560, %cst_286 {dimension_numbers = #tpu.dot_dimension_numbers<[1], [0], [0], [1], [0, 0, 1, 1], [], []>} : vector<2x128xbf16>, vector<128x16xbf16>, vector<2x16xf32> -> vector<2x16xf32>
      %c0_287 = arith.constant 0 : index
      %c0_288 = arith.constant 0 : index
      %562 = vector.load %arg13[%c0_287, %c0_288] : memref<1x16xf32, #tpu.memory_space<vmem>>, vector<1x16xf32>
      %563 = vector.broadcast %562 : vector<1x16xf32> to vector<2x16xf32>
      %564 = arith.addf %561, %563 : vector<2x16xf32>
      %565 = arith.negf %564 : vector<2x16xf32>
      %566 = math.exp %565 : vector<2x16xf32>
      %cst_289 = arith.constant 1.000000e+00 : f32
      %567 = vector.broadcast %cst_289 : f32 to vector<2x16xf32>
      %568 = arith.addf %567, %566 : vector<2x16xf32>
      %569 = arith.divf %567, %568 : vector<2x16xf32>
      %c0_290 = arith.constant 0 : index
      %c0_291 = arith.constant 0 : index
      %c0_292 = arith.constant 0 : index
      %570 = vector.load %arg14[%c0_290, %c0_291, %c0_292] : memref<1x2x16xf32, #tpu.memory_space<vmem>>, vector<1x2x16xf32>
      %571 = vector.shape_cast %570 : vector<1x2x16xf32> to vector<2x16xf32>
      %572 = vector.shape_cast %569 : vector<2x16xf32> to vector<1x2x16xf32>
      tpu.vector_store %arg14[%c0_290, %c0_291, %c0_292], %572 {strides = array<i32>} : memref<1x2x16xf32, #tpu.memory_space<vmem>>, vector<1x2x16xf32>,
    } else {
    }
    return
  }
  func.func @transform_0(%arg0: i32, %arg1: i32) -> (i32, i32, i32) {
    %c0_i32 = arith.constant 0 : i32
    %c0_i32_0 = arith.constant 0 : i32
    return %arg0, %arg1, %c0_i32 : i32, i32, i32
  }
  func.func @transform_1(%arg0: i32, %arg1: i32) -> (i32, i32, i32, i32) {
    %c0_i32 = arith.constant 0 : i32
    %c0_i32_0 = arith.constant 0 : i32
    %c0_i32_1 = arith.constant 0 : i32
    return %arg0, %arg1, %c0_i32, %c0_i32_0 : i32, i32, i32, i32
  }
  func.func @transform_2(%arg0: i32, %arg1: i32) -> (i32, i32) {
    %c0_i32 = arith.constant 0 : i32
    %c0_i32_0 = arith.constant 0 : i32
    %c0_i32_1 = arith.constant 0 : i32
    return %c0_i32, %c0_i32_0 : i32, i32
  }
  func.func @transform_3(%arg0: i32, %arg1: i32) -> (i32, i32) {
    %c0_i32 = arith.constant 0 : i32
    %c0_i32_0 = arith.constant 0 : i32
    %c0_i32_1 = arith.constant 0 : i32
    return %c0_i32, %c0_i32_0 : i32, i32
  }
  func.func @transform_4(%arg0: i32, %arg1: i32) -> (i32, i32) {
    %c0_i32 = arith.constant 0 : i32
    %c0_i32_0 = arith.constant 0 : i32
    %c0_i32_1 = arith.constant 0 : i32
    return %c0_i32, %c0_i32_0 : i32, i32
  }
  func.func @transform_5(%arg0: i32, %arg1: i32) -> (i32, i32) {
    %c0_i32 = arith.constant 0 : i32
    %c0_i32_0 = arith.constant 0 : i32
    %c0_i32_1 = arith.constant 0 : i32
    return %c0_i32, %c0_i32_0 : i32, i32
  }
  func.func @transform_6(%arg0: i32, %arg1: i32) -> (i32, i32) {
    %c0_i32 = arith.constant 0 : i32
    %c0_i32_0 = arith.constant 0 : i32
    %c0_i32_1 = arith.constant 0 : i32
    return %c0_i32, %c0_i32_0 : i32, i32
  }
  func.func @transform_7(%arg0: i32, %arg1: i32) -> (i32, i32) {
    %c0_i32 = arith.constant 0 : i32
    %c0_i32_0 = arith.constant 0 : i32
    %c0_i32_1 = arith.constant 0 : i32
    return %c0_i32, %c0_i32_0 : i32, i32
  }
  func.func @transform_8(%arg0: i32, %arg1: i32) -> (i32, i32, i32) {
    %c0_i32 = arith.constant 0 : i32
    %c0_i32_0 = arith.constant 0 : i32
    %c0_i32_1 = arith.constant 0 : i32
    %c0_i32_2 = arith.constant 0 : i32
    return %c0_i32, %c0_i32_0, %c0_i32_1 : i32, i32, i32
  }
  func.func @transform_9(%arg0: i32, %arg1: i32) -> (i32, i32, i32) {
    %c0_i32 = arith.constant 0 : i32
    %c0_i32_0 = arith.constant 0 : i32
    %c0_i32_1 = arith.constant 0 : i32
    %c0_i32_2 = arith.constant 0 : i32
    return %c0_i32, %c0_i32_0, %c0_i32_1 : i32, i32, i32
  }
  func.func @transform_10(%arg0: i32, %arg1: i32) -> (i32, i32) {
    %c0_i32 = arith.constant 0 : i32
    %c0_i32_0 = arith.constant 0 : i32
    %c0_i32_1 = arith.constant 0 : i32
    return %c0_i32, %c0_i32_0 : i32, i32
  }
  func.func @transform_11(%arg0: i32, %arg1: i32) -> (i32, i32) {
    %c0_i32 = arith.constant 0 : i32
    %c0_i32_0 = arith.constant 0 : i32
    %c0_i32_1 = arith.constant 0 : i32
    return %c0_i32, %c0_i32_0 : i32, i32
  }
  func.func @transform_12(%arg0: i32, %arg1: i32) -> (i32, i32, i32) {
    %c0_i32 = arith.constant 0 : i32
    %c0_i32_0 = arith.constant 0 : i32
    %c0_i32_1 = arith.constant 0 : i32
    return %arg0, %c0_i32, %c0_i32_0 : i32, i32, i32
  }
}

</mosaic_0001>

<bundles_post_ra>
// kernel: tpu_custom_call.1
= control target key start
LH: loop header
LB: loop body
LE: loop exit
PB: predicated region body
PF: predicated region fallthrough
CT: control target
= control target key end

     0   :  { %17 = vsyncpa [#allocation4], 0  ;;  %s18198_s0 = inlined_call_operand.hbm [shape: bf16[1,128,2048], index: 0, kind: input, shape index: {}]   ;;  %s18199_s1 = inlined_call_operand.hbm [shape: f32[1,1,8,256], index: 1, kind: input, shape index: {}]   ;;  %s18200_s2 = inlined_call_operand.hbm [shape: bf16[2048,128], index: 2, kind: input, shape index: {}]   ;;  %s18201_s3 = inlined_call_operand.hbm [shape: bf16[256,128], index: 3, kind: input, shape index: {}]   ;;  %s18202_s4 = inlined_call_operand.hbm [shape: bf16[256,128], index: 4, kind: input, shape index: {}]   ;;  %s18203_s5 = inlined_call_operand.hbm [shape: f32[1,128], index: 5, kind: input, shape index: {}]   ;;  %s18204_s6 = inlined_call_operand.hbm [shape: bf16[896,128], index: 6, kind: input, shape index: {}]   ;;  %s18205_s7 = inlined_call_operand.hbm [shape: f32[1,128], index: 7, kind: input, shape index: {}]   ;;  %s18206_s8 = inlined_call_operand.hbm [shape: bf16[12,640,128], index: 8, kind: input, shape index: {}]   ;;  %s18207_s9 = inlined_call_operand.hbm [shape: f32[12,1,128], index: 9, kind: input, shape index: {}]   ;;  %s18208_s10 = inlined_call_operand.vmem [shape: bf16[128,16], index: 10, kind: input, shape index: {}]   ;;  %s18209_s11 = inlined_call_operand.hbm [shape: f32[1,16], index: 11, kind: input, shape index: {}]   ;;  %s18210_s12 = inlined_call_operand.hbm [shape: f32[1,2,16], index: 12, kind: output, shape index: {}]  }
   0x1   :  { %18 = vsyncpa [#allocation7], 0 }
   0x2   :  { %19 = vsyncpa [#allocation10], 0 }
   0x3   :  { %20 = vsyncpa [#allocation13], 0 }
   0x4   :  { %21 = vsyncpa [#allocation16], 0 }
   0x5   :  { %22 = vsyncpa [#allocation19], 0 }
   0x6   :  { %23 = vsyncpa [#allocation5], 0  ;;  %s15491_s21 = smov [#allocation6]  }
   0x7   :  { %s42_s22 = sshll.u32 %s15491_s21, 4  ;;  %s43_s22 = int_to_ptr.vmem [resolvable:$true] %s42_s22 }
   0x8   :  { %s15245_s23 = scalar_lea.vmem %s43_s22, 256  ;;  %p15250_p1 = scmp.lt.s32.totalorder %s43_s22, %s43_s22 }
   0x9   :  { %p15246_p0 = scmp.ne.s32.totalorder %s43_s22, %s15245_s23  ;;  %p15251_p2 = scmp.lt.s32.totalorder %s15245_s23, %s15245_s23 }
   0xb   :  { %p15252_p3 = por %p15251_p2, %p15250_p1 }
   0xd   :  { %p15253_p4 = pnand %p15252_p3, %p15246_p0 }
   0xf   :  { %15256 = shalt.err (!%p15253_p4)
}
  0x10   :  { %45 = dma.hbm_to_vmem [thread:$0]  %s18199_s1, 256, %s43_s22, [#allocation7]  }
  0x11   :  { %s15492_s26 = smov [#allocation9]   ;;  %s15493_s28 = smov [#allocation12]  }
  0x12   :  { %s63_s27 = sshll.u32 %s15492_s26, 4  ;;  %s88_s29 = sshll.u32 %s15493_s28, 4  ;;  %s64_s27 = int_to_ptr.vmem [resolvable:$true] %s63_s27  ;;  %s89_s29 = int_to_ptr.vmem [resolvable:$true] %s88_s29 }
  0x13   :  { %s15265_s30 = scalar_lea.vmem %s64_s27, 2048  ;;  %p15270_p6 = scmp.lt.s32.totalorder %s64_s27, %s64_s27 }
  0x14   :  { %p15266_p5 = scmp.ne.s32.totalorder %s64_s27, %s15265_s30  ;;  %p15271_p7 = scmp.lt.s32.totalorder %s15265_s30, %s15265_s30 }
  0x16   :  { %p15272_p8 = por %p15271_p7, %p15270_p6 }
  0x18   :  { %p15273_p9 = pnand %p15272_p8, %p15266_p5 }
  0x1a   :  { %15276 = shalt.err (!%p15273_p9)
}
  0x1b   :  { %s15494_s13 = smov 64   ;;  %s15495_s14 = smov 4  }
  0x1c   :  { %69 = dma.hbm_to_vmem [thread:$0]  %s18201_s3, 2048, %s64_s27, [#allocation10], %s15494_s13, %s15494_s13, %s15495_s14  }
  0x1d   :  { %s15285_s1 = scalar_lea.vmem %s89_s29, 16  ;;  %s15289_s17 = scalar_lea.vmem %s89_s29, 32 }
  0x1e   :  { %p15286_p10 = scmp.ne.s32.totalorder %s89_s29, %s15285_s1  ;;  %p15290_p11 = scmp.lt.s32.totalorder %s89_s29, %s89_s29 }
  0x1f   :  { %p15291_p12 = scmp.lt.s32.totalorder %s15289_s17, %s15285_s1 }
  0x21   :  { %p15292_p13 = por %p15291_p12, %p15290_p11 }
  0x23   :  { %p15293_p0 = pnand %p15292_p13, %p15286_p10 }
  0x25   :  { %15296 = shalt.err (!%p15293_p0)
}
  0x26   :  { %91 = dma.hbm_to_vmem [thread:$0]  %s18203_s5, 16, %s89_s29, [#allocation13]  }
  0x27   :  { %s15496_s20 = smov [#allocation15]   ;;  %s15497_s22 = smov [#allocation18]  }
  0x28   :  { %s110_s21 = sshll.u32 %s15496_s20, 4  ;;  %s131_s23 = sshll.u32 %s15497_s22, 4  ;;  %s111_s21 = int_to_ptr.vmem [resolvable:$true] %s110_s21  ;;  %s132_s23 = int_to_ptr.vmem [resolvable:$true] %s131_s23 }
  0x29   :  { %s15305_s24 = scalar_lea.vmem %s111_s21, 16  ;;  %s15309_s3 = scalar_lea.vmem %s111_s21, 32 }
  0x2a   :  { %p15306_p1 = scmp.ne.s32.totalorder %s111_s21, %s15305_s24  ;;  %p15310_p2 = scmp.lt.s32.totalorder %s111_s21, %s111_s21 }
  0x2b   :  { %p15311_p3 = scmp.lt.s32.totalorder %s15309_s3, %s15305_s24 }
  0x2d   :  { %p15312_p4 = por %p15311_p3, %p15310_p2 }
  0x2f   :  { %p15313_p5 = pnand %p15312_p4, %p15306_p1 }
  0x31   :  { %15316 = shalt.err (!%p15313_p5)
}
  0x32   :  { %113 = dma.hbm_to_vmem [thread:$0]  %s18205_s7, 16, %s111_s21, [#allocation16]  }
  0x33   :  { %s15325_s27 = scalar_lea.vmem %s132_s23, 192  ;;  %p15330_p7 = scmp.lt.s32.totalorder %s132_s23, %s132_s23 }
  0x34   :  { %p15326_p6 = scmp.ne.s32.totalorder %s132_s23, %s15325_s27  ;;  %p15331_p8 = scmp.lt.s32.totalorder %s15325_s27, %s15325_s27 }
  0x36   :  { %p15332_p9 = por %p15331_p8, %p15330_p7 }
  0x38   :  { %p15333_p10 = pnand %p15332_p9, %p15326_p6 }
  0x3a   :  { %15336 = shalt.err (!%p15333_p10)
}
  0x3b   :  { %s15498_s5 = smov 16   ;;  %s15499_s28 = smov 1  }
  0x3c   :  { %137 = dma.hbm_to_vmem [thread:$0]  %s18207_s9, 192, %s132_s23, [#allocation19], %s15498_s5, %s15498_s5, %s15499_s28  }
  0x3d   :  { %s15500_s15 = smov [#allocation3]  }
  0x3e   :  { %s29_s16 = sshll.u32 %s15500_s15, 4  ;;  %s30_s16 = int_to_ptr.vmem [resolvable:$true] %s29_s16 }
  0x3f   :  { %s15345_s1 = scalar_lea.vmem %s30_s16, 16384  ;;  %p15350_p12 = scmp.lt.s32.totalorder %s30_s16, %s30_s16 }
  0x40   :  { %p15346_p11 = scmp.ne.s32.totalorder %s30_s16, %s15345_s1  ;;  %p15351_p13 = scmp.lt.s32.totalorder %s15345_s1, %s15345_s1 }
  0x42   :  { %p15352_p0 = por %p15351_p13, %p15350_p12 }
  0x44   :  { %p15353_p1 = pnand %p15352_p0, %p15346_p11 }
  0x46   :  { %15356 = shalt.err (!%p15353_p1)
}
  0x47   :  { %s15501_s7 = smov 1024   ;;  %s15502_s19 = smov [#allocation8]  }
  0x48   :  { %35 = dma.hbm_to_vmem [thread:$0]  %s18198_s0, 16384, %s30_s16, [#allocation4], %s15501_s7, %s15501_s7, %s15494_s13  }
  0x49   :  { %s51_s20 = sshll.u32 %s15502_s19, 4  ;;  %s15503_s9 = smov [#allocation11]   ;;  %s52_s20 = int_to_ptr.vmem [resolvable:$true] %s51_s20 }
  0x4a   :  { %s75_s21 = sshll.u32 %s15503_s9, 4  ;;  %s15365_s22 = scalar_lea.vmem %s52_s20, 16384  ;;  %s76_s21 = int_to_ptr.vmem [resolvable:$true] %s75_s21 }
  0x4b   :  { %p15366_p2 = scmp.ne.s32.totalorder %s52_s20, %s15365_s22  ;;  %p15370_p3 = scmp.lt.s32.totalorder %s52_s20, %s52_s20 }
  0x4c   :  { %p15371_p4 = scmp.lt.s32.totalorder %s15365_s22, %s15365_s22 }
  0x4e   :  { %p15372_p5 = por %p15371_p4, %p15370_p3 }
  0x50   :  { %p15373_p6 = pnand %p15372_p5, %p15366_p2 }
  0x52   :  { %15376 = shalt.err (!%p15373_p6)
}
  0x53   :  { %57 = dma.hbm_to_vmem [thread:$0]  %s18200_s2, 16384, %s52_s20, [#allocation7], %s15494_s13, %s15494_s13, %s15495_s14  }
  0x54   :  { %s15385_s0 = scalar_lea.vmem %s76_s21, 2048  ;;  %p15390_p8 = scmp.lt.s32.totalorder %s76_s21, %s76_s21 }
  0x55   :  { %p15386_p7 = scmp.ne.s32.totalorder %s76_s21, %s15385_s0  ;;  %p15391_p9 = scmp.lt.s32.totalorder %s15385_s0, %s15385_s0 }
  0x57   :  { %p15392_p10 = por %p15391_p9, %p15390_p8 }
  0x59   :  { %p15393_p11 = pnand %p15392_p10, %p15386_p7 }
  0x5b   :  { %15396 = shalt.err (!%p15393_p11)
}
  0x5c   :  { %81 = dma.hbm_to_vmem [thread:$0]  %s18202_s4, 2048, %s76_s21, [#allocation10], %s15494_s13, %s15494_s13, %s15495_s14  }
  0x5d   :  { %s15504_s26 = smov [#allocation14]   ;;  %s15505_s5 = smov [#allocation17]  }
  0x5e   :  { %s97_s27 = sshll.u32 %s15504_s26, 4  ;;  %s119_s2 = sshll.u32 %s15505_s5, 4  ;;  %s98_s27 = int_to_ptr.vmem [resolvable:$true] %s97_s27  ;;  %s120_s2 = int_to_ptr.vmem [resolvable:$true] %s119_s2 }
  0x5f   :  { %s15405_s28 = scalar_lea.vmem %s98_s27, 7168  ;;  %p15410_p13 = scmp.lt.s32.totalorder %s98_s27, %s98_s27 }
  0x60   :  { %p15406_p12 = scmp.ne.s32.totalorder %s98_s27, %s15405_s28  ;;  %p15411_p0 = scmp.lt.s32.totalorder %s15405_s28, %s15405_s28 }
  0x62   :  { %p15412_p1 = por %p15411_p0, %p15410_p13 }
  0x64   :  { %p15413_p2 = pnand %p15412_p1, %p15406_p12 }
  0x66   :  { %15416 = shalt.err (!%p15413_p2)
}
  0x67   :  { %103 = dma.hbm_to_vmem [thread:$0]  %s18204_s6, 7168, %s98_s27, [#allocation13], %s15494_s13, %s15494_s13, %s15495_s14  }
  0x68   :  { %s15425_s4 = scalar_lea.vmem %s120_s2, 61440  ;;  %p15430_p4 = scmp.lt.s32.totalorder %s120_s2, %s120_s2 }
  0x69   :  { %p15426_p3 = scmp.ne.s32.totalorder %s120_s2, %s15425_s4  ;;  %p15431_p5 = scmp.lt.s32.totalorder %s15425_s4, %s15425_s4 }
  0x6b   :  { %p15432_p6 = por %p15431_p5, %p15430_p4 }
  0x6d   :  { %p15433_p7 = pnand %p15432_p6, %p15426_p3 }
  0x6f   :  { %15436 = shalt.err (!%p15433_p7)
}
  0x70   :  { %125 = dma.hbm_to_vmem [thread:$0]  %s18206_s8, 61440, %s120_s2, [#allocation16], %s15494_s13, %s15494_s13, %s15495_s14  }
  0x71   :  { %s15506_s1 = smov [#allocation20]  }
  0x72   :  { %s146_s7 = sshll.u32 %s15506_s1, 4  ;;  %s147_s7 = int_to_ptr.vmem [resolvable:$true] %s146_s7 }
  0x73   :  { %s15445_s17 = scalar_lea.vmem %s147_s7, 16  ;;  %s15449_s6 = scalar_lea.vmem %s147_s7, 32 }
  0x74   :  { %p15446_p8 = scmp.ne.s32.totalorder %s147_s7, %s15445_s17  ;;  %p15450_p9 = scmp.lt.s32.totalorder %s147_s7, %s147_s7 }
  0x75   :  { %p15451_p10 = scmp.lt.s32.totalorder %s15449_s6, %s15445_s17 }
  0x77   :  { %p15452_p11 = por %p15451_p10, %p15450_p9 }
  0x79   :  { %p15453_p12 = pnand %p15452_p11, %p15446_p8 }
  0x7b   :  { %15456 = shalt.err (!%p15453_p12)
}
  0x7c   :  { %149 = dma.hbm_to_vmem [thread:$0]  %s18209_s11, 16, %s147_s7, [#allocation19]  }
  0x7d   :  { %15477 = dma.done.wait [#allocation4], 16384  }
  0x7e   :  { %15478 = vsyncadd [#allocation4], 4294950912 }
  0x7f   :  { %15479 = dma.done.wait [#allocation7], 16640  }
  0x80   :  { %15480 = vsyncadd [#allocation7], 4294950656 }
  0x81   :  { %15481 = dma.done.wait [#allocation10], 4096  }
  0x82   :  { %15482 = vsyncadd [#allocation10], 4294963200 }
  0x83   :  { %15483 = dma.done.wait [#allocation13], 7184  }
  0x84   :  { %15484 = vsyncadd [#allocation13], 4294960112 }
  0x85   :  { %15485 = dma.done.wait [#allocation16], 61456  }
  0x86   :  { %15486 = vsyncadd [#allocation16], 4294905840 }
  0x87   :  { %15487 = dma.done.wait [#allocation19], 208  }
  0x88   :  { %15488 = vsyncadd [#allocation19], 4294967088  ;;  %v14494_v0 = vld [vmem:[#allocation9 + $0x78] sm:$0xff]   ;;  %v14498_v4 = vld [vmem:[#allocation9 + $0x70] sm:$0xff]   ;;  %v568_v23 = vlaneseq }
  0x89   :  { %v14495_v1 = vld [vmem:[#allocation8 + $0x78] sm:$0xff]   ;;  %12576 = vmatprep.subr.bf16.mxu0 %v14494_v0  ;;  %v14499_v5 = vld [vmem:[#allocation8 + $0x70] sm:$0xff]   ;;  %v14502_v8 = vld [vmem:[#allocation9 + $0x68] sm:$0xff]  }
  0x8a   :  { %v14496_v2 = vld [vmem:[#allocation9 + $0x38] sm:$0xff]   ;;  %12640 = vmatprep.subr.bf16.mxu1 %v14495_v1  ;;  %v14500_v6 = vld [vmem:[#allocation9 + $0x30] sm:$0xff]   ;;  %v14503_v9 = vld [vmem:[#allocation8 + $0x68] sm:$0xff]   ;;  %v15626_v28 = vshrl.u32 %v568_v23, 7 }
  0x8b   :  { %v14497_v3 = vld [vmem:[#allocation8 + $0x38] sm:$0xff]   ;;  %12577 = vmatpush3.bf16.msra.mxu0 %v14496_v2  ;;  %v14501_v7 = vld [vmem:[#allocation8 + $0x30] sm:$0xff]   ;;  %v14504_v10 = vld [vmem:[#allocation9 + $0x28] sm:$0xff]  }
  0x8c   :  { %12641 = vmatpush3.bf16.msra.mxu1 %v14497_v3  ;;  %12578 = vmatprep.subr.bf16.mxu0 %v14498_v4  ;;  %v14505_v11 = vld [vmem:[#allocation8 + $0x28] sm:$0xff]   ;;  %v14506_v12 = vld [vmem:[#allocation9 + $0x60] sm:$0xff]   ;;  %v14510_v16 = vld [vmem:[#allocation9 + $0x58] sm:$0xff]   ;;  %v702_v33 = vsub.s32 0, %v15626_v28  ;;  %vm619_vm0 = vcmp.eq.s32.totalorder %v15626_v28, 0  ;;  %vm667_vm1 = vcmp.lt.s32.totalorder %v15626_v28, 1 }
  0x8d   :  { %12642 = vmatprep.subr.bf16.mxu1 %v14499_v5  ;;  %v14507_v13 = vld [vmem:[#allocation8 + $0x60] sm:$0xff]   ;;  %v14511_v17 = vld [vmem:[#allocation8 + $0x58] sm:$0xff]   ;;  %v14514_v20 = vld [vmem:[#allocation9 + $0x50] sm:$0xff]   ;;  %vm820_vm2 = vcmp.lt.s32.totalorder %v15626_v28, 7  ;;  %vm3885_vm4 = vcmp.lt.s32.totalorder %v15626_v28, 2  ;;  %vm3813_vm5 = vcmp.lt.s32.totalorder %v15626_v28, 3 }
  0x8e   :  { %v14508_v14 = vld [vmem:[#allocation9 + $0x20] sm:$0xff]   ;;  %v14512_v18 = vld [vmem:[#allocation9 + $0x18] sm:$0xff]   ;;  %v14515_v21 = vld [vmem:[#allocation8 + $0x50] sm:$0xff]   ;;  %vm4181_vm8 = vcmp.lt.s32.totalorder %v15626_v28, 5 }
  0x8f   :  { %12579 = vmatpush3.bf16.msra.mxu0 %v14500_v6  ;;  %v14509_v15 = vld [vmem:[#allocation8 + $0x20] sm:$0xff]   ;;  %v14513_v19 = vld [vmem:[#allocation8 + $0x18] sm:$0xff]   ;;  %v14516_v22 = vld [vmem:[#allocation9 + $0x10] sm:$0xff]  }
  0x90   :  { %12643 = vmatpush3.bf16.msra.mxu1 %v14501_v7  ;;  %12580 = vmatprep.subr.bf16.mxu0 %v14502_v8  ;;  %v14517_v24 = vld [vmem:[#allocation8 + $0x10] sm:$0xff]   ;;  %v14518_v25 = vld [vmem:[#allocation9 + $0x48] sm:$0xff]   ;;  %v14522_v30 = vld [vmem:[#allocation9 + $0x40] sm:$0xff]  }
  0x91   :  { %12644 = vmatprep.subr.bf16.mxu1 %v14503_v9  ;;  %v14519_v26 = vld [vmem:[#allocation8 + $0x48] sm:$0xff]   ;;  %v14523_v31 = vld [vmem:[#allocation8 + $0x40] sm:$0xff]   ;;  %v586_v38 = vld [vmem:[#allocation6 + $0x8] sm:$0xff] }
  0x92   :  { %v14520_v27 = vld [vmem:[#allocation9 + $0x8] sm:$0xff]   ;;  %v14524_v32 = vld [vmem:[#allocation9] sm:$0xff]   ;;  %v184_v42 = vld [vmem:[#allocation3] sm:$0xff]  ;;  %v707_v44 = vrot.slane %v586_v38, %v702_v33 }
  0x93   :  { %12581 = vmatpush3.bf16.msra.mxu0 %v14504_v10  ;;  %v14521_v29 = vld [vmem:[#allocation8 + $0x8] sm:$0xff]   ;;  %v14525_v34 = vld [vmem:[#allocation8] sm:$0xff]   ;;  %v192_v43 = vld [vmem:[#allocation3 + $0x40] sm:$0xff]  ;;  %v740_v45 = vunpack.c.l.bf16 %v184_v42 }
  0x94   :  { %12645 = vmatpush3.bf16.msra.mxu1 %v14505_v11  ;;  %12582 = vmatprep.subr.bf16.mxu0 %v14506_v12  ;;  %v191_v35 = vld [vmem:[#allocation3 + $0x38] sm:$0xff]  ;;  %v742_v49 = vunpack.c.l.bf16 %v192_v43  ;;  %v14526_v50 = vld [vmem:[#allocation8 + $0xf8] sm:$0xff]   ;;  %v11531_v52 = vcombine.high %v184_v42, %v192_v43  ;;  %v585_v53 = vld [vmem:[#allocation6] sm:$0xff]  ;;  %v11530_v9 = vcombine.low %v184_v42, %v192_v43 }
  0x95   :  { %12646 = vmatprep.subr.bf16.mxu1 %v14507_v13  ;;  %v199_v36 = vld [vmem:[#allocation3 + $0x78] sm:$0xff]  ;;  %v588_v39 = vunpack.c.h.bf16 %v191_v35  ;;  %v15634_v51 = vrot.slane %v740_v45, 1  ;;  %v14528_v54 = vld [vmem:[#allocation8 + $0x178] sm:$0xff]   ;;  %v587_v58 = vunpack.c.l.bf16 %v191_v35  ;;  %v703_v3 = vrot.slane %v585_v53, %v702_v33  ;;  %v200_v5 = vld [vmem:[#allocation3 + $0x80] sm:$0xff] }
  0x96   :  { %v311_v37 = vld [vmem:[#allocation3 + $0x3f8] sm:$0xff]  ;;  %v590_v40 = vunpack.c.h.bf16 %v199_v36  ;;  %v15641_v57 = vrot.slane %v742_v49, 1  ;;  %v14529_v59 = vld [vmem:[#allocation8 + $0x138] sm:$0xff]   ;;  %2574 = vmatprep.mubr.bf16.mxu1 %v11531_v52  ;;  %v589_v61 = vunpack.c.l.bf16 %v199_v36  ;;  %v208_v6 = vld [vmem:[#allocation3 + $0xc0] sm:$0xff] }
  0x97   :  { %12583 = vmatpush3.bf16.msra.mxu0 %v14508_v14  ;;  %v618_v41 = vunpack.c.h.bf16 %v311_v37  ;;  %v636_v46 = vrot.slane %v588_v39, 7  ;;  %v617_v62 = vunpack.c.l.bf16 %v311_v37  ;;  %v207_v63 = vld [vmem:[#allocation3 + $0xb8] sm:$0xff]  ;;  %v635_v2 = vrot.slane %v587_v58, 7  ;;  %v14527_v14 = vld [vmem:[#allocation8 + $0xb8] sm:$0xff]   ;;  %v14531_v36 = vld [vmem:[#allocation8 + $0xb0] sm:$0xff]  }
  0x98   :  { %12647 = vmatpush3.bf16.msra.mxu1 %v14509_v15  ;;  %12584 = vmatprep.subr.bf16.mxu0 %v14510_v16  ;;  %v638_v47 = vrot.slane %v590_v40, 7  ;;  %v15649_v1 = vsel %vm820_vm2, %v15634_v51, %v15641_v57  ;;  %v215_v4 = vld [vmem:[#allocation3 + $0xf8] sm:$0xff]  ;;  %v637_v7 = vrot.slane %v589_v61, 7  ;;  %v592_v10 = vunpack.c.h.bf16 %v207_v63 }
  0x99   :  { %12648 = vmatprep.subr.bf16.mxu1 %v14511_v17  ;;  %v15631_v48 = vrot.slane %v618_v41, 7  ;;  %v15651_v8 = vrot.slane %v617_v62, 7  ;;  %v594_v11 = vunpack.c.h.bf16 %v215_v4  ;;  %v11547_v15 = vcombine.high %v200_v5, %v208_v6  ;;  %v14534_v41 = vld [vmem:[#allocation8 + $0xe8] sm:$0xff]   ;;  %v15678_v62 = vld [vmem:[#allocation3 + $0x180] sm:$0xff] }
  0x9a   :  { %v697_v55 = vsel %vm667_vm1, %v636_v46, %v638_v47  ;;  %v696_v12 = vsel %vm667_vm1, %v635_v2, %v637_v7  ;;  %v591_v16 = vunpack.c.l.bf16 %v207_v63  ;;  %v593_v23 = vunpack.c.l.bf16 %v215_v4  ;;  %v14535_v49 = vld [vmem:[#allocation8 + $0xa8] sm:$0xff]   ;;  %v15680_v63 = vld [vmem:[#allocation3 + $0x1c0] sm:$0xff] }
  0x9b   :  { %12585 = vmatpush3.bf16.msra.mxu0 %v14512_v18  ;;  %v699_v56 = vsel %vm667_vm1, %v15631_v48, %v636_v46  ;;  %v698_v13 = vsel %vm667_vm1, %v15651_v8, %v635_v2  ;;  %v640_v18 = vrot.slane %v592_v10, 7  ;;  %v11546_v35 = vcombine.low %v200_v5, %v208_v6  ;;  %v14536_v46 = vld [vmem:[#allocation8 + $0x168] sm:$0xff]   ;;  %v14538_v2 = vld [vmem:[#allocation8 + $0xe0] sm:$0xff]  }
  0x9c   :  { %12649 = vmatpush3.bf16.msra.mxu1 %v14513_v19  ;;  %12586 = vmatprep.subr.bf16.mxu0 %v14514_v20  ;;  %v709_v60 = vsel %vm619_vm0, %v707_v44, %v699_v56  ;;  %v708_v17 = vsel %vm619_vm0, %v703_v3, %v698_v13  ;;  %v642_v19 = vrot.slane %v594_v11, 7  ;;  %v14530_v20 = vld [vmem:[#allocation8 + $0xf0] sm:$0xff]   ;;  %v247_v56 = vld [vmem:[#allocation3 + $0x1f8] sm:$0xff]  ;;  %v14540_v5 = vld [vmem:[#allocation8 + $0x160] sm:$0xff]  }
  0x9d   :  { %12650 = vmatprep.subr.bf16.mxu1 %v14515_v21  ;;  %v894_v0 = vpack.c.bf16 %v697_v55, %v709_v60  ;;  %v14532_v21 = vld [vmem:[#allocation8 + $0x170] sm:$0xff]   ;;  %v239_v55 = vld [vmem:[#allocation3 + $0x1b8] sm:$0xff]  ;;  %v602_v61 = vunpack.c.h.bf16 %v247_v56  ;;  %v601_v13 = vunpack.c.l.bf16 %v247_v56 }
  0x9e   :  { %v600_v60 = vunpack.c.h.bf16 %v239_v55 }
  0x9f   :  { %12587 = vmatpush3.bf16.msra.mxu0 %v14516_v22  ;;  %1069 = vmatprep.mubr.bf16.mxu0 %v894_v0  ;;  %v893_v22 = vpack.c.bf16 %v696_v12, %v708_v17  ;;  %v650_v4 = vrot.slane %v602_v61, 7  ;;  %v11579_v12 = vcombine.high %v15678_v62, %v15680_v63  ;;  %v255_v17 = vld [vmem:[#allocation3 + $0x238] sm:$0xff] }
  0xa0   :  { %12651 = vmatpush3.bf16.msra.mxu1 %v14517_v24  ;;  %12588 = vmatprep.subr.bf16.mxu0 %v14518_v25  ;;  %v639_v24 = vrot.slane %v591_v16, 7  ;;  %v14533_v25 = vld [vmem:[#allocation8 + $0x130] sm:$0xff]   ;;  %v648_v3 = vrot.slane %v600_v60, 7  ;;  %v287_v61 = vld [vmem:[#allocation3 + $0x338] sm:$0xff] }
  0xa1   :  { %12652 = vmatprep.subr.bf16.mxu1 %v14519_v26  ;;  %v223_v26 = vld [vmem:[#allocation3 + $0x138] sm:$0xff]  ;;  %v272_v60 = vld [vmem:[#allocation3 + $0x2c0] sm:$0xff] }
  0xa2   :  { %v596_v37 = vunpack.c.h.bf16 %v223_v26  ;;  %v694_v38 = vsel %vm667_vm1, %v637_v7, %v639_v24  ;;  %v595_v44 = vunpack.c.l.bf16 %v223_v26  ;;  %v599_v7 = vunpack.c.l.bf16 %v239_v55  ;;  %v15694_v26 = vld [vmem:[#allocation3 + $0x200] sm:$0xff] }
  0xa3   :  { %12589 = vmatpush3.bf16.msra.mxu0 %v14520_v27  ;;  %v693_v27 = vsel %vm667_vm1, %v640_v18, %v642_v19  ;;  %v14549_v55 = vld [vmem:[#allocation8 + $0x110] sm:$0xff]  }
  0xa4   :  { %12653 = vmatpush3.bf16.msra.mxu1 %v14521_v29  ;;  %12590 = vmatprep.subr.bf16.mxu0 %v14522_v30  ;;  %v695_v29 = vsel %vm667_vm1, %v638_v47, %v640_v18  ;;  %v231_v30 = vld [vmem:[#allocation3 + $0x178] sm:$0xff]  ;;  %v644_v43 = vrot.slane %v596_v37, 7 }
  0xa5   :  { %12654 = vmatprep.subr.bf16.mxu1 %v14523_v31  ;;  %v15664_v31 = vld [vmem:[#allocation3 + $0x100] sm:$0xff]  ;;  %v896_v33 = vpack.c.bf16 %v693_v27, %v695_v29  ;;  %v598_v39 = vunpack.c.h.bf16 %v231_v30  ;;  %v597_v45 = vunpack.c.l.bf16 %v231_v30  ;;  %v263_v18 = vld [vmem:[#allocation3 + $0x278] sm:$0xff]  ;;  %v14543_v27 = vld [vmem:[#allocation8 + $0x98] sm:$0xff]  }
  0xa6   :  { %v691_v53 = vsel %vm667_vm1, %v642_v19, %v644_v43  ;;  %v604_v19 = vunpack.c.h.bf16 %v255_v17  ;;  %v279_v37 = vld [vmem:[#allocation3 + $0x2f8] sm:$0xff] }
  0xa7   :  { %12591 = vmatpush3.bf16.msra.mxu0 %v14524_v32  ;;  %v15666_v32 = vld [vmem:[#allocation3 + $0x140] sm:$0xff]  ;;  %v646_v47 = vrot.slane %v598_v39, 7 }
  0xa8   :  { %12655 = vmatpush3.bf16.msra.mxu1 %v14525_v34  ;;  %12704 = vmatprep.subr.bf16.mxu0 %v14526_v50  ;;  %v641_v34 = vrot.slane %v593_v23, 7  ;;  %v11563_v40 = vcombine.high %v15664_v31, %v15666_v32  ;;  %v14537_v50 = vld [vmem:[#allocation8 + $0x128] sm:$0xff]   ;;  %v11562_v6 = vcombine.low %v15664_v31, %v15666_v32  ;;  %v652_v29 = vrot.slane %v604_v19, 7  ;;  %v256_v31 = vld [vmem:[#allocation3 + $0x240] sm:$0xff]  ;;  %v14544_v32 = vld [vmem:[#allocation8 + $0x158] sm:$0xff]  }
  0xa9   :  { %12768 = vmatprep.subr.bf16.mxu1 %v14528_v54  ;;  %v643_v54 = vrot.slane %v595_v44, 7  ;;  %v689_v58 = vsel %vm667_vm1, %v644_v43, %v646_v47  ;;  %v687_v16 = vsel %vm667_vm1, %v646_v47, %v648_v3  ;;  %v14547_v47 = vld [vmem:[#allocation8 + $0x90] sm:$0xff]  }
  0xaa   :  { %1070 = vmatmul.mubr.bf16.vlgmr.msra.gmra.mxu0 %v893_v22  ;;  %v692_v42 = vsel %vm667_vm1, %v639_v24, %v641_v34  ;;  %v898_v0 = vpack.c.bf16 %v689_v58, %v691_v53  ;;  %v14542_v22 = vld [vmem:[#allocation8 + $0xd8] sm:$0xff]   ;;  %v647_v24 = vrot.slane %v599_v7, 7  ;;  %v683_v43 = vsel %vm667_vm1, %v650_v4, %v652_v29  ;;  %v288_v19 = vld [vmem:[#allocation3 + $0x340] sm:$0xff] }
  0xab   :  { %2575 = vmatmul.mubr.bf16.vlgmr.msra.gmra.mxu1 %v11530_v9  ;;  %12705 = vmatpush3.bf16.msra.mxu0 %v14527_v14  ;;  %v895_v52 = vpack.c.bf16 %v692_v42, %v694_v38  ;;  %v14539_v9 = vld [vmem:[#allocation8 + $0xa0] sm:$0xff]   ;;  %v690_v11 = vsel %vm667_vm1, %v641_v34, %v643_v54  ;;  %v11578_v34 = vcombine.low %v15678_v62, %v15680_v63  ;;  %v295_v62 = vld [vmem:[#allocation3 + $0x378] sm:$0xff]  ;;  %v612_v7 = vunpack.c.h.bf16 %v287_v61 }
  0xac   :  { %12769 = vmatpush3.bf16.msra.mxu1 %v14529_v59  ;;  %2582 = vmatprep.mubr.bf16.mxu1 %v11547_v15  ;;  %v645_v59 = vrot.slane %v597_v45, 7  ;;  %v14541_v14 = vld [vmem:[#allocation8 + $0x120] sm:$0xff]   ;;  %v685_v15 = vsel %vm667_vm1, %v648_v3, %v650_v4  ;;  %v610_v45 = vunpack.c.h.bf16 %v279_v37  ;;  %v11594_v63 = vcombine.low %v15694_v26, %v256_v31  ;;  %v14550_v3 = vld [vmem:[#allocation8 + $0xc8] sm:$0xff]  }
  0xad   :  { %12770 = vmatprep.subr.bf16.mxu1 %v14532_v21  ;;  %1077 = vmatprep.mubr.bf16.mxu0 %v896_v33  ;;  %v900_v23 = vpack.c.bf16 %v685_v15, %v687_v16  ;;  %v14545_v33 = vld [vmem:[#allocation8 + $0x118] sm:$0xff]  }
  0xae   :  { %12706 = vmatprep.subr.bf16.mxu0 %v14530_v20  ;;  %v688_v10 = vsel %vm667_vm1, %v643_v54, %v645_v59  ;;  %v606_v20 = vunpack.c.h.bf16 %v263_v18  ;;  %v686_v39 = vsel %vm667_vm1, %v645_v59, %v647_v24  ;;  %v658_v58 = vrot.slane %v610_v45, 7  ;;  %v264_v59 = vld [vmem:[#allocation3 + $0x280] sm:$0xff] }
  0xaf   :  { %12707 = vmatpush3.bf16.msra.mxu0 %v14531_v36  ;;  %v897_v21 = vpack.c.bf16 %v688_v10, %v690_v11  ;;  %v271_v36 = vld [vmem:[#allocation3 + $0x2b8] sm:$0xff]  ;;  %v15724_v45 = vld [vmem:[#allocation3 + $0x380] sm:$0xff] }
  0xb0   :  { %12771 = vmatpush3.bf16.msra.mxu1 %v14533_v25  ;;  %12708 = vmatprep.subr.bf16.mxu0 %v14534_v41  ;;  %v649_v25 = vrot.slane %v601_v13, 7  ;;  %v654_v30 = vrot.slane %v606_v20, 7  ;;  %v605_v41 = vunpack.c.l.bf16 %v263_v18  ;;  %v608_v44 = vunpack.c.h.bf16 %v271_v36  ;;  %v14552_v13 = vld [vmem:[#allocation8 + $0x148] sm:$0xff]   ;;  %v280_v18 = vld [vmem:[#allocation3 + $0x300] sm:$0xff] }
  0xb1   :  { %12772 = vmatprep.subr.bf16.mxu1 %v14536_v46  ;;  %v14546_v46 = vld [vmem:[#allocation8 + $0xd0] sm:$0xff]  }
  0xb2   :  { %1078 = vmatmul.mubr.bf16.gmra.mxu0 %v895_v52  ;;  %v684_v38 = vsel %vm667_vm1, %v647_v24, %v649_v25  ;;  %v681_v42 = vsel %vm667_vm1, %v652_v29, %v654_v30  ;;  %v14548_v52 = vld [vmem:[#allocation8 + $0x150] sm:$0xff]   ;;  %v653_v54 = vrot.slane %v605_v41, 7  ;;  %v656_v56 = vrot.slane %v608_v44, 7  ;;  %v14555_v24 = vld [vmem:[#allocation8 + $0x80] sm:$0xff]  }
  0xb3   :  { %2583 = vmatmul.mubr.bf16.gmra.mxu1 %v11546_v35  ;;  %1085 = vmatprep.mubr.bf16.mxu0 %v898_v0  ;;  %v603_v35 = vunpack.c.l.bf16 %v255_v17  ;;  %v902_v53 = vpack.c.bf16 %v681_v42, %v683_v43  ;;  %v607_v0 = vunpack.c.l.bf16 %v271_v36  ;;  %v611_v29 = vunpack.c.l.bf16 %v287_v61  ;;  %v14560_v43 = vld [vmem:[#allocation8 + $0x278] sm:$0xff]   ;;  %v194_v61 = vld [vmem:[#allocation3 + $0x50] sm:$0xff] }
  0xb4   :  { %2590 = vmatprep.mubr.bf16.mxu1 %v11563_v40  ;;  %12773 = vmatpush3.bf16.msra.mxu1 %v14537_v50  ;;  %v11595_v40 = vcombine.high %v15694_v26, %v256_v31  ;;  %v677_v10 = vsel %vm667_vm1, %v656_v56, %v658_v58  ;;  %v679_v11 = vsel %vm667_vm1, %v654_v30, %v656_v56  ;;  %v14556_v26 = vld [vmem:[#allocation8 + $0x140] sm:$0xff]  }
  0xb5   :  { %12709 = vmatpush3.bf16.msra.mxu0 %v14535_v49  ;;  %12774 = vmatprep.subr.bf16.mxu1 %v14540_v5  ;;  %v899_v49 = vpack.c.bf16 %v684_v38, %v686_v39  ;;  %v651_v50 = vrot.slane %v603_v35, 7  ;;  %v655_v16 = vrot.slane %v607_v0, 7  ;;  %v904_v20 = vpack.c.bf16 %v677_v10, %v679_v11  ;;  %v14557_v30 = vld [vmem:[#allocation8 + $0x100] sm:$0xff]   ;;  %v14558_v38 = vld [vmem:[#allocation8 + $0x1f8] sm:$0xff]  }
  0xb6   :  { %12710 = vmatprep.subr.bf16.mxu0 %v14538_v2  ;;  %v609_v2 = vunpack.c.l.bf16 %v279_v37  ;;  %v201_v11 = vld [vmem:[#allocation3 + $0x88] sm:$0xff] }
  0xb7   :  { %v680_v4 = vsel %vm667_vm1, %v651_v50, %v653_v54  ;;  %v682_v5 = vsel %vm667_vm1, %v649_v25, %v651_v50  ;;  %v303_v25 = vld [vmem:[#allocation3 + $0x3b8] sm:$0xff] }
  0xb8   :  { %12775 = vmatpush3.bf16.msra.mxu1 %v14541_v14  ;;  %v14553_v14 = vld [vmem:[#allocation8 + $0x108] sm:$0xff]   ;;  %v901_v15 = vpack.c.bf16 %v680_v4, %v682_v5  ;;  %v657_v17 = vrot.slane %v609_v2, 7  ;;  %v616_v37 = vunpack.c.h.bf16 %v303_v25  ;;  %v185_v2 = vld [vmem:[#allocation3 + $0x8] sm:$0xff] }
  0xb9   :  { %12711 = vmatpush3.bf16.msra.mxu0 %v14539_v9  ;;  %12776 = vmatprep.subr.bf16.mxu1 %v14544_v32  ;;  %v14551_v9 = vld [vmem:[#allocation8 + $0x88] sm:$0xff]   ;;  %v678_v32 = vsel %vm667_vm1, %v653_v54, %v655_v16 }
  0xba   :  { %12712 = vmatprep.subr.bf16.mxu0 %v14542_v22  ;;  %1086 = vmatmul.mubr.bf16.gmra.mxu0 %v897_v21  ;;  %v660_v21 = vrot.slane %v612_v7, 7  ;;  %v14554_v22 = vld [vmem:[#allocation8 + $0xc0] sm:$0xff]   ;;  %v676_v31 = vsel %vm667_vm1, %v655_v16, %v657_v17  ;;  %v664_v44 = vrot.slane %v616_v37, 7  ;;  %v14562_v16 = vld [vmem:[#allocation8 + $0x1f0] sm:$0xff]  }
  0xbb   :  { %2591 = vmatmul.mubr.bf16.gmra.mxu1 %v11562_v6  ;;  %1093 = vmatprep.mubr.bf16.mxu0 %v900_v23  ;;  %v11611_v6 = vcombine.high %v264_v59, %v272_v60  ;;  %v903_v39 = vpack.c.bf16 %v676_v31, %v678_v32  ;;  %v210_v7 = vld [vmem:[#allocation3 + $0xd0] sm:$0xff] }
  0xbc   :  { %2598 = vmatprep.mubr.bf16.mxu1 %v11579_v12  ;;  %12777 = vmatpush3.bf16.msra.mxu1 %v14545_v33  ;;  %v614_v12 = vunpack.c.h.bf16 %v295_v62  ;;  %v11627_v33 = vcombine.high %v280_v18, %v288_v19  ;;  %v675_v36 = vsel %vm667_vm1, %v658_v58, %v660_v21  ;;  %v669_v54 = vsel %vm667_vm1, %v664_v44, %v15631_v48  ;;  %v14572_v31 = vld [vmem:[#allocation8 + $0x260] sm:$0xff]  }
  0xbd   :  { %12713 = vmatpush3.bf16.msra.mxu0 %v14543_v27  ;;  %12778 = vmatprep.subr.bf16.mxu1 %v14548_v52  ;;  %v11610_v27 = vcombine.low %v264_v59, %v272_v60  ;;  %v186_v60 = vld [vmem:[#allocation3 + $0x10] sm:$0xff] }
  0xbe   :  { %12714 = vmatprep.subr.bf16.mxu0 %v14546_v46  ;;  %v662_v23 = vrot.slane %v614_v12, 7  ;;  %v15726_v46 = vld [vmem:[#allocation3 + $0x3c0] sm:$0xff]  ;;  %v11535_v0 = vcombine.high %v186_v60, %v194_v61  ;;  %v11534_v10 = vcombine.low %v186_v60, %v194_v61  ;;  %v209_v12 = vld [vmem:[#allocation3 + $0xc8] sm:$0xff]  ;;  %v14573_v37 = vld [vmem:[#allocation8 + $0x220] sm:$0xff]  }
  0xbf   :  { %v11643_v52 = vcombine.high %v15724_v45, %v15726_v46  ;;  %v11548_v32 = vcombine.low %v201_v11, %v209_v12  ;;  %v249_v61 = vld [vmem:[#allocation3 + $0x208] sm:$0xff] }
  0xc0   :  { %12779 = vmatpush3.bf16.msra.mxu1 %v14549_v55  ;;  %v673_v35 = vsel %vm667_vm1, %v660_v21, %v662_v23  ;;  %v671_v55 = vsel %vm667_vm1, %v662_v23, %v664_v44  ;;  %v14568_v21 = vld [vmem:[#allocation8 + $0x268] sm:$0xff]   ;;  %v14563_v23 = vld [vmem:[#allocation8 + $0x1b0] sm:$0xff]   ;;  %v14574_v44 = vld [vmem:[#allocation8 + $0x1d8] sm:$0xff]  }
  0xc1   :  { %12715 = vmatpush3.bf16.msra.mxu0 %v14547_v47  ;;  %12780 = vmatprep.subr.bf16.mxu1 %v14552_v13  ;;  %v906_v41 = vpack.c.bf16 %v673_v35, %v675_v36  ;;  %v11626_v47 = vcombine.low %v280_v18, %v288_v19  ;;  %v908_v58 = vpack.c.bf16 %v669_v54, %v671_v55  ;;  %v218_v19 = vld [vmem:[#allocation3 + $0x110] sm:$0xff]  ;;  %v14575_v54 = vld [vmem:[#allocation8 + $0x198] sm:$0xff]  }
  0xc2   :  { %1094 = vmatmul.mubr.bf16.gmra.mxu0 %v899_v49  ;;  %12716 = vmatprep.subr.bf16.mxu0 %v14550_v3  ;;  %v193_v3 = vld [vmem:[#allocation3 + $0x48] sm:$0xff]  ;;  %v11549_v18 = vcombine.high %v201_v11, %v209_v12  ;;  %v242_v35 = vld [vmem:[#allocation3 + $0x1d0] sm:$0xff] }
  0xc3   :  { %2599 = vmatmul.mubr.bf16.gmra.mxu1 %v11578_v34  ;;  %1101 = vmatprep.mubr.bf16.mxu0 %v902_v53  ;;  %v613_v34 = vunpack.c.l.bf16 %v295_v62  ;;  %v615_v53 = vunpack.c.l.bf16 %v303_v25  ;;  %v11642_v62 = vcombine.low %v15724_v45, %v15726_v46  ;;  %v11533_v5 = vcombine.high %v185_v2, %v193_v3  ;;  %v225_v25 = vld [vmem:[#allocation3 + $0x148] sm:$0xff]  ;;  %v14570_v36 = vld [vmem:[#allocation8 + $0x1e0] sm:$0xff]  }
  0xc4   :  { %2606 = vmatprep.mubr.bf16.mxu1 %v11595_v40  ;;  %12781 = vmatpush3.bf16.msra.mxu1 %v14553_v14  ;;  %v659_v40 = vrot.slane %v611_v29, 7  ;;  %v11532_v14 = vcombine.low %v185_v2, %v193_v3  ;;  %v14569_v29 = vld [vmem:[#allocation8 + $0x228] sm:$0xff]   ;;  %v14588_v3 = vld [vmem:[#allocation8 + $0x240] sm:$0xff]   ;;  %v14592_v12 = vld [vmem:[#allocation8 + $0x378] sm:$0xff]  }
  0xc5   :  { %12717 = vmatpush3.bf16.msra.mxu0 %v14551_v9  ;;  %12782 = vmatprep.subr.bf16.mxu1 %v14556_v26  ;;  %v661_v42 = vrot.slane %v613_v34, 7  ;;  %v663_v59 = vrot.slane %v615_v53, 7  ;;  %v14561_v9 = vld [vmem:[#allocation8 + $0x238] sm:$0xff]   ;;  %v258_v53 = vld [vmem:[#allocation3 + $0x250] sm:$0xff]  ;;  %v14585_v2 = vld [vmem:[#allocation8 + $0x208] sm:$0xff]  }
  0xc6   :  { %12718 = vmatprep.subr.bf16.mxu0 %v14554_v22  ;;  %v674_v50 = vsel %vm667_vm1, %v657_v17, %v659_v40  ;;  %v14565_v17 = vld [vmem:[#allocation8 + $0x230] sm:$0xff]   ;;  %v14589_v11 = vld [vmem:[#allocation8 + $0x200] sm:$0xff]  }
  0xc7   :  { %v672_v49 = vsel %vm667_vm1, %v659_v40, %v661_v42  ;;  %v670_v48 = vsel %vm667_vm1, %v661_v42, %v663_v59  ;;  %v233_v40 = vld [vmem:[#allocation3 + $0x188] sm:$0xff]  ;;  %v14571_v42 = vld [vmem:[#allocation8 + $0x1a0] sm:$0xff]  }
  0xc8   :  { %12783 = vmatpush3.bf16.msra.mxu1 %v14557_v30  ;;  %v905_v56 = vpack.c.bf16 %v672_v49, %v674_v50  ;;  %v14567_v30 = vld [vmem:[#allocation8 + $0x1a8] sm:$0xff]   ;;  %v14580_v49 = vld [vmem:[#allocation8 + $0x250] sm:$0xff]  }
  0xc9   :  { %12719 = vmatpush3.bf16.msra.mxu0 %v14555_v24  ;;  %12896 = vmatprep.subr.bf16.mxu1 %v14560_v43  ;;  %v217_v24 = vld [vmem:[#allocation3 + $0x108] sm:$0xff] }
  0xca   :  { %1102 = vmatmul.mubr.bf16.gmra.mxu0 %v901_v15  ;;  %12832 = vmatprep.subr.bf16.mxu0 %v14558_v38  ;;  %v14559_v15 = vld [vmem:[#allocation8 + $0x1b8] sm:$0xff]   ;;  %v11565_v34 = vcombine.high %v217_v24, %v225_v25  ;;  %v11564_v50 = vcombine.low %v217_v24, %v225_v25 }
  0xcb   :  { %2607 = vmatmul.mubr.bf16.gmra.mxu1 %v11594_v63  ;;  %1109 = vmatprep.mubr.bf16.mxu0 %v904_v20  ;;  %v668_v63 = vsel %vm667_vm1, %v663_v59, %v15651_v8  ;;  %v14564_v8 = vld [vmem:[#allocation8 + $0x270] sm:$0xff]   ;;  %v226_v20 = vld [vmem:[#allocation3 + $0x150] sm:$0xff]  ;;  %v14576_v38 = vld [vmem:[#allocation8 + $0x258] sm:$0xff]  }
  0xcc   :  { %2614 = vmatprep.mubr.bf16.mxu1 %v11611_v6  ;;  %v907_v4 = vpack.c.bf16 %v668_v63, %v670_v48  ;;  %v202_v6 = vld [vmem:[#allocation3 + $0x90] sm:$0xff]  ;;  %v11567_v26 = vcombine.high %v218_v19, %v226_v20  ;;  %v14584_v59 = vld [vmem:[#allocation8 + $0x248] sm:$0xff]   ;;  %v14579_v48 = vld [vmem:[#allocation8 + $0x190] sm:$0xff]  }
  0xcd   :  { %v11551_v13 = vcombine.high %v202_v6, %v210_v7  ;;  %v11550_v22 = vcombine.low %v202_v6, %v210_v7  ;;  %v274_v6 = vld [vmem:[#allocation3 + $0x2d0] sm:$0xff]  ;;  %v281_v24 = vld [vmem:[#allocation3 + $0x308] sm:$0xff] }
  0xce   :  { %v289_v25 = vld [vmem:[#allocation3 + $0x348] sm:$0xff] }
  0xd2   :  { %1110 = vmatmul.mubr.bf16.gmra.mxu0 %v903_v39  ;;  %v11566_v39 = vcombine.low %v218_v19, %v226_v20  ;;  %v282_v20 = vld [vmem:[#allocation3 + $0x310] sm:$0xff] }
  0xd3   :  { %2615 = vmatmul.mubr.bf16.gmra.mxu1 %v11610_v27  ;;  %1117 = vmatprep.mubr.bf16.mxu0 %v906_v41  ;;  %v14566_v27 = vld [vmem:[#allocation8 + $0x1e8] sm:$0xff]   ;;  %v241_v41 = vld [vmem:[#allocation3 + $0x1c8] sm:$0xff] }
  0xd4   :  { %2622 = vmatprep.mubr.bf16.mxu1 %v11627_v33  ;;  %v234_v33 = vld [vmem:[#allocation3 + $0x190] sm:$0xff]  ;;  %v11581_v55 = vcombine.high %v233_v40, %v241_v41 }
  0xd5   :  { %v11583_v43 = vcombine.high %v234_v33, %v242_v35  ;;  %v11582_v60 = vcombine.low %v234_v33, %v242_v35  ;;  %v11628_v35 = vcombine.low %v281_v24, %v289_v25 }
  0xda   :  { %1118 = vmatmul.mubr.bf16.gmra.mxu0 %v905_v56  ;;  %v14578_v56 = vld [vmem:[#allocation8 + $0x1d0] sm:$0xff]  }
  0xdb   :  { %2623 = vmatmul.mubr.bf16.gmra.mxu1 %v11626_v47  ;;  %1125 = vmatprep.mubr.bf16.mxu0 %v908_v58  ;;  %v14577_v47 = vld [vmem:[#allocation8 + $0x218] sm:$0xff]   ;;  %v14581_v58 = vld [vmem:[#allocation8 + $0x210] sm:$0xff]  }
  0xdc   :  { %2630 = vmatprep.mubr.bf16.mxu1 %v11643_v52  ;;  %v250_v52 = vld [vmem:[#allocation3 + $0x210] sm:$0xff] }
  0xdd   :  { %v11599_v63 = vcombine.high %v250_v52, %v258_v53 }
  0xe2   :  { %1126 = vmatmul.mubr.bf16.gmra.mxu0 %v907_v4  ;;  %v11580_v4 = vcombine.low %v233_v40, %v241_v41  ;;  %v187_v41 = vld [vmem:[#allocation3 + $0x18] sm:$0xff] }
  0xe3   :  { %2631 = vmatmul.mubr.bf16.gmra.mxu1 %v11642_v62  ;;  %2671 = vmatprep.mubr.bf16.mxu0 %v11533_v5  ;;  %v257_v62 = vld [vmem:[#allocation3 + $0x248] sm:$0xff]  ;;  %v266_v5 = vld [vmem:[#allocation3 + $0x290] sm:$0xff] }
  0xe4   :  { %2768 = vmatprep.mubr.bf16.mxu1 %v11535_v0  ;;  %v14582_v0 = vld [vmem:[#allocation8 + $0x1c8] sm:$0xff]   ;;  %v11597_v7 = vcombine.high %v249_v61, %v257_v62 }
  0xea   :  { %2672 = vmatmul.mubr.bf16.vlgmr.msra.gmra.mxu0 %v11532_v14  ;;  %v273_v14 = vld [vmem:[#allocation3 + $0x2c8] sm:$0xff] }
  0xeb   :  { %2769 = vmatmul.mubr.bf16.vlgmr.msra.gmra.mxu1 %v11534_v10  ;;  %12833 = vmatpush3.bf16.msra.mxu0 %v14559_v15  ;;  %v14586_v10 = vld [vmem:[#allocation8 + $0x1c0] sm:$0xff]   ;;  %v11615_v15 = vcombine.high %v266_v5, %v274_v6 }
  0xec   :  { %12897 = vmatpush3.bf16.msra.mxu1 %v14561_v9  ;;  %2776 = vmatprep.mubr.bf16.mxu1 %v11551_v13  ;;  %v14583_v9 = vld [vmem:[#allocation8 + $0x188] sm:$0xff]   ;;  %v11598_v13 = vcombine.low %v250_v52, %v258_v53 }
  0xed   :  { %12898 = vmatprep.subr.bf16.mxu1 %v14564_v8  ;;  %2679 = vmatprep.mubr.bf16.mxu0 %v11549_v18  ;;  %v265_v8 = vld [vmem:[#allocation3 + $0x288] sm:$0xff]  ;;  %v11596_v18 = vcombine.low %v249_v61, %v257_v62 }
  0xee   :  { %12834 = vmatprep.subr.bf16.mxu0 %v14562_v16  ;;  %v14587_v16 = vld [vmem:[#allocation8 + $0x180] sm:$0xff]   ;;  %v11613_v19 = vcombine.high %v265_v8, %v273_v14 }
  0xef   :  { %12835 = vmatpush3.bf16.msra.mxu0 %v14563_v23 }
  0xf0   :  { %12899 = vmatpush3.bf16.msra.mxu1 %v14565_v17  ;;  %12836 = vmatprep.subr.bf16.mxu0 %v14566_v27  ;;  %v14590_v17 = vld [vmem:[#allocation8 + $0x2f8] sm:$0xff]   ;;  %v11629_v27 = vcombine.high %v281_v24, %v289_v25  ;;  %v14599_v24 = vld [vmem:[#allocation8 + $0x2a8] sm:$0xff]   ;;  %v14604_v25 = vld [vmem:[#allocation8 + $0x360] sm:$0xff]  }
  0xf1   :  { %12900 = vmatprep.subr.bf16.mxu1 %v14568_v21  ;;  %v290_v21 = vld [vmem:[#allocation3 + $0x350] sm:$0xff] }
  0xf2   :  { %2680 = vmatmul.mubr.bf16.gmra.mxu0 %v11548_v32  ;;  %v11631_v23 = vcombine.high %v282_v20, %v290_v21  ;;  %v297_v32 = vld [vmem:[#allocation3 + $0x388] sm:$0xff] }
  0xf3   :  { %2777 = vmatmul.mubr.bf16.gmra.mxu1 %v11550_v22  ;;  %2687 = vmatprep.mubr.bf16.mxu0 %v11565_v34  ;;  %v11614_v22 = vcombine.low %v266_v5, %v274_v6  ;;  %v305_v34 = vld [vmem:[#allocation3 + $0x3c8] sm:$0xff] }
  0xf4   :  { %2784 = vmatprep.mubr.bf16.mxu1 %v11567_v26  ;;  %12901 = vmatpush3.bf16.msra.mxu1 %v14569_v29  ;;  %v11612_v26 = vcombine.low %v265_v8, %v273_v14  ;;  %v298_v29 = vld [vmem:[#allocation3 + $0x390] sm:$0xff]  ;;  %v11644_v53 = vcombine.low %v297_v32, %v305_v34  ;;  %v228_v8 = vld [vmem:[#allocation3 + $0x160] sm:$0xff] }
  0xf5   :  { %12902 = vmatprep.subr.bf16.mxu1 %v14572_v31  ;;  %12837 = vmatpush3.bf16.msra.mxu0 %v14567_v30  ;;  %v306_v30 = vld [vmem:[#allocation3 + $0x3d0] sm:$0xff]  ;;  %v11630_v31 = vcombine.low %v282_v20, %v290_v21  ;;  %v227_v20 = vld [vmem:[#allocation3 + $0x158] sm:$0xff] }
  0xf6   :  { %12838 = vmatprep.subr.bf16.mxu0 %v14570_v36  ;;  %v11647_v33 = vcombine.high %v298_v29, %v306_v30  ;;  %v11645_v36 = vcombine.high %v297_v32, %v305_v34  ;;  %v14605_v32 = vld [vmem:[#allocation8 + $0x320] sm:$0xff]  }
  0xf8   :  { %12903 = vmatpush3.bf16.msra.mxu1 %v14573_v37  ;;  %v188_v37 = vld [vmem:[#allocation3 + $0x20] sm:$0xff] }
  0xf9   :  { %12904 = vmatprep.subr.bf16.mxu1 %v14576_v38  ;;  %12839 = vmatpush3.bf16.msra.mxu0 %v14571_v42  ;;  %v196_v38 = vld [vmem:[#allocation3 + $0x60] sm:$0xff]  ;;  %v195_v42 = vld [vmem:[#allocation3 + $0x58] sm:$0xff] }
  0xfa   :  { %12840 = vmatprep.subr.bf16.mxu0 %v14574_v44  ;;  %2688 = vmatmul.mubr.bf16.gmra.mxu0 %v11564_v50  ;;  %v11539_v40 = vcombine.high %v188_v37, %v196_v38  ;;  %v15204_v50 = vld [vmem:[#allocation3 + $0x40] sm:$0xff]  ;;  %v11538_v62 = vcombine.low %v188_v37, %v196_v38  ;;  %v11536_v6 = vcombine.low %v187_v41, %v195_v42  ;;  %v14603_v37 = vld [vmem:[#allocation8 + $0x2a0] sm:$0xff]  }
  0xfb   :  { %2785 = vmatmul.mubr.bf16.gmra.mxu1 %v11566_v39  ;;  %2695 = vmatprep.mubr.bf16.mxu0 %v11581_v55  ;;  %v11646_v39 = vcombine.low %v298_v29, %v306_v30  ;;  %v743_v52 = vunpack.c.h.bf16 %v15204_v50  ;;  %v204_v55 = vld [vmem:[#allocation3 + $0xa0] sm:$0xff] }
  0xfc   :  { %2792 = vmatprep.mubr.bf16.mxu1 %v11583_v43  ;;  %12905 = vmatpush3.bf16.msra.mxu1 %v14577_v47  ;;  %v15202_v43 = vld [vmem:[#allocation3] sm:$0xff] }
  0xfd   :  { %12906 = vmatprep.subr.bf16.mxu1 %v14580_v49  ;;  %12841 = vmatpush3.bf16.msra.mxu0 %v14575_v54  ;;  %v741_v44 = vunpack.c.h.bf16 %v15202_v43  ;;  %v15203_v47 = vld [vmem:[#allocation3 + $0x80] sm:$0xff]  ;;  %v11537_v54 = vcombine.high %v187_v41, %v195_v42  ;;  %v791_v61 = vrot.slane %v743_v52, 1 }
  0xfe   :  { %12842 = vmatprep.subr.bf16.mxu0 %v14578_v56  ;;  %v744_v49 = vunpack.c.l.bf16 %v15203_v47  ;;  %v212_v56 = vld [vmem:[#allocation3 + $0xe0] sm:$0xff] }
  0xff   :  { %v15774_v30 = vld [vmem:[#allocation3 + $0x1e0] sm:$0xff] }
 0x100   :  { %12907 = vmatpush3.bf16.msra.mxu1 %v14581_v58  ;;  %v15746_v58 = vrot.slane %v741_v44, 1  ;;  %v14612_v41 = vld [vmem:[#allocation8 + $0x350] sm:$0xff]  }
 0x101   :  { %12908 = vmatprep.subr.bf16.mxu1 %v14584_v59  ;;  %12843 = vmatpush3.bf16.msra.mxu0 %v14579_v48  ;;  %v15748_v59 = vrot.slane %v744_v49, 1  ;;  %v211_v48 = vld [vmem:[#allocation3 + $0xd8] sm:$0xff]  ;;  %v15782_v43 = vld [vmem:[#allocation3 + $0x220] sm:$0xff] }
 0x102   :  { %12844 = vmatprep.subr.bf16.mxu0 %v14582_v0  ;;  %2696 = vmatmul.mubr.bf16.gmra.mxu0 %v11580_v4  ;;  %v11555_v0 = vcombine.high %v204_v55, %v212_v56  ;;  %v15784_v44 = vld [vmem:[#allocation3 + $0x260] sm:$0xff] }
 0x103   :  { %2793 = vmatmul.mubr.bf16.gmra.mxu1 %v11582_v60  ;;  %2703 = vmatprep.mubr.bf16.mxu0 %v11597_v7  ;;  %v14593_v60 = vld [vmem:[#allocation8 + $0x338] sm:$0xff]   ;;  %v15754_v4 = vsel %vm820_vm2, %v15641_v57, %v15748_v59  ;;  %v14610_v50 = vld [vmem:[#allocation8 + $0x2d0] sm:$0xff]  }
 0x104   :  { %2800 = vmatprep.mubr.bf16.mxu1 %v11599_v63  ;;  %12909 = vmatpush3.bf16.msra.mxu1 %v14585_v2  ;;  %v203_v63 = vld [vmem:[#allocation3 + $0x98] sm:$0xff]  ;;  %v745_v2 = vunpack.c.h.bf16 %v15203_v47  ;;  %v14591_v7 = vld [vmem:[#allocation8 + $0x2b8] sm:$0xff]   ;;  %v14613_v52 = vld [vmem:[#allocation8 + $0x310] sm:$0xff]  }
 0x105   :  { %12910 = vmatprep.subr.bf16.mxu1 %v14588_v3  ;;  %12845 = vmatpush3.bf16.msra.mxu0 %v14583_v9  ;;  %v14596_v3 = vld [vmem:[#allocation8 + $0x370] sm:$0xff]   ;;  %v14607_v47 = vld [vmem:[#allocation8 + $0x298] sm:$0xff]  }
 0x106   :  { %12846 = vmatprep.subr.bf16.mxu0 %v14586_v10  ;;  %v15756_v5 = vrot.slane %v745_v2, 1  ;;  %v14594_v9 = vld [vmem:[#allocation8 + $0x2f0] sm:$0xff]  }
 0x107   :  { %v14597_v10 = vld [vmem:[#allocation8 + $0x330] sm:$0xff]  }
 0x108   :  { %12911 = vmatpush3.bf16.msra.mxu1 %v14589_v11  ;;  %v15761_v11 = vsel %vm820_vm2, %v15746_v58, %v791_v61  ;;  %v15766_v57 = vsel %vm820_vm2, %v791_v61, %v15756_v5  ;;  %v15802_v2 = vld [vmem:[#allocation3 + $0x140] sm:$0xff] }
 0x109   :  { %13024 = vmatprep.subr.bf16.mxu1 %v14592_v12  ;;  %12847 = vmatpush3.bf16.msra.mxu0 %v14587_v16  ;;  %v11553_v12 = vcombine.high %v203_v63, %v211_v48 }
 0x10a   :  { %12960 = vmatprep.subr.bf16.mxu0 %v14590_v17  ;;  %2704 = vmatmul.mubr.bf16.gmra.mxu0 %v11596_v18  ;;  %v11554_v17 = vcombine.low %v204_v55, %v212_v56  ;;  %v14595_v18 = vld [vmem:[#allocation8 + $0x2b0] sm:$0xff]  }
 0x10b   :  { %2801 = vmatmul.mubr.bf16.gmra.mxu1 %v11598_v13  ;;  %2711 = vmatprep.mubr.bf16.mxu0 %v11613_v19  ;;  %v220_v13 = vld [vmem:[#allocation3 + $0x120] sm:$0xff]  ;;  %v219_v19 = vld [vmem:[#allocation3 + $0x118] sm:$0xff] }
 0x10c   :  { %2808 = vmatprep.mubr.bf16.mxu1 %v11615_v15  ;;  %v14600_v15 = vld [vmem:[#allocation8 + $0x368] sm:$0xff]   ;;  %v11571_v21 = vcombine.high %v220_v13, %v228_v8  ;;  %v11569_v29 = vcombine.high %v219_v19, %v227_v20  ;;  %v11570_v34 = vcombine.low %v220_v13, %v228_v8  ;;  %v11568_v42 = vcombine.low %v219_v19, %v227_v20  ;;  %v15809_v13 = vld [vmem:[#allocation3 + $0x1c0] sm:$0xff] }
 0x10d   :  { %v754_v8 = vunpack.c.l.bf16 %v15809_v13  ;;  %v15817_v20 = vld [vmem:[#allocation3 + $0x240] sm:$0xff] }
 0x112   :  { %2712 = vmatmul.mubr.bf16.gmra.mxu0 %v11612_v26  ;;  %v11552_v26 = vcombine.low %v203_v63, %v211_v48  ;;  %v15798_v63 = vld [vmem:[#allocation3 + $0x258] sm:$0xff]  ;;  %v11603_v48 = vcombine.high %v15782_v43, %v15784_v44 }
 0x113   :  { %2809 = vmatmul.mubr.bf16.gmra.mxu1 %v11614_v22  ;;  %2719 = vmatprep.mubr.bf16.mxu0 %v11629_v27  ;;  %v14598_v22 = vld [vmem:[#allocation8 + $0x2e8] sm:$0xff]   ;;  %v15772_v27 = vld [vmem:[#allocation3 + $0x1a0] sm:$0xff] }
 0x114   :  { %2816 = vmatprep.mubr.bf16.mxu1 %v11631_v23  ;;  %v14601_v23 = vld [vmem:[#allocation8 + $0x328] sm:$0xff]   ;;  %v11587_v38 = vcombine.high %v15772_v27, %v15774_v30  ;;  %v11586_v56 = vcombine.low %v15772_v27, %v15774_v30 }
 0x115   :  { %v14615_v30 = vld [vmem:[#allocation8 + $0x288] sm:$0xff]  }
 0x11a   :  { %2720 = vmatmul.mubr.bf16.gmra.mxu0 %v11628_v35  ;;  %v15776_v35 = vld [vmem:[#allocation3 + $0x198] sm:$0xff] }
 0x11b   :  { %2817 = vmatmul.mubr.bf16.gmra.mxu1 %v11630_v31  ;;  %2727 = vmatprep.mubr.bf16.mxu0 %v11645_v36  ;;  %v14602_v31 = vld [vmem:[#allocation8 + $0x2e0] sm:$0xff]   ;;  %v15778_v36 = vld [vmem:[#allocation3 + $0x1d8] sm:$0xff] }
 0x11c   :  { %2824 = vmatprep.mubr.bf16.mxu1 %v11647_v33  ;;  %v14608_v33 = vld [vmem:[#allocation8 + $0x358] sm:$0xff]   ;;  %v11585_v49 = vcombine.high %v15776_v35, %v15778_v36 }
 0x122   :  { %2728 = vmatmul.mubr.bf16.gmra.mxu0 %v11644_v53  ;;  %v14616_v53 = vld [vmem:[#allocation8 + $0x348] sm:$0xff]  }
 0x123   :  { %2825 = vmatmul.mubr.bf16.gmra.mxu1 %v11646_v39  ;;  %2865 = vmatprep.mubr.bf16.mxu0 %v11537_v54  ;;  %v14606_v39 = vld [vmem:[#allocation8 + $0x2d8] sm:$0xff]   ;;  %v15788_v54 = vld [vmem:[#allocation3 + $0xc0] sm:$0xff] }
 0x124   :  { %2962 = vmatprep.mubr.bf16.mxu1 %v11539_v40  ;;  %v14609_v40 = vld [vmem:[#allocation8 + $0x318] sm:$0xff]   ;;  %v746_v55 = vunpack.c.l.bf16 %v15788_v54 }
 0x126   :  { %v15815_v19 = vrot.slane %v746_v55, 1  ;;  %v275_v55 = vld [vmem:[#allocation3 + $0x2d8] sm:$0xff] }
 0x12a   :  { %2866 = vmatmul.mubr.bf16.vlgmr.msra.gmra.mxu0 %v11536_v6  ;;  %v15805_v6 = vld [vmem:[#allocation3 + $0x180] sm:$0xff] }
 0x12b   :  { %2963 = vmatmul.mubr.bf16.vlgmr.msra.gmra.mxu1 %v11538_v62  ;;  %12961 = vmatpush3.bf16.msra.mxu0 %v14591_v7  ;;  %v15796_v62 = vld [vmem:[#allocation3 + $0x218] sm:$0xff]  ;;  %v752_v7 = vunpack.c.l.bf16 %v15805_v6 }
 0x12c   :  { %13025 = vmatpush3.bf16.msra.mxu1 %v14593_v60  ;;  %2970 = vmatprep.mubr.bf16.mxu1 %v11555_v0  ;;  %v15793_v60 = vld [vmem:[#allocation3 + $0x100] sm:$0xff] }
 0x12d   :  { %13026 = vmatprep.subr.bf16.mxu1 %v14596_v3  ;;  %2873 = vmatprep.mubr.bf16.mxu0 %v11553_v12  ;;  %v748_v61 = vunpack.c.l.bf16 %v15793_v60  ;;  %v14611_v0 = vld [vmem:[#allocation8 + $0x290] sm:$0xff]   ;;  %v750_v3 = vunpack.c.l.bf16 %v15802_v2  ;;  %v855_v12 = vsub.s32 1, %v15626_v28 }
 0x12e   :  { %12962 = vmatprep.subr.bf16.mxu0 %v14594_v9  ;;  %v14614_v9 = vld [vmem:[#allocation8 + $0x2c8] sm:$0xff]  }
 0x12f   :  { %12963 = vmatpush3.bf16.msra.mxu0 %v14595_v18  ;;  %v14620_v18 = vld [vmem:[#allocation8 + $0x340] sm:$0xff]  }
 0x130   :  { %13027 = vmatpush3.bf16.msra.mxu1 %v14597_v10  ;;  %12964 = vmatprep.subr.bf16.mxu0 %v14598_v22  ;;  %v14617_v10 = vld [vmem:[#allocation8 + $0x308] sm:$0xff]   ;;  %v11584_v22 = vcombine.low %v15776_v35, %v15778_v36  ;;  %v14618_v35 = vld [vmem:[#allocation8 + $0x2c0] sm:$0xff]  }
 0x131   :  { %13028 = vmatprep.subr.bf16.mxu1 %v14600_v15  ;;  %v15812_v15 = vld [vmem:[#allocation3 + $0x200] sm:$0xff]  ;;  %v14621_v36 = vld [vmem:[#allocation8 + $0x300] sm:$0xff]  }
 0x132   :  { %2874 = vmatmul.mubr.bf16.gmra.mxu0 %v11552_v26  ;;  %v15828_v26 = vld [vmem:[#allocation3 + $0x280] sm:$0xff] }
 0x133   :  { %2971 = vmatmul.mubr.bf16.gmra.mxu1 %v11554_v17  ;;  %2881 = vmatprep.mubr.bf16.mxu0 %v11569_v29  ;;  %v756_v17 = vunpack.c.l.bf16 %v15812_v15  ;;  %v760_v27 = vunpack.c.l.bf16 %v15828_v26  ;;  %v11601_v29 = vcombine.high %v15796_v62, %v15798_v63 }
 0x134   :  { %2978 = vmatprep.mubr.bf16.mxu1 %v11571_v21  ;;  %13029 = vmatpush3.bf16.msra.mxu1 %v14601_v23  ;;  %v758_v21 = vunpack.c.l.bf16 %v15817_v20  ;;  %v15822_v23 = vld [vmem:[#allocation3 + $0x2a0] sm:$0xff] }
 0x135   :  { %13030 = vmatprep.subr.bf16.mxu1 %v14604_v25  ;;  %12965 = vmatpush3.bf16.msra.mxu0 %v14599_v24  ;;  %v15824_v24 = vld [vmem:[#allocation3 + $0x2e0] sm:$0xff]  ;;  %v15826_v25 = vrot.slane %v748_v61, 1  ;;  %v770_v61 = vunpack.c.l.bf16 %v15726_v46  ;;  %v749_v46 = vunpack.c.h.bf16 %v15793_v60  ;;  %v757_v60 = vunpack.c.h.bf16 %v15812_v15 }
 0x136   :  { %12966 = vmatprep.subr.bf16.mxu0 %v14602_v31  ;;  %v15833_v31 = vrot.slane %v750_v3, 1 }
 0x138   :  { %13031 = vmatpush3.bf16.msra.mxu1 %v14605_v32  ;;  %v15835_v32 = vrot.slane %v752_v7, 1  ;;  %v747_v7 = vunpack.c.h.bf16 %v15788_v54  ;;  %v15875_v54 = vrot.slane %v770_v61, 1 }
 0x139   :  { %13032 = vmatprep.subr.bf16.mxu1 %v14608_v33  ;;  %12967 = vmatpush3.bf16.msra.mxu0 %v14603_v37  ;;  %v15837_v33 = vld [vmem:[#allocation3 + $0x2c0] sm:$0xff]  ;;  %v15840_v37 = vrot.slane %v754_v8, 1  ;;  %v11600_v8 = vcombine.low %v15796_v62, %v15798_v63  ;;  %v761_v62 = vunpack.c.h.bf16 %v15828_v26  ;;  %v15882_v63 = vrot.slane %v749_v46, 1 }
 0x13a   :  { %12968 = vmatprep.subr.bf16.mxu0 %v14606_v39  ;;  %2882 = vmatmul.mubr.bf16.gmra.mxu0 %v11568_v42  ;;  %v15844_v39 = vld [vmem:[#allocation3 + $0x300] sm:$0xff]  ;;  %18270 = vst [vmem:[#allocation31_spill] sm:$0xff] %v15875_v54 }
 0x13b   :  { %2979 = vmatmul.mubr.bf16.gmra.mxu1 %v11570_v34  ;;  %2889 = vmatprep.mubr.bf16.mxu0 %v11585_v49  ;;  %v762_v34 = vunpack.c.l.bf16 %v15837_v33  ;;  %v15850_v49 = vrot.slane %v758_v21, 1  ;;  %v765_v61 = vunpack.c.h.bf16 %v15844_v39 }
 0x13c   :  { %2986 = vmatprep.mubr.bf16.mxu1 %v11587_v38  ;;  %13033 = vmatpush3.bf16.msra.mxu1 %v14609_v40  ;;  %v15842_v38 = vrot.slane %v756_v17, 1  ;;  %v764_v40 = vunpack.c.l.bf16 %v15844_v39  ;;  %v753_v17 = vunpack.c.h.bf16 %v15805_v6 }
 0x13d   :  { %13034 = vmatprep.subr.bf16.mxu1 %v14612_v41  ;;  %12969 = vmatpush3.bf16.msra.mxu0 %v14607_v47  ;;  %v15847_v41 = vld [vmem:[#allocation3 + $0x340] sm:$0xff]  ;;  %v14624_v47 = vld [vmem:[#allocation11 + $0x78] sm:$0xff]   ;;  %v15860_v3 = vrot.slane %v762_v34, 1  ;;  %v291_v34 = vld [vmem:[#allocation3 + $0x358] sm:$0xff]  ;;  %v15903_v46 = vrot.slane %v765_v61, 1 }
 0x13e   :  { %12970 = vmatprep.subr.bf16.mxu0 %v14610_v50  ;;  %v766_v42 = vunpack.c.l.bf16 %v15847_v41  ;;  %v768_v50 = vunpack.c.l.bf16 %v15724_v45  ;;  %v14622_v45 = vld [vmem:[#allocation8 + $0x3f8] sm:$0xff]  }
 0x140   :  { %13035 = vmatpush3.bf16.msra.mxu1 %v14613_v52  ;;  %v11602_v52 = vcombine.low %v15782_v43, %v15784_v44  ;;  %v15863_v43 = vrot.slane %v764_v40, 1  ;;  %v15865_v44 = vrot.slane %v766_v42, 1  ;;  %v15893_v40 = vrot.slane %v757_v60, 1  ;;  %v15218_v60 = vld [vmem:[#allocation6 + $0x8] sm:$0xff] }
 0x141   :  { %13036 = vmatprep.subr.bf16.mxu1 %v14616_v53  ;;  %12971 = vmatpush3.bf16.msra.mxu0 %v14611_v0  ;;  %v267_v53 = vld [vmem:[#allocation3 + $0x298] sm:$0xff]  ;;  %v14619_v0 = vld [vmem:[#allocation8 + $0x280] sm:$0xff]   ;;  %v15897_v42 = vrot.slane %v761_v62, 1  ;;  %v197_v62 = vld [vmem:[#allocation3 + $0x68] sm:$0xff] }
 0x142   :  { %12972 = vmatprep.subr.bf16.mxu0 %v14614_v9  ;;  %2890 = vmatmul.mubr.bf16.gmra.mxu0 %v11584_v22  ;;  %18268 = vst [vmem:[#allocation29_spill] sm:$0xff] %v15865_v44  ;;  %v751_v9 = vunpack.c.h.bf16 %v15802_v2  ;;  %v11617_v21 = vcombine.high %v267_v53, %v275_v55  ;;  %v284_v22 = vld [vmem:[#allocation3 + $0x320] sm:$0xff]  ;;  %v759_v2 = vunpack.c.h.bf16 %v15817_v20  ;;  %v763_v20 = vunpack.c.h.bf16 %v15837_v33 }
 0x143   :  { %2987 = vmatmul.mubr.bf16.gmra.mxu1 %v11586_v56  ;;  %v15855_v56 = vrot.slane %v760_v27, 1  ;;  %2897 = vmatprep.mubr.bf16.mxu0 %v11601_v29  ;;  %v292_v27 = vld [vmem:[#allocation3 + $0x360] sm:$0xff]  ;;  %v15879_v29 = vrot.slane %v747_v7, 1 }
 0x144   :  { %2994 = vmatprep.mubr.bf16.mxu1 %v11603_v48  ;;  %13037 = vmatpush3.bf16.msra.mxu1 %v14617_v10  ;;  %v11619_v48 = vcombine.high %v15822_v23, %v15824_v24  ;;  %v15869_v10 = vrot.slane %v768_v50, 1  ;;  %v15884_v6 = vrot.slane %v751_v9, 1  ;;  %v15895_v26 = vrot.slane %v759_v2, 1 }
 0x145   :  { %13038 = vmatprep.subr.bf16.mxu1 %v14620_v18  ;;  %12973 = vmatpush3.bf16.msra.mxu0 %v14615_v30  ;;  %v755_v18 = vunpack.c.h.bf16 %v15809_v13  ;;  %v11618_v13 = vcombine.low %v15822_v23, %v15824_v24  ;;  %v283_v30 = vld [vmem:[#allocation3 + $0x318] sm:$0xff]  ;;  %v11616_v50 = vcombine.low %v267_v53, %v275_v55  ;;  %v300_v23 = vld [vmem:[#allocation3 + $0x3a0] sm:$0xff]  ;;  %v11634_v33 = vcombine.low %v284_v22, %v292_v27  ;;  %v190_v55 = vld [vmem:[#allocation3 + $0x30] sm:$0xff] }
 0x146   :  { %12974 = vmatprep.subr.bf16.mxu0 %v14618_v35  ;;  %18269 = vst [vmem:[#allocation30_spill] sm:$0xff] %v15869_v10  ;;  %v15888_v35 = vrot.slane %v753_v17, 1  ;;  %v308_v24 = vld [vmem:[#allocation3 + $0x3e0] sm:$0xff]  ;;  %v11632_v53 = vcombine.low %v283_v30, %v291_v34  ;;  %v14653_v10 = vld [vmem:[#allocation11] sm:$0xff]  }
 0x147   :  { %v15890_v15 = vrot.slane %v755_v18, 1  ;;  %v11651_v7 = vcombine.high %v300_v23, %v308_v24  ;;  %v15216_v18 = vld [vmem:[#allocation3 + $0x380] sm:$0xff]  ;;  %v11650_v2 = vcombine.low %v300_v23, %v308_v24 }
 0x148   :  { %13039 = vmatpush3.bf16.msra.mxu1 %v14621_v36  ;;  %v11635_v36 = vcombine.high %v284_v22, %v292_v27  ;;  %v769_v39 = vunpack.c.h.bf16 %v15216_v18  ;;  %v189_v27 = vld [vmem:[#allocation3 + $0x28] sm:$0xff] }
 0x149   :  { %13152 = vmatprep.subr.bf16.mxu1 %v14624_v47  ;;  %12975 = vmatpush3.bf16.msra.mxu0 %v14619_v0  ;;  %v15899_v47 = vrot.slane %v763_v20, 1  ;;  %v307_v0 = vld [vmem:[#allocation3 + $0x3d8] sm:$0xff]  ;;  %v15912_v20 = vadd.s32 120, %v15626_v28  ;;  %v15931_v18 = vld [vmem:[#allocation3 + $0xa8] sm:$0xff] }
 0x14a   :  { %13088 = vmatprep.subr.bf16.mxu0 %v14622_v45  ;;  %2898 = vmatmul.mubr.bf16.gmra.mxu0 %v11600_v8  ;;  %v767_v45 = vunpack.c.h.bf16 %v15847_v41  ;;  %v198_v8 = vld [vmem:[#allocation3 + $0x70] sm:$0xff]  ;;  %v860_v41 = vrot.slane %v15218_v60, %v855_v12  ;;  %v14626_v60 = vld [vmem:[#allocation8 + $0x3f0] sm:$0xff]  }
 0x14b   :  { %2995 = vmatmul.mubr.bf16.gmra.mxu1 %v11602_v52  ;;  %2905 = vmatprep.mubr.bf16.mxu0 %v11617_v21  ;;  %v11633_v52 = vcombine.high %v283_v30, %v291_v34  ;;  %v15217_v21 = vld [vmem:[#allocation3 + $0x3c0] sm:$0xff]  ;;  %v11543_v34 = vcombine.high %v190_v55, %v198_v8  ;;  %18272 = vst [vmem:[#allocation33_spill] sm:$0xff] %v15912_v20  ;;  %vm787_vm3 = vcmp.eq.s32.totalorder %v15912_v20, 127  ;;  %v15945_v20 = vld [vmem:[#allocation3 + $0x1b0] sm:$0xff] }
 0x14c   :  { %3002 = vmatprep.mubr.bf16.mxu1 %v11619_v48  ;;  %v299_v48 = vld [vmem:[#allocation3 + $0x398] sm:$0xff]  ;;  %v15905_v9 = vrot.slane %v767_v45, 1  ;;  %v771_v22 = vunpack.c.h.bf16 %v15217_v21  ;;  %v11541_v45 = vcombine.high %v189_v27, %v197_v62  ;;  %v11540_v21 = vcombine.low %v189_v27, %v197_v62 }
 0x14d   :  { %v11649_v17 = vcombine.high %v299_v48, %v307_v0  ;;  %v11648_v24 = vcombine.low %v299_v48, %v307_v0  ;;  %v14628_v48 = vld [vmem:[#allocation11 + $0x70] sm:$0xff]  }
 0x14e   :  { %18271 = vst [vmem:[#allocation32_spill] sm:$0xff] %v15905_v9 }
 0x152   :  { %2906 = vmatmul.mubr.bf16.gmra.mxu0 %v11616_v50  ;;  %v15916_v50 = vrot.slane %v769_v39, 1  ;;  %v14623_v39 = vld [vmem:[#allocation8 + $0x3b8] sm:$0xff]  }
 0x153   :  { %3003 = vmatmul.mubr.bf16.gmra.mxu1 %v11618_v13  ;;  %2913 = vmatprep.mubr.bf16.mxu0 %v11633_v52  ;;  %v15219_v13 = vld [vmem:[#allocation6] sm:$0xff]  ;;  %v206_v52 = vld [vmem:[#allocation3 + $0xb0] sm:$0xff] }
 0x154   :  { %3010 = vmatprep.mubr.bf16.mxu1 %v11635_v36  ;;  %v856_v30 = vrot.slane %v15219_v13, %v855_v12  ;;  %v15914_v36 = vrot.slane %v771_v22, 1  ;;  %v214_v12 = vld [vmem:[#allocation3 + $0xf0] sm:$0xff] }
 0x155   :  { %v11559_v0 = vcombine.high %v206_v52, %v214_v12  ;;  %v11558_v62 = vcombine.low %v206_v52, %v214_v12 }
 0x156   :  { %18273 = vst [vmem:[#allocation34_spill] sm:$0xff] %v15914_v36  ;;  %v852_v23 = vsel %vm820_vm2, %v15914_v36, %v15746_v58  ;;  %v213_v58 = vld [vmem:[#allocation3 + $0xe8] sm:$0xff] }
 0x157   :  { %v15923_v61 = vsel %vm787_vm3, %v860_v41, %v852_v23  ;;  %v14629_v41 = vld [vmem:[#allocation11 + $0x30] sm:$0xff]   ;;  %v11557_v13 = vcombine.high %v15931_v18, %v213_v58  ;;  %v11556_v16 = vcombine.low %v15931_v18, %v213_v58 }
 0x158   :  { %18274 = vst [vmem:[#allocation35_spill] sm:$0xff] %v15923_v61 }
 0x15a   :  { %2914 = vmatmul.mubr.bf16.gmra.mxu0 %v11632_v53  ;;  %v14625_v53 = vld [vmem:[#allocation11 + $0x38] sm:$0xff]  }
 0x15b   :  { %3011 = vmatmul.mubr.bf16.gmra.mxu1 %v11634_v33  ;;  %2921 = vmatprep.mubr.bf16.mxu0 %v11649_v17  ;;  %v851_v33 = vsel %vm820_vm2, %v15875_v54, %v15634_v51  ;;  %v11542_v17 = vcombine.low %v190_v55, %v198_v8  ;;  %v15933_v51 = vld [vmem:[#allocation3 + $0x130] sm:$0xff]  ;;  %v14632_v55 = vld [vmem:[#allocation11 + $0x68] sm:$0xff]  }
 0x15c   :  { %3018 = vmatprep.mubr.bf16.mxu1 %v11651_v7  ;;  %v15929_v7 = vsel %vm787_vm3, %v856_v30, %v851_v33  ;;  %v15940_v33 = vld [vmem:[#allocation3 + $0x168] sm:$0xff] }
 0x15d   :  { %18275 = vst [vmem:[#allocation36_spill] sm:$0xff] %v15929_v7  ;;  %v14637_v7 = vld [vmem:[#allocation11 + $0x20] sm:$0xff]  }
 0x162   :  { %2922 = vmatmul.mubr.bf16.gmra.mxu0 %v11648_v24  ;;  %v15938_v24 = vld [vmem:[#allocation3 + $0x128] sm:$0xff] }
 0x163   :  { %3019 = vmatmul.mubr.bf16.gmra.mxu1 %v11650_v2  ;;  %3059 = vmatprep.mubr.bf16.mxu0 %v11541_v45  ;;  %v15935_v2 = vld [vmem:[#allocation3 + $0x170] sm:$0xff]  ;;  %v14630_v45 = vld [vmem:[#allocation8 + $0x3e8] sm:$0xff]  }
 0x164   :  { %3156 = vmatprep.mubr.bf16.mxu1 %v11543_v34  ;;  %v14627_v34 = vld [vmem:[#allocation8 + $0x3b0] sm:$0xff]  }
 0x16a   :  { %v12592_v23 = vpop.f32.mrf.mxu0  ;;  %3060 = vmatmul.mubr.bf16.vlgmr.msra.gmra.mxu0 %v11540_v21 }
 0x16b   :  { %v12656_v22 = vpop.f32.mrf.mxu1  ;;  %3157 = vmatmul.mubr.bf16.vlgmr.msra.gmra.mxu1 %v11542_v17  ;;  %v14633_v17 = vld [vmem:[#allocation11 + $0x28] sm:$0xff]   ;;  %13089 = vmatpush3.bf16.msra.mxu0 %v14623_v39  ;;  %v15947_v39 = vld [vmem:[#allocation3 + $0x1f0] sm:$0xff] }
 0x16c   :  { %13153 = vmatpush3.bf16.msra.mxu1 %v14625_v53  ;;  %3164 = vmatprep.mubr.bf16.mxu1 %v11559_v0  ;;  %v11575_v53 = vcombine.high %v15933_v51, %v15935_v2  ;;  %v14636_v0 = vld [vmem:[#allocation11 + $0x60] sm:$0xff]   ;;  %v12593_v14 = vpop.f32.mrf.mxu0 }
 0x16d   :  { %v12657_v8 = vpop.f32.mrf.mxu1  ;;  %13154 = vmatprep.subr.bf16.mxu1 %v14628_v48  ;;  %3067 = vmatprep.mubr.bf16.mxu0 %v11557_v13  ;;  %v14634_v13 = vld [vmem:[#allocation8 + $0x3e0] sm:$0xff]  }
 0x16e   :  { %v12658_v30 = vadd.f32 %v12657_v8, %v12656_v22  ;;  %13090 = vmatprep.subr.bf16.mxu0 %v14626_v60  ;;  %v12594_v22 = vadd.f32 %v12593_v14, %v12592_v23  ;;  %v14631_v8 = vld [vmem:[#allocation8 + $0x3a8] sm:$0xff]   ;;  %v12595_v52 = vpop.f32.mrf.mxu0  ;;  %v11573_v14 = vcombine.high %v15938_v24, %v15940_v33  ;;  %v14640_v60 = vld [vmem:[#allocation11 + $0x58] sm:$0xff]   ;;  %v14635_v23 = vld [vmem:[#allocation8 + $0x3a0] sm:$0xff]  }
 0x16f   :  { %v12659_v27 = vpop.f32.mrf.mxu1  ;;  %13091 = vmatpush3.bf16.msra.mxu0 %v14627_v34  ;;  %v15955_v34 = vld [vmem:[#allocation3 + $0x1a8] sm:$0xff] }
 0x170   :  { %13155 = vmatpush3.bf16.msra.mxu1 %v14629_v41  ;;  %v15949_v54 = vadd.f32 %v12658_v30, %v12594_v22  ;;  %v12596_v41 = vpop.f32.mrf.mxu0  ;;  %13092 = vmatprep.subr.bf16.mxu0 %v14630_v45  ;;  %v11574_v30 = vcombine.low %v15933_v51, %v15935_v2  ;;  %v14641_v22 = vld [vmem:[#allocation11 + $0x18] sm:$0xff]   ;;  %v11591_v45 = vcombine.high %v15945_v20, %v15947_v39 }
 0x171   :  { %v12660_v48 = vpop.f32.mrf.mxu1  ;;  %13156 = vmatprep.subr.bf16.mxu1 %v14632_v55  ;;  %v12597_v18 = vadd.f32 %v12596_v41, %v12595_v52  ;;  %v14639_v2 = vld [vmem:[#allocation8 + $0x398] sm:$0xff]  }
 0x172   :  { %v12661_v21 = vadd.f32 %v12660_v48, %v12659_v27  ;;  %v12598_v27 = vpop.f32.mrf.mxu0  ;;  %3068 = vmatmul.mubr.bf16.gmra.mxu0 %v11556_v16  ;;  %v15957_v48 = vld [vmem:[#allocation3 + $0x1e8] sm:$0xff] }
 0x173   :  { %v12662_v12 = vpop.f32.mrf.mxu1  ;;  %3165 = vmatmul.mubr.bf16.gmra.mxu1 %v11558_v62  ;;  %3075 = vmatprep.mubr.bf16.mxu0 %v11573_v14  ;;  %v15965_v14 = vld [vmem:[#allocation3 + $0x230] sm:$0xff] }
 0x174   :  { %3172 = vmatprep.mubr.bf16.mxu1 %v11575_v53  ;;  %13157 = vmatpush3.bf16.msra.mxu1 %v14633_v17  ;;  %v14638_v53 = vld [vmem:[#allocation8 + $0x3d8] sm:$0xff]   ;;  %v15959_v61 = vadd.f32 %v12661_v21, %v12597_v18  ;;  %v14644_v17 = vld [vmem:[#allocation11 + $0x50] sm:$0xff]   ;;  %v11572_v21 = vcombine.low %v15938_v24, %v15940_v33 }
 0x175   :  { %v12663_v55 = vpop.f32.mrf.mxu1  ;;  %13158 = vmatprep.subr.bf16.mxu1 %v14636_v0  ;;  %13093 = vmatpush3.bf16.msra.mxu0 %v14631_v8  ;;  %v12599_v0 = vpop.f32.mrf.mxu0  ;;  %v15967_v8 = vld [vmem:[#allocation3 + $0x270] sm:$0xff]  ;;  %v14645_v18 = vld [vmem:[#allocation11 + $0x10] sm:$0xff]  }
 0x176   :  { %v12664_v58 = vadd.f32 %v12663_v55, %v12662_v12  ;;  %13094 = vmatprep.subr.bf16.mxu0 %v14634_v13  ;;  %v12600_v52 = vadd.f32 %v12599_v0, %v12598_v27  ;;  %v14642_v55 = vld [vmem:[#allocation8 + $0x3d0] sm:$0xff]   ;;  %v14648_v13 = vld [vmem:[#allocation11 + $0x48] sm:$0xff]  }
 0x177   :  { %v12665_v62 = vpop.f32.mrf.mxu1  ;;  %v12601_v12 = vpop.f32.mrf.mxu0 }
 0x178   :  { %13159 = vmatpush3.bf16.msra.mxu1 %v14637_v7  ;;  %v15969_v36 = vadd.f32 %v12664_v58, %v12600_v52  ;;  %v11589_v7 = vcombine.high %v15955_v34, %v15957_v48  ;;  %v11590_v58 = vcombine.low %v15945_v20, %v15947_v39  ;;  %v15977_v52 = vld [vmem:[#allocation3 + $0x268] sm:$0xff]  ;;  %v14647_v39 = vld [vmem:[#allocation8 + $0x388] sm:$0xff]  }
 0x179   :  { %v12666_v16 = vpop.f32.mrf.mxu1  ;;  %13160 = vmatprep.subr.bf16.mxu1 %v14640_v60  ;;  %13095 = vmatpush3.bf16.msra.mxu0 %v14635_v23  ;;  %v12602_v60 = vpop.f32.mrf.mxu0  ;;  %v14646_v23 = vld [vmem:[#allocation8 + $0x3c8] sm:$0xff]  }
 0x17a   :  { %v12667_v51 = vadd.f32 %v12666_v16, %v12665_v62  ;;  %13096 = vmatprep.subr.bf16.mxu0 %v14638_v53  ;;  %v12603_v24 = vadd.f32 %v12602_v60, %v12601_v12  ;;  %v14643_v62 = vld [vmem:[#allocation8 + $0x390] sm:$0xff]   ;;  %3076 = vmatmul.mubr.bf16.gmra.mxu0 %v11572_v21  ;;  %v15975_v16 = vld [vmem:[#allocation3 + $0x228] sm:$0xff]  ;;  %v11607_v53 = vcombine.high %v15965_v14, %v15967_v8 }
 0x17b   :  { %v12668_v41 = vpop.f32.mrf.mxu1  ;;  %3173 = vmatmul.mubr.bf16.gmra.mxu1 %v11574_v30  ;;  %v12604_v30 = vpop.f32.mrf.mxu0  ;;  %3083 = vmatprep.mubr.bf16.mxu0 %v11589_v7  ;;  %v270_v7 = vld [vmem:[#allocation3 + $0x2b0] sm:$0xff] }
 0x17c   :  { %3180 = vmatprep.mubr.bf16.mxu1 %v11591_v45  ;;  %13161 = vmatpush3.bf16.msra.mxu1 %v14641_v22  ;;  %v14649_v45 = vld [vmem:[#allocation11 + $0x8] sm:$0xff]   ;;  %v15979_v44 = vadd.f32 %v12667_v51, %v12603_v24  ;;  %v14652_v22 = vld [vmem:[#allocation11 + $0x40] sm:$0xff]   ;;  %v11588_v51 = vcombine.low %v15955_v34, %v15957_v48 }
 0x17d   :  { %v12669_v27 = vpop.f32.mrf.mxu1  ;;  %13162 = vmatprep.subr.bf16.mxu1 %v14644_v17  ;;  %13097 = vmatpush3.bf16.msra.mxu0 %v14639_v2  ;;  %v12605_v17 = vpop.f32.mrf.mxu0  ;;  %v14650_v24 = vld [vmem:[#allocation8 + $0x3c0] sm:$0xff]  }
 0x17e   :  { %v12670_v33 = vadd.f32 %v12669_v27, %v12668_v41  ;;  %13098 = vmatprep.subr.bf16.mxu0 %v14642_v55  ;;  %v12606_v41 = vadd.f32 %v12605_v17, %v12604_v30  ;;  %v278_v27 = vld [vmem:[#allocation3 + $0x2f0] sm:$0xff]  ;;  %v11605_v55 = vcombine.high %v15975_v16, %v15977_v52 }
 0x17f   :  { %v12671_v0 = vpop.f32.mrf.mxu1  ;;  %v12607_v21 = vpop.f32.mrf.mxu0  ;;  %v14651_v17 = vld [vmem:[#allocation8 + $0x380] sm:$0xff]  }
 0x180   :  { %13163 = vmatpush3.bf16.msra.mxu1 %v14645_v18  ;;  %v15985_v2 = vadd.f32 %v12670_v33, %v12606_v41  ;;  %v11606_v33 = vcombine.low %v15965_v14, %v15967_v8  ;;  %v286_v14 = vld [vmem:[#allocation3 + $0x330] sm:$0xff] }
 0x181   :  { %v12672_v12 = vpop.f32.mrf.mxu1  ;;  %13164 = vmatprep.subr.bf16.mxu1 %v14648_v13  ;;  %13099 = vmatpush3.bf16.msra.mxu0 %v14643_v62  ;;  %v12608_v18 = vpop.f32.mrf.mxu0  ;;  %v11623_v62 = vcombine.high %v270_v7, %v278_v27  ;;  %v294_v8 = vld [vmem:[#allocation3 + $0x370] sm:$0xff] }
 0x182   :  { %v12673_v20 = vadd.f32 %v12672_v12, %v12671_v0  ;;  %13100 = vmatprep.subr.bf16.mxu0 %v14646_v23  ;;  %v12609_v13 = vadd.f32 %v12608_v18, %v12607_v21  ;;  %3084 = vmatmul.mubr.bf16.gmra.mxu0 %v11588_v51  ;;  %v277_v12 = vld [vmem:[#allocation3 + $0x2e8] sm:$0xff] }
 0x183   :  { %v12674_v60 = vpop.f32.mrf.mxu1  ;;  %3181 = vmatmul.mubr.bf16.gmra.mxu1 %v11590_v58  ;;  %v12610_v34 = vpop.f32.mrf.mxu0  ;;  %v269_v58 = vld [vmem:[#allocation3 + $0x2a8] sm:$0xff]  ;;  %3091 = vmatprep.mubr.bf16.mxu0 %v11605_v55 }
 0x184   :  { %3188 = vmatprep.mubr.bf16.mxu1 %v11607_v53  ;;  %13165 = vmatpush3.bf16.msra.mxu1 %v14649_v45  ;;  %v15991_v41 = vadd.f32 %v12673_v20, %v12609_v13  ;;  %v11621_v20 = vcombine.high %v269_v58, %v277_v12 }
 0x185   :  { %v12675_v30 = vpop.f32.mrf.mxu1  ;;  %13166 = vmatprep.subr.bf16.mxu1 %v14652_v22  ;;  %13101 = vmatpush3.bf16.msra.mxu0 %v14647_v39  ;;  %v12611_v53 = vpop.f32.mrf.mxu0 }
 0x186   :  { %v12676_v0 = vadd.f32 %v12675_v30, %v12674_v60  ;;  %13102 = vmatprep.subr.bf16.mxu0 %v14650_v24  ;;  %v12612_v45 = vadd.f32 %v12611_v53, %v12610_v34  ;;  %v11604_v60 = vcombine.low %v15975_v16, %v15977_v52  ;;  %v11622_v34 = vcombine.low %v270_v7, %v278_v27  ;;  %v293_v53 = vld [vmem:[#allocation3 + $0x368] sm:$0xff] }
 0x187   :  { %v12677_v48 = vpop.f32.mrf.mxu1  ;;  %v12613_v22 = vpop.f32.mrf.mxu0  ;;  %v11639_v52 = vcombine.high %v286_v14, %v294_v8 }
 0x188   :  { %13167 = vmatpush3.bf16.msra.mxu1 %v14653_v10  ;;  %v15995_v18 = vadd.f32 %v12676_v0, %v12612_v45 }
 0x189   :  { %v12678_v23 = vpop.f32.mrf.mxu1  ;;  %13103 = vmatpush3.bf16.msra.mxu0 %v14651_v17  ;;  %v12614_v39 = vpop.f32.mrf.mxu0  ;;  %v11620_v17 = vcombine.low %v269_v58, %v277_v12 }
 0x18a   :  { %v12679_v21 = vadd.f32 %v12678_v23, %v12677_v48  ;;  %v12615_v30 = vadd.f32 %v12614_v39, %v12613_v22  ;;  %3092 = vmatmul.mubr.bf16.gmra.mxu0 %v11604_v60  ;;  %v285_v48 = vld [vmem:[#allocation3 + $0x328] sm:$0xff]  ;;  %v302_v22 = vld [vmem:[#allocation3 + $0x3b0] sm:$0xff] }
 0x18b   :  { %v12680_v51 = vpop.f32.mrf.mxu1  ;;  %3189 = vmatmul.mubr.bf16.gmra.mxu1 %v11606_v33  ;;  %v12616_v10 = vpop.f32.mrf.mxu0  ;;  %3099 = vmatprep.mubr.bf16.mxu0 %v11621_v20  ;;  %v11637_v60 = vcombine.high %v285_v48, %v293_v53 }
 0x18c   :  { %3196 = vmatprep.mubr.bf16.mxu1 %v11623_v62  ;;  %v15997_v16 = vadd.f32 %v12679_v21, %v12615_v30 }
 0x18d   :  { %v12681_v55 = vpop.f32.mrf.mxu1  ;;  %v12617_v33 = vpop.f32.mrf.mxu0 }
 0x18e   :  { %v12682_v24 = vadd.f32 %v12681_v55, %v12680_v51  ;;  %18276 = vst [vmem:[#allocation37_spill] sm:$0xff] %v15997_v16  ;;  %v12618_v23 = vadd.f32 %v12617_v33, %v12616_v10  ;;  %v310_v51 = vld [vmem:[#allocation3 + $0x3f0] sm:$0xff]  ;;  %v11638_v16 = vcombine.low %v286_v14, %v294_v8  ;;  %v301_v10 = vld [vmem:[#allocation3 + $0x3a8] sm:$0xff] }
 0x18f   :  { %v12683_v13 = vpop.f32.mrf.mxu1  ;;  %v12619_v62 = vpop.f32.mrf.mxu0  ;;  %v11655_v58 = vcombine.high %v302_v22, %v310_v51 }
 0x190   :  { %v15999_v39 = vadd.f32 %v12682_v24, %v12618_v23 }
 0x191   :  { %v12684_v0 = vpop.f32.mrf.mxu1  ;;  %v12620_v7 = vpop.f32.mrf.mxu0 }
 0x192   :  { %v12685_v45 = vadd.f32 %v12684_v0, %v12683_v13  ;;  %18277 = vst [vmem:[#allocation38_spill] sm:$0xff] %v15999_v39  ;;  %v12621_v21 = vadd.f32 %v12620_v7, %v12619_v62  ;;  %3100 = vmatmul.mubr.bf16.gmra.mxu0 %v11620_v17  ;;  %v309_v13 = vld [vmem:[#allocation3 + $0x3e8] sm:$0xff] }
 0x193   :  { %v12686_v9 = vpop.f32.mrf.mxu1  ;;  %3197 = vmatmul.mubr.bf16.gmra.mxu1 %v11622_v34  ;;  %v12622_v20 = vpop.f32.mrf.mxu0  ;;  %3107 = vmatprep.mubr.bf16.mxu0 %v11637_v60 }
 0x194   :  { %3204 = vmatprep.mubr.bf16.mxu1 %v11639_v52  ;;  %v16001_v33 = vadd.f32 %v12685_v45, %v12621_v21  ;;  %v11636_v52 = vcombine.low %v285_v48, %v293_v53 }
 0x195   :  { %v12687_v27 = vpop.f32.mrf.mxu1  ;;  %v12623_v12 = vpop.f32.mrf.mxu0 }
 0x196   :  { %v12688_v55 = vadd.f32 %v12687_v27, %v12686_v9  ;;  %v12624_v24 = vadd.f32 %v12623_v12, %v12622_v20  ;;  %v11653_v9 = vcombine.high %v301_v10, %v309_v13  ;;  %v11654_v27 = vcombine.low %v302_v22, %v310_v51 }
 0x197   :  { %v12689_v30 = vpop.f32.mrf.mxu1  ;;  %v12625_v23 = vpop.f32.mrf.mxu0 }
 0x198   :  { %v16003_v62 = vadd.f32 %v12688_v55, %v12624_v24  ;;  %v11652_v55 = vcombine.low %v301_v10, %v309_v13  ;;  %v15221_v24 = vld [vmem:[#allocation3 + $0x78] sm:$0xff]  ;;  %v846_v10 = vsel %vm820_vm2, %v15756_v5, %v15879_v29 }
 0x199   :  { %v12690_v34 = vpop.f32.mrf.mxu1  ;;  %v12626_v17 = vpop.f32.mrf.mxu0 }
 0x19a   :  { %v12691_v0 = vadd.f32 %v12690_v34, %v12689_v30  ;;  %v12627_v8 = vadd.f32 %v12626_v17, %v12625_v23  ;;  %3108 = vmatmul.mubr.bf16.gmra.mxu0 %v11636_v52  ;;  %v15220_v34 = vld [vmem:[#allocation3 + $0x38] sm:$0xff]  ;;  %v18278_v23 = vpack.c.bf16 %v15766_v57, %v15761_v11 }
 0x19b   :  { %v12692_v39 = vpop.f32.mrf.mxu1  ;;  %3205 = vmatmul.mubr.bf16.gmra.mxu1 %v11638_v16  ;;  %v12628_v45 = vpop.f32.mrf.mxu0  ;;  %3115 = vmatprep.mubr.bf16.mxu0 %v11653_v9 }
 0x19c   :  { %3212 = vmatprep.mubr.bf16.mxu1 %v11655_v58  ;;  %v16005_v21 = vadd.f32 %v12691_v0, %v12627_v8  ;;  %v844_v0 = vsel %vm820_vm2, %v15879_v29, %v15882_v63  ;;  %v15222_v29 = vld [vmem:[#allocation3 + $0xb8] sm:$0xff] }
 0x19d   :  { %v12693_v14 = vpop.f32.mrf.mxu1  ;;  %v12629_v20 = vpop.f32.mrf.mxu0  ;;  %v3321_v11 = vpack.c.bf16 %v844_v0, %v846_v10 }
 0x19e   :  { %v12694_v7 = vadd.f32 %v12693_v14, %v12692_v39  ;;  %v12630_v48 = vadd.f32 %v12629_v20, %v12628_v45  ;;  %v11545_v39 = vcombine.high %v15220_v34, %v15221_v24 }
 0x19f   :  { %v12695_v60 = vpop.f32.mrf.mxu1  ;;  %v12631_v16 = vpop.f32.mrf.mxu0 }
 0x1a0   :  { %v16007_v58 = vadd.f32 %v12694_v7, %v12630_v48  ;;  %v15223_v48 = vld [vmem:[#allocation3 + $0xf8] sm:$0xff] }
 0x1a1   :  { %v12696_v30 = vpop.f32.mrf.mxu1  ;;  %v12632_v22 = vpop.f32.mrf.mxu0 }
 0x1a2   :  { %v12697_v53 = vadd.f32 %v12696_v30, %v12695_v60  ;;  %v12633_v13 = vadd.f32 %v12632_v22, %v12631_v16  ;;  %3116 = vmatmul.mubr.bf16.gmra.mxu0 %v11652_v55  ;;  %v11544_v60 = vcombine.low %v15220_v34, %v15221_v24  ;;  %v18279_v30 = vpack.c.bf16 %v15754_v4, %v15649_v1 }
 0x1a3   :  { %v12698_v12 = vpop.f32.mrf.mxu1  ;;  %3213 = vmatmul.mubr.bf16.gmra.mxu1 %v11654_v27  ;;  %v12634_v9 = vpop.f32.mrf.mxu0  ;;  %3253 = vmatprep.mubr.bf16.mxu0 %v11545_v39  ;;  %v11561_v16 = vcombine.high %v15222_v29, %v15223_v48  ;;  %v845_v55 = vsel %vm820_vm2, %v15748_v59, %v15815_v19  ;;  %v840_v1 = vsel %vm820_vm2, %v15884_v6, %v15888_v35 }
 0x1a4   :  { %3494 = vmatprep.mubr.bf16.mxu1 %v18278_v23  ;;  %v16020_v14 = vadd.f32 %v12697_v53, %v12633_v13  ;;  %v843_v53 = vsel %vm820_vm2, %v15815_v19, %v15826_v25  ;;  %v842_v4 = vsel %vm820_vm2, %v15882_v63, %v15884_v6  ;;  %v15224_v6 = vld [vmem:[#allocation3 + $0x138] sm:$0xff] }
 0x1a5   :  { %v12699_v51 = vpop.f32.mrf.mxu1  ;;  %v12635_v57 = vpop.f32.mrf.mxu0  ;;  %v3323_v59 = vpack.c.bf16 %v840_v1, %v842_v4 }
 0x1a6   :  { %v12700_v52 = vadd.f32 %v12699_v51, %v12698_v12  ;;  %v12636_v7 = vadd.f32 %v12635_v57, %v12634_v9  ;;  %v3320_v51 = vpack.c.bf16 %v843_v53, %v845_v55  ;;  %v15225_v57 = vld [vmem:[#allocation3 + $0x178] sm:$0xff] }
 0x1a7   :  { %v12701_v17 = vpop.f32.mrf.mxu1  ;;  %v12637_v27 = vpop.f32.mrf.mxu0 }
 0x1a8   :  { %v16025_v5 = vadd.f32 %v12700_v52, %v12636_v7  ;;  %v839_v7 = vsel %vm820_vm2, %v15833_v31, %v15835_v32 }
 0x1a9   :  { %v12702_v8 = vpop.f32.mrf.mxu1  ;;  %v12638_v12 = vpop.f32.mrf.mxu0 }
 0x1aa   :  { %v12703_v45 = vadd.f32 %v12702_v8, %v12701_v17  ;;  %v12639_v24 = vadd.f32 %v12638_v12, %v12637_v27  ;;  %3254 = vmatmul.mubr.bf16.vlgmr.msra.gmra.mxu0 %v11544_v60  ;;  %v11577_v8 = vcombine.high %v15224_v6, %v15225_v57 }
 0x1ab   :  { %v12784_v20 = vpop.f32.mrf.mxu1  ;;  %3495 = vmatmul.mubr.bf16.vlgmr.msra.gmra.mxu1 %v18279_v30  ;;  %v12720_v23 = vpop.f32.mrf.mxu0  ;;  %3261 = vmatprep.mubr.bf16.mxu0 %v11561_v16 }
 0x1ac   :  { %3502 = vmatprep.mubr.bf16.mxu1 %v3321_v11  ;;  %v16043_v0 = vadd.f32 %v12703_v45, %v12639_v24  ;;  %v11560_v11 = vcombine.low %v15222_v29, %v15223_v48  ;;  %v841_v45 = vsel %vm820_vm2, %v15826_v25, %v15833_v31 }
 0x1ad   :  { %v12785_v34 = vpop.f32.mrf.mxu1  ;;  %v12721_v19 = vpop.f32.mrf.mxu0  ;;  %v3322_v25 = vpack.c.bf16 %v839_v7, %v841_v45 }
 0x1ae   :  { %v12786_v39 = vadd.f32 %v12785_v34, %v12784_v20  ;;  %v12722_v13 = vadd.f32 %v12721_v19, %v12720_v23  ;;  %v838_v20 = vsel %vm820_vm2, %v15888_v35, %v15890_v15  ;;  %v837_v19 = vsel %vm820_vm2, %v15835_v32, %v15840_v37 }
 0x1af   :  { %v12787_v22 = vpop.f32.mrf.mxu1  ;;  %v12723_v9 = vpop.f32.mrf.mxu0 }
 0x1b0   :  { %v2674_v63 = vadd.f32 %v12722_v13, %v15949_v54  ;;  %v836_v54 = vsel %vm820_vm2, %v15890_v15, %v15893_v40  ;;  %v11576_v15 = vcombine.low %v15224_v6, %v15225_v57 }
 0x1b1   :  { %v12788_v10 = vpop.f32.mrf.mxu1  ;;  %v12724_v60 = vpop.f32.mrf.mxu0  ;;  %v3325_v55 = vpack.c.bf16 %v836_v54, %v838_v20 }
 0x1b2   :  { %v12789_v52 = vadd.f32 %v12788_v10, %v12787_v22  ;;  %v16062_v30 = vadd.f32 %v12786_v39, %v2674_v63  ;;  %v12725_v29 = vadd.f32 %v12724_v60, %v12723_v9  ;;  %3262 = vmatmul.mubr.bf16.gmra.mxu0 %v11560_v11  ;;  %v15226_v22 = vld [vmem:[#allocation3 + $0x1b8] sm:$0xff] }
 0x1b3   :  { %v12790_v17 = vpop.f32.mrf.mxu1  ;;  %3503 = vmatmul.mubr.bf16.gmra.mxu1 %v3320_v51  ;;  %v12726_v16 = vpop.f32.mrf.mxu0  ;;  %3269 = vmatprep.mubr.bf16.mxu0 %v11577_v8  ;;  %v15227_v51 = vld [vmem:[#allocation3 + $0x1f8] sm:$0xff] }
 0x1b4   :  { %3510 = vmatprep.mubr.bf16.mxu1 %v3323_v59  ;;  %v2677_v31 = vadd.f32 %v12725_v29, %v15959_v61  ;;  %v11593_v59 = vcombine.high %v15226_v22, %v15227_v51  ;;  %v835_v61 = vsel %vm820_vm2, %v15840_v37, %v15842_v38  ;;  %v15228_v29 = vld [vmem:[#allocation3 + $0x238] sm:$0xff] }
 0x1b5   :  { %v12791_v27 = vpop.f32.mrf.mxu1  ;;  %v12727_v12 = vpop.f32.mrf.mxu0  ;;  %v3324_v32 = vpack.c.bf16 %v835_v61, %v837_v19 }
 0x1b6   :  { %v12792_v48 = vadd.f32 %v12791_v27, %v12790_v17  ;;  %v16065_v1 = vadd.f32 %v12789_v52, %v2677_v31  ;;  %v12728_v4 = vadd.f32 %v12727_v12, %v12726_v16  ;;  %v834_v52 = vsel %vm820_vm2, %v15893_v40, %v15895_v26 }
 0x1b7   :  { %v12793_v53 = vpop.f32.mrf.mxu1  ;;  %v12729_v23 = vpop.f32.mrf.mxu0 }
 0x1b8   :  { %v2682_v39 = vadd.f32 %v12728_v4, %v15969_v36  ;;  %v832_v36 = vsel %vm820_vm2, %v15895_v26, %v15897_v42  ;;  %v11592_v26 = vcombine.low %v15226_v22, %v15227_v51 }
 0x1b9   :  { %v12794_v34 = vpop.f32.mrf.mxu1  ;;  %v12730_v10 = vpop.f32.mrf.mxu0  ;;  %v3327_v57 = vpack.c.bf16 %v832_v36, %v834_v52  ;;  %v829_v52 = vsel %vm820_vm2, %v15855_v56, %v15860_v3 }
 0x1ba   :  { %v12795_v24 = vadd.f32 %v12794_v34, %v12793_v53  ;;  %v16084_v9 = vadd.f32 %v12792_v48, %v2682_v39  ;;  %v12731_v17 = vadd.f32 %v12730_v10, %v12729_v23  ;;  %3270 = vmatmul.mubr.bf16.gmra.mxu0 %v11576_v15  ;;  %v15229_v48 = vld [vmem:[#allocation3 + $0x278] sm:$0xff]  ;;  %v833_v53 = vsel %vm820_vm2, %v15842_v38, %v15850_v49 }
 0x1bb   :  { %v12796_v35 = vpop.f32.mrf.mxu1  ;;  %3511 = vmatmul.mubr.bf16.gmra.mxu1 %v3322_v25  ;;  %v12732_v63 = vpop.f32.mrf.mxu0  ;;  %3277 = vmatprep.mubr.bf16.mxu0 %v11593_v59  ;;  %v11609_v16 = vcombine.high %v15228_v29, %v15229_v48  ;;  %v15230_v10 = vld [vmem:[#allocation3 + $0x2b8] sm:$0xff] }
 0x1bc   :  { %3518 = vmatprep.mubr.bf16.mxu1 %v3325_v55  ;;  %v2685_v37 = vadd.f32 %v12731_v17, %v15979_v44  ;;  %v831_v44 = vsel %vm820_vm2, %v15850_v49, %v15855_v56  ;;  %v830_v55 = vsel %vm820_vm2, %v15897_v42, %v15899_v47 }
 0x1bd   :  { %v12797_v13 = vpop.f32.mrf.mxu1  ;;  %v12733_v8 = vpop.f32.mrf.mxu0  ;;  %v3326_v38 = vpack.c.bf16 %v831_v44, %v833_v53  ;;  %v15232_v53 = vld [vmem:[#allocation3 + $0x338] sm:$0xff] }
 0x1be   :  { %v12798_v11 = vadd.f32 %v12797_v13, %v12796_v35  ;;  %v16087_v45 = vadd.f32 %v12795_v24, %v2685_v37  ;;  %v12734_v60 = vadd.f32 %v12733_v8, %v12732_v63  ;;  %v15231_v13 = vld [vmem:[#allocation3 + $0x2f8] sm:$0xff] }
 0x1bf   :  { %v12799_v6 = vpop.f32.mrf.mxu1  ;;  %v12735_v54 = vpop.f32.mrf.mxu0  ;;  %v11625_v36 = vcombine.high %v15230_v10, %v15231_v13  ;;  %v18280_v63 = vld [vmem:[#allocation32_spill] sm:$0xff] }
 0x1c0   :  { %v2690_v20 = vadd.f32 %v12734_v60, %v15985_v2  ;;  %v828_v2 = vsel %vm820_vm2, %v15899_v47, %v15903_v46  ;;  %v11608_v47 = vcombine.low %v15228_v29, %v15229_v48 }
 0x1c1   :  { %v12800_v7 = vpop.f32.mrf.mxu1  ;;  %v12736_v25 = vpop.f32.mrf.mxu0  ;;  %v3329_v35 = vpack.c.bf16 %v828_v2, %v830_v55  ;;  %v18283_v2 = vld [vmem:[#allocation30_spill] sm:$0xff]  ;;  %v18284_v55 = vld [vmem:[#allocation29_spill] sm:$0xff] }
 0x1c2   :  { %v12801_v27 = vadd.f32 %v12800_v7, %v12799_v6  ;;  %v16106_v12 = vadd.f32 %v12798_v11, %v2690_v20  ;;  %v12737_v34 = vadd.f32 %v12736_v25, %v12735_v54  ;;  %3278 = vmatmul.mubr.bf16.gmra.mxu0 %v11592_v26  ;;  %v826_v6 = vsel %vm820_vm2, %v15903_v46, %v18280_v63  ;;  %v15233_v25 = vld [vmem:[#allocation3 + $0x378] sm:$0xff] }
 0x1c3   :  { %v12802_v40 = vpop.f32.mrf.mxu1  ;;  %3519 = vmatmul.mubr.bf16.gmra.mxu1 %v3324_v32  ;;  %v12738_v24 = vpop.f32.mrf.mxu0  ;;  %3285 = vmatprep.mubr.bf16.mxu0 %v11609_v16  ;;  %v11624_v46 = vcombine.low %v15230_v10, %v15231_v13  ;;  %v18282_v16 = vld [vmem:[#allocation38_spill] sm:$0xff] }
 0x1c4   :  { %3526 = vmatprep.mubr.bf16.mxu1 %v3327_v57  ;;  %v2693_v49 = vadd.f32 %v12737_v34, %v15991_v41  ;;  %v827_v41 = vsel %vm820_vm2, %v15860_v3, %v15863_v43  ;;  %v18281_v3 = vld [vmem:[#allocation37_spill] sm:$0xff]  ;;  %v823_v34 = vsel %vm820_vm2, %v18284_v55, %v18283_v2 }
 0x1c5   :  { %v12803_v31 = vpop.f32.mrf.mxu1  ;;  %v12739_v15 = vpop.f32.mrf.mxu0  ;;  %v3328_v56 = vpack.c.bf16 %v827_v41, %v829_v52 }
 0x1c6   :  { %v12804_v4 = vadd.f32 %v12803_v31, %v12802_v40  ;;  %v16109_v22 = vadd.f32 %v12801_v27, %v2693_v49  ;;  %v12740_v51 = vadd.f32 %v12739_v15, %v12738_v24  ;;  %v11641_v31 = vcombine.high %v15232_v53, %v15233_v25 }
 0x1c7   :  { %v12805_v23 = vpop.f32.mrf.mxu1  ;;  %v12741_v61 = vpop.f32.mrf.mxu0 }
 0x1c8   :  { %v2698_v19 = vadd.f32 %v12740_v51, %v15995_v18  ;;  %v824_v18 = vsel %vm820_vm2, %v18280_v63, %v15916_v50  ;;  %v15234_v63 = vld [vmem:[#allocation3 + $0x3f8] sm:$0xff] }
 0x1c9   :  { %v12806_v39 = vpop.f32.mrf.mxu1  ;;  %v12742_v17 = vpop.f32.mrf.mxu0  ;;  %v3331_v27 = vpack.c.bf16 %v824_v18, %v826_v6  ;;  %v15235_v18 = vld [vmem:[#allocation3 + $0x3b8] sm:$0xff] }
 0x1ca   :  { %v12807_v59 = vadd.f32 %v12806_v39, %v12805_v23  ;;  %v16128_v32 = vadd.f32 %v12804_v4, %v2698_v19  ;;  %v12743_v37 = vadd.f32 %v12742_v17, %v12741_v61  ;;  %3286 = vmatmul.mubr.bf16.gmra.mxu0 %v11608_v47  ;;  %v825_v4 = vsel %vm820_vm2, %v15863_v43, %v18284_v55  ;;  %v18286_v43 = vld [vmem:[#allocation35_spill] sm:$0xff] }
 0x1cb   :  { %v12808_v42 = vpop.f32.mrf.mxu1  ;;  %3527 = vmatmul.mubr.bf16.gmra.mxu1 %v3326_v38  ;;  %v12744_v8 = vpop.f32.mrf.mxu0  ;;  %3293 = vmatprep.mubr.bf16.mxu0 %v11625_v36  ;;  %v18285_v38 = vld [vmem:[#allocation34_spill] sm:$0xff]  ;;  %v3330_v61 = vpack.c.bf16 %v823_v34, %v825_v4  ;;  %v11640_v17 = vcombine.low %v15232_v53, %v15233_v25  ;;  %v11657_v6 = vcombine.high %v15235_v18, %v15234_v63 }
 0x1cc   :  { %3534 = vmatprep.mubr.bf16.mxu1 %v3329_v35  ;;  %v2701_v60 = vadd.f32 %v12743_v37, %v18281_v3  ;;  %v822_v49 = vsel %vm820_vm2, %v15916_v50, %v18285_v38  ;;  %v11656_v25 = vcombine.low %v15235_v18, %v15234_v63 }
 0x1cd   :  { %v12809_v11 = vpop.f32.mrf.mxu1  ;;  %v12745_v54 = vpop.f32.mrf.mxu0  ;;  %v3333_v19 = vpack.c.bf16 %v18286_v43, %v822_v49 }
 0x1ce   :  { %v12810_v57 = vadd.f32 %v12809_v11, %v12808_v42  ;;  %v16131_v26 = vadd.f32 %v12807_v59, %v2701_v60  ;;  %v12746_v20 = vadd.f32 %v12745_v54, %v12744_v8  ;;  %v18288_v54 = vld [vmem:[#allocation36_spill] sm:$0xff] }
 0x1cf   :  { %v12811_v7 = vpop.f32.mrf.mxu1  ;;  %v12747_v29 = vpop.f32.mrf.mxu0 }
 0x1d0   :  { %v2706_v44 = vadd.f32 %v12746_v20, %v18282_v16 }
 0x1d1   :  { %v12812_v40 = vpop.f32.mrf.mxu1  ;;  %v12748_v24 = vpop.f32.mrf.mxu0 }
 0x1d2   :  { %v16146_v35 = vadd.f32 %v12810_v57, %v2706_v44  ;;  %v12749_v15 = vadd.f32 %v12748_v24, %v12747_v29  ;;  %3294 = vmatmul.mubr.bf16.gmra.mxu0 %v11624_v46  ;;  %v12813_v47 = vadd.f32 %v12812_v40, %v12811_v7 }
 0x1d3   :  { %v12814_v48 = vpop.f32.mrf.mxu1  ;;  %3535 = vmatmul.mubr.bf16.gmra.mxu1 %v3328_v56  ;;  %v12750_v51 = vpop.f32.mrf.mxu0  ;;  %3301 = vmatprep.mubr.bf16.mxu0 %v11641_v31 }
 0x1d4   :  { %3542 = vmatprep.mubr.bf16.mxu1 %v3331_v27  ;;  %v2709_v42 = vadd.f32 %v12749_v15, %v16001_v33  ;;  %v18287_v33 = vld [vmem:[#allocation31_spill] sm:$0xff] }
 0x1d5   :  { %v12815_v23 = vpop.f32.mrf.mxu1  ;;  %v12751_v10 = vpop.f32.mrf.mxu0  ;;  %v821_v37 = vsel %vm820_vm2, %v18283_v2, %v18287_v33 }
 0x1d6   :  { %v12816_v39 = vadd.f32 %v12815_v23, %v12814_v48  ;;  %v16150_v36 = vadd.f32 %v12813_v47, %v2709_v42  ;;  %v12752_v41 = vadd.f32 %v12751_v10, %v12750_v51 }
 0x1d7   :  { %v12817_v59 = vpop.f32.mrf.mxu1  ;;  %v12753_v50 = vpop.f32.mrf.mxu0 }
 0x1d8   :  { %v2714_v11 = vadd.f32 %v12752_v41, %v16003_v62  ;;  %v3332_v62 = vpack.c.bf16 %v18288_v54, %v821_v37 }
 0x1d9   :  { %v12818_v13 = vpop.f32.mrf.mxu1  ;;  %v12754_v57 = vpop.f32.mrf.mxu0 }
 0x1da   :  { %v16157_v7 = vadd.f32 %v12816_v39, %v2714_v11  ;;  %v12755_v56 = vadd.f32 %v12754_v57, %v12753_v50  ;;  %3302 = vmatmul.mubr.bf16.gmra.mxu0 %v11640_v17  ;;  %v12819_v20 = vadd.f32 %v12818_v13, %v12817_v59 }
 0x1db   :  { %v12820_v52 = vpop.f32.mrf.mxu1  ;;  %3543 = vmatmul.mubr.bf16.gmra.mxu1 %v3330_v61  ;;  %v12756_v60 = vpop.f32.mrf.mxu0  ;;  %3309 = vmatprep.mubr.bf16.mxu0 %v11657_v6 }
 0x1dc   :  { %3550 = vmatprep.mubr.bf16.mxu1 %v3333_v19  ;;  %v2717_v40 = vadd.f32 %v12755_v56, %v16005_v21 }
 0x1dd   :  { %v12821_v8 = vpop.f32.mrf.mxu1  ;;  %v12757_v29 = vpop.f32.mrf.mxu0 }
 0x1de   :  { %v12822_v3 = vadd.f32 %v12821_v8, %v12820_v52  ;;  %v16161_v46 = vadd.f32 %v12819_v20, %v2717_v40  ;;  %v12758_v16 = vadd.f32 %v12757_v29, %v12756_v60 }
 0x1df   :  { %v12823_v27 = vpop.f32.mrf.mxu1  ;;  %v12759_v44 = vpop.f32.mrf.mxu0 }
 0x1e0   :  { %v2722_v31 = vadd.f32 %v12758_v16, %v16007_v58 }
 0x1e1   :  { %v12824_v48 = vpop.f32.mrf.mxu1  ;;  %v12760_v2 = vpop.f32.mrf.mxu0 }
 0x1e2   :  { %v16164_v34 = vadd.f32 %v12822_v3, %v2722_v31  ;;  %v12761_v4 = vadd.f32 %v12760_v2, %v12759_v44  ;;  %3310 = vmatmul.mubr.bf16.gmra.mxu0 %v11656_v25  ;;  %v12825_v49 = vadd.f32 %v12824_v48, %v12823_v27 }
 0x1e3   :  { %v12826_v53 = vpop.f32.mrf.mxu1  ;;  %3551 = vmatmul.mubr.bf16.gmra.mxu1 %v3332_v62  ;;  %v12762_v21 = vpop.f32.mrf.mxu0 }
 0x1e4   :  { %v2725_v38 = vadd.f32 %v12761_v4, %v16020_v14 }
 0x1e5   :  { %v12827_v55 = vpop.f32.mrf.mxu1  ;;  %v12763_v15 = vpop.f32.mrf.mxu0 }
 0x1e6   :  { %v12828_v24 = vadd.f32 %v12827_v55, %v12826_v53  ;;  %v16167_v51 = vadd.f32 %v12825_v49, %v2725_v38  ;;  %v12764_v59 = vadd.f32 %v12763_v15, %v12762_v21 }
 0x1e7   :  { %v12829_v23 = vpop.f32.mrf.mxu1  ;;  %v12765_v61 = vpop.f32.mrf.mxu0 }
 0x1e8   :  { %v2730_v58 = vadd.f32 %v12764_v59, %v16025_v5 }
 0x1e9   :  { %v12830_v39 = vpop.f32.mrf.mxu1  ;;  %v12766_v47 = vpop.f32.mrf.mxu0 }
 0x1ea   :  { %v16170_v19 = vadd.f32 %v12828_v24, %v2730_v58  ;;  %v12767_v10 = vadd.f32 %v12766_v47, %v12765_v61  ;;  %v12831_v52 = vadd.f32 %v12830_v39, %v12829_v23 }
 0x1eb   :  { %v12912_v42 = vpop.f32.mrf.mxu1  ;;  %v12848_v41 = vpop.f32.mrf.mxu0 }
 0x1ec   :  { %v2733_v14 = vadd.f32 %v12767_v10, %v16043_v0 }
 0x1ed   :  { %v12913_v43 = vpop.f32.mrf.mxu1  ;;  %v12849_v17 = vpop.f32.mrf.mxu0 }
 0x1ee   :  { %v12914_v13 = vadd.f32 %v12913_v43, %v12912_v42  ;;  %v16173_v63 = vadd.f32 %v12831_v52, %v2733_v14  ;;  %v12850_v18 = vadd.f32 %v12849_v17, %v12848_v41 }
 0x1ef   :  { %v12915_v50 = vpop.f32.mrf.mxu1  ;;  %v12851_v6 = vpop.f32.mrf.mxu0 }
 0x1f0   :  { %v2868_v5 = vadd.f32 %v12850_v18, %v16062_v30 }
 0x1f1   :  { %v12916_v11 = vpop.f32.mrf.mxu1  ;;  %v12852_v37 = vpop.f32.mrf.mxu0 }
 0x1f2   :  { %v16176_v8 = vadd.f32 %v12914_v13, %v2868_v5  ;;  %v12853_v56 = vadd.f32 %v12852_v37, %v12851_v6  ;;  %v12917_v54 = vadd.f32 %v12916_v11, %v12915_v50 }
 0x1f3   :  { %v12918_v33 = vpop.f32.mrf.mxu1  ;;  %v12854_v60 = vpop.f32.mrf.mxu0 }
 0x1f4   :  { %v2871_v0 = vadd.f32 %v12853_v56, %v16065_v1 }
 0x1f5   :  { %v12919_v57 = vpop.f32.mrf.mxu1  ;;  %v12855_v62 = vpop.f32.mrf.mxu0 }
 0x1f6   :  { %v12920_v3 = vadd.f32 %v12919_v57, %v12918_v33  ;;  %v16179_v20 = vadd.f32 %v12917_v54, %v2871_v0  ;;  %v12856_v29 = vadd.f32 %v12855_v62, %v12854_v60  ;;  %v14654_v60 = vld [vmem:[#allocation14 + $0x78] sm:$0xff]  }
 0x1f7   :  { %v12921_v27 = vpop.f32.mrf.mxu1  ;;  %v12857_v48 = vpop.f32.mrf.mxu0  ;;  %13216 = vmatprep.subr.bf16.mxu0 %v14654_v60  ;;  %v14670_v60 = vld [vmem:[#allocation14 + $0xa8] sm:$0xff]  }
 0x1f8   :  { %v2876_v30 = vadd.f32 %v12856_v29, %v16084_v9 }
 0x1f9   :  { %v12922_v40 = vpop.f32.mrf.mxu1  ;;  %v12858_v44 = vpop.f32.mrf.mxu0 }
 0x1fa   :  { %v16182_v25 = vadd.f32 %v12920_v3, %v2876_v30  ;;  %v12859_v31 = vadd.f32 %v12858_v44, %v12857_v48  ;;  %v12923_v24 = vadd.f32 %v12922_v40, %v12921_v27  ;;  %v14655_v27 = vld [vmem:[#allocation14 + $0x38] sm:$0xff]  }
 0x1fb   :  { %v12924_v16 = vpop.f32.mrf.mxu1  ;;  %v12860_v55 = vpop.f32.mrf.mxu0  ;;  %13217 = vmatpush3.bf16.msra.mxu0 %v14655_v27 }
 0x1fc   :  { %v2879_v1 = vadd.f32 %v12859_v31, %v16087_v45 }
 0x1fd   :  { %v12925_v53 = vpop.f32.mrf.mxu1  ;;  %v12861_v21 = vpop.f32.mrf.mxu0 }
 0x1fe   :  { %v12926_v2 = vadd.f32 %v12925_v53, %v12924_v16  ;;  %v16185_v38 = vadd.f32 %v12923_v24, %v2879_v1  ;;  %v12862_v49 = vadd.f32 %v12861_v21, %v12860_v55  ;;  %v14656_v1 = vld [vmem:[#allocation14 + $0x70] sm:$0xff]  }
 0x1ff   :  { %v12927_v4 = vpop.f32.mrf.mxu1  ;;  %v12863_v15 = vpop.f32.mrf.mxu0  ;;  %v14657_v24 = vld [vmem:[#allocation14 + $0x30] sm:$0xff]   ;;  %13218 = vmatprep.subr.bf16.mxu0 %v14656_v1 }
 0x200   :  { %v2884_v9 = vadd.f32 %v12862_v49, %v16106_v12  ;;  %13219 = vmatpush3.bf16.msra.mxu0 %v14657_v24 }
 0x201   :  { %v12928_v23 = vpop.f32.mrf.mxu1  ;;  %v12864_v59 = vpop.f32.mrf.mxu0 }
 0x202   :  { %v16188_v42 = vadd.f32 %v12926_v2, %v2884_v9  ;;  %v12865_v58 = vadd.f32 %v12864_v59, %v12863_v15  ;;  %v12929_v13 = vadd.f32 %v12928_v23, %v12927_v4  ;;  %v14662_v59 = vld [vmem:[#allocation14 + $0xf8] sm:$0xff]  }
 0x203   :  { %v12930_v39 = vpop.f32.mrf.mxu1  ;;  %v12866_v43 = vpop.f32.mrf.mxu0  ;;  %13280 = vmatprep.subr.bf16.mxu1 %v14662_v59 }
 0x204   :  { %v2887_v45 = vadd.f32 %v12865_v58, %v16109_v22 }
 0x205   :  { %v12931_v61 = vpop.f32.mrf.mxu1  ;;  %v12867_v41 = vpop.f32.mrf.mxu0 }
 0x206   :  { %v12932_v47 = vadd.f32 %v12931_v61, %v12930_v39  ;;  %v16191_v14 = vadd.f32 %v12929_v13, %v2887_v45  ;;  %v12868_v52 = vadd.f32 %v12867_v41, %v12866_v43 }
 0x207   :  { %v12933_v10 = vpop.f32.mrf.mxu1  ;;  %v12869_v17 = vpop.f32.mrf.mxu0 }
 0x208   :  { %v2892_v12 = vadd.f32 %v12868_v52, %v16128_v32  ;;  %v14658_v52 = vld [vmem:[#allocation14 + $0x68] sm:$0xff]  }
 0x209   :  { %v12934_v50 = vpop.f32.mrf.mxu1  ;;  %v12870_v18 = vpop.f32.mrf.mxu0  ;;  %13220 = vmatprep.subr.bf16.mxu0 %v14658_v52 }
 0x20a   :  { %v16194_v33 = vadd.f32 %v12932_v47, %v2892_v12  ;;  %v12871_v5 = vadd.f32 %v12870_v18, %v12869_v17  ;;  %v12935_v3 = vadd.f32 %v12934_v50, %v12933_v10  ;;  %v14664_v47 = vld [vmem:[#allocation14 + $0xb8] sm:$0xff]   ;;  %v14659_v17 = vld [vmem:[#allocation14 + $0x28] sm:$0xff]   ;;  %v14667_v18 = vld [vmem:[#allocation14 + $0xb0] sm:$0xff]  }
 0x20b   :  { %v12936_v11 = vpop.f32.mrf.mxu1  ;;  %v12872_v57 = vpop.f32.mrf.mxu0  ;;  %13281 = vmatpush3.bf16.msra.mxu1 %v14664_v47  ;;  %13221 = vmatpush3.bf16.msra.mxu0 %v14659_v17 }
 0x20c   :  { %v2895_v22 = vadd.f32 %v12871_v5, %v16131_v26 }
 0x20d   :  { %v12937_v6 = vpop.f32.mrf.mxu1  ;;  %v12873_v0 = vpop.f32.mrf.mxu0 }
 0x20e   :  { %v12938_v37 = vadd.f32 %v12937_v6, %v12936_v11  ;;  %v16197_v62 = vadd.f32 %v12935_v3, %v2895_v22  ;;  %v12874_v40 = vadd.f32 %v12873_v0, %v12872_v57  ;;  %v14666_v11 = vld [vmem:[#allocation14 + $0xf0] sm:$0xff]   ;;  %v14668_v22 = vld [vmem:[#allocation14 + $0xe8] sm:$0xff]  }
 0x20f   :  { %v12939_v56 = vpop.f32.mrf.mxu1  ;;  %v12875_v32 = vpop.f32.mrf.mxu0  ;;  %13282 = vmatprep.subr.bf16.mxu1 %v14666_v11  ;;  %v14671_v11 = vld [vmem:[#allocation14 + $0x10] sm:$0xff]  }
 0x210   :  { %v2900_v48 = vadd.f32 %v12874_v40, %v16146_v35  ;;  %13283 = vmatpush3.bf16.msra.mxu1 %v14667_v18  ;;  %v14680_v18 = vld [vmem:[#allocation14 + $0xc8] sm:$0xff]  }
 0x211   :  { %v12940_v54 = vpop.f32.mrf.mxu1  ;;  %v12876_v16 = vpop.f32.mrf.mxu0  ;;  %13284 = vmatprep.subr.bf16.mxu1 %v14668_v22 }
 0x212   :  { %v16200_v44 = vadd.f32 %v12938_v37, %v2900_v48  ;;  %v12877_v53 = vadd.f32 %v12876_v16, %v12875_v32  ;;  %v12941_v4 = vadd.f32 %v12940_v54, %v12939_v56  ;;  %v14660_v16 = vld [vmem:[#allocation14 + $0x60] sm:$0xff]  }
 0x213   :  { %v12942_v29 = vpop.f32.mrf.mxu1  ;;  %v12878_v31 = vpop.f32.mrf.mxu0  ;;  %13222 = vmatprep.subr.bf16.mxu0 %v14660_v16 }
 0x214   :  { %v2903_v55 = vadd.f32 %v12877_v53, %v16150_v36  ;;  %13285 = vmatpush3.bf16.msra.mxu1 %v14670_v60  ;;  %v14672_v53 = vld [vmem:[#allocation14 + $0xe0] sm:$0xff]  }
 0x215   :  { %v12943_v30 = vpop.f32.mrf.mxu1  ;;  %v12879_v21 = vpop.f32.mrf.mxu0  ;;  %13286 = vmatprep.subr.bf16.mxu1 %v14672_v53 }
 0x216   :  { %v12944_v26 = vadd.f32 %v12943_v30, %v12942_v29  ;;  %v16203_v49 = vadd.f32 %v12941_v4, %v2903_v55  ;;  %v12880_v15 = vadd.f32 %v12879_v21, %v12878_v31  ;;  %v14661_v30 = vld [vmem:[#allocation14 + $0x20] sm:$0xff]   ;;  %v14674_v21 = vld [vmem:[#allocation14 + $0xd8] sm:$0xff]  }
 0x217   :  { %v12945_v2 = vpop.f32.mrf.mxu1  ;;  %v12881_v35 = vpop.f32.mrf.mxu0  ;;  %v14673_v31 = vld [vmem:[#allocation14 + $0xa0] sm:$0xff]   ;;  %13223 = vmatpush3.bf16.msra.mxu0 %v14661_v30 }
 0x218   :  { %v2908_v9 = vadd.f32 %v12880_v15, %v16157_v7  ;;  %13287 = vmatpush3.bf16.msra.mxu1 %v14673_v31  ;;  %v14663_v15 = vld [vmem:[#allocation14 + $0x58] sm:$0xff]  }
 0x219   :  { %v12946_v23 = vpop.f32.mrf.mxu1  ;;  %v12882_v61 = vpop.f32.mrf.mxu0  ;;  %13288 = vmatprep.subr.bf16.mxu1 %v14674_v21  ;;  %13224 = vmatprep.subr.bf16.mxu0 %v14663_v15 }
 0x21a   :  { %v16206_v43 = vadd.f32 %v12944_v26, %v2908_v9  ;;  %v12883_v36 = vadd.f32 %v12882_v61, %v12881_v35  ;;  %v12947_v50 = vadd.f32 %v12946_v23, %v12945_v2  ;;  %v14676_v35 = vld [vmem:[#allocation14 + $0x98] sm:$0xff]  }
 0x21b   :  { %v12948_v39 = vpop.f32.mrf.mxu1  ;;  %v12884_v45 = vpop.f32.mrf.mxu0  ;;  %v14665_v61 = vld [vmem:[#allocation14 + $0x18] sm:$0xff]  }
 0x21c   :  { %v2911_v41 = vadd.f32 %v12883_v36, %v16161_v46  ;;  %13289 = vmatpush3.bf16.msra.mxu1 %v14676_v35  ;;  %13225 = vmatpush3.bf16.msra.mxu0 %v14665_v61 }
 0x21d   :  { %v12949_v58 = vpop.f32.mrf.mxu1  ;;  %v12885_v12 = vpop.f32.mrf.mxu0 }
 0x21e   :  { %v12950_v10 = vadd.f32 %v12949_v58, %v12948_v39  ;;  %v16209_v6 = vadd.f32 %v12947_v50, %v2911_v41  ;;  %v12886_v5 = vadd.f32 %v12885_v12, %v12884_v45  ;;  %v14669_v41 = vld [vmem:[#allocation14 + $0x50] sm:$0xff]  }
 0x21f   :  { %v12951_v13 = vpop.f32.mrf.mxu1  ;;  %v12887_v37 = vpop.f32.mrf.mxu0  ;;  %v14679_v50 = vld [vmem:[#allocation14 + $0x90] sm:$0xff]   ;;  %13226 = vmatprep.subr.bf16.mxu0 %v14669_v41 }
 0x220   :  { %v2916_v56 = vadd.f32 %v12886_v5, %v16164_v34  ;;  %13227 = vmatpush3.bf16.msra.mxu0 %v14671_v11 }
 0x221   :  { %v12952_v7 = vpop.f32.mrf.mxu1  ;;  %v12888_v46 = vpop.f32.mrf.mxu0 }
 0x222   :  { %v16212_v27 = vadd.f32 %v12950_v10, %v2916_v56  ;;  %v12889_v0 = vadd.f32 %v12888_v46, %v12887_v37  ;;  %v12953_v48 = vadd.f32 %v12952_v7, %v12951_v13  ;;  %v14682_v56 = vld [vmem:[#allocation14 + $0x88] sm:$0xff]  }
 0x223   :  { %v12954_v57 = vpop.f32.mrf.mxu1  ;;  %v12890_v40 = vpop.f32.mrf.mxu0 }
 0x224   :  { %v2919_v29 = vadd.f32 %v12889_v0, %v16167_v51 }
 0x225   :  { %v12955_v3 = vpop.f32.mrf.mxu1  ;;  %v12891_v26 = vpop.f32.mrf.mxu0 }
 0x226   :  { %v12956_v54 = vadd.f32 %v12955_v3, %v12954_v57  ;;  %v16215_v2 = vadd.f32 %v12953_v48, %v2919_v29  ;;  %v12892_v55 = vadd.f32 %v12891_v26, %v12890_v40  ;;  %v14675_v57 = vld [vmem:[#allocation14 + $0x48] sm:$0xff]   ;;  %v14683_v40 = vld [vmem:[#allocation14] sm:$0xff]  }
 0x227   :  { %v12957_v32 = vpop.f32.mrf.mxu1  ;;  %v12893_v4 = vpop.f32.mrf.mxu0  ;;  %v14677_v3 = vld [vmem:[#allocation14 + $0x8] sm:$0xff]   ;;  %13228 = vmatprep.subr.bf16.mxu0 %v14675_v57  ;;  %v14685_v48 = vld [vmem:[#allocation14 + $0x80] sm:$0xff]  }
 0x228   :  { %v2924_v24 = vadd.f32 %v12892_v55, %v16170_v19  ;;  %v14678_v19 = vld [vmem:[#allocation14 + $0xd0] sm:$0xff]   ;;  %13229 = vmatpush3.bf16.msra.mxu0 %v14677_v3 }
 0x229   :  { %v12958_v34 = vpop.f32.mrf.mxu1  ;;  %v12894_v51 = vpop.f32.mrf.mxu0  ;;  %13290 = vmatprep.subr.bf16.mxu1 %v14678_v19 }
 0x22a   :  { %v16218_v39 = vadd.f32 %v12956_v54, %v2924_v24  ;;  %v12895_v9 = vadd.f32 %v12894_v51, %v12893_v4  ;;  %v12959_v10 = vadd.f32 %v12958_v34, %v12957_v32  ;;  %13291 = vmatpush3.bf16.msra.mxu1 %v14679_v50  ;;  %v14681_v54 = vld [vmem:[#allocation14 + $0x40] sm:$0xff]   ;;  %v14686_v51 = vld [vmem:[#allocation14 + $0x178] sm:$0xff]  }
 0x22b   :  { %v13040_v1 = vpop.f32.mrf.mxu1  ;;  %v12976_v58 = vpop.f32.mrf.mxu0  ;;  %13292 = vmatprep.subr.bf16.mxu1 %v14680_v18  ;;  %13230 = vmatprep.subr.bf16.mxu0 %v14681_v54 }
 0x22c   :  { %v2927_v36 = vadd.f32 %v12895_v9, %v16173_v63  ;;  %13231 = vmatpush3.bf16.msra.mxu0 %v14683_v40 }
 0x22d   :  { %v13041_v23 = vpop.f32.mrf.mxu1  ;;  %v12977_v45 = vpop.f32.mrf.mxu0  ;;  %13344 = vmatprep.subr.bf16.mxu0 %v14686_v51 }
 0x22e   :  { %v13042_v59 = vadd.f32 %v13041_v23, %v13040_v1  ;;  %v16225_v52 = vadd.f32 %v12959_v10, %v2927_v36  ;;  %v12978_v17 = vadd.f32 %v12977_v45, %v12976_v58  ;;  %13293 = vmatpush3.bf16.msra.mxu1 %v14682_v56 }
 0x22f   :  { %v16220_v47 = vpop.f32.mrf.mxu1  ;;  %v16227_v12 = vpop.f32.mrf.mxu0 }
 0x230   :  { %v3062_v63 = vadd.f32 %v12978_v17, %v16176_v8  ;;  %v14684_v8 = vld [vmem:[#allocation14 + $0xc0] sm:$0xff]  }
 0x231   :  { %v16223_v13 = vpop.f32.mrf.mxu1  ;;  %v16230_v5 = vpop.f32.mrf.mxu0  ;;  %13294 = vmatprep.subr.bf16.mxu1 %v14684_v8 }
 0x232   :  { %v16232_v22 = vadd.f32 %v13042_v59, %v3062_v63  ;;  %13295 = vmatpush3.bf16.msra.mxu1 %v14685_v48 }
 0x233   :  { %v13046_v7 = vpop.f32.mrf.mxu1  ;;  %v12982_v60 = vpop.f32.mrf.mxu0 }
 0x235   :  { %v13047_v37 = vpop.f32.mrf.mxu1  ;;  %v12983_v32 = vpop.f32.mrf.mxu0 }
 0x236   :  { %v13048_v46 = vadd.f32 %v13047_v37, %v13046_v7  ;;  %v12984_v16 = vadd.f32 %v12983_v32, %v12982_v60 }
 0x237   :  { %v13049_v0 = vpop.f32.mrf.mxu1  ;;  %v12985_v30 = vpop.f32.mrf.mxu0 }
 0x238   :  { %v3070_v26 = vadd.f32 %v12984_v16, %v16182_v25 }
 0x239   :  { %v13050_v29 = vpop.f32.mrf.mxu1  ;;  %v12986_v34 = vpop.f32.mrf.mxu0 }
 0x23a   :  { %v16235_v55 = vadd.f32 %v13048_v46, %v3070_v26  ;;  %v12987_v4 = vadd.f32 %v12986_v34, %v12985_v30  ;;  %v13051_v15 = vadd.f32 %v13050_v29, %v13049_v0 }
 0x23b   :  { %v13052_v53 = vpop.f32.mrf.mxu1  ;;  %v12988_v24 = vpop.f32.mrf.mxu0 }
 0x23c   :  { %v3073_v23 = vadd.f32 %v12987_v4, %v16185_v38 }
 0x23d   :  { %v13053_v31 = vpop.f32.mrf.mxu1  ;;  %v12989_v35 = vpop.f32.mrf.mxu0 }
 0x23e   :  { %v13054_v1 = vadd.f32 %v13053_v31, %v13052_v53  ;;  %v16238_v59 = vadd.f32 %v13051_v15, %v3073_v23  ;;  %v12990_v61 = vadd.f32 %v12989_v35, %v12988_v24 }
 0x23f   :  { %v13055_v21 = vpop.f32.mrf.mxu1  ;;  %v12991_v25 = vpop.f32.mrf.mxu0 }
 0x240   :  { %v3078_v36 = vadd.f32 %v12990_v61, %v16188_v42 }
 0x241   :  { %v13056_v9 = vpop.f32.mrf.mxu1  ;;  %v12992_v10 = vpop.f32.mrf.mxu0 }
 0x242   :  { %v16241_v45 = vadd.f32 %v13054_v1, %v3078_v36  ;;  %v12993_v41 = vadd.f32 %v12992_v10, %v12991_v25  ;;  %v13057_v7 = vadd.f32 %v13056_v9, %v13055_v21 }
 0x243   :  { %v13058_v58 = vpop.f32.mrf.mxu1  ;;  %v12994_v17 = vpop.f32.mrf.mxu0 }
 0x244   :  { %v3081_v38 = vadd.f32 %v12993_v41, %v16191_v14 }
 0x245   :  { %v13059_v19 = vpop.f32.mrf.mxu1  ;;  %v12995_v63 = vpop.f32.mrf.mxu0 }
 0x246   :  { %v13060_v50 = vadd.f32 %v13059_v19, %v13058_v58  ;;  %v16244_v37 = vadd.f32 %v13057_v7, %v3081_v38  ;;  %v12996_v57 = vadd.f32 %v12995_v63, %v12994_v17 }
 0x247   :  { %v13061_v11 = vpop.f32.mrf.mxu1  ;;  %v12997_v56 = vpop.f32.mrf.mxu0 }
 0x248   :  { %v3086_v42 = vadd.f32 %v12996_v57, %v16194_v33 }
 0x249   :  { %v13062_v18 = vpop.f32.mrf.mxu1  ;;  %v12998_v3 = vpop.f32.mrf.mxu0 }
 0x24a   :  { %v16247_v0 = vadd.f32 %v13060_v50, %v3086_v42  ;;  %v12999_v54 = vadd.f32 %v12998_v3, %v12997_v56  ;;  %v13063_v29 = vadd.f32 %v13062_v18, %v13061_v11  ;;  %v14694_v11 = vld [vmem:[#allocation14 + $0x1b8] sm:$0xff]  }
 0x24b   :  { %v13064_v46 = vpop.f32.mrf.mxu1  ;;  %v13000_v8 = vpop.f32.mrf.mxu0  ;;  %14173 = vmatprep.subr.bf16.mxu1 %v14694_v11 }
 0x24c   :  { %v3089_v14 = vadd.f32 %v12999_v54, %v16197_v62 }
 0x24d   :  { %v13065_v60 = vpop.f32.mrf.mxu1  ;;  %v13001_v48 = vpop.f32.mrf.mxu0 }
 0x24e   :  { %v13066_v40 = vadd.f32 %v13065_v60, %v13064_v46  ;;  %v16250_v30 = vadd.f32 %v13063_v29, %v3089_v14  ;;  %v13002_v53 = vadd.f32 %v13001_v48, %v13000_v8 }
 0x24f   :  { %v13067_v32 = vpop.f32.mrf.mxu1  ;;  %v13003_v26 = vpop.f32.mrf.mxu0 }
 0x250   :  { %v3094_v33 = vadd.f32 %v13002_v53, %v16200_v44 }
 0x251   :  { %v13068_v16 = vpop.f32.mrf.mxu1  ;;  %v13004_v31 = vpop.f32.mrf.mxu0 }
 0x252   :  { %v16253_v1 = vadd.f32 %v13066_v40, %v3094_v33  ;;  %v13005_v24 = vadd.f32 %v13004_v31, %v13003_v26  ;;  %v13069_v15 = vadd.f32 %v13068_v16, %v13067_v32 }
 0x253   :  { %v13070_v34 = vpop.f32.mrf.mxu1  ;;  %v13006_v51 = vpop.f32.mrf.mxu0 }
 0x254   :  { %v3097_v62 = vadd.f32 %v13005_v24, %v16203_v49 }
 0x255   :  { %v13071_v4 = vpop.f32.mrf.mxu1  ;;  %v13007_v35 = vpop.f32.mrf.mxu0 }
 0x256   :  { %v13072_v21 = vadd.f32 %v13071_v4, %v13070_v34  ;;  %v16256_v61 = vadd.f32 %v13069_v15, %v3097_v62  ;;  %v13008_v25 = vadd.f32 %v13007_v35, %v13006_v51 }
 0x257   :  { %v13073_v23 = vpop.f32.mrf.mxu1  ;;  %v13009_v58 = vpop.f32.mrf.mxu0 }
 0x258   :  { %v3102_v44 = vadd.f32 %v13008_v25, %v16206_v43  ;;  %v16276_v25 = vld [vmem:[#allocation12] ss:$0 sm:$0xff] }
 0x259   :  { %v13074_v9 = vpop.f32.mrf.mxu1  ;;  %v13010_v10 = vpop.f32.mrf.mxu0 }
 0x25a   :  { %v16259_v41 = vadd.f32 %v13072_v21, %v3102_v44  ;;  %v13011_v50 = vadd.f32 %v13010_v10, %v13009_v58  ;;  %v13075_v63 = vadd.f32 %v13074_v9, %v13073_v23  ;;  %v12981_v21 = vadd.f32 %v16230_v5, %v16227_v12 }
 0x25b   :  { %v13076_v36 = vpop.f32.mrf.mxu1  ;;  %v13012_v38 = vpop.f32.mrf.mxu0 }
 0x25c   :  { %v3105_v49 = vadd.f32 %v13011_v50, %v16209_v6  ;;  %v3065_v35 = vadd.f32 %v12981_v21, %v16179_v20 }
 0x25d   :  { %v13077_v19 = vpop.f32.mrf.mxu1  ;;  %v13013_v18 = vpop.f32.mrf.mxu0 }
 0x25e   :  { %v13078_v17 = vadd.f32 %v13077_v19, %v13076_v36  ;;  %v16262_v56 = vadd.f32 %v13075_v63, %v3105_v49  ;;  %v13014_v46 = vadd.f32 %v13013_v18, %v13012_v38 }
 0x25f   :  { %v13079_v7 = vpop.f32.mrf.mxu1  ;;  %v13015_v42 = vpop.f32.mrf.mxu0 }
 0x260   :  { %v3110_v3 = vadd.f32 %v13014_v46, %v16212_v27 }
 0x261   :  { %v13080_v57 = vpop.f32.mrf.mxu1  ;;  %v13016_v60 = vpop.f32.mrf.mxu0 }
 0x262   :  { %v16265_v40 = vadd.f32 %v13078_v17, %v3110_v3  ;;  %v13017_v8 = vadd.f32 %v13016_v60, %v13015_v42  ;;  %v13081_v48 = vadd.f32 %v13080_v57, %v13079_v7 }
 0x263   :  { %v13082_v43 = vpop.f32.mrf.mxu1  ;;  %v13018_v14 = vpop.f32.mrf.mxu0 }
 0x264   :  { %v3113_v6 = vadd.f32 %v13017_v8, %v16215_v2 }
 0x265   :  { %v13083_v54 = vpop.f32.mrf.mxu1  ;;  %v13019_v16 = vpop.f32.mrf.mxu0 }
 0x266   :  { %v13084_v32 = vadd.f32 %v13083_v54, %v13082_v43  ;;  %v16268_v26 = vadd.f32 %v13081_v48, %v3113_v6  ;;  %v13020_v34 = vadd.f32 %v13019_v16, %v13018_v14 }
 0x267   :  { %v13085_v29 = vpop.f32.mrf.mxu1  ;;  %v13021_v33 = vpop.f32.mrf.mxu0 }
 0x268   :  { %v3118_v27 = vadd.f32 %v13020_v34, %v16218_v39  ;;  %v13045_v39 = vadd.f32 %v16223_v13, %v16220_v47 }
 0x269   :  { %v13086_v53 = vpop.f32.mrf.mxu1  ;;  %v13022_v4 = vpop.f32.mrf.mxu0 }
 0x26a   :  { %v16273_v51 = vadd.f32 %v13084_v32, %v3118_v27  ;;  %v3162_v19 = vadd.f32 %v13045_v39, %v3065_v35  ;;  %v13023_v11 = vadd.f32 %v13022_v4, %v13021_v33  ;;  %v13087_v42 = vadd.f32 %v13086_v53, %v13085_v29 }
 0x26b   :  { %v13168_v31 = vpop.f32.mrf.mxu1  ;;  %v13104_v23 = vpop.f32.mrf.mxu0 }
 0x26c   :  { %v3121_v46 = vadd.f32 %v13023_v11, %v16225_v52 }
 0x26d   :  { %v13169_v24 = vpop.f32.mrf.mxu1  ;;  %v13105_v2 = vpop.f32.mrf.mxu0 }
 0x26e   :  { %v13106_v9 = vadd.f32 %v13105_v2, %v13104_v23  ;;  %v13170_v10 = vadd.f32 %v13169_v24, %v13168_v31  ;;  %v16293_v31 = vadd.f32 %v13087_v42, %v3121_v46 }
 0x26f   :  { %v13171_v62 = vpop.f32.mrf.mxu1  ;;  %v13107_v58 = vpop.f32.mrf.mxu0 }
 0x270   :  { %v3256_v44 = vadd.f32 %v13106_v9, %v16232_v22 }
 0x271   :  { %v13172_v15 = vpop.f32.mrf.mxu1  ;;  %v13108_v12 = vpop.f32.mrf.mxu0 }
 0x272   :  { %v3559_v50 = vadd.f32 %v13170_v10, %v3256_v44  ;;  %v13109_v17 = vadd.f32 %v13108_v12, %v13107_v58  ;;  %v13173_v63 = vadd.f32 %v13172_v15, %v13171_v62 }
 0x273   :  { %v13174_v36 = vpop.f32.mrf.mxu1  ;;  %v13110_v38 = vpop.f32.mrf.mxu0 }
 0x274   :  { %v3582_v20 = vadd.f32 %v16276_v25, %v3559_v50  ;;  %v3259_v49 = vadd.f32 %v13109_v17, %v3162_v19 }
 0x275   :  { %v13175_v5 = vpop.f32.mrf.mxu1  ;;  %v13111_v47 = vpop.f32.mrf.mxu0 }
 0x276   :  { %vm3598_vm6 = vcmp.ge.f32.partialorder %v3582_v20, 0.0  ;;  %v3614_v22 = vmul.f32 0.1, %v3582_v20  ;;  %v3560_v18 = vadd.f32 %v13173_v63, %v3259_v49  ;;  %v13112_v57 = vadd.f32 %v13111_v47, %v13110_v38 }
 0x277   :  { %v13177_v7 = vpop.f32.mrf.mxu1  ;;  %v13113_v43 = vpop.f32.mrf.mxu0  ;;  %v13176_v32 = vadd.f32 %v13175_v5, %v13174_v36 }
 0x278   :  { %v16285_v60 = vsel %vm3598_vm6, %v3582_v20, %v3614_v22  ;;  %v3583_v54 = vadd.f32 %v16276_v25, %v3560_v18  ;;  %v3264_v8 = vadd.f32 %v13112_v57, %v16235_v55 }
 0x279   :  { %v13178_v13 = vpop.f32.mrf.mxu1  ;;  %v13114_v14 = vpop.f32.mrf.mxu0  ;;  %v18220_v48 = vrot.slane %v16285_v60, 6  ;;  %v18219_v16 = vrot.slane %v16285_v60, 7  ;;  %v18218_v34 = vrot.slane %v16285_v60, 5 }
 0x27a   :  { %vm3599_vm7 = vcmp.ge.f32.partialorder %v3583_v54, 0.0  ;;  %v3615_v29 = vmul.f32 0.1, %v3583_v54  ;;  %v3561_v53 = vadd.f32 %v13176_v32, %v3264_v8  ;;  %v13115_v33 = vadd.f32 %v13114_v14, %v13113_v43 }
 0x27b   :  { %v13180_v3 = vpop.f32.mrf.mxu1  ;;  %v13179_v27 = vadd.f32 %v13178_v13, %v13177_v7  ;;  %v13116_v4 = vpop.f32.mrf.mxu0 }
 0x27c   :  { %v16298_v23 = vsel %vm3599_vm7, %v3583_v54, %v3615_v29  ;;  %v3584_v62 = vadd.f32 %v16276_v25, %v3561_v53  ;;  %v3267_v2 = vadd.f32 %v13115_v33, %v16238_v59 }
 0x27d   :  { %v13181_v6 = vpop.f32.mrf.mxu1  ;;  %v13117_v35 = vpop.f32.mrf.mxu0  ;;  %v4012_v58 = vpack.c.bf16 %v16298_v23, %v16285_v60  ;;  %v3870_v36 = vrot.slane %v16298_v23, 6  ;;  %v3942_v39 = vrot.slane %v16298_v23, 7  ;;  %v3798_v44 = vrot.slane %v16298_v23, 5 }
 0x27e   :  { %v13182_v15 = vadd.f32 %v13181_v6, %v13180_v3  ;;  %vm3600_vm9 = vcmp.ge.f32.partialorder %v3584_v62, 0.0  ;;  %v3616_v10 = vmul.f32 0.1, %v3584_v62  ;;  %v3562_v12 = vadd.f32 %v13179_v27, %v3267_v2 }
 0x27f   :  { %v13183_v55 = vpop.f32.mrf.mxu1  ;;  %v13118_v5 = vadd.f32 %v13117_v35, %v13116_v4  ;;  %v13119_v19 = vpop.f32.mrf.mxu0  ;;  %4709 = vmatprep.mubr.bf16.mxu1 %v4012_v58  ;;  %v16311_v59 = vsel %vm3885_vm4, %v18220_v48, %v3870_v36  ;;  %v16317_v11 = vsel %vm667_vm1, %v18219_v16, %v3942_v39  ;;  %v16323_v38 = vsel %vm3813_vm5, %v18218_v34, %v3798_v44 }
 0x280   :  { %v16325_v7 = vsel %vm3600_vm9, %v3584_v62, %v3616_v10  ;;  %v3585_v20 = vadd.f32 %v16276_v25, %v3562_v12  ;;  %v18221_v63 = vrot.slane %v16298_v23, 3 }
 0x281   :  { %v13184_v9 = vpop.f32.mrf.mxu1  ;;  %v3272_v49 = vadd.f32 %v13118_v5, %v16241_v45  ;;  %v13120_v47 = vpop.f32.mrf.mxu0  ;;  %v3871_v22 = vrot.slane %v16325_v7, 6  ;;  %v3943_v18 = vrot.slane %v16325_v7, 7  ;;  %v3799_v57 = vrot.slane %v16325_v7, 5 }
 0x282   :  { %v13185_v50 = vadd.f32 %v13184_v9, %v13183_v55  ;;  %v18222_v46 = vrot.slane %v16325_v7, 3  ;;  %vm3601_vm10 = vcmp.ge.f32.partialorder %v3585_v20, 0.0  ;;  %v3617_v42 = vmul.f32 0.1, %v3585_v20 }
 0x283   :  { %v13186_v17 = vpop.f32.mrf.mxu1  ;;  %v3563_v43 = vadd.f32 %v13182_v15, %v3272_v49  ;;  %v13121_v3 = vadd.f32 %v13120_v47, %v13119_v19  ;;  %v13122_v54 = vpop.f32.mrf.mxu0  ;;  %v16336_v45 = vsel %vm3885_vm4, %v3870_v36, %v3871_v22  ;;  %v16340_v14 = vsel %vm667_vm1, %v3942_v39, %v3943_v18 }
 0x284   :  { %v16344_v6 = vsel %vm3813_vm5, %v3798_v44, %v3799_v57  ;;  %v16346_v29 = vsel %vm3601_vm10, %v3585_v20, %v3617_v42  ;;  %v16356_v27 = vsel %vm4181_vm8, %v18221_v63, %v18222_v46  ;;  %vm4108_vm10 = vcmp.lt.s32.totalorder %v15626_v28, 6 }
 0x285   :  { %v13187_v13 = vpop.f32.mrf.mxu1  ;;  %v3586_v53 = vadd.f32 %v16276_v25, %v3563_v43  ;;  %v3275_v33 = vadd.f32 %v13121_v3, %v16244_v37  ;;  %18289 = vst [vmem:[#allocation32_spill] sm:$0xff] %v16356_v27  ;;  %v13123_v4 = vpop.f32.mrf.mxu0  ;;  %v3872_v2 = vrot.slane %v16346_v29, 6  ;;  %v3944_v15 = vrot.slane %v16346_v29, 7 }
 0x286   :  { %v13188_v8 = vadd.f32 %v13187_v13, %v13186_v17  ;;  %v3800_v35 = vrot.slane %v16346_v29, 5  ;;  %v13124_v58 = vadd.f32 %v13123_v4, %v13122_v54  ;;  %v18335_v27 = vrot.slane %v16285_v60, 6 }
 0x287   :  { %v13189_v32 = vpop.f32.mrf.mxu1  ;;  %vm3602_vm11 = vcmp.ge.f32.partialorder %v3586_v53, 0.0  ;;  %v3618_v37 = vmul.f32 0.1, %v3586_v53  ;;  %v3564_v9 = vadd.f32 %v13185_v50, %v3275_v33  ;;  %v13125_v36 = vpop.f32.mrf.mxu0  ;;  %v16365_v10 = vsel %vm3885_vm4, %v3871_v22, %v3872_v2 }
 0x288   :  { %v16369_v12 = vsel %vm667_vm1, %v3943_v18, %v3944_v15  ;;  %v16373_v5 = vsel %vm3813_vm5, %v3799_v57, %v3800_v35  ;;  %v3280_v17 = vadd.f32 %v13124_v58, %v16247_v0 }
 0x289   :  { %v13190_v55 = vpop.f32.mrf.mxu1  ;;  %v16375_v19 = vsel %vm3602_vm11, %v3586_v53, %v3618_v37  ;;  %v3587_v50 = vadd.f32 %v16276_v25, %v3564_v9  ;;  %v13126_v49 = vpop.f32.mrf.mxu0 }
 0x28a   :  { %v13191_v39 = vadd.f32 %v13190_v55, %v13189_v32  ;;  %v3873_v18 = vrot.slane %v16375_v19, 6  ;;  %v3945_v57 = vrot.slane %v16375_v19, 7  ;;  %v3565_v43 = vadd.f32 %v13188_v8, %v3280_v17 }
 0x28b   :  { %v13192_v44 = vpop.f32.mrf.mxu1  ;;  %vm3603_vm12 = vcmp.ge.f32.partialorder %v3587_v50, 0.0  ;;  %v3619_v42 = vmul.f32 0.1, %v3587_v50  ;;  %v13127_v3 = vadd.f32 %v13126_v49, %v13125_v36  ;;  %v13128_v0 = vpop.f32.mrf.mxu0  ;;  %v3801_v4 = vrot.slane %v16375_v19, 5 }
 0x28c   :  { %v16389_v53 = vsel %vm3885_vm4, %v3872_v2, %v3873_v18  ;;  %v16393_v33 = vsel %vm667_vm1, %v3944_v15, %v3945_v57  ;;  %v3588_v37 = vadd.f32 %v16276_v25, %v3565_v43 }
 0x28d   :  { %v13193_v47 = vpop.f32.mrf.mxu1  ;;  %v16396_v55 = vsel %vm3603_vm12, %v3587_v50, %v3619_v42  ;;  %v3283_v8 = vadd.f32 %v13127_v3, %v16250_v30  ;;  %v13129_v58 = vpop.f32.mrf.mxu0  ;;  %vm16594_vm12 = vmneg %vm3885_vm4 }
 0x28e   :  { %v13194_v54 = vadd.f32 %v13193_v47, %v13192_v44  ;;  %v3874_v44 = vrot.slane %v16396_v55, 6  ;;  %v3946_v15 = vrot.slane %v16396_v55, 7  ;;  %v3802_v17 = vrot.slane %v16396_v55, 5 }
 0x28f   :  { %v13195_v32 = vpop.f32.mrf.mxu1  ;;  %vm3604_vm13 = vcmp.ge.f32.partialorder %v3588_v37, 0.0  ;;  %v3620_v50 = vmul.f32 0.1, %v3588_v37  ;;  %v3566_v49 = vadd.f32 %v13191_v39, %v3283_v8  ;;  %v13130_v47 = vadd.f32 %v13129_v58, %v13128_v0  ;;  %v13131_v42 = vpop.f32.mrf.mxu0 }
 0x290   :  { %v16408_v3 = vsel %vm3885_vm4, %v3873_v18, %v3874_v44  ;;  %v16412_v2 = vsel %vm667_vm1, %v3945_v57, %v3946_v15  ;;  %v16416_v22 = vsel %vm3813_vm5, %v3801_v4, %v3802_v17  ;;  %v16428_v57 = vsel %vm3813_vm5, %v3800_v35, %v3801_v4 }
 0x291   :  { %v13196_v36 = vpop.f32.mrf.mxu1  ;;  %v16418_v13 = vsel %vm3604_vm13, %v3588_v37, %v3620_v50  ;;  %v3589_v39 = vadd.f32 %v16276_v25, %v3566_v49  ;;  %v3288_v0 = vadd.f32 %v13130_v47, %v16253_v1  ;;  %v13132_v8 = vpop.f32.mrf.mxu0  ;;  %vm16631_vm13 = vmneg %vm667_vm1 }
 0x292   :  { %v13197_v43 = vadd.f32 %v13196_v36, %v13195_v32  ;;  %v3875_v36 = vrot.slane %v16418_v13, 6  ;;  %v3947_v37 = vrot.slane %v16418_v13, 7  ;;  %v13133_v1 = vadd.f32 %v13132_v8, %v13131_v42 }
 0x293   :  { %v13198_v30 = vpop.f32.mrf.mxu1  ;;  %vm3605_vm14 = vcmp.ge.f32.partialorder %v3589_v39, 0.0  ;;  %v3621_v50 = vmul.f32 0.1, %v3589_v39  ;;  %v3567_v49 = vadd.f32 %v13194_v54, %v3288_v0  ;;  %v13134_v47 = vpop.f32.mrf.mxu0  ;;  %v3803_v42 = vrot.slane %v16418_v13, 5 }
 0x294   :  { %v16436_v58 = vsel %vm3885_vm4, %v3874_v44, %v3875_v36  ;;  %v16440_v35 = vsel %vm667_vm1, %v3946_v15, %v3947_v37  ;;  %v3291_v54 = vadd.f32 %v13133_v1, %v16256_v61 }
 0x295   :  { %v13199_v18 = vpop.f32.mrf.mxu1  ;;  %v16442_v4 = vsel %vm3605_vm14, %v3589_v39, %v3621_v50  ;;  %v3590_v21 = vadd.f32 %v16276_v25, %v3567_v49 }
 0x296   :  { %v13200_v20 = vadd.f32 %v13199_v18, %v13198_v30  ;;  %v13135_v30 = vpop.f32.mrf.mxu0  ;;  %v3876_v44 = vrot.slane %v16442_v4, 6  ;;  %v3948_v18 = vrot.slane %v16442_v4, 7  ;;  %v3804_v15 = vrot.slane %v16442_v4, 5 }
 0x297   :  { %v13201_v32 = vpop.f32.mrf.mxu1  ;;  %vm3606_vm15 = vcmp.ge.f32.partialorder %v3590_v21, 0.0  ;;  %v3622_v39 = vmul.f32 0.1, %v3590_v21  ;;  %v3568_v50 = vadd.f32 %v13197_v43, %v3291_v54  ;;  %v13136_v62 = vadd.f32 %v13135_v30, %v13134_v47 }
 0x298   :  { %v13137_v49 = vpop.f32.mrf.mxu0  ;;  %v16454_v1 = vsel %vm3885_vm4, %v3875_v36, %v3876_v44  ;;  %v16458_v8 = vsel %vm667_vm1, %v3947_v37, %v3948_v18  ;;  %v16462_v16 = vsel %vm3813_vm5, %v3803_v42, %v3804_v15  ;;  %v16474_v37 = vsel %vm3813_vm5, %v3802_v17, %v3803_v42 }
 0x299   :  { %v13202_v0 = vpop.f32.mrf.mxu1  ;;  %18290 = vst [vmem:[#allocation37_spill] sm:$0xff] %v16462_v16  ;;  %v16464_v48 = vsel %vm3606_vm15, %v3590_v21, %v3622_v39  ;;  %v3591_v43 = vadd.f32 %v16276_v25, %v3568_v50  ;;  %v3296_v47 = vadd.f32 %v13136_v62, %v16259_v41  ;;  %18291 = vst [vmem:[#allocation38_spill] sm:$0xff] %v16474_v37 }
 0x29a   :  { %v13203_v34 = vadd.f32 %v13202_v0, %v13201_v32  ;;  %v13138_v54 = vpop.f32.mrf.mxu0  ;;  %v3877_v0 = vrot.slane %v16464_v48, 6  ;;  %v3949_v21 = vrot.slane %v16464_v48, 7  ;;  %vm16642_vm15 = vmneg %vm3813_vm5 }
 0x29b   :  { %v13204_v61 = vpop.f32.mrf.mxu1  ;;  %vm3607_vm0 = vcmp.ge.f32.partialorder %v3591_v43, 0.0  ;;  %v3623_v39 = vmul.f32 0.1, %v3591_v43  ;;  %v3569_v50 = vadd.f32 %v13200_v20, %v3296_v47  ;;  %v13139_v41 = vadd.f32 %v13138_v54, %v13137_v49 }
 0x29c   :  { %v13140_v62 = vpop.f32.mrf.mxu0  ;;  %v16482_v30 = vsel %vm3885_vm4, %v3876_v44, %v3877_v0  ;;  %v16486_v17 = vsel %vm667_vm1, %v3948_v18, %v3949_v21  ;;  %v3805_v49 = vrot.slane %v16464_v48, 5 }
 0x29d   :  { %v13205_v36 = vpop.f32.mrf.mxu1  ;;  %18292 = vst [vmem:[#allocation30_spill] sm:$0xff] %v16482_v30  ;;  %18293 = vst [vmem:[#allocation29_spill] sm:$0xff] %v16486_v17  ;;  %v16488_v42 = vsel %vm3607_vm0, %v3591_v43, %v3623_v39  ;;  %v3592_v63 = vadd.f32 %v16276_v25, %v3569_v50  ;;  %v3299_v20 = vadd.f32 %v13139_v41, %v16262_v56  ;;  %vm15507_vm0 = vmmov 1  }
 0x29e   :  { %v13206_v24 = vadd.f32 %v13205_v36, %v13204_v61  ;;  %v13141_v61 = vpop.f32.mrf.mxu0  ;;  %v3878_v44 = vrot.slane %v16488_v42, 6  ;;  %v3950_v36 = vrot.slane %v16488_v42, 7  ;;  %v3806_v18 = vrot.slane %v16488_v42, 5 }
 0x29f   :  { %v13207_v32 = vpop.f32.mrf.mxu1  ;;  %vm3608_vm3 = vcmp.ge.f32.partialorder %v3592_v63, 0.0  ;;  %v3624_v43 = vmul.f32 0.1, %v3592_v63  ;;  %v3570_v39 = vadd.f32 %v13203_v34, %v3299_v20  ;;  %v13142_v52 = vadd.f32 %v13141_v61, %v13140_v62 }
 0x2a0   :  { %v13143_v50 = vpop.f32.mrf.mxu0  ;;  %v16500_v41 = vsel %vm3885_vm4, %v3877_v0, %v3878_v44  ;;  %v16504_v54 = vsel %vm667_vm1, %v3949_v21, %v3950_v36  ;;  %v16508_v9 = vsel %vm3813_vm5, %v3805_v49, %v3806_v18  ;;  %v16520_v21 = vsel %vm3813_vm5, %v3804_v15, %v3805_v49 }
 0x2a1   :  { %v13208_v47 = vpop.f32.mrf.mxu1  ;;  %18294 = vst [vmem:[#allocation34_spill] sm:$0xff] %v16500_v41  ;;  %18295 = vst [vmem:[#allocation35_spill] sm:$0xff] %v16504_v54  ;;  %v16510_v37 = vsel %vm3608_vm3, %v3592_v63, %v3624_v43  ;;  %v3593_v34 = vadd.f32 %v16276_v25, %v3570_v39  ;;  %v3304_v62 = vadd.f32 %v13142_v52, %v16265_v40  ;;  %v14692_v41 = vld [vmem:[#allocation14 + $0x160] sm:$0xff]  }
 0x2a2   :  { %v13209_v46 = vadd.f32 %v13208_v47, %v13207_v32  ;;  %18296 = vst [vmem:[#allocation31_spill] sm:$0xff] %v16508_v9  ;;  %v13144_v20 = vpop.f32.mrf.mxu0  ;;  %18297 = vst [vmem:[#allocation36_spill] sm:$0xff] %v16520_v21  ;;  %v3879_v47 = vrot.slane %v16510_v37, 6  ;;  %v3951_v63 = vrot.slane %v16510_v37, 7 }
 0x2a3   :  { %v13210_v56 = vpop.f32.mrf.mxu1  ;;  %vm3609_vm6 = vcmp.ge.f32.partialorder %v3593_v34, 0.0  ;;  %v3625_v43 = vmul.f32 0.1, %v3593_v34  ;;  %v3571_v39 = vadd.f32 %v13206_v24, %v3304_v62  ;;  %v13145_v40 = vadd.f32 %v13144_v20, %v13143_v50  ;;  %vm16681_vm3 = vmpackc.low %vm15507_vm0, %vm16594_vm12 }
 0x2a4   :  { %v13146_v52 = vpop.f32.mrf.mxu0  ;;  %v16528_v61 = vsel %vm3885_vm4, %v3878_v44, %v3879_v47  ;;  %v16532_v15 = vsel %vm667_vm1, %v3950_v36, %v3951_v63  ;;  %v3807_v50 = vrot.slane %v16510_v37, 5 }
 0x2a5   :  { %v13211_v0 = vpop.f32.mrf.mxu1  ;;  %18298 = vst [vmem:[#allocation39_spill] sm:$0xff] %v16528_v61  ;;  %18299 = vst [vmem:[#allocation40_spill] sm:$0xff] %v16532_v15  ;;  %v16534_v49 = vsel %vm3609_vm6, %v3593_v34, %v3625_v43  ;;  %v3594_v17 = vadd.f32 %v16276_v25, %v3571_v39  ;;  %v3307_v24 = vadd.f32 %v13145_v40, %v16268_v26 }
 0x2a6   :  { %v13212_v16 = vadd.f32 %v13211_v0, %v13210_v56  ;;  %v13147_v56 = vpop.f32.mrf.mxu0  ;;  %v3880_v44 = vrot.slane %v16534_v49, 6  ;;  %v3952_v0 = vrot.slane %v16534_v49, 7  ;;  %v3808_v36 = vrot.slane %v16534_v49, 5  ;;  %vm16694_vm6 = vmpackc.low %vm15507_vm0, %vm16631_vm13 }
 0x2a7   :  { %v13213_v32 = vpop.f32.mrf.mxu1  ;;  %vm3610_vm7 = vcmp.ge.f32.partialorder %v3594_v17, 0.0  ;;  %v3626_v34 = vmul.f32 0.1, %v3594_v17  ;;  %v3572_v43 = vadd.f32 %v13209_v46, %v3307_v24  ;;  %v13148_v30 = vadd.f32 %v13147_v56, %v13146_v52 }
 0x2a8   :  { %v13149_v39 = vpop.f32.mrf.mxu0  ;;  %v16546_v26 = vsel %vm3885_vm4, %v3879_v47, %v3880_v44  ;;  %v16550_v40 = vsel %vm667_vm1, %v3951_v63, %v3952_v0  ;;  %v16554_v20 = vsel %vm3813_vm5, %v3807_v50, %v3808_v36  ;;  %v16566_v63 = vsel %vm3813_vm5, %v3806_v18, %v3807_v50 }
 0x2a9   :  { %v13214_v62 = vpop.f32.mrf.mxu1  ;;  %18300 = vst [vmem:[#allocation41_spill] sm:$0xff] %v16546_v26  ;;  %18301 = vst [vmem:[#allocation42_spill] sm:$0xff] %v16550_v40  ;;  %v16556_v9 = vsel %vm3610_vm7, %v3594_v17, %v3626_v34  ;;  %v3595_v54 = vadd.f32 %v16276_v25, %v3572_v43  ;;  %v3312_v46 = vadd.f32 %v13148_v30, %v16273_v51  ;;  %v18337_v40 = vrot.slane %v16285_v60, 5 }
 0x2aa   :  { %v13215_v21 = vadd.f32 %v13214_v62, %v13213_v32  ;;  %18302 = vst [vmem:[#allocation43_spill] sm:$0xff] %v16554_v20  ;;  %v13150_v52 = vpop.f32.mrf.mxu0  ;;  %18303 = vst [vmem:[#allocation44_spill] sm:$0xff] %v16566_v63  ;;  %v3881_v24 = vrot.slane %v16556_v9, 6  ;;  %v3953_v17 = vrot.slane %v16556_v9, 7  ;;  %v3809_v50 = vrot.slane %v16556_v9, 5 }
 0x2ab   :  { %vm3611_vm9 = vcmp.ge.f32.partialorder %v3595_v54, 0.0  ;;  %v3627_v56 = vmul.f32 0.1, %v3595_v54  ;;  %v3573_v62 = vadd.f32 %v13212_v16, %v3312_v46  ;;  %v13151_v34 = vadd.f32 %v13150_v52, %v13149_v39  ;;  %vm16704_vm7 = vmpackc.low %vm15507_vm0, %vm16642_vm15 }
 0x2ac   :  { %v16575_v30 = vsel %vm3885_vm4, %v3880_v44, %v3881_v24  ;;  %v16579_v18 = vsel %vm667_vm1, %v3952_v0, %v3953_v17  ;;  %v18230_v46 = vrot.slane %v16375_v19, 3  ;;  %v4022_v52 = vrot.slane %v16325_v7, 1 }
 0x2ad   :  { %18304 = vst [vmem:[#allocation45_spill] sm:$0xff] %v16575_v30  ;;  %18305 = vst [vmem:[#allocation46_spill] sm:$0xff] %v16579_v18  ;;  %v16582_v43 = vsel %vm3611_vm9, %v3595_v54, %v3627_v56  ;;  %v3596_v16 = vadd.f32 %v16276_v25, %v3573_v62  ;;  %v3315_v39 = vadd.f32 %v13151_v34, %v16293_v31  ;;  %v18306_v54 = vmov 0 }
 0x2ae   :  { %v3882_v44 = vrot.slane %v16582_v43, 6  ;;  %v3954_v51 = vrot.slane %v16582_v43, 7  ;;  %v3810_v0 = vrot.slane %v16582_v43, 5  ;;  %v18307_v54 = vsel %vm16594_vm12, 4294967295, %v18306_v54 }
 0x2af   :  { %vm3612_vm11 = vcmp.ge.f32.partialorder %v3596_v16, 0.0  ;;  %v3628_v47 = vmul.f32 0.1, %v3596_v16  ;;  %v3574_v32 = vadd.f32 %v13215_v21, %v3315_v39  ;;  %18308 = vst [vmem:[#allocation47_spill] sm:$0xff] %v18307_v54  ;;  %v16600_v31 = vsel %vm3813_vm5, %v3808_v36, %v3809_v50  ;;  %v14690_v54 = vld [vmem:[#allocation14 + $0x168] sm:$0xff]  }
 0x2b0   :  { %18309 = vst [vmem:[#allocation48_spill] sm:$0xff] %v16600_v31  ;;  %v16604_v56 = vsel %vm3885_vm4, %v3881_v24, %v3882_v44  ;;  %v16608_v62 = vsel %vm667_vm1, %v3953_v17, %v3954_v51  ;;  %v16612_v21 = vsel %vm3813_vm5, %v3809_v50, %v3810_v0  ;;  %v18313_v34 = vrot.slane %v16346_v29, 3 }
 0x2b1   :  { %18310 = vst [vmem:[#allocation49_spill] sm:$0xff] %v16604_v56  ;;  %18311 = vst [vmem:[#allocation50_spill] sm:$0xff] %v16608_v62  ;;  %v16622_v39 = vsel %vm3612_vm11, %v3596_v16, %v3628_v47  ;;  %v3597_v24 = vadd.f32 %v16276_v25, %v3574_v32  ;;  %v18315_v50 = vmov 0  ;;  %v18323_v31 = vrot.slane %v16298_v23, 3 }
 0x2b2   :  { %18312 = vst [vmem:[#allocation51_spill] sm:$0xff] %v16612_v21  ;;  %v16620_v36 = vsel %vm4181_vm8, %v18313_v34, %v18230_v46  ;;  %v18316_v50 = vsel %vm16631_vm13, 4294967295, %v18315_v50  ;;  %v3883_v47 = vrot.slane %v16622_v39, 6  ;;  %v3955_v16 = vrot.slane %v16622_v39, 7 }
 0x2b3   :  { %18314 = vst [vmem:[#allocation52_spill] sm:$0xff] %v16620_v36  ;;  %18317 = vst [vmem:[#allocation53_spill] sm:$0xff] %v18316_v50  ;;  %v3811_v25 = vrot.slane %v16622_v39, 5  ;;  %vm3613_vm14 = vcmp.ge.f32.partialorder %v3597_v24, 0.0  ;;  %v3629_v32 = vmul.f32 0.1, %v3597_v24  ;;  %v18320_v17 = vmov %v18313_v34 }
 0x2b4   :  { %v18321_v46 = vrot.slane %v16325_v7, 3  ;;  %v18324_v21 = vrot.slane %v16285_v60, 3  ;;  %v16664_v62 = vsel %vm3885_vm4, %v3882_v44, %v3883_v47  ;;  %v16668_v30 = vsel %vm667_vm1, %v3954_v51, %v3955_v16 }
 0x2b5   :  { %v16676_v56 = vsel %vm3613_vm14, %v3597_v24, %v3629_v32  ;;  %v18326_v44 = vmov 0  ;;  %v18329_v32 = vmov 0  ;;  %v18334_v36 = vrot.slane %v16285_v60, 2 }
 0x2b6   :  { %v16652_v34 = vsel %vm4181_vm8, %v18321_v46, %v18320_v17  ;;  %v16660_v18 = vsel %vm4181_vm8, %v18324_v21, %v18323_v31  ;;  %v16672_v46 = vsel %vm3813_vm5, %v3810_v0, %v3811_v25  ;;  %v18327_v44 = vsel %vm16681_vm3, 4294967295, %v18326_v44 }
 0x2b7   :  { %18322 = vst [vmem:[#allocation54_spill] sm:$0xff] %v16652_v34  ;;  %18325 = vst [vmem:[#allocation55_spill] sm:$0xff] %v16660_v18  ;;  %v4093_v31 = vrot.slane %v16298_v23, 2  ;;  %v4094_v0 = vrot.slane %v16325_v7, 2  ;;  %v3884_v21 = vrot.slane %v16676_v56, 6  ;;  %v3956_v24 = vrot.slane %v16676_v56, 7 }
 0x2b8   :  { %18328 = vst [vmem:[#allocation56_spill] sm:$0xff] %v18327_v44  ;;  %v18330_v32 = vsel %vm16694_vm6, 4294967295, %v18329_v32  ;;  %v3812_v17 = vrot.slane %v16676_v56, 5  ;;  %v14687_v34 = vld [vmem:[#allocation14 + $0x138] sm:$0xff]   ;;  %v4021_v51 = vrot.slane %v16298_v23, 1  ;;  %v18336_v20 = vrot.slane %v16285_v60, 7 }
 0x2b9   :  { %18331 = vst [vmem:[#allocation57_spill] sm:$0xff] %v18330_v32  ;;  %v16710_v50 = vsel %vm4108_vm10, %v4093_v31, %v4094_v0  ;;  %v16716_v18 = vsel %vm4108_vm10, %v18334_v36, %v4093_v31  ;;  %v3901_v63 = vsel %vm3885_vm4, %v3884_v21, %v18335_v27  ;;  %v14688_v31 = vld [vmem:[#allocation14 + $0x170] sm:$0xff]   ;;  %v16734_v23 = vsel %vm3885_vm4, %v3883_v47, %v3884_v21  ;;  %v15236_v47 = vld [vmem:[#allocation14 + $0x1b8] sm:$0xff]   ;;  %v14701_v32 = vld [vmem:[#allocation14 + $0x1a0] sm:$0xff]  }
 0x2ba   :  { %v3972_v15 = vsel %vm667_vm1, %v3956_v24, %v18336_v20  ;;  %v3829_v36 = vsel %vm3813_vm5, %v3812_v17, %v18337_v40  ;;  %v11862_v61 = vpack.c.bf16 %v16311_v59, %v3901_v63  ;;  %v16743_v20 = vsel %vm667_vm1, %v3955_v16, %v3956_v24 }
 0x2bb   :  { %v11870_v26 = vpack.c.bf16 %v16317_v11, %v3972_v15  ;;  %v11866_v27 = vpack.c.bf16 %v16323_v38, %v3829_v36  ;;  %v16747_v40 = vsel %vm3813_vm5, %v3811_v25, %v3812_v17  ;;  %v16753_v59 = vsel %vm820_vm2, %v4021_v51, %v4022_v52  ;;  %v14697_v11 = vld [vmem:[#allocation14 + $0x1b0] sm:$0xff]   ;;  %v14698_v15 = vld [vmem:[#allocation14 + $0x1a8] sm:$0xff]  }
 0x2bc   :  { %11863 = vmatprep.mubr.msk.bf16.mxu0 %vm16681_vm3, %v11862_v61  ;;  %v18338_v63 = vrot.slane %v16285_v60, 1  ;;  %v4170_v25 = vrot.slane %v16396_v55, 3  ;;  %v18339_v61 = vpack.c.bf16 %v16346_v29, %v16325_v7  ;;  %v4171_v21 = vrot.slane %v16418_v13, 3 }
 0x2bd   :  { %11871 = vmatmul.mubr.msk.bf16.vlgmr.msra.gmra.mxu1 %vm16694_vm6, %v11870_v26  ;;  %11867 = vmatmul.mubr.msk.bf16.vlgmr.msra.gmra.mxu0 %vm16704_vm7, %v11866_v27  ;;  %v14689_v26 = vld [vmem:[#allocation14 + $0x130] sm:$0xff]   ;;  %v4095_v24 = vrot.slane %v16346_v29, 2  ;;  %v18340_v36 = vpack.c.bf16 %v16365_v10, %v16336_v45  ;;  %v18341_v27 = vrot.slane %v16375_v19, 3  ;;  %v4023_v17 = vrot.slane %v16346_v29, 1  ;;  %v14691_v29 = vld [vmem:[#allocation14 + $0x128] sm:$0xff]  }
 0x2be   :  { %v16767_v16 = vsel %vm820_vm2, %v18338_v63, %v4021_v51  ;;  %4717 = vmatprep.mubr.bf16.mxu1 %v18339_v61  ;;  %v4096_v51 = vrot.slane %v16375_v19, 2  ;;  %13345 = vmatpush3.bf16.msra.mxu0 %v14687_v34  ;;  %v4172_v63 = vrot.slane %v16442_v4, 3  ;;  %v4173_v61 = vrot.slane %v16464_v48, 3 }
 0x2bf   :  { %4620 = vmatprep.mubr.bf16.mxu0 %v18340_v36  ;;  %v16787_v7 = vsel %vm4181_vm8, %v18341_v27, %v4170_v25  ;;  %13346 = vmatprep.subr.bf16.mxu0 %v14688_v31  ;;  %v16794_v45 = vsel %vm4181_vm8, %v4170_v25, %v4171_v21  ;;  %v16802_v34 = vsel %vm4108_vm10, %v4094_v0, %v4095_v24  ;;  %v4024_v36 = vrot.slane %v16375_v19, 1 }
 0x2c0   :  { %14174 = vmatpush3.bf16.msra.mxu1 %v15236_v47  ;;  %v16798_v10 = vsel %vm4108_vm10, %v4095_v24, %v4096_v51  ;;  %v16811_v47 = vsel %vm4181_vm8, %v4172_v63, %v4173_v61  ;;  %v16815_v25 = vsel %vm4181_vm8, %v4171_v21, %v4172_v63  ;;  %v16825_v27 = vsel %vm820_vm2, %v4022_v52, %v4023_v17 }
 0x2c1   :  { %14175 = vmatprep.subr.bf16.mxu1 %v14697_v11  ;;  %v16821_v24 = vsel %vm820_vm2, %v4023_v17, %v4024_v36  ;;  %18342 = vst [vmem:[#allocation58_spill] sm:$0xff] %v16825_v27  ;;  %v4174_v31 = vrot.slane %v16488_v42, 3  ;;  %v4175_v21 = vrot.slane %v16510_v37, 3  ;;  %v4097_v63 = vrot.slane %v16396_v55, 2 }
 0x2c2   :  { %13347 = vmatpush3.bf16.msra.mxu0 %v14689_v26  ;;  %v4098_v0 = vrot.slane %v16418_v13, 2  ;;  %v4176_v17 = vrot.slane %v16534_v49, 3  ;;  %v4177_v26 = vrot.slane %v16556_v9, 3  ;;  %v4025_v44 = vrot.slane %v16396_v55, 1 }
 0x2c3   :  { %13348 = vmatprep.subr.bf16.mxu0 %v14690_v54  ;;  %v16835_v52 = vsel %vm4181_vm8, %v4173_v61, %v4174_v31  ;;  %v18343_v38 = vpack.c.bf16 %v16369_v12, %v16340_v14  ;;  %v16845_v54 = vsel %vm4181_vm8, %v4174_v31, %v4175_v21  ;;  %v16853_v61 = vsel %vm4108_vm10, %v4096_v51, %v4097_v63  ;;  %v14695_v31 = vld [vmem:[#allocation14 + $0x158] sm:$0xff]  }
 0x2c4   :  { %14176 = vmatpush3.bf16.msra.mxu1 %v14697_v11  ;;  %v16849_v11 = vsel %vm4108_vm10, %v4097_v63, %v4098_v0  ;;  %v4026_v27 = vrot.slane %v16418_v13, 1  ;;  %v18344_v14 = vpack.c.bf16 %v16373_v5, %v16344_v6  ;;  %v18345_v12 = vpack.c.bf16 %v16396_v55, %v16375_v19  ;;  %v14693_v5 = vld [vmem:[#allocation14 + $0x120] sm:$0xff]  }
 0x2c5   :  { %4718 = vmatmul.mubr.bf16.gmra.mxu1 %v18343_v38  ;;  %14177 = vmatprep.subr.bf16.mxu1 %v14698_v15  ;;  %v16868_v51 = vsel %vm4181_vm8, %v4176_v17, %v4177_v26  ;;  %v4178_v63 = vrot.slane %v16582_v43, 3  ;;  %v18346_v6 = vpack.c.bf16 %v16408_v3, %v16389_v53  ;;  %v16876_v19 = vsel %vm4181_vm8, %v4175_v21, %v4176_v17  ;;  %v14696_v17 = vld [vmem:[#allocation14 + $0x118] sm:$0xff]   ;;  %v14699_v38 = vld [vmem:[#allocation14 + $0x150] sm:$0xff]  }
 0x2c6   :  { %4621 = vmatmul.mubr.bf16.gmra.mxu0 %v18344_v14  ;;  %4725 = vmatprep.mubr.bf16.mxu1 %v18345_v12  ;;  %v16880_v55 = vsel %vm820_vm2, %v4025_v44, %v4026_v27  ;;  %v16884_v14 = vsel %vm820_vm2, %v4024_v36, %v4025_v44  ;;  %v4179_v12 = vrot.slane %v16622_v39, 3  ;;  %v4099_v21 = vrot.slane %v16442_v4, 2  ;;  %v14702_v44 = vld [vmem:[#allocation14 + $0x198] sm:$0xff]  }
 0x2c7   :  { %4628 = vmatprep.mubr.bf16.mxu0 %v18346_v6  ;;  %13349 = vmatpush3.bf16.msra.mxu0 %v14691_v29  ;;  %18347 = vst [vmem:[#allocation59_spill] sm:$0xff] %v16880_v55  ;;  %18348 = vst [vmem:[#allocation60_spill] sm:$0xff] %v16884_v14  ;;  %v16893_v29 = vsel %vm4181_vm8, %v4177_v26, %v4178_v63  ;;  %v4180_v36 = vrot.slane %v16676_v56, 3  ;;  %v4027_v3 = vrot.slane %v16442_v4, 1  ;;  %v4028_v53 = vrot.slane %v16464_v48, 1 }
 0x2c8   :  { %13350 = vmatprep.subr.bf16.mxu0 %v14692_v41  ;;  %14178 = vmatpush3.bf16.msra.mxu1 %v14698_v15  ;;  %18349 = vst [vmem:[#allocation61_spill] sm:$0xff] %v16893_v29  ;;  %v16898_v41 = vsel %vm4181_vm8, %v4178_v63, %v4179_v12  ;;  %v4100_v15 = vrot.slane %v16464_v48, 2  ;;  %v16906_v26 = vsel %vm4108_vm10, %v4098_v0, %v4099_v21  ;;  %v18352_v6 = vrot.slane %v16285_v60, 3 }
 0x2c9   :  { %14179 = vmatprep.subr.bf16.mxu1 %v14701_v32  ;;  %18350 = vst [vmem:[#allocation62_spill] sm:$0xff] %v16898_v41  ;;  %v16916_v14 = vsel %vm4181_vm8, %v4179_v12, %v4180_v36  ;;  %v4101_v29 = vrot.slane %v16488_v42, 2  ;;  %v16931_v12 = vsel %vm820_vm2, %v4027_v3, %v4028_v53  ;;  %v4102_v55 = vrot.slane %v16510_v37, 2 }
 0x2ca   :  { %v16912_v63 = vsel %vm4108_vm10, %v4099_v21, %v4100_v15  ;;  %18351 = vst [vmem:[#allocation63_spill] sm:$0xff] %v16916_v14  ;;  %v16922_v0 = vsel %vm4181_vm8, %v4180_v36, %v18352_v6  ;;  %v18353_v36 = vpack.c.bf16 %v16412_v2, %v16393_v33  ;;  %v14700_v6 = vld [vmem:[#allocation14 + $0x110] sm:$0xff]   ;;  %v4029_v21 = vrot.slane %v16488_v42, 1 }
 0x2cb   :  { %13351 = vmatpush3.bf16.msra.mxu0 %v14693_v5  ;;  %v14705_v5 = vld [vmem:[#allocation14 + $0x190] sm:$0xff]   ;;  %v4030_v41 = vrot.slane %v16510_v37, 1  ;;  %v18354_v14 = vpack.c.bf16 %v16416_v22, %v16428_v57  ;;  %v18355_v33 = vpack.c.bf16 %v16442_v4, %v16418_v13  ;;  %v14703_v22 = vld [vmem:[#allocation14 + $0x148] sm:$0xff]  }
 0x2cc   :  { %13352 = vmatprep.subr.bf16.mxu0 %v14695_v31  ;;  %14180 = vmatpush3.bf16.msra.mxu1 %v14701_v32  ;;  %v16939_v32 = vsel %vm820_vm2, %v4026_v27, %v4027_v3  ;;  %v16943_v31 = vsel %vm4108_vm10, %v4100_v15, %v4101_v29  ;;  %v16957_v27 = vsel %vm4108_vm10, %v4101_v29, %v4102_v55  ;;  %v4103_v3 = vrot.slane %v16534_v49, 2  ;;  %v14706_v29 = vld [vmem:[#allocation14 + $0x188] sm:$0xff]  }
 0x2cd   :  { %4726 = vmatmul.mubr.bf16.gmra.mxu1 %v18353_v36  ;;  %14181 = vmatprep.subr.bf16.mxu1 %v14702_v44  ;;  %v4104_v15 = vrot.slane %v16556_v9, 2  ;;  %v18356_v36 = vpack.c.bf16 %v16454_v1, %v16436_v58  ;;  %v16968_v57 = vsel %vm820_vm2, %v4029_v21, %v4030_v41  ;;  %v16972_v4 = vsel %vm820_vm2, %v4028_v53, %v4029_v21  ;;  %v14704_v53 = vld [vmem:[#allocation14 + $0x108] sm:$0xff]  }
 0x2ce   :  { %4629 = vmatmul.mubr.bf16.gmra.mxu0 %v18354_v14  ;;  %4733 = vmatprep.mubr.bf16.mxu1 %v18355_v33  ;;  %v4031_v14 = vrot.slane %v16534_v49, 1  ;;  %v4032_v33 = vrot.slane %v16556_v9, 1  ;;  %v4106_v21 = vrot.slane %v16622_v39, 2  ;;  %v4107_v58 = vrot.slane %v16676_v56, 2 }
 0x2cf   :  { %4636 = vmatprep.mubr.bf16.mxu0 %v18356_v36  ;;  %13353 = vmatpush3.bf16.msra.mxu0 %v14696_v17  ;;  %v16979_v1 = vsel %vm4108_vm10, %v4103_v3, %v4104_v15  ;;  %v16983_v17 = vsel %vm4108_vm10, %v4102_v55, %v4103_v3  ;;  %v4033_v55 = vrot.slane %v16582_v43, 1  ;;  %v4034_v3 = vrot.slane %v16622_v39, 1 }
 0x2d0   :  { %13354 = vmatprep.subr.bf16.mxu0 %v14699_v38  ;;  %14182 = vmatpush3.bf16.msra.mxu1 %v14702_v44  ;;  %18357 = vst [vmem:[#allocation64_spill] sm:$0xff] %v16979_v1  ;;  %18358 = vst [vmem:[#allocation65_spill] sm:$0xff] %v16983_v17  ;;  %v16990_v38 = vsel %vm820_vm2, %v4030_v41, %v4031_v14  ;;  %v4105_v44 = vrot.slane %v16582_v43, 2  ;;  %v16996_v36 = vsel %vm820_vm2, %v4031_v14, %v4032_v33  ;;  %v14707_v14 = vld [vmem:[#allocation14 + $0x140] sm:$0xff]  }
 0x2d1   :  { %14183 = vmatprep.subr.bf16.mxu1 %v14705_v5  ;;  %18359 = vst [vmem:[#allocation66_spill] sm:$0xff] %v16990_v38  ;;  %18360 = vst [vmem:[#allocation67_spill] sm:$0xff] %v16996_v36  ;;  %v4038_v41 = vsel %vm820_vm2, %v4032_v33, %v4033_v55  ;;  %v4035_v38 = vrot.slane %v16676_v56, 1  ;;  %v18361_v36 = vpack.c.bf16 %v16458_v8, %v16440_v35  ;;  %v18364_v33 = vld [vmem:[#allocation38_spill] sm:$0xff] }
 0x2d2   :  { %v17005_v13 = vsel %vm4108_vm10, %v4105_v44, %v4106_v21  ;;  %v17009_v2 = vsel %vm4108_vm10, %v4104_v15, %v4105_v44  ;;  %v14709_v15 = vld [vmem:[#allocation14 + $0x180] sm:$0xff]   ;;  %v18363_v44 = vld [vmem:[#allocation37_spill] sm:$0xff]  ;;  %v18366_v35 = vpack.c.bf16 %v16488_v42, %v16464_v48 }
 0x2d3   :  { %13355 = vmatpush3.bf16.msra.mxu0 %v14700_v6  ;;  %v4163_v17 = vpack.c.bf16 %v17005_v13, %v17009_v2  ;;  %v17015_v6 = vsel %vm820_vm2, %v4033_v55, %v4034_v3  ;;  %v4109_v2 = vsel %vm4108_vm10, %v4106_v21, %v4107_v58  ;;  %v18365_v55 = vpack.c.bf16 %v18363_v44, %v18364_v33  ;;  %v18369_v1 = vld [vmem:[#allocation30_spill] sm:$0xff]  ;;  %v18371_v48 = vld [vmem:[#allocation35_spill] sm:$0xff]  ;;  %v18372_v42 = vld [vmem:[#allocation29_spill] sm:$0xff] }
 0x2d4   :  { %13356 = vmatprep.subr.bf16.mxu0 %v14703_v22  ;;  %14184 = vmatpush3.bf16.msra.mxu1 %v14705_v5  ;;  %v4090_v5 = vpack.c.bf16 %v17015_v6, %v4038_v41  ;;  %v18362_v22 = vrot.slane %v16285_v60, 2  ;;  %v18367_v41 = vrot.slane %v16285_v60, 1  ;;  %v18368_v6 = vld [vmem:[#allocation34_spill] sm:$0xff]  ;;  %v18374_v60 = vld [vmem:[#allocation31_spill] sm:$0xff] }
 0x2d5   :  { %4734 = vmatmul.mubr.bf16.gmra.mxu1 %v18361_v36  ;;  %14185 = vmatprep.subr.bf16.mxu1 %v14706_v29  ;;  %v4036_v36 = vsel %vm820_vm2, %v4034_v3, %v4035_v38  ;;  %v18373_v3 = vpack.c.bf16 %v18371_v48, %v18372_v42  ;;  %v18394_v48 = vld [vmem:[#allocation51_spill] sm:$0xff]  ;;  %v18395_v42 = vld [vmem:[#allocation48_spill] sm:$0xff] }
 0x2d6   :  { %v4124_v13 = vsel %vm4108_vm10, %v4107_v58, %v18362_v22  ;;  %4637 = vmatmul.mubr.bf16.gmra.mxu0 %v18365_v55  ;;  %4741 = vmatprep.mubr.bf16.mxu1 %v18366_v35  ;;  %v4051_v21 = vsel %vm820_vm2, %v4035_v38, %v18367_v41  ;;  %v18370_v58 = vpack.c.bf16 %v18368_v6, %v18369_v1  ;;  %v14708_v22 = vld [vmem:[#allocation14 + $0x100] sm:$0xff]   ;;  %v18385_v35 = vld [vmem:[#allocation44_spill] sm:$0xff]  ;;  %v18389_v6 = vld [vmem:[#allocation45_spill] sm:$0xff] }
 0x2d7   :  { %v11874_v8 = vpack.c.bf16 %v4124_v13, %v4109_v2  ;;  %13357 = vmatpush3.bf16.msra.mxu0 %v14704_v53  ;;  %v11878_v44 = vpack.c.bf16 %v4051_v21, %v4036_v36  ;;  %v18375_v2 = vld [vmem:[#allocation36_spill] sm:$0xff]  ;;  %v18377_v1 = vpack.c.bf16 %v16534_v49, %v16510_v37  ;;  %v18378_v53 = vld [vmem:[#allocation41_spill] sm:$0xff]  ;;  %v18379_v38 = vld [vmem:[#allocation39_spill] sm:$0xff]  ;;  %v18387_v41 = vpack.c.bf16 %v16582_v43, %v16556_v9 }
 0x2d8   :  { %4644 = vmatprep.mubr.bf16.mxu0 %v18370_v58  ;;  %13358 = vmatprep.subr.bf16.mxu0 %v14707_v14  ;;  %v18376_v13 = vpack.c.bf16 %v18374_v60, %v18375_v2  ;;  %v18380_v33 = vpack.c.bf16 %v18378_v53, %v18379_v38  ;;  %v18382_v14 = vld [vmem:[#allocation40_spill] sm:$0xff]  ;;  %v18388_v21 = vld [vmem:[#allocation49_spill] sm:$0xff]  ;;  %v18391_v49 = vld [vmem:[#allocation50_spill] sm:$0xff]  ;;  %v18397_v60 = vpack.c.bf16 %v16676_v56, %v16622_v39 }
 0x2d9   :  { %14186 = vmatpush3.bf16.msra.mxu1 %v14706_v29  ;;  %v18381_v29 = vld [vmem:[#allocation42_spill] sm:$0xff]  ;;  %v18390_v37 = vpack.c.bf16 %v18388_v21, %v18389_v6  ;;  %v18398_v9 = vpack.c.bf16 %v16734_v23, %v16664_v62  ;;  %v18399_v43 = vpack.c.bf16 %v16743_v20, %v16668_v30  ;;  %v18400_v2 = vpack.c.bf16 %v16747_v40, %v16672_v46  ;;  %v18405_v39 = vld [vmem:[#allocation52_spill] sm:$0xff]  ;;  %v14725_v21 = vld [vmem:[#allocation17 + $0x80] sm:$0xff]  }
 0x2da   :  { %14187 = vmatprep.subr.bf16.mxu1 %v14709_v15  ;;  %v18383_v55 = vpack.c.bf16 %v18381_v29, %v18382_v14  ;;  %v18392_v58 = vld [vmem:[#allocation46_spill] sm:$0xff]  ;;  %v18404_v56 = vpack.c.bf16 %v16710_v50, %v16716_v18  ;;  %v18408_v30 = vpack.c.bf16 %v16753_v59, %v16767_v16  ;;  %v18409_v46 = vpack.c.bf16 %v16794_v45, %v16787_v7  ;;  %v18417_v7 = vld [vmem:[#allocation59_spill] sm:$0xff]  ;;  %v18418_v45 = vld [vmem:[#allocation60_spill] sm:$0xff] }
 0x2db   :  { %13359 = vmatpush3.bf16.msra.mxu0 %v14708_v22  ;;  %v18393_v22 = vpack.c.bf16 %v18391_v49, %v18392_v58  ;;  %v18406_v38 = vld [vmem:[#allocation54_spill] sm:$0xff]  ;;  %v18410_v23 = vpack.c.bf16 %v16798_v10, %v16802_v34  ;;  %v18411_v18 = vpack.c.bf16 %v16811_v47, %v16815_v25  ;;  %v18414_v40 = vpack.c.bf16 %v16845_v54, %v16835_v52  ;;  %v18421_v47 = vld [vmem:[#allocation61_spill] sm:$0xff]  ;;  %v18425_v54 = vld [vmem:[#allocation63_spill] sm:$0xff] }
 0x2dc   :  { %v18407_v62 = vpack.c.bf16 %v18405_v39, %v18406_v38  ;;  %v18412_v50 = vld [vmem:[#allocation58_spill] sm:$0xff]  ;;  %v18415_v59 = vpack.c.bf16 %v16849_v11, %v16853_v61  ;;  %v18416_v16 = vpack.c.bf16 %v16868_v51, %v16876_v19  ;;  %v18419_v10 = vpack.c.bf16 %v18417_v7, %v18418_v45  ;;  %v18424_v52 = vld [vmem:[#allocation33_spill] sm:$0xff]  ;;  %v18433_v29 = vld [vmem:[#allocation67_spill] sm:$0xff] }
 0x2dd   :  { %14188 = vmatpush3.bf16.msra.mxu1 %v14709_v15  ;;  %v18384_v15 = vld [vmem:[#allocation43_spill] sm:$0xff]  ;;  %v18413_v20 = vpack.c.bf16 %v16821_v24, %v18412_v50  ;;  %v18420_v34 = vld [vmem:[#allocation62_spill] sm:$0xff]  ;;  %v18423_v24 = vpack.c.bf16 %v16912_v63, %v16906_v26  ;;  %vm12571_vm5 = vcmp.lt.s32.totalorder %v18424_v52, 125  ;;  %v18426_v11 = vpack.c.bf16 %v16922_v0, %v18425_v54  ;;  %v18430_v26 = vld [vmem:[#allocation64_spill] sm:$0xff] }
 0x2de   :  { %4742 = vmatmul.mubr.bf16.gmra.mxu1 %v18373_v3  ;;  %4645 = vmatmul.mubr.bf16.gmra.mxu0 %v18376_v13  ;;  %v18386_v36 = vpack.c.bf16 %v18384_v15, %v18385_v35  ;;  %v18396_v3 = vpack.c.bf16 %v18394_v48, %v18395_v42  ;;  %v18401_v13 = vld [vmem:[#allocation32_spill] sm:$0xff]  ;;  %v18422_v25 = vpack.c.bf16 %v18420_v34, %v18421_v47  ;;  %vm11881_vm8 = vmpackc.low %vm12571_vm5, %vm15507_vm0  ;;  %v18431_v63 = vld [vmem:[#allocation65_spill] sm:$0xff]  ;;  %vm12570_vm9 = vcmp.lt.s32.totalorder %v18424_v52, 126 }
 0x2df   :  { %4749 = vmatprep.mubr.bf16.mxu1 %v18377_v1  ;;  %4652 = vmatprep.mubr.bf16.mxu0 %v18380_v33  ;;  %v18402_v1 = vld [vmem:[#allocation55_spill] sm:$0xff]  ;;  %v18427_v61 = vpack.c.bf16 %v16931_v12, %v16939_v32  ;;  %v18428_v51 = vpack.c.bf16 %v16957_v27, %v16943_v31  ;;  %v18429_v19 = vpack.c.bf16 %v16968_v57, %v16972_v4  ;;  %v18434_v14 = vld [vmem:[#allocation66_spill] sm:$0xff]  ;;  %vm11873_vm11 = vmpackc.low %vm12570_vm9, %vm15507_vm0  ;;  %vm4067_vm14 = vcmp.ge.s32.totalorder %v18424_v52, 127 }
 0x2e0   :  { %v18403_v53 = vpack.c.bf16 %v18401_v13, %v18402_v1  ;;  %v18432_v33 = vpack.c.bf16 %v18430_v26, %v18431_v63  ;;  %v18435_v0 = vpack.c.bf16 %v18433_v29, %v18434_v14  ;;  %vm11876_vm15 = vmneg %vm4067_vm14  ;;  %v14710_v12 = vld [vmem:[#allocation17 + $0xf8] sm:$0xff]   ;;  %v14712_v31 = vld [vmem:[#allocation17 + $0xf0] sm:$0xff]  }
 0x2e1   :  { %vm11877_vm7 = vmpackc.low %vm11876_vm15, %vm15507_vm0  ;;  %v14711_v32 = vld [vmem:[#allocation17 + $0xb8] sm:$0xff]   ;;  %13464 = vmatprep.subr.bf16.mxu0 %v14710_v12  ;;  %v14713_v27 = vld [vmem:[#allocation17 + $0xb0] sm:$0xff]  }
 0x2e2   :  { %v14714_v57 = vld [vmem:[#allocation17 + $0xe8] sm:$0xff]   ;;  %v14721_v15 = vld [vmem:[#allocation17 + $0x90] sm:$0xff]   ;;  %v17155_v58 = vld [vmem:[#allocation15] ss:$0 sm:$0xff] }
 0x2e3   :  { %v14715_v4 = vld [vmem:[#allocation17 + $0xa8] sm:$0xff]   ;;  %v14726_v48 = vld [vmem:[#allocation17 + $0x78] sm:$0xff]   ;;  %v14733_v34 = vld [vmem:[#allocation17 + $0x20] sm:$0xff]  }
 0x2e4   :  { %v14722_v35 = vld [vmem:[#allocation17 + $0xc8] sm:$0xff]   ;;  %13424 = vmatprep.subr.bf16.mxu1 %v14726_v48  ;;  %v14727_v1 = vld [vmem:[#allocation17 + $0x38] sm:$0xff]   ;;  %v14737_v29 = vld [vmem:[#allocation17 + $0x10] sm:$0xff]  }
 0x2e6   :  { %4750 = vmatmul.mubr.bf16.gmra.mxu1 %v18383_v55  ;;  %4653 = vmatmul.mubr.bf16.gmra.mxu0 %v18386_v36  ;;  %v14719_v55 = vld [vmem:[#allocation17 + $0x98] sm:$0xff]   ;;  %v14723_v36 = vld [vmem:[#allocation17 + $0x88] sm:$0xff]  }
 0x2e7   :  { %4757 = vmatprep.mubr.bf16.mxu1 %v18387_v41  ;;  %4660 = vmatprep.mubr.bf16.mxu0 %v18390_v37  ;;  %v14724_v41 = vld [vmem:[#allocation17 + $0xc0] sm:$0xff]  }
 0x2ee   :  { %4758 = vmatmul.mubr.bf16.gmra.mxu1 %v18393_v22  ;;  %4661 = vmatmul.mubr.bf16.gmra.mxu0 %v18396_v3 }
 0x2ef   :  { %4765 = vmatprep.mubr.bf16.mxu1 %v18397_v60  ;;  %4668 = vmatprep.mubr.bf16.mxu0 %v18398_v9 }
 0x2f6   :  { %4766 = vmatmul.mubr.bf16.gmra.mxu1 %v18399_v43  ;;  %4669 = vmatmul.mubr.bf16.gmra.mxu0 %v18400_v2 }
 0x2f7   :  { %14189 = vmatprep.mubr.bf16.mxu1 %v18403_v53  ;;  %4806 = vmatprep.mubr.bf16.mxu0 %v18404_v56  ;;  %v14728_v53 = vld [vmem:[#allocation17 + $0x70] sm:$0xff]  }
 0x2fe   :  { %14190 = vmatmul.mubr.bf16.vlgmr.msra.gmra.mxu1 %v18407_v62  ;;  %4807 = vmatmul.mubr.bf16.vlgmr.msra.gmra.mxu0 %v18408_v30 }
 0x2ff   :  { %14193 = vmatprep.mubr.bf16.mxu1 %v18409_v46  ;;  %4814 = vmatprep.mubr.bf16.mxu0 %v18410_v23  ;;  %v14729_v23 = vld [vmem:[#allocation17 + $0x30] sm:$0xff]  }
 0x300   :  { %13465 = vmatpush3.bf16.msra.mxu0 %v14711_v32  ;;  %13425 = vmatpush3.bf16.msra.mxu1 %v14727_v1 }
 0x301   :  { %13466 = vmatprep.subr.bf16.mxu0 %v14712_v31  ;;  %13426 = vmatprep.subr.bf16.mxu1 %v14728_v53 }
 0x304   :  { %13467 = vmatpush3.bf16.msra.mxu0 %v14713_v27  ;;  %13427 = vmatpush3.bf16.msra.mxu1 %v14729_v23  ;;  %v14739_v27 = vld [vmem:[#allocation17 + $0x8] sm:$0xff]  }
 0x305   :  { %13468 = vmatprep.subr.bf16.mxu0 %v14714_v57 }
 0x306   :  { %14194 = vmatmul.mubr.bf16.gmra.mxu1 %v18411_v18  ;;  %4815 = vmatmul.mubr.bf16.gmra.mxu0 %v18413_v20  ;;  %v14730_v18 = vld [vmem:[#allocation17 + $0x68] sm:$0xff]  }
 0x307   :  { %14197 = vmatprep.mubr.bf16.mxu1 %v18414_v40  ;;  %4822 = vmatprep.mubr.bf16.mxu0 %v18415_v59  ;;  %v14731_v40 = vld [vmem:[#allocation17 + $0x28] sm:$0xff]  }
 0x308   :  { %13469 = vmatpush3.bf16.msra.mxu0 %v14715_v4  ;;  %13428 = vmatprep.subr.bf16.mxu1 %v14730_v18  ;;  %v14740_v4 = vld [vmem:[#allocation17 + $0x40] sm:$0xff]  }
 0x309   :  { %13429 = vmatpush3.bf16.msra.mxu1 %v14731_v40 }
 0x30e   :  { %14198 = vmatmul.mubr.bf16.gmra.mxu1 %v18416_v16  ;;  %4823 = vmatmul.mubr.bf16.gmra.mxu0 %v18419_v10  ;;  %v14732_v16 = vld [vmem:[#allocation17 + $0x60] sm:$0xff]  }
 0x30f   :  { %14201 = vmatprep.mubr.bf16.mxu1 %v18422_v25  ;;  %4830 = vmatprep.mubr.bf16.mxu0 %v18423_v24  ;;  %v14734_v25 = vld [vmem:[#allocation17 + $0x58] sm:$0xff]  }
 0x310   :  { %13430 = vmatprep.subr.bf16.mxu1 %v14732_v16 }
 0x311   :  { %13431 = vmatpush3.bf16.msra.mxu1 %v14733_v34 }
 0x312   :  { %13432 = vmatprep.subr.bf16.mxu1 %v14734_v25 }
 0x316   :  { %14202 = vmatmul.mubr.msk.bf16.gmra.mxu1 %vm11881_vm8, %v18426_v11  ;;  %4831 = vmatmul.mubr.bf16.gmra.mxu0 %v18427_v61  ;;  %v14735_v61 = vld [vmem:[#allocation17 + $0x18] sm:$0xff]  }
 0x317   :  { %4838 = vmatprep.mubr.bf16.mxu0 %v18428_v51  ;;  %13433 = vmatpush3.bf16.msra.mxu1 %v14735_v61 }
 0x31e   :  { %4839 = vmatmul.mubr.bf16.gmra.mxu0 %v18429_v19  ;;  %v14736_v19 = vld [vmem:[#allocation17 + $0x50] sm:$0xff]  }
 0x31f   :  { %4846 = vmatprep.mubr.bf16.mxu0 %v18432_v33  ;;  %13434 = vmatprep.subr.bf16.mxu1 %v14736_v19 }
 0x320   :  { %13435 = vmatpush3.bf16.msra.mxu1 %v14737_v29 }
 0x326   :  { %4847 = vmatmul.mubr.bf16.gmra.mxu0 %v18435_v0  ;;  %v14738_v0 = vld [vmem:[#allocation17 + $0x48] sm:$0xff]  }
 0x327   :  { %4854 = vmatprep.mubr.bf16.mxu0 %v4163_v17  ;;  %v14716_v17 = vld [vmem:[#allocation17 + $0xe0] sm:$0xff]   ;;  %13436 = vmatprep.subr.bf16.mxu1 %v14738_v0 }
 0x328   :  { %13470 = vmatprep.subr.bf16.mxu0 %v14716_v17  ;;  %13437 = vmatpush3.bf16.msra.mxu1 %v14739_v27 }
 0x329   :  { %13438 = vmatprep.subr.bf16.mxu1 %v14740_v4 }
 0x32e   :  { %4855 = vmatmul.mubr.bf16.gmra.mxu0 %v4090_v5  ;;  %v14717_v5 = vld [vmem:[#allocation17 + $0xa0] sm:$0xff]  }
 0x32f   :  { %11875 = vmatprep.mubr.msk.bf16.mxu0 %vm11873_vm11, %v11874_v8  ;;  %13471 = vmatpush3.bf16.msra.mxu0 %v14717_v5  ;;  %v14718_v8 = vld [vmem:[#allocation17 + $0xd8] sm:$0xff]  }
 0x330   :  { %13472 = vmatprep.subr.bf16.mxu0 %v14718_v8 }
 0x333   :  { %13473 = vmatpush3.bf16.msra.mxu0 %v14719_v55  ;;  %v14741_v55 = vld [vmem:[#allocation17] sm:$0xff]  }
 0x334   :  { %13439 = vmatpush3.bf16.msra.mxu1 %v14741_v55 }
 0x336   :  { %11879 = vmatmul.mubr.msk.bf16.gmra.mxu0 %vm11877_vm7, %v11878_v44  ;;  %v14720_v44 = vld [vmem:[#allocation17 + $0xd0] sm:$0xff]  }
 0x337   :  { %13474 = vmatprep.subr.bf16.mxu0 %v14720_v44 }
 0x338   :  { %13475 = vmatpush3.bf16.msra.mxu0 %v14721_v15  ;;  %v17224_v15 = vld [vmem:[#allocation17 + $0x138] sm:$0xff]  }
 0x339   :  { %13476 = vmatprep.subr.bf16.mxu0 %v14722_v35  ;;  %18436 = vst [vmem:[#allocation37_spill] sm:$0xff] %v17224_v15  ;;  %14205 = vmatprep.subr.bf16.mxu1 %v17224_v15 }
 0x33c   :  { %13477 = vmatpush3.bf16.msra.mxu0 %v14723_v36 }
 0x33d   :  { %13478 = vmatprep.subr.bf16.mxu0 %v14724_v41 }
 0x340   :  { %13479 = vmatpush3.bf16.msra.mxu0 %v14725_v21 }
 0x37d   :  { %v13296_v6 = vpop.f32.mrf.mxu1  ;;  %v13232_v37 = vpop.f32.mrf.mxu0 }
 0x37f   :  { %v13297_v49 = vpop.f32.mrf.mxu1  ;;  %v13233_v22 = vpop.f32.mrf.mxu0 }
 0x380   :  { %v13234_v42 = vadd.f32 %v13233_v22, %v13232_v37  ;;  %v13298_v9 = vadd.f32 %v13297_v49, %v13296_v6 }
 0x381   :  { %v17157_v3 = vpop.f32.mrf.mxu1  ;;  %v17159_v60 = vpop.f32.mrf.mxu0 }
 0x382   :  { %v4615_v43 = vadd.f32 %v13234_v42, %v17155_v58 }
 0x383   :  { %v17162_v2 = vpop.f32.mrf.mxu1  ;;  %v17164_v13 = vpop.f32.mrf.mxu0 }
 0x384   :  { %v17168_v39 = vadd.f32 %v13298_v9, %v4615_v43  ;;  %v13237_v52 = vadd.f32 %v17164_v13, %v17159_v60 }
 0x385   :  { %v17166_v56 = vpop.f32.mrf.mxu1 }
 0x386   :  { %v17170_v38 = vpop.f32.mrf.mxu0 }
 0x387   :  { %v17172_v62 = vpop.f32.mrf.mxu1 }
 0x388   :  { %v17174_v30 = vpop.f32.mrf.mxu0 }
 0x389   :  { %v17176_v46 = vpop.f32.mrf.mxu1 }
 0x38a   :  { %v17178_v50 = vpop.f32.mrf.mxu0 }
 0x38b   :  { %v17180_v20 = vpop.f32.mrf.mxu1 }
 0x38c   :  { %v17182_v59 = vpop.f32.mrf.mxu0 }
 0x38d   :  { %v17184_v7 = vpop.f32.mrf.mxu1  ;;  %v13243_v13 = vadd.f32 %v17182_v59, %v17178_v50  ;;  %v13307_v59 = vadd.f32 %v17180_v20, %v17176_v46 }
 0x38e   :  { %v17186_v45 = vpop.f32.mrf.mxu0 }
 0x38f   :  { %v17188_v10 = vpop.f32.mrf.mxu1 }
 0x390   :  { %v17190_v47 = vpop.f32.mrf.mxu0  ;;  %v13310_v46 = vadd.f32 %v17188_v10, %v17184_v7 }
 0x391   :  { %v17192_v24 = vpop.f32.mrf.mxu1 }
 0x392   :  { %v17194_v54 = vpop.f32.mrf.mxu0 }
 0x393   :  { %v17196_v11 = vpop.f32.mrf.mxu1 }
 0x394   :  { %v17198_v51 = vpop.f32.mrf.mxu0  ;;  %v13313_v7 = vadd.f32 %v17196_v11, %v17192_v24 }
 0x395   :  { %v17200_v26 = vpop.f32.mrf.mxu1 }
 0x396   :  { %v17202_v63 = vpop.f32.mrf.mxu0 }
 0x397   :  { %v17204_v33 = vpop.f32.mrf.mxu1 }
 0x398   :  { %v17206_v14 = vpop.f32.mrf.mxu0  ;;  %v13316_v11 = vadd.f32 %v17204_v33, %v17200_v26 }
 0x399   :  { %v17208_v12 = vpop.f32.mrf.mxu1 }
 0x39a   :  { %v17210_v32 = vpop.f32.mrf.mxu0 }
 0x39b   :  { %v17212_v31 = vpop.f32.mrf.mxu1 }
 0x39c   :  { %v17214_v57 = vpop.f32.mrf.mxu0 }
 0x39e   :  { %v17216_v17 = vpop.f32.mrf.mxu1  ;;  %v17218_v5 = vpop.f32.mrf.mxu0 }
 0x3a0   :  { %v17220_v8 = vpop.f32.mrf.mxu1  ;;  %v17222_v44 = vpop.f32.mrf.mxu0 }
 0x3a2   :  { %v17226_v35 = vpop.f32.mrf.mxu1  ;;  %v17228_v36 = vpop.f32.mrf.mxu0 }
 0x3a4   :  { %v17230_v41 = vpop.f32.mrf.mxu1  ;;  %v17232_v21 = vpop.f32.mrf.mxu0 }
 0x3a6   :  { %v17235_v6 = vpop.f32.mrf.mxu1  ;;  %v17237_v37 = vpop.f32.mrf.mxu0 }
 0x3a8   :  { %v17239_v49 = vpop.f32.mrf.mxu1  ;;  %v17241_v22 = vpop.f32.mrf.mxu0 }
 0x3aa   :  { %v17243_v48 = vpop.f32.mrf.mxu1  ;;  %v17245_v42 = vpop.f32.mrf.mxu0 }
 0x3ac   :  { %v17247_v9 = vpop.f32.mrf.mxu1  ;;  %v17249_v43 = vpop.f32.mrf.mxu0 }
 0x3ad   :  { %18437 = vst [vmem:[#allocation38_spill] sm:$0xff] %v17247_v9 }
 0x3ae   :  { %v17251_v1 = vpop.f32.mrf.mxu1  ;;  %v17253_v53 = vpop.f32.mrf.mxu0 }
 0x3af   :  { %18438 = vst [vmem:[#allocation34_spill] sm:$0xff] %v17251_v1 }
 0x3b0   :  { %v17255_v23 = vpop.f32.mrf.mxu1  ;;  %v17257_v18 = vpop.f32.mrf.mxu0 }
 0x3b1   :  { %18439 = vst [vmem:[#allocation30_spill] sm:$0xff] %v17255_v23 }
 0x3b2   :  { %v17259_v40 = vpop.f32.mrf.mxu1  ;;  %v17261_v16 = vpop.f32.mrf.mxu0 }
 0x3b3   :  { %18440 = vst [vmem:[#allocation35_spill] sm:$0xff] %v17259_v40  ;;  %18441 = vst [vmem:[#allocation29_spill] sm:$0xff] %v17261_v16 }
 0x3b4   :  { %v17263_v34 = vpop.f32.mrf.mxu1  ;;  %v17265_v25 = vpop.f32.mrf.mxu0 }
 0x3b5   :  { %18442 = vst [vmem:[#allocation31_spill] sm:$0xff] %v17263_v34  ;;  %18443 = vst [vmem:[#allocation36_spill] sm:$0xff] %v17265_v25 }
 0x3b6   :  { %v17267_v61 = vpop.f32.mrf.mxu1  ;;  %v17269_v19 = vpop.f32.mrf.mxu0 }
 0x3b7   :  { %18444 = vst [vmem:[#allocation41_spill] sm:$0xff] %v17267_v61  ;;  %18445 = vst [vmem:[#allocation39_spill] sm:$0xff] %v17269_v19  ;;  %v4618_v19 = vadd.f32 %v13237_v52, %v17155_v58 }
 0x3b8   :  { %v17271_v29 = vpop.f32.mrf.mxu1  ;;  %v17273_v0 = vpop.f32.mrf.mxu0 }
 0x3b9   :  { %18446 = vst [vmem:[#allocation42_spill] sm:$0xff] %v17271_v29  ;;  %18447 = vst [vmem:[#allocation40_spill] sm:$0xff] %v17273_v0  ;;  %v13240_v29 = vadd.f32 %v17174_v30, %v17170_v38  ;;  %v13304_v38 = vadd.f32 %v17172_v62, %v17166_v56 }
 0x3ba   :  { %v17275_v27 = vpop.f32.mrf.mxu1  ;;  %v17277_v4 = vpop.f32.mrf.mxu0 }
 0x3bb   :  { %18448 = vst [vmem:[#allocation43_spill] sm:$0xff] %v17275_v27  ;;  %18449 = vst [vmem:[#allocation44_spill] sm:$0xff] %v17277_v4  ;;  %v13301_v4 = vadd.f32 %v17162_v2, %v17157_v3  ;;  %v4623_v60 = vadd.f32 %v13240_v29, %v17155_v58  ;;  %v13246_v3 = vadd.f32 %v17190_v47, %v17186_v45 }
 0x3bc   :  { %v17279_v55 = vpop.f32.mrf.mxu1  ;;  %v17281_v15 = vpop.f32.mrf.mxu0  ;;  %v13249_v45 = vadd.f32 %v17198_v51, %v17194_v54 }
 0x3bd   :  { %18450 = vst [vmem:[#allocation49_spill] sm:$0xff] %v17279_v55  ;;  %18451 = vst [vmem:[#allocation45_spill] sm:$0xff] %v17281_v15  ;;  %v4715_v25 = vadd.f32 %v13301_v4, %v4618_v19 }
 0x3be   :  { %v14191_v34 = vpop.f32.mrf.mxu1  ;;  %v13360_v40 = vpop.f32.mrf.mxu0  ;;  %v4634_v54 = vadd.f32 %v13249_v45, %v17155_v58 }
 0x3c0   :  { %v4905_v61 = vpop.f32.mrf.mxu1  ;;  %v13361_v23 = vpop.f32.mrf.mxu0 }
 0x3c1   :  { %v13362_v0 = vadd.f32 %v13361_v23, %v13360_v40  ;;  %v4626_v40 = vadd.f32 %v13243_v13, %v17155_v58 }
 0x3c2   :  { %v13363_v27 = vpop.f32.mrf.mxu0  ;;  %v14192_v15 = vpop.f32.mrf.mxu1 }
 0x3c3   :  { %v4809_v55 = vadd.f32 %v13362_v0, %v17168_v39  ;;  %v4720_v0 = vadd.f32 %v13304_v38, %v4623_v60  ;;  %v13252_v38 = vadd.f32 %v17206_v14, %v17202_v63 }
 0x3c4   :  { %v13364_v1 = vpop.f32.mrf.mxu0  ;;  %v4908_v2 = vpop.f32.mrf.mxu1 }
 0x3c5   :  { %v13365_v16 = vadd.f32 %v13364_v1, %v13363_v27  ;;  %v17296_v30 = vadd.f32 %v4905_v61, %v4809_v55  ;;  %v4723_v27 = vadd.f32 %v13307_v59, %v4626_v40  ;;  %v4731_v59 = vadd.f32 %v13313_v7, %v4634_v54 }
 0x3c6   :  { %v13366_v52 = vpop.f32.mrf.mxu0  ;;  %v14195_v47 = vpop.f32.mrf.mxu1  ;;  %v4639_v63 = vadd.f32 %v13252_v38, %v17155_v58  ;;  %v13264_v7 = vadd.f32 %v17241_v22, %v17237_v37  ;;  %v13267_v22 = vadd.f32 %v17249_v43, %v17245_v42 }
 0x3c7   :  { %v4812_v23 = vadd.f32 %v13365_v16, %v4715_v25  ;;  %v4968_v1 = vrot.slane %v17296_v30, 1  ;;  %v4631_v16 = vadd.f32 %v13246_v3, %v17155_v58 }
 0x3c8   :  { %v13367_v39 = vpop.f32.mrf.mxu0  ;;  %v4921_v51 = vpop.f32.mrf.mxu1  ;;  %v4655_v37 = vadd.f32 %v13264_v7, %v17155_v58  ;;  %v4658_v42 = vadd.f32 %v13267_v22, %v17155_v58 }
 0x3c9   :  { %v4909_v29 = vadd.f32 %v4908_v2, %v4812_v23  ;;  %v13368_v9 = vadd.f32 %v13367_v39, %v13366_v52  ;;  %v4728_v13 = vadd.f32 %v13310_v46, %v4631_v16  ;;  %v4736_v46 = vadd.f32 %v13316_v11, %v4639_v63 }
 0x3ca   :  { %v13369_v50 = vpop.f32.mrf.mxu0 }
 0x3cb   :  { %v4969_v56 = vrot.slane %v4909_v29, 1  ;;  %v4817_v62 = vadd.f32 %v13368_v9, %v4720_v0  ;;  %v13255_v0 = vadd.f32 %v17214_v57, %v17210_v32  ;;  %v13258_v57 = vadd.f32 %v17222_v44, %v17218_v5 }
 0x3cc   :  { %v13370_v25 = vpop.f32.mrf.mxu0 }
 0x3cd   :  { %v4998_v61 = vsel %vm820_vm2, %v4968_v1, %v4969_v56  ;;  %v4914_v19 = vadd.f32 %v14191_v34, %v4817_v62  ;;  %v13371_v4 = vadd.f32 %v13370_v25, %v13369_v50  ;;  %v14196_v50 = vpop.f32.mrf.mxu1  ;;  %v4642_v32 = vadd.f32 %v13255_v0, %v17155_v58 }
 0x3ce   :  { %v5016_v20 = vmax.f32 %v17296_v30, %v4998_v61  ;;  %v13372_v9 = vpop.f32.mrf.mxu0 }
 0x3cf   :  { %v4970_v55 = vrot.slane %v4914_v19, 1  ;;  %v4820_v60 = vadd.f32 %v13371_v4, %v4723_v27  ;;  %v4924_v25 = vpop.f32.mrf.mxu1 }
 0x3d0   :  { %5032 = vst [vmem:[#allocation2] sm:$0xff] %v5016_v20  ;;  %v13373_v52 = vpop.f32.mrf.mxu0  ;;  %v13319_v20 = vadd.f32 %v17212_v31, %v17208_v12  ;;  %v13322_v12 = vadd.f32 %v17220_v8, %v17216_v17  ;;  %v13325_v8 = vadd.f32 %v17230_v41, %v17226_v35 }
 0x3d1   :  { %v4997_v34 = vsel %vm820_vm2, %v4969_v56, %v4970_v55  ;;  %v4917_v23 = vadd.f32 %v14192_v15, %v4820_v60  ;;  %v13374_v3 = vadd.f32 %v13373_v52, %v13372_v9  ;;  %v4647_v60 = vadd.f32 %v13258_v57, %v17155_v58  ;;  %v17336_v54 = vpop.f32.mrf.mxu1 }
 0x3d2   :  { %v5017_v10 = vmax.f32 %v4909_v29, %v4997_v34  ;;  %v13375_v2 = vpop.f32.mrf.mxu0  ;;  %v4739_v5 = vadd.f32 %v13319_v20, %v4642_v32 }
 0x3d3   :  { %v4971_v39 = vrot.slane %v4917_v23, 1  ;;  %v4825_v40 = vadd.f32 %v13374_v3, %v4728_v13 }
 0x3d4   :  { %5033 = vst [vmem:[#allocation2 + $0x8] sm:$0xff] %v5017_v10  ;;  %v13376_v62 = vpop.f32.mrf.mxu0  ;;  %v4937_v10 = vpop.f32.mrf.mxu1 }
 0x3d5   :  { %v4996_v14 = vsel %vm820_vm2, %v4970_v55, %v4971_v39  ;;  %v4922_v15 = vadd.f32 %v4921_v51, %v4825_v40  ;;  %v13377_v56 = vadd.f32 %v13376_v62, %v13375_v2  ;;  %v13261_v51 = vadd.f32 %v17232_v21, %v17228_v36 }
 0x3d6   :  { %v5018_v16 = vmax.f32 %v4914_v19, %v4996_v14  ;;  %v13378_v24 = vpop.f32.mrf.mxu0  ;;  %v4744_v2 = vadd.f32 %v13322_v12, %v4647_v60  ;;  %v14200_v63 = vpop.f32.mrf.mxu1  ;;  %v18453_v60 = vld [vmem:[#allocation29_spill] sm:$0xff] }
 0x3d7   :  { %v4972_v29 = vrot.slane %v4922_v15, 1  ;;  %v4828_v45 = vadd.f32 %v13377_v56, %v4731_v59  ;;  %v4650_v36 = vadd.f32 %v13261_v51, %v17155_v58 }
 0x3d8   :  { %5034 = vst [vmem:[#allocation2 + $0x10] sm:$0xff] %v5018_v16  ;;  %v13379_v61 = vpop.f32.mrf.mxu0  ;;  %v4940_v43 = vpop.f32.mrf.mxu1 }
 0x3d9   :  { %v4995_v27 = vsel %vm820_vm2, %v4971_v39, %v4972_v29  ;;  %v4925_v4 = vadd.f32 %v4924_v25, %v4828_v45  ;;  %v13380_v19 = vadd.f32 %v13379_v61, %v13378_v24  ;;  %v4747_v56 = vadd.f32 %v13325_v8, %v4650_v36 }
 0x3da   :  { %v5019_v26 = vmax.f32 %v4917_v23, %v4995_v27  ;;  %v13381_v33 = vpop.f32.mrf.mxu0  ;;  %v13328_v24 = vadd.f32 %v17239_v49, %v17235_v6  ;;  %v13270_v25 = vadd.f32 %v17257_v18, %v17253_v53  ;;  %v18454_v53 = vld [vmem:[#allocation36_spill] sm:$0xff] }
 0x3db   :  { %v4973_v9 = vrot.slane %v4925_v4, 1  ;;  %v4833_v55 = vadd.f32 %v13380_v19, %v4736_v46  ;;  %v17365_v49 = vld [vmem:[#allocation2] ss:$2 sm:$0xff]  ;;  %v13273_v18 = vadd.f32 %v18454_v53, %v18453_v60 }
 0x3dc   :  { %5035 = vst [vmem:[#allocation2 + $0x18] sm:$0xff] %v5019_v26  ;;  %v13382_v44 = vpop.f32.mrf.mxu0  ;;  %v4752_v32 = vadd.f32 %v13328_v24, %v4655_v37 }
 0x3dd   :  { %v4994_v13 = vsel %vm820_vm2, %v4972_v29, %v4973_v9  ;;  %v4930_v52 = vadd.f32 %v14195_v47, %v4833_v55  ;;  %v13383_v38 = vadd.f32 %v13382_v44, %v13381_v33 }
 0x3de   :  { %v5020_v31 = vmax.f32 %v4922_v15, %v4994_v13  ;;  %v13384_v34 = vpop.f32.mrf.mxu0  ;;  %v5204_v13 = vrot.slane %v17365_v49, 1 }
 0x3df   :  { %v4974_v23 = vrot.slane %v4930_v52, 1  ;;  %v4836_v3 = vadd.f32 %v13383_v38, %v4739_v5  ;;  %v17374_v5 = vpop.f32.mrf.mxu1 }
 0x3e0   :  { %5036 = vst [vmem:[#allocation2 + $0x20] sm:$0xff] %v5020_v31  ;;  %v13385_v39 = vpop.f32.mrf.mxu0 }
 0x3e1   :  { %v4993_v21 = vsel %vm820_vm2, %v4973_v9, %v4974_v23  ;;  %v4933_v47 = vadd.f32 %v14196_v50, %v4836_v3  ;;  %v13386_v40 = vadd.f32 %v13385_v39, %v13384_v34  ;;  %v4953_v8 = vpop.f32.mrf.mxu1 }
 0x3e2   :  { %v5021_v0 = vmax.f32 %v4925_v4, %v4993_v21  ;;  %v13387_v17 = vpop.f32.mrf.mxu0  ;;  %v18452_v4 = vld [vmem:[#allocation38_spill] sm:$0xff] }
 0x3e3   :  { %v4975_v59 = vrot.slane %v4933_v47, 1  ;;  %v4841_v62 = vadd.f32 %v13386_v40, %v4744_v2  ;;  %v17358_v45 = vld [vmem:[#allocation2 + $0x10] ss:$2 sm:$0xff]  ;;  %v13331_v46 = vadd.f32 %v18452_v4, %v17243_v48 }
 0x3e4   :  { %5037 = vst [vmem:[#allocation2 + $0x28] sm:$0xff] %v5021_v0  ;;  %v13388_v14 = vpop.f32.mrf.mxu0  ;;  %v5205_v26 = vrot.slane %v17358_v45, 1  ;;  %v18456_v2 = vld [vmem:[#allocation30_spill] sm:$0xff]  ;;  %v18457_v40 = vld [vmem:[#allocation39_spill] sm:$0xff]  ;;  %v18458_v0 = vld [vmem:[#allocation40_spill] sm:$0xff] }
 0x3e5   :  { %v4992_v15 = vsel %vm820_vm2, %v4974_v23, %v4975_v59  ;;  %v4938_v50 = vadd.f32 %v4937_v10, %v4841_v62  ;;  %v13389_v16 = vadd.f32 %v13388_v14, %v13387_v17  ;;  %v4755_v44 = vadd.f32 %v13331_v46, %v4658_v42  ;;  %v18455_v10 = vld [vmem:[#allocation34_spill] sm:$0xff]  ;;  %v14204_v42 = vpop.f32.mrf.mxu1  ;;  %v18463_v46 = vld [vmem:[#allocation41_spill] sm:$0xff] }
 0x3e6   :  { %v5022_v35 = vmax.f32 %v4930_v52, %v4992_v15  ;;  %v13390_v41 = vpop.f32.mrf.mxu0  ;;  %v4663_v52 = vadd.f32 %v13270_v25, %v17155_v58  ;;  %v5218_v7 = vsel %vm820_vm2, %v5204_v13, %v5205_v26  ;;  %v13334_v39 = vadd.f32 %v18456_v2, %v18455_v10  ;;  %v18462_v25 = vld [vmem:[#allocation45_spill] sm:$0xff] }
 0x3e7   :  { %v4976_v11 = vrot.slane %v4938_v50, 1  ;;  %v4844_v29 = vadd.f32 %v13389_v16, %v4747_v56  ;;  %v13276_v17 = vadd.f32 %v18458_v0, %v18457_v40  ;;  %v5200_v62 = vpack.c.bf16 %v17358_v45, %v17365_v49  ;;  %v18460_v56 = vld [vmem:[#allocation31_spill] sm:$0xff]  ;;  %v4956_v53 = vpop.f32.mrf.mxu1 }
 0x3e8   :  { %5038 = vst [vmem:[#allocation2 + $0x30] sm:$0xff] %v5022_v35  ;;  %v13391_v57 = vpop.f32.mrf.mxu0  ;;  %v4760_v14 = vadd.f32 %v13334_v39, %v4663_v52 }
 0x3e9   :  { %v4991_v61 = vsel %vm820_vm2, %v4975_v59, %v4976_v11  ;;  %v4941_v27 = vadd.f32 %v4940_v43, %v4844_v29  ;;  %v13392_v6 = vadd.f32 %v13391_v57, %v13390_v41  ;;  %v4671_v29 = vadd.f32 %v13276_v17, %v17155_v58  ;;  %v18461_v57 = vld [vmem:[#allocation44_spill] sm:$0xff] }
 0x3ea   :  { %v5023_v19 = vmax.f32 %v4933_v47, %v4991_v61  ;;  %v13393_v20 = vpop.f32.mrf.mxu0 }
 0x3eb   :  { %v4977_v33 = vrot.slane %v4941_v27, 1  ;;  %v4849_v9 = vadd.f32 %v13392_v6, %v4752_v32  ;;  %v17370_v55 = vld [vmem:[#allocation2 + $0x20] ss:$2 sm:$0xff] }
 0x3ec   :  { %5039 = vst [vmem:[#allocation2 + $0x38] sm:$0xff] %v5023_v19  ;;  %v13394_v51 = vpop.f32.mrf.mxu0  ;;  %v5206_v48 = vrot.slane %v17370_v55, 1 }
 0x3ed   :  { %v4990_v38 = vsel %vm820_vm2, %v4976_v11, %v4977_v33  ;;  %v4946_v12 = vadd.f32 %v17336_v54, %v4849_v9  ;;  %v13395_v31 = vadd.f32 %v13394_v51, %v13393_v20  ;;  %v4666_v54 = vadd.f32 %v13273_v18, %v17155_v58 }
 0x3ee   :  { %v5024_v34 = vmax.f32 %v4938_v50, %v4990_v38  ;;  %v13396_v23 = vpop.f32.mrf.mxu0  ;;  %v5217_v3 = vsel %vm820_vm2, %v5205_v26, %v5206_v48  ;;  %v18459_v50 = vld [vmem:[#allocation35_spill] sm:$0xff] }
 0x3ef   :  { %v4978_v36 = vrot.slane %v4946_v12, 1  ;;  %v4852_v21 = vadd.f32 %v13395_v31, %v4755_v44  ;;  %v5236_v47 = vpack.c.bf16 %v5217_v3, %v5218_v7  ;;  %v13337_v16 = vadd.f32 %v18460_v56, %v18459_v50  ;;  %v18465_v3 = vld [vmem:[#allocation43_spill] sm:$0xff]  ;;  %v18466_v7 = vld [vmem:[#allocation49_spill] sm:$0xff] }
 0x3f0   :  { %5040 = vst [vmem:[#allocation2 + $0x40] sm:$0xff] %v5024_v34  ;;  %v13397_v59 = vpop.f32.mrf.mxu0  ;;  %v13343_v10 = vadd.f32 %v18466_v7, %v18465_v3 }
 0x3f1   :  { %v4989_v37 = vsel %vm820_vm2, %v4977_v33, %v4978_v36  ;;  %v4949_v22 = vadd.f32 %v14200_v63, %v4852_v21  ;;  %v13398_v15 = vadd.f32 %v13397_v59, %v13396_v23  ;;  %5619 = vmatprep.mubr.bf16.mxu0 %v5236_v47  ;;  %v4763_v43 = vadd.f32 %v13337_v16, %v4666_v54 }
 0x3f2   :  { %v5025_v24 = vmax.f32 %v4941_v27, %v4989_v37  ;;  %v13399_v35 = vpop.f32.mrf.mxu0  ;;  %5620 = vmatmul.mubr.bf16.vlgmr.msra.gmra.mxu0 %v5200_v62  ;;  %v13279_v63 = vadd.f32 %v18462_v25, %v18461_v57  ;;  %v18464_v27 = vld [vmem:[#allocation42_spill] sm:$0xff] }
 0x3f3   :  { %v4979_v41 = vrot.slane %v4949_v22, 1  ;;  %v4857_v11 = vadd.f32 %v13398_v15, %v4760_v14  ;;  %v13340_v19 = vadd.f32 %v18464_v27, %v18463_v46  ;;  %v17408_v60 = vld [vmem:[#allocation2 + $0x30] ss:$2 sm:$0xff]  ;;  %v5172_v27 = vrot.slane %v17365_v49, 7 }
 0x3f4   :  { %5041 = vst [vmem:[#allocation2 + $0x48] sm:$0xff] %v5025_v24  ;;  %v13400_v32 = vpop.f32.mrf.mxu0  ;;  %v4674_v51 = vadd.f32 %v13279_v63, %v17155_v58  ;;  %v5201_v14 = vpack.c.bf16 %v17408_v60, %v17370_v55  ;;  %v5145_v63 = vrot.slane %v17358_v45, 6 }
 0x3f5   :  { %v4988_v61 = vsel %vm820_vm2, %v4978_v36, %v4979_v41  ;;  %v4954_v6 = vadd.f32 %v4953_v8, %v4857_v11  ;;  %v13401_v4 = vadd.f32 %v13400_v32, %v13399_v35  ;;  %v4768_v18 = vadd.f32 %v13340_v19, %v4671_v29 }
 0x3f6   :  { %v5026_v20 = vmax.f32 %v4946_v12, %v4988_v61  ;;  %v13402_v26 = vpop.f32.mrf.mxu0  ;;  %v5207_v12 = vrot.slane %v17408_v60, 1  ;;  %v4771_v40 = vadd.f32 %v13343_v10, %v4674_v51  ;;  %v5175_v61 = vrot.slane %v17408_v60, 7  ;;  %v14743_v10 = vld [vmem:[#allocation17 + $0x130] sm:$0xff]  }
 0x3f7   :  { %v4980_v33 = vrot.slane %v4954_v6, 1  ;;  %v4860_v9 = vadd.f32 %v13401_v4, %v4763_v43  ;;  %v5144_v19 = vrot.slane %v17365_v49, 6 }
 0x3f8   :  { %5042 = vst [vmem:[#allocation2 + $0x50] sm:$0xff] %v5026_v20  ;;  %v13403_v44 = vpop.f32.mrf.mxu0  ;;  %v5216_v59 = vsel %vm820_vm2, %v5206_v48, %v5207_v12  ;;  %v5174_v20 = vrot.slane %v17370_v55, 7 }
 0x3f9   :  { %v4987_v52 = vsel %vm820_vm2, %v4979_v41, %v4980_v33  ;;  %v4957_v38 = vadd.f32 %v4956_v53, %v4860_v9  ;;  %v13404_v31 = vadd.f32 %v13403_v44, %v13402_v26 }
 0x3fa   :  { %v5027_v34 = vmax.f32 %v4949_v22, %v4987_v52  ;;  %v13405_v23 = vpop.f32.mrf.mxu0  ;;  %v5184_v44 = vsel %vm667_vm1, %v5174_v20, %v5175_v61 }
 0x3fb   :  { %v4981_v2 = vrot.slane %v4957_v38, 1  ;;  %v4865_v39 = vadd.f32 %v13404_v31, %v4768_v18  ;;  %v17416_v36 = vld [vmem:[#allocation2 + $0x40] ss:$2 sm:$0xff]  ;;  %v5158_v18 = vsel %vm3885_vm4, %v5144_v19, %v5145_v63 }
 0x3fc   :  { %5043 = vst [vmem:[#allocation2 + $0x58] sm:$0xff] %v5027_v34  ;;  %v13406_v21 = vpop.f32.mrf.mxu0  ;;  %v5208_v58 = vrot.slane %v17416_v36, 1 }
 0x3fd   :  { %v4986_v47 = vsel %vm820_vm2, %v4980_v33, %v4981_v2  ;;  %v4962_v54 = vadd.f32 %v17374_v5, %v4865_v39  ;;  %v13407_v0 = vadd.f32 %v13406_v21, %v13405_v23  ;;  %v5147_v39 = vrot.slane %v17408_v60, 6  ;;  %v14946_v21 = vld [vmem:[#allocation17 + $0x758] sm:$0xff]  }
 0x3fe   :  { %v5028_v17 = vmax.f32 %v4954_v6, %v4986_v47  ;;  %v5215_v8 = vsel %vm820_vm2, %v5207_v12, %v5208_v58  ;;  %v18472_v47 = vld [vmem:[#allocation37_spill] sm:$0xff] }
 0x3ff   :  { %v4982_v62 = vrot.slane %v4962_v54, 1  ;;  %v4868_v37 = vadd.f32 %v13407_v0, %v4771_v40  ;;  %v5237_v22 = vpack.c.bf16 %v5215_v8, %v5216_v59  ;;  %v5146_v40 = vrot.slane %v17370_v55, 6  ;;  %v14744_v0 = vld [vmem:[#allocation17 + $0x128] sm:$0xff]  }
 0x400   :  { %5044 = vst [vmem:[#allocation2 + $0x60] sm:$0xff] %v5028_v17  ;;  %v5176_v17 = vrot.slane %v17416_v36, 7 }
 0x401   :  { %v4985_v5 = vsel %vm820_vm2, %v4981_v2, %v4982_v62  ;;  %v4965_v15 = vadd.f32 %v14204_v42, %v4868_v37  ;;  %5627 = vmatprep.mubr.bf16.mxu0 %v5237_v22  ;;  %v17443_v42 = vadd.s32 56, %v15626_v28  ;;  %v5156_v8 = vsel %vm3885_vm4, %v5146_v40, %v5147_v39  ;;  %v14945_v2 = vld [vmem:[#allocation17 + $0x760] sm:$0xff]  }
 0x402   :  { %v5029_v50 = vmax.f32 %v4957_v38, %v4985_v5  ;;  %5628 = vmatmul.mubr.bf16.gmra.mxu0 %v5201_v14  ;;  %v5183_v22 = vsel %vm667_vm1, %v5175_v61, %v5176_v17  ;;  %v14745_v14 = vld [vmem:[#allocation17 + $0x120] sm:$0xff]  }
 0x403   :  { %v4983_v56 = vrot.slane %v4965_v15, 1  ;;  %v17440_v29 = vld [vmem:[#allocation2 + $0x50] ss:$2 sm:$0xff]  ;;  %vm5227_vm5 = vcmp.ge.s32.totalorder %v17443_v42, 63  ;;  %vm12572_vm11 = vcmp.lt.s32.totalorder %v17443_v42, 62 }
 0x404   :  { %5045 = vst [vmem:[#allocation2 + $0x68] sm:$0xff] %v5029_v50  ;;  %v5209_v43 = vrot.slane %v17440_v29, 1  ;;  %v5202_v4 = vpack.c.bf16 %v17440_v29, %v17416_v36  ;;  %vm11933_vm8 = vmneg %vm5227_vm5  ;;  %v5148_v50 = vrot.slane %v17416_v36, 6 }
 0x405   :  { %v4984_v16 = vsel %vm820_vm2, %v4982_v62, %v4983_v56  ;;  %v4999_v48 = vsel %vm820_vm2, %v4983_v56, %v4968_v1  ;;  %v5173_v1 = vrot.slane %v17358_v45, 7  ;;  %vm17484_vm9 = vmpackc.low %vm11933_vm8, %vm15507_vm0  ;;  %v5157_v62 = vsel %vm3885_vm4, %v5145_v63, %v5146_v40  ;;  %v14746_v56 = vld [vmem:[#allocation17 + $0x118] sm:$0xff]   ;;  %v14761_v40 = vld [vmem:[#allocation17 + $0x1e0] sm:$0xff]  }
 0x406   :  { %v5015_v35 = vsel %vm4067_vm14, 0.0, %v4999_v48  ;;  %v5030_v41 = vmax.f32 %v4962_v54, %v4984_v16  ;;  %v5214_v25 = vsel %vm820_vm2, %v5208_v58, %v5209_v43  ;;  %v5177_v58 = vrot.slane %v17440_v29, 7  ;;  %vm17559_vm14 = vmpackc.low %vm12572_vm11, %vm15507_vm0 }
 0x407   :  { %v5031_v11 = vmax.f32 %v4965_v15, %v5015_v35  ;;  %v5186_v53 = vsel %vm667_vm1, %v5172_v27, %v5173_v1  ;;  %v5185_v7 = vsel %vm667_vm1, %v5173_v1, %v5174_v20  ;;  %v5169_v37 = vpack.c.bf16 %v5156_v8, %v5157_v62  ;;  %v14764_v8 = vld [vmem:[#allocation17 + $0x218] sm:$0xff]   ;;  %v14766_v62 = vld [vmem:[#allocation17 + $0x1a0] sm:$0xff]  }
 0x408   :  { %5046 = vst [vmem:[#allocation2 + $0x70] sm:$0xff] %v5030_v41  ;;  %v5182_v59 = vsel %vm667_vm1, %v5176_v17, %v5177_v58  ;;  %v5149_v15 = vrot.slane %v17440_v29, 6  ;;  %v5155_v35 = vsel %vm3885_vm4, %v5147_v39, %v5148_v50  ;;  %v5242_v1 = vrot.slane %v17370_v55, 2  ;;  %v14757_v39 = vld [vmem:[#allocation17 + $0x1e8] sm:$0xff]  }
 0x409   :  { %5047 = vst [vmem:[#allocation2 + $0x78] sm:$0xff] %v5031_v11  ;;  %v5198_v5 = vpack.c.bf16 %v5182_v59, %v5183_v22  ;;  %v5241_v63 = vrot.slane %v17358_v45, 2  ;;  %v14749_v45 = vld [vmem:[#allocation17 + $0x100] sm:$0xff]   ;;  %v5244_v20 = vrot.slane %v17416_v36, 2  ;;  %v14763_v17 = vld [vmem:[#allocation17 + $0x168] sm:$0xff]   ;;  %v14765_v59 = vld [vmem:[#allocation17 + $0x1d8] sm:$0xff]  }
 0x40a   :  { %v5154_v48 = vsel %vm3885_vm4, %v5148_v50, %v5149_v15  ;;  %v14768_v22 = vld [vmem:[#allocation17 + $0x210] sm:$0xff]   ;;  %v14772_v50 = vld [vmem:[#allocation17 + $0x208] sm:$0xff]  }
 0x40b   :  { %v17446_v32 = vld [vmem:[#allocation2 + $0x60] ss:$2 sm:$0xff]  ;;  %v5170_v41 = vpack.c.bf16 %v5154_v48, %v5155_v35  ;;  %v14777_v35 = vld [vmem:[#allocation17 + $0x1c0] sm:$0xff]  }
 0x40c   :  { %v5210_v30 = vrot.slane %v17446_v32, 1  ;;  %v5178_v16 = vrot.slane %v17446_v32, 7  ;;  %v14775_v48 = vld [vmem:[#allocation17 + $0x150] sm:$0xff]  }
 0x40e   :  { %v5213_v57 = vsel %vm820_vm2, %v5209_v43, %v5210_v30  ;;  %v5181_v11 = vsel %vm667_vm1, %v5177_v58, %v5178_v16  ;;  %v14747_v43 = vld [vmem:[#allocation17 + $0x110] sm:$0xff]  }
 0x40f   :  { %v5238_v6 = vpack.c.bf16 %v5213_v57, %v5214_v25  ;;  %v5150_v57 = vrot.slane %v17446_v32, 6  ;;  %v14748_v25 = vld [vmem:[#allocation17 + $0x108] sm:$0xff]   ;;  %v14758_v58 = vld [vmem:[#allocation17 + $0x1b0] sm:$0xff]  }
 0x410   :  { %v17459_v46 = vld [vmem:[#allocation2 + $0x70] ss:$2 sm:$0xff] }
 0x411   :  { %5635 = vmatprep.mubr.bf16.mxu0 %v5238_v6  ;;  %v5151_v26 = vrot.slane %v17459_v46, 6  ;;  %v5179_v33 = vrot.slane %v17459_v46, 7  ;;  %v5211_v9 = vrot.slane %v17459_v46, 1  ;;  %v5203_v54 = vpack.c.bf16 %v17459_v46, %v17446_v32 }
 0x412   :  { %5636 = vmatmul.mubr.bf16.gmra.mxu0 %v5202_v4  ;;  %v5240_v6 = vrot.slane %v17365_v49, 2  ;;  %v5253_v4 = vsel %vm4108_vm10, %v5241_v63, %v5242_v1  ;;  %v5153_v55 = vsel %vm3885_vm4, %v5149_v15, %v5150_v57  ;;  %v5243_v49 = vrot.slane %v17408_v60, 2  ;;  %v14771_v15 = vld [vmem:[#allocation17 + $0x158] sm:$0xff]  }
 0x413   :  { %v5187_v51 = vsel %vm667_vm1, %v5179_v33, %v5172_v27  ;;  %v5212_v52 = vsel %vm820_vm2, %v5210_v30, %v5211_v9  ;;  %v5219_v38 = vsel %vm820_vm2, %v5211_v9, %v5204_v13  ;;  %v5159_v34 = vsel %vm3885_vm4, %v5151_v26, %v5144_v19 }
 0x414   :  { %v11927_v23 = vpack.c.bf16 %v5186_v53, %v5187_v51  ;;  %v11935_v12 = vpack.c.bf16 %v5219_v38, %v5212_v52  ;;  %v11931_v3 = vpack.c.bf16 %v5158_v18, %v5159_v34  ;;  %v5197_v13 = vpack.c.bf16 %v5184_v44, %v5185_v7  ;;  %v14754_v7 = vld [vmem:[#allocation17 + $0x1b8] sm:$0xff]   ;;  %v14802_v38 = vld [vmem:[#allocation17 + $0x2e0] sm:$0xff]  }
 0x415   :  { %v5180_v24 = vsel %vm667_vm1, %v5178_v16, %v5179_v33  ;;  %v5152_v61 = vsel %vm3885_vm4, %v5150_v57, %v5151_v26  ;;  %v5254_v19 = vsel %vm4108_vm10, %v5240_v6, %v5241_v63  ;;  %v5246_v26 = vrot.slane %v17446_v32, 2  ;;  %13516 = vmatprep.subr.bf16.mxu0 %v14754_v7  ;;  %v14774_v16 = vld [vmem:[#allocation17 + $0x190] sm:$0xff]  }
 0x416   :  { %11928 = vmatprep.mubr.msk.bf16.mxu1 %vm16694_vm6, %v11927_v23  ;;  %11936 = vmatprep.mubr.msk.bf16.mxu0 %vm17484_vm9, %v11935_v12  ;;  %v5199_v30 = vpack.c.bf16 %v5180_v24, %v5181_v11  ;;  %v5171_v27 = vpack.c.bf16 %v5152_v61, %v5153_v55  ;;  %v5272_v33 = vpack.c.bf16 %v5253_v4, %v5254_v19  ;;  %v5245_v9 = vrot.slane %v17440_v29, 2  ;;  %v14751_v23 = vld [vmem:[#allocation17 + $0x1f8] sm:$0xff]   ;;  %v14752_v12 = vld [vmem:[#allocation17 + $0x230] sm:$0xff]   ;;  %v14776_v24 = vld [vmem:[#allocation17 + $0x200] sm:$0xff]  }
 0x417   :  { %11932 = vmatmul.mubr.msk.bf16.vlgmr.msra.gmra.mxu1 %vm16681_vm3, %v11931_v3  ;;  %v5251_v53 = vsel %vm4108_vm10, %v5243_v49, %v5244_v20  ;;  %v5252_v36 = vsel %vm4108_vm10, %v5242_v1, %v5243_v49  ;;  %v5247_v60 = vrot.slane %v17459_v46, 2  ;;  %v14750_v46 = vld [vmem:[#allocation17 + $0x238] sm:$0xff]   ;;  %v14753_v3 = vld [vmem:[#allocation17 + $0x1f0] sm:$0xff]   ;;  %v14779_v11 = vld [vmem:[#allocation17 + $0x148] sm:$0xff]  }
 0x418   :  { %5562 = vmatprep.mubr.bf16.mxu1 %v5197_v13  ;;  %14206 = vmatpush3.bf16.msra.mxu1 %v18472_v47  ;;  %v5249_v18 = vsel %vm4108_vm10, %v5245_v9, %v5246_v26  ;;  %v5273_v44 = vpack.c.bf16 %v5251_v53, %v5252_v36  ;;  %v5250_v32 = vsel %vm4108_vm10, %v5244_v20, %v5245_v9  ;;  %v14756_v13 = vld [vmem:[#allocation17 + $0x228] sm:$0xff]   ;;  %v14759_v47 = vld [vmem:[#allocation17 + $0x170] sm:$0xff]   ;;  %v17565_v1 = vld [vmem:[#allocation17 + $0x278] sm:$0xff]  }
 0x419   :  { %14207 = vmatprep.subr.bf16.mxu1 %v14743_v10  ;;  %v5274_v51 = vpack.c.bf16 %v5249_v18, %v5250_v32  ;;  %v5248_v29 = vsel %vm4108_vm10, %v5246_v26, %v5247_v60  ;;  %v5255_v52 = vsel %vm4108_vm10, %v5247_v60, %v5240_v6 }
 0x41a   :  { %5644 = vmatmul.mubr.bf16.gmra.mxu0 %v5203_v54  ;;  %v11939_v34 = vpack.c.bf16 %v5255_v52, %v5248_v29  ;;  %v14760_v54 = vld [vmem:[#allocation17 + $0x220] sm:$0xff]  }
 0x41c   :  { %14208 = vmatpush3.bf16.msra.mxu1 %v14743_v10  ;;  %v14755_v10 = vld [vmem:[#allocation17 + $0x178] sm:$0xff]  }
 0x41d   :  { %14209 = vmatprep.subr.bf16.mxu1 %v14744_v0  ;;  %13517 = vmatpush3.bf16.msra.mxu0 %v14755_v10 }
 0x41e   :  { %13518 = vmatprep.subr.bf16.mxu0 %v14758_v58 }
 0x41f   :  { %5563 = vmatmul.mubr.bf16.gmra.mxu1 %v5169_v37  ;;  %v14767_v37 = vld [vmem:[#allocation17 + $0x160] sm:$0xff]  }
 0x420   :  { %5570 = vmatprep.mubr.bf16.mxu1 %v5198_v5  ;;  %14210 = vmatpush3.bf16.msra.mxu1 %v14744_v0  ;;  %v14762_v0 = vld [vmem:[#allocation17 + $0x1a8] sm:$0xff]   ;;  %v14770_v5 = vld [vmem:[#allocation17 + $0x198] sm:$0xff]  }
 0x421   :  { %14211 = vmatprep.subr.bf16.mxu1 %v14745_v14  ;;  %13519 = vmatpush3.bf16.msra.mxu0 %v14759_v47 }
 0x422   :  { %13520 = vmatprep.subr.bf16.mxu0 %v14762_v0 }
 0x424   :  { %14212 = vmatpush3.bf16.msra.mxu1 %v14745_v14  ;;  %v14769_v14 = vld [vmem:[#allocation17 + $0x1d0] sm:$0xff]  }
 0x425   :  { %14213 = vmatprep.subr.bf16.mxu1 %v14746_v56  ;;  %13521 = vmatpush3.bf16.msra.mxu0 %v14763_v17 }
 0x426   :  { %13522 = vmatprep.subr.bf16.mxu0 %v14766_v62 }
 0x427   :  { %5571 = vmatmul.mubr.bf16.gmra.mxu1 %v5170_v41  ;;  %v14778_v41 = vld [vmem:[#allocation17 + $0x188] sm:$0xff]  }
 0x428   :  { %5578 = vmatprep.mubr.bf16.mxu1 %v5199_v30  ;;  %14214 = vmatpush3.bf16.msra.mxu1 %v14746_v56  ;;  %v14773_v56 = vld [vmem:[#allocation17 + $0x1c8] sm:$0xff]   ;;  %v14781_v30 = vld [vmem:[#allocation17 + $0x140] sm:$0xff]  }
 0x429   :  { %14215 = vmatprep.subr.bf16.mxu1 %v14747_v43  ;;  %13523 = vmatpush3.bf16.msra.mxu0 %v14767_v37 }
 0x42a   :  { %13524 = vmatprep.subr.bf16.mxu0 %v14770_v5 }
 0x42c   :  { %14216 = vmatpush3.bf16.msra.mxu1 %v14747_v43  ;;  %v14780_v43 = vld [vmem:[#allocation17 + $0x180] sm:$0xff]  }
 0x42d   :  { %14217 = vmatprep.subr.bf16.mxu1 %v14748_v25  ;;  %13525 = vmatpush3.bf16.msra.mxu0 %v14771_v15 }
 0x42e   :  { %13526 = vmatprep.subr.bf16.mxu0 %v14774_v16 }
 0x42f   :  { %5579 = vmatmul.mubr.bf16.gmra.mxu1 %v5171_v27 }
 0x430   :  { %14218 = vmatpush3.bf16.msra.mxu1 %v14748_v25  ;;  %14221 = vmatprep.mubr.bf16.mxu1 %v5272_v33 }
 0x431   :  { %14219 = vmatprep.subr.bf16.mxu1 %v14749_v45  ;;  %13527 = vmatpush3.bf16.msra.mxu0 %v14775_v48 }
 0x432   :  { %13528 = vmatprep.subr.bf16.mxu0 %v14778_v41 }
 0x434   :  { %14220 = vmatpush3.bf16.msra.mxu1 %v14749_v45 }
 0x435   :  { %13556 = vmatprep.subr.bf16.mxu1 %v14750_v46  ;;  %13529 = vmatpush3.bf16.msra.mxu0 %v14779_v11 }
 0x436   :  { %13530 = vmatprep.subr.bf16.mxu0 %v14780_v43 }
 0x437   :  { %14222 = vmatmul.mubr.bf16.vlgmr.msra.gmra.mxu1 %v5273_v44 }
 0x438   :  { %14225 = vmatprep.mubr.bf16.mxu1 %v5274_v51  ;;  %13557 = vmatpush3.bf16.msra.mxu1 %v14751_v23 }
 0x439   :  { %13558 = vmatprep.subr.bf16.mxu1 %v14752_v12  ;;  %13531 = vmatpush3.bf16.msra.mxu0 %v14781_v30 }
 0x43a   :  { %14229 = vmatprep.subr.bf16.mxu0 %v17565_v1 }
 0x43c   :  { %13559 = vmatpush3.bf16.msra.mxu1 %v14753_v3  ;;  %v11884_v3 = vld [vmem:[#allocation18] ss:$0 sm:$0xff] }
 0x43d   :  { %13560 = vmatprep.subr.bf16.mxu1 %v14756_v13 }
 0x43f   :  { %14226 = vmatmul.mubr.msk.bf16.gmra.mxu1 %vm17559_vm14, %v11939_v34 }
 0x440   :  { %13561 = vmatpush3.bf16.msra.mxu1 %v14757_v39 }
 0x441   :  { %13562 = vmatprep.subr.bf16.mxu1 %v14760_v54 }
 0x444   :  { %13563 = vmatpush3.bf16.msra.mxu1 %v14761_v40 }
 0x445   :  { %13564 = vmatprep.subr.bf16.mxu1 %v14764_v8 }
 0x448   :  { %13565 = vmatpush3.bf16.msra.mxu1 %v14765_v59 }
 0x449   :  { %13566 = vmatprep.subr.bf16.mxu1 %v14768_v22 }
 0x44c   :  { %13567 = vmatpush3.bf16.msra.mxu1 %v14769_v14 }
 0x44d   :  { %13568 = vmatprep.subr.bf16.mxu1 %v14772_v50 }
 0x450   :  { %13569 = vmatpush3.bf16.msra.mxu1 %v14773_v56 }
 0x451   :  { %13570 = vmatprep.subr.bf16.mxu1 %v14776_v24 }
 0x454   :  { %13571 = vmatpush3.bf16.msra.mxu1 %v14777_v35 }
 0x4b2   :  { %v13480_v57 = vpop.f32.mrf.mxu0 }
 0x4b4   :  { %v13481_v25 = vpop.f32.mrf.mxu0 }
 0x4b5   :  { %v13482_v17 = vadd.f32 %v13481_v25, %v13480_v57 }
 0x4b6   :  { %v13483_v63 = vpop.f32.mrf.mxu0 }
 0x4b8   :  { %v13484_v61 = vpop.f32.mrf.mxu0 }
 0x4b9   :  { %v13485_v16 = vadd.f32 %v13484_v61, %v13483_v63 }
 0x4c2   :  { %v13486_v6 = vpop.f32.mrf.mxu0 }
 0x4c4   :  { %v13487_v4 = vpop.f32.mrf.mxu0 }
 0x4c5   :  { %v13488_v47 = vadd.f32 %v13487_v4, %v13486_v6 }
 0x4c6   :  { %v13489_v19 = vpop.f32.mrf.mxu0 }
 0x4c8   :  { %v13490_v33 = vpop.f32.mrf.mxu0 }
 0x4c9   :  { %v13491_v5 = vadd.f32 %v13490_v33, %v13489_v19 }
 0x4d2   :  { %v13492_v49 = vpop.f32.mrf.mxu0 }
 0x4d4   :  { %v13493_v18 = vpop.f32.mrf.mxu0 }
 0x4d6   :  { %v13495_v32 = vpop.f32.mrf.mxu0 }
 0x4d7   :  { %v13440_v55 = vpop.f32.mrf.mxu1 }
 0x4d8   :  { %v13496_v29 = vpop.f32.mrf.mxu0 }
 0x4d9   :  { %v13441_v27 = vpop.f32.mrf.mxu1 }
 0x4da   :  { %v13442_v23 = vadd.f32 %v13441_v27, %v13440_v55  ;;  %v13498_v12 = vpop.f32.mrf.mxu0 }
 0x4db   :  { %v13443_v45 = vpop.f32.mrf.mxu1 }
 0x4dc   :  { %v5557_v54 = vadd.f32 %v13442_v23, %v11884_v3  ;;  %v13499_v40 = vpop.f32.mrf.mxu0 }
 0x4dd   :  { %v13444_v20 = vpop.f32.mrf.mxu1  ;;  %v13500_v30 = vadd.f32 %v13499_v40, %v13498_v12 }
 0x4de   :  { %v13445_v39 = vadd.f32 %v13444_v20, %v13443_v45  ;;  %v13501_v15 = vpop.f32.mrf.mxu0  ;;  %v5622_v56 = vadd.f32 %v13482_v17, %v5557_v54  ;;  %v13494_v45 = vadd.f32 %v13493_v18, %v13492_v49  ;;  %v13497_v20 = vadd.f32 %v13496_v29, %v13495_v32 }
 0x4df   :  { %v13446_v26 = vpop.f32.mrf.mxu1 }
 0x4e0   :  { %v5560_v37 = vadd.f32 %v13445_v39, %v11884_v3  ;;  %v13502_v55 = vpop.f32.mrf.mxu0 }
 0x4e1   :  { %v13447_v9 = vpop.f32.mrf.mxu1 }
 0x4e2   :  { %v13448_v34 = vadd.f32 %v13447_v9, %v13446_v26  ;;  %v5625_v4 = vadd.f32 %v13485_v16, %v5560_v37 }
 0x4e3   :  { %v13449_v53 = vpop.f32.mrf.mxu1 }
 0x4e4   :  { %v5565_v10 = vadd.f32 %v13448_v34, %v11884_v3 }
 0x4e5   :  { %v13450_v36 = vpop.f32.mrf.mxu1 }
 0x4e6   :  { %v13451_v13 = vadd.f32 %v13450_v36, %v13449_v53  ;;  %v5630_v62 = vadd.f32 %v13488_v47, %v5565_v10  ;;  %v13503_v36 = vadd.f32 %v13502_v55, %v13501_v15 }
 0x4e7   :  { %v13452_v44 = vpop.f32.mrf.mxu1 }
 0x4e8   :  { %v5568_v8 = vadd.f32 %v13451_v13, %v11884_v3 }
 0x4e9   :  { %v13453_v51 = vpop.f32.mrf.mxu1 }
 0x4ea   :  { %v13454_v22 = vadd.f32 %v13453_v51, %v13452_v44  ;;  %v5633_v43 = vadd.f32 %v13491_v5, %v5568_v8 }
 0x4eb   :  { %v13455_v60 = vpop.f32.mrf.mxu1 }
 0x4ec   :  { %v5573_v6 = vadd.f32 %v13454_v22, %v11884_v3 }
 0x4ed   :  { %v13456_v52 = vpop.f32.mrf.mxu1 }
 0x4ee   :  { %v13457_v48 = vadd.f32 %v13456_v52, %v13455_v60  ;;  %v5638_v52 = vadd.f32 %v13494_v45, %v5573_v6 }
 0x4ef   :  { %v13458_v46 = vpop.f32.mrf.mxu1 }
 0x4f0   :  { %v5576_v33 = vadd.f32 %v13457_v48, %v11884_v3 }
 0x4f1   :  { %v13459_v7 = vpop.f32.mrf.mxu1 }
 0x4f2   :  { %v13460_v59 = vadd.f32 %v13459_v7, %v13458_v46  ;;  %v5641_v29 = vadd.f32 %v13497_v20, %v5576_v33 }
 0x4f3   :  { %v13461_v58 = vpop.f32.mrf.mxu1 }
 0x4f4   :  { %v5581_v41 = vadd.f32 %v13460_v59, %v11884_v3 }
 0x4f5   :  { %v13462_v0 = vpop.f32.mrf.mxu1 }
 0x4f6   :  { %v13463_v24 = vadd.f32 %v13462_v0, %v13461_v58  ;;  %v5646_v53 = vadd.f32 %v13500_v30, %v5581_v41 }
 0x4f7   :  { %v14223_v14 = vpop.f32.mrf.mxu1 }
 0x4f8   :  { %v5695_v50 = vadd.f32 %v14223_v14, %v5630_v62  ;;  %v5584_v63 = vadd.f32 %v13463_v24, %v11884_v3 }
 0x4f9   :  { %v5686_v35 = vpop.f32.mrf.mxu1 }
 0x4fa   :  { %v5687_v11 = vadd.f32 %v5686_v35, %v5622_v56  ;;  %v5727_v57 = vmul.f32 0.1, %v5695_v50  ;;  %vm5719_vm15 = vcmp.ge.f32.partialorder %v5695_v50, 0.0  ;;  %v5649_v32 = vadd.f32 %v13503_v36, %v5584_v63 }
 0x4fb   :  { %v14224_v25 = vpop.f32.mrf.mxu1 }
 0x4fc   :  { %vm5717_vm7 = vcmp.ge.f32.partialorder %v5687_v11, 0.0  ;;  %v5725_v27 = vmul.f32 0.1, %v5687_v11  ;;  %v5698_v19 = vadd.f32 %v14224_v25, %v5633_v43  ;;  %v17568_v44 = vsel %vm5719_vm15, %v5695_v50, %v5727_v57 }
 0x4fd   :  { %v5689_v61 = vpop.f32.mrf.mxu1  ;;  %v5886_v3 = vrot.slane %v17568_v44, 1  ;;  %v5854_v7 = vrot.slane %v17568_v44, 7 }
 0x4fe   :  { %vm5720_vm8 = vcmp.ge.f32.partialorder %v5698_v19, 0.0  ;;  %v5728_v26 = vmul.f32 0.1, %v5698_v19  ;;  %v5690_v9 = vadd.f32 %v5689_v61, %v5625_v4  ;;  %v17570_v51 = vsel %vm5717_vm7, %v5687_v11, %v5725_v27 }
 0x4ff   :  { %v14227_v60 = vpop.f32.mrf.mxu1  ;;  %v5824_v10 = vrot.slane %v17570_v51, 6  ;;  %v5884_v39 = vrot.slane %v17570_v51, 1  ;;  %v5852_v5 = vrot.slane %v17570_v51, 7 }
 0x500   :  { %v17572_v34 = vsel %vm5720_vm8, %v5698_v19, %v5728_v26  ;;  %vm5718_vm11 = vcmp.ge.f32.partialorder %v5690_v9, 0.0  ;;  %v5726_v46 = vmul.f32 0.1, %v5690_v9  ;;  %v5711_v49 = vadd.f32 %v14227_v60, %v5646_v53 }
 0x501   :  { %v5702_v18 = vpop.f32.mrf.mxu1  ;;  %v5887_v47 = vrot.slane %v17572_v34, 1  ;;  %v5855_v43 = vrot.slane %v17572_v34, 7 }
 0x502   :  { %v17574_v23 = vsel %vm5718_vm11, %v5690_v9, %v5726_v46  ;;  %v5703_v12 = vadd.f32 %v5702_v18, %v5638_v52  ;;  %vm5723_vm15 = vcmp.ge.f32.partialorder %v5711_v49, 0.0  ;;  %v5731_v17 = vmul.f32 0.1, %v5711_v49  ;;  %v14783_v9 = vld [vmem:[#allocation17 + $0x270] sm:$0xff]  }
 0x503   :  { %v14228_v13 = vpop.f32.mrf.mxu1  ;;  %v5885_v58 = vrot.slane %v17574_v23, 1  ;;  %v5825_v0 = vrot.slane %v17574_v23, 6  ;;  %v5853_v15 = vrot.slane %v17574_v23, 7  ;;  %v5880_v16 = vpack.c.bf16 %v17574_v23, %v17570_v51 }
 0x504   :  { %vm5721_vm7 = vcmp.ge.f32.partialorder %v5703_v12, 0.0  ;;  %v5729_v54 = vmul.f32 0.1, %v5703_v12  ;;  %v5714_v40 = vadd.f32 %v14228_v13, %v5649_v32  ;;  %v17599_v35 = vsel %vm5723_vm15, %v5711_v49, %v5731_v17 }
 0x505   :  { %v5705_v8 = vpop.f32.mrf.mxu1  ;;  %v5897_v59 = vsel %vm820_vm2, %v5885_v58, %v5886_v3  ;;  %v5898_v62 = vsel %vm820_vm2, %v5884_v39, %v5885_v58  ;;  %v5838_v30 = vsel %vm3885_vm4, %v5824_v10, %v5825_v0  ;;  %v5896_v25 = vsel %vm820_vm2, %v5886_v3, %v5887_v47 }
 0x506   :  { %v17589_v37 = vsel %vm5721_vm7, %v5703_v12, %v5729_v54  ;;  %vm5724_vm8 = vcmp.ge.f32.partialorder %v5714_v40, 0.0  ;;  %v5732_v22 = vmul.f32 0.1, %v5714_v40  ;;  %v5706_v14 = vadd.f32 %v5705_v8, %v5641_v29  ;;  %v14784_v29 = vld [vmem:[#allocation17 + $0x268] sm:$0xff]  }
 0x507   :  { %v5908_v50 = vpack.c.bf16 %v5897_v59, %v5898_v62  ;;  %v5888_v56 = vrot.slane %v17589_v37, 1  ;;  %v5866_v27 = vsel %vm667_vm1, %v5852_v5, %v5853_v15  ;;  %v5865_v33 = vsel %vm667_vm1, %v5853_v15, %v5854_v7 }
 0x508   :  { %v17596_v48 = vsel %vm5724_vm8, %v5714_v40, %v5732_v22  ;;  %vm5722_vm11 = vcmp.ge.f32.partialorder %v5706_v14, 0.0  ;;  %v5730_v24 = vmul.f32 0.1, %v5706_v14  ;;  %v5864_v63 = vsel %vm667_vm1, %v5854_v7, %v5855_v43  ;;  %v14786_v22 = vld [vmem:[#allocation17 + $0x258] sm:$0xff]  }
 0x509   :  { %v5831_v41 = vrot.slane %v17596_v48, 6  ;;  %v5859_v11 = vrot.slane %v17596_v48, 7  ;;  %6283 = vmatprep.mubr.bf16.mxu1 %v5908_v50  ;;  %v5895_v57 = vsel %vm820_vm2, %v5887_v47, %v5888_v56  ;;  %v5890_v26 = vrot.slane %v17599_v35, 1  ;;  %v14785_v47 = vld [vmem:[#allocation17 + $0x260] sm:$0xff]  }
 0x50a   :  { %v17606_v6 = vsel %vm5722_vm11, %v5706_v14, %v5730_v24  ;;  %6284 = vmatmul.mubr.bf16.vlgmr.msra.gmra.mxu1 %v5880_v16  ;;  %v5909_v55 = vpack.c.bf16 %v5895_v57, %v5896_v25  ;;  %v5877_v53 = vpack.c.bf16 %v5864_v63, %v5865_v33  ;;  %v5826_v46 = vrot.slane %v17568_v44, 6  ;;  %v14787_v16 = vld [vmem:[#allocation17 + $0x250] sm:$0xff]   ;;  %v14788_v57 = vld [vmem:[#allocation17 + $0x248] sm:$0xff]  }
 0x50b   :  { %v5839_v4 = vsel %vm3885_vm4, %v5831_v41, %v5824_v10  ;;  %v5867_v19 = vsel %vm667_vm1, %v5859_v11, %v5852_v5  ;;  %v5889_v61 = vrot.slane %v17606_v6, 1  ;;  %v5857_v52 = vrot.slane %v17606_v6, 7 }
 0x50c   :  { %v11988_v45 = vpack.c.bf16 %v5838_v30, %v5839_v4  ;;  %v11984_v20 = vpack.c.bf16 %v5866_v27, %v5867_v19  ;;  %6291 = vmatprep.mubr.bf16.mxu1 %v5909_v55  ;;  %v5827_v49 = vrot.slane %v17572_v34, 6  ;;  %v5881_v18 = vpack.c.bf16 %v17572_v34, %v17568_v44 }
 0x50d   :  { %v5893_v36 = vsel %vm820_vm2, %v5889_v61, %v5890_v26  ;;  %v5894_v60 = vsel %vm820_vm2, %v5888_v56, %v5889_v61  ;;  %v5856_v12 = vrot.slane %v17589_v37, 7  ;;  %v5891_v3 = vrot.slane %v17596_v48, 1 }
 0x50e   :  { %11985 = vmatprep.mubr.msk.bf16.mxu0 %vm16694_vm6, %v11984_v20  ;;  %v5910_v32 = vpack.c.bf16 %v5893_v36, %v5894_v60  ;;  %v5837_v7 = vsel %vm3885_vm4, %v5825_v0, %v5826_v46  ;;  %v5829_v54 = vrot.slane %v17606_v6, 6  ;;  %v5828_v8 = vrot.slane %v17589_v37, 6  ;;  %v14790_v60 = vld [vmem:[#allocation17 + $0x2f8] sm:$0xff]  }
 0x50f   :  { %11989 = vmatmul.mubr.msk.bf16.vlgmr.msra.gmra.mxu0 %vm16681_vm3, %v11988_v45  ;;  %v5862_v10 = vsel %vm667_vm1, %v5856_v12, %v5857_v52  ;;  %v5863_v58 = vsel %vm667_vm1, %v5855_v43, %v5856_v12  ;;  %v5892_v0 = vsel %vm820_vm2, %v5890_v26, %v5891_v3  ;;  %v5899_v17 = vsel %vm820_vm2, %v5891_v3, %v5884_v39  ;;  %v14798_v12 = vld [vmem:[#allocation17 + $0x2e8] sm:$0xff]  }
 0x510   :  { %6226 = vmatprep.mubr.bf16.mxu0 %v5877_v53  ;;  %14230 = vmatpush3.bf16.msra.mxu0 %v17565_v1  ;;  %v5836_v1 = vsel %vm3885_vm4, %v5826_v46, %v5827_v49  ;;  %v5878_v40 = vpack.c.bf16 %v5862_v10, %v5863_v58  ;;  %v5882_v59 = vpack.c.bf16 %v17606_v6, %v17589_v37  ;;  %v5858_v14 = vrot.slane %v17599_v35, 7  ;;  %v14792_v46 = vld [vmem:[#allocation17 + $0x378] sm:$0xff]   ;;  %v14799_v3 = vld [vmem:[#allocation17 + $0x2a8] sm:$0xff]  }
 0x511   :  { %14231 = vmatprep.subr.bf16.mxu0 %v14783_v9  ;;  %v5849_v13 = vpack.c.bf16 %v5836_v1, %v5837_v7  ;;  %v11992_v62 = vpack.c.bf16 %v5899_v17, %v5892_v0  ;;  %v5834_v5 = vsel %vm3885_vm4, %v5828_v8, %v5829_v54  ;;  %v5835_v15 = vsel %vm3885_vm4, %v5827_v49, %v5828_v8  ;;  %v14793_v49 = vld [vmem:[#allocation17 + $0x338] sm:$0xff]   ;;  %v14800_v7 = vld [vmem:[#allocation17 + $0x368] sm:$0xff]   ;;  %v14803_v1 = vld [vmem:[#allocation17 + $0x2a0] sm:$0xff]  }
 0x512   :  { %6292 = vmatmul.mubr.bf16.gmra.mxu1 %v5881_v18  ;;  %v5861_v39 = vsel %vm667_vm1, %v5857_v52, %v5858_v14  ;;  %v5850_v50 = vpack.c.bf16 %v5834_v5, %v5835_v15  ;;  %v5860_v56 = vsel %vm667_vm1, %v5858_v14, %v5859_v11  ;;  %v5913_v31 = vrot.slane %v17574_v23, 2  ;;  %13608 = vmatprep.subr.bf16.mxu1 %v14790_v60  ;;  %v14791_v52 = vld [vmem:[#allocation17 + $0x2b8] sm:$0xff]   ;;  %v14794_v18 = vld [vmem:[#allocation17 + $0x2f0] sm:$0xff]   ;;  %v14801_v10 = vld [vmem:[#allocation17 + $0x328] sm:$0xff]  }
 0x513   :  { %6299 = vmatprep.mubr.bf16.mxu1 %v5910_v32  ;;  %v5879_v24 = vpack.c.bf16 %v5860_v56, %v5861_v39  ;;  %v5830_v43 = vrot.slane %v17599_v35, 6  ;;  %v5883_v30 = vpack.c.bf16 %v17596_v48, %v17599_v35  ;;  %v5912_v25 = vrot.slane %v17570_v51, 2  ;;  %v14789_v51 = vld [vmem:[#allocation17 + $0x240] sm:$0xff]   ;;  %13609 = vmatpush3.bf16.msra.mxu1 %v14791_v52  ;;  %v14796_v32 = vld [vmem:[#allocation17 + $0x370] sm:$0xff]   ;;  %v14806_v58 = vld [vmem:[#allocation17 + $0x2d8] sm:$0xff]  }
 0x514   :  { %14232 = vmatpush3.bf16.msra.mxu0 %v14783_v9  ;;  %v5914_v4 = vrot.slane %v17568_v44, 2  ;;  %v5916_v44 = vrot.slane %v17589_v37, 2  ;;  %v5917_v20 = vrot.slane %v17606_v6, 2  ;;  %v5915_v33 = vrot.slane %v17572_v34, 2  ;;  %13610 = vmatprep.subr.bf16.mxu1 %v14794_v18  ;;  %v14810_v0 = vld [vmem:[#allocation17 + $0x2d0] sm:$0xff]   ;;  %v14809_v17 = vld [vmem:[#allocation17 + $0x318] sm:$0xff]  }
 0x515   :  { %14233 = vmatprep.subr.bf16.mxu0 %v14784_v29  ;;  %v5833_v11 = vsel %vm3885_vm4, %v5829_v54, %v5830_v43  ;;  %v5926_v55 = vsel %vm4108_vm10, %v5912_v25, %v5913_v31  ;;  %v5832_v27 = vsel %vm3885_vm4, %v5830_v43, %v5831_v41  ;;  %v5918_v63 = vrot.slane %v17599_v35, 2  ;;  %v14807_v54 = vld [vmem:[#allocation17 + $0x298] sm:$0xff]   ;;  %v14811_v8 = vld [vmem:[#allocation17 + $0x290] sm:$0xff]   ;;  %v14815_v14 = vld [vmem:[#allocation17 + $0x288] sm:$0xff]  }
 0x516   :  { %v5925_v23 = vsel %vm4108_vm10, %v5913_v31, %v5914_v4  ;;  %v5851_v19 = vpack.c.bf16 %v5832_v27, %v5833_v11  ;;  %v5923_v61 = vsel %vm4108_vm10, %v5915_v33, %v5916_v44  ;;  %v5922_v37 = vsel %vm4108_vm10, %v5916_v44, %v5917_v20  ;;  %v14816_v5 = vld [vmem:[#allocation17 + $0x348] sm:$0xff]   ;;  %v14818_v39 = vld [vmem:[#allocation17 + $0x2c0] sm:$0xff]  }
 0x517   :  { %6227 = vmatmul.mubr.bf16.gmra.mxu0 %v5849_v13  ;;  %v5936_v45 = vpack.c.bf16 %v5925_v23, %v5926_v55  ;;  %v5921_v41 = vsel %vm4108_vm10, %v5917_v20, %v5918_v63  ;;  %v5924_v26 = vsel %vm4108_vm10, %v5914_v4, %v5915_v33  ;;  %v5919_v34 = vrot.slane %v17596_v48, 2  ;;  %v14795_v48 = vld [vmem:[#allocation17 + $0x2b0] sm:$0xff]   ;;  %v14804_v13 = vld [vmem:[#allocation17 + $0x360] sm:$0xff]   ;;  %v14817_v15 = vld [vmem:[#allocation17 + $0x308] sm:$0xff]  }
 0x518   :  { %6234 = vmatprep.mubr.bf16.mxu0 %v5878_v40  ;;  %14234 = vmatpush3.bf16.msra.mxu0 %v14784_v29  ;;  %v5937_v6 = vpack.c.bf16 %v5923_v61, %v5924_v26  ;;  %v5938_v9 = vpack.c.bf16 %v5921_v41, %v5922_v37  ;;  %v14797_v29 = vld [vmem:[#allocation17 + $0x330] sm:$0xff]   ;;  %v14808_v40 = vld [vmem:[#allocation17 + $0x358] sm:$0xff]   ;;  %v14820_v56 = vld [vmem:[#allocation17 + $0x340] sm:$0xff]  }
 0x519   :  { %14235 = vmatprep.subr.bf16.mxu0 %v14785_v47  ;;  %v5920_v35 = vsel %vm4108_vm10, %v5918_v63, %v5919_v34  ;;  %v5927_v53 = vsel %vm4108_vm10, %v5919_v34, %v5912_v25  ;;  %13611 = vmatpush3.bf16.msra.mxu1 %v14795_v48  ;;  %v11941_v52 = vld [vmem:[#allocation18 + $0x1] ss:$0 sm:$0xff] }
 0x51a   :  { %6300 = vmatmul.mubr.bf16.gmra.mxu1 %v5882_v59  ;;  %v11996_v36 = vpack.c.bf16 %v5927_v53, %v5920_v35  ;;  %13612 = vmatprep.subr.bf16.mxu1 %v14798_v12  ;;  %v14812_v59 = vld [vmem:[#allocation17 + $0x350] sm:$0xff]  }
 0x51b   :  { %11993 = vmatprep.mubr.msk.bf16.mxu1 %vm17484_vm9, %v11992_v62  ;;  %v14814_v62 = vld [vmem:[#allocation17 + $0x2c8] sm:$0xff]  }
 0x51c   :  { %14236 = vmatpush3.bf16.msra.mxu0 %v14785_v47  ;;  %v14805_v47 = vld [vmem:[#allocation17 + $0x320] sm:$0xff]  }
 0x51d   :  { %14237 = vmatprep.subr.bf16.mxu0 %v14786_v22  ;;  %13613 = vmatpush3.bf16.msra.mxu1 %v14799_v3 }
 0x51e   :  { %13614 = vmatprep.subr.bf16.mxu1 %v14802_v38 }
 0x51f   :  { %6235 = vmatmul.mubr.bf16.gmra.mxu0 %v5850_v50  ;;  %v14819_v50 = vld [vmem:[#allocation17 + $0x280] sm:$0xff]  }
 0x520   :  { %6242 = vmatprep.mubr.bf16.mxu0 %v5879_v24  ;;  %14238 = vmatpush3.bf16.msra.mxu0 %v14786_v22  ;;  %v14813_v22 = vld [vmem:[#allocation17 + $0x310] sm:$0xff]   ;;  %v14821_v24 = vld [vmem:[#allocation17 + $0x300] sm:$0xff]  }
 0x521   :  { %14239 = vmatprep.subr.bf16.mxu0 %v14787_v16  ;;  %13615 = vmatpush3.bf16.msra.mxu1 %v14803_v1 }
 0x522   :  { %6308 = vmatmul.mubr.bf16.gmra.mxu1 %v5883_v30  ;;  %13616 = vmatprep.subr.bf16.mxu1 %v14806_v58 }
 0x524   :  { %14240 = vmatpush3.bf16.msra.mxu0 %v14787_v16  ;;  %v17710_v16 = vld [vmem:[#allocation17 + $0x3b8] sm:$0xff]  }
 0x525   :  { %14241 = vmatprep.subr.bf16.mxu0 %v14788_v57  ;;  %13617 = vmatpush3.bf16.msra.mxu1 %v14807_v54 }
 0x526   :  { %13618 = vmatprep.subr.bf16.mxu1 %v14810_v0 }
 0x527   :  { %6243 = vmatmul.mubr.bf16.gmra.mxu0 %v5851_v19 }
 0x528   :  { %14242 = vmatpush3.bf16.msra.mxu0 %v14788_v57  ;;  %14245 = vmatprep.mubr.bf16.mxu0 %v5936_v45 }
 0x529   :  { %14243 = vmatprep.subr.bf16.mxu0 %v14789_v51  ;;  %13619 = vmatpush3.bf16.msra.mxu1 %v14811_v8 }
 0x52a   :  { %13620 = vmatprep.subr.bf16.mxu1 %v14814_v62 }
 0x52c   :  { %14244 = vmatpush3.bf16.msra.mxu0 %v14789_v51 }
 0x52d   :  { %13636 = vmatprep.subr.bf16.mxu0 %v14792_v46  ;;  %13621 = vmatpush3.bf16.msra.mxu1 %v14815_v14 }
 0x52e   :  { %13622 = vmatprep.subr.bf16.mxu1 %v14818_v39 }
 0x52f   :  { %14246 = vmatmul.mubr.bf16.vlgmr.msra.gmra.mxu0 %v5937_v6 }
 0x530   :  { %14249 = vmatprep.mubr.bf16.mxu0 %v5938_v9  ;;  %13637 = vmatpush3.bf16.msra.mxu0 %v14793_v49 }
 0x531   :  { %13638 = vmatprep.subr.bf16.mxu0 %v14796_v32  ;;  %13623 = vmatpush3.bf16.msra.mxu1 %v14819_v50 }
 0x532   :  { %14253 = vmatprep.subr.bf16.mxu1 %v17710_v16 }
 0x534   :  { %13639 = vmatpush3.bf16.msra.mxu0 %v14797_v29 }
 0x535   :  { %13640 = vmatprep.subr.bf16.mxu0 %v14800_v7 }
 0x537   :  { %14250 = vmatmul.mubr.msk.bf16.gmra.mxu0 %vm17559_vm14, %v11996_v36 }
 0x538   :  { %13641 = vmatpush3.bf16.msra.mxu0 %v14801_v10 }
 0x539   :  { %13642 = vmatprep.subr.bf16.mxu0 %v14804_v13 }
 0x53c   :  { %13643 = vmatpush3.bf16.msra.mxu0 %v14805_v47 }
 0x53d   :  { %13644 = vmatprep.subr.bf16.mxu0 %v14808_v40 }
 0x540   :  { %13645 = vmatpush3.bf16.msra.mxu0 %v14809_v17 }
 0x541   :  { %13646 = vmatprep.subr.bf16.mxu0 %v14812_v59 }
 0x544   :  { %13647 = vmatpush3.bf16.msra.mxu0 %v14813_v22 }
 0x545   :  { %13648 = vmatprep.subr.bf16.mxu0 %v14816_v5 }
 0x548   :  { %13649 = vmatpush3.bf16.msra.mxu0 %v14817_v15 }
 0x549   :  { %13650 = vmatprep.subr.bf16.mxu0 %v14820_v56 }
 0x54c   :  { %13651 = vmatpush3.bf16.msra.mxu0 %v14821_v24 }
 0x5ca   :  { %v13572_v31 = vpop.f32.mrf.mxu1 }
 0x5cc   :  { %v13573_v43 = vpop.f32.mrf.mxu1 }
 0x5cd   :  { %v13574_v10 = vadd.f32 %v13573_v43, %v13572_v31 }
 0x5ce   :  { %v13575_v30 = vpop.f32.mrf.mxu1 }
 0x5cf   :  { %v13532_v57 = vpop.f32.mrf.mxu0 }
 0x5d0   :  { %v13576_v25 = vpop.f32.mrf.mxu1 }
 0x5d1   :  { %v13533_v4 = vpop.f32.mrf.mxu0  ;;  %v13577_v5 = vadd.f32 %v13576_v25, %v13575_v30 }
 0x5d2   :  { %v13578_v11 = vpop.f32.mrf.mxu1  ;;  %v13534_v36 = vadd.f32 %v13533_v4, %v13532_v57 }
 0x5d3   :  { %v13535_v23 = vpop.f32.mrf.mxu0 }
 0x5d4   :  { %v13579_v55 = vpop.f32.mrf.mxu1  ;;  %v6221_v32 = vadd.f32 %v13534_v36, %v11941_v52 }
 0x5d5   :  { %v13536_v27 = vpop.f32.mrf.mxu0  ;;  %v13580_v29 = vadd.f32 %v13579_v55, %v13578_v11 }
 0x5d6   :  { %v13581_v19 = vpop.f32.mrf.mxu1  ;;  %v13537_v12 = vadd.f32 %v13536_v27, %v13535_v23  ;;  %v6286_v8 = vadd.f32 %v13574_v10, %v6221_v32 }
 0x5d7   :  { %v13538_v51 = vpop.f32.mrf.mxu0 }
 0x5d8   :  { %v13582_v44 = vpop.f32.mrf.mxu1  ;;  %v6224_v54 = vadd.f32 %v13537_v12, %v11941_v52 }
 0x5d9   :  { %v13539_v45 = vpop.f32.mrf.mxu0  ;;  %v13583_v40 = vadd.f32 %v13582_v44, %v13581_v19 }
 0x5da   :  { %v13584_v20 = vpop.f32.mrf.mxu1  ;;  %v13540_v35 = vadd.f32 %v13539_v45, %v13538_v51  ;;  %v6289_v11 = vadd.f32 %v13577_v5, %v6224_v54 }
 0x5db   :  { %v13541_v33 = vpop.f32.mrf.mxu0 }
 0x5dc   :  { %v13585_v63 = vpop.f32.mrf.mxu1  ;;  %v6229_v49 = vadd.f32 %v13540_v35, %v11941_v52 }
 0x5dd   :  { %v13542_v61 = vpop.f32.mrf.mxu0  ;;  %v13586_v23 = vadd.f32 %v13585_v63, %v13584_v20 }
 0x5de   :  { %v13587_v37 = vpop.f32.mrf.mxu1  ;;  %v13543_v18 = vadd.f32 %v13542_v61, %v13541_v33  ;;  %v6294_v13 = vadd.f32 %v13580_v29, %v6229_v49 }
 0x5df   :  { %v13544_v41 = vpop.f32.mrf.mxu0 }
 0x5e0   :  { %v13588_v34 = vpop.f32.mrf.mxu1  ;;  %v6232_v1 = vadd.f32 %v13543_v18, %v11941_v52 }
 0x5e1   :  { %v13545_v26 = vpop.f32.mrf.mxu0  ;;  %v13589_v45 = vadd.f32 %v13588_v34, %v13587_v37 }
 0x5e2   :  { %v13590_v60 = vpop.f32.mrf.mxu1  ;;  %v13546_v58 = vadd.f32 %v13545_v26, %v13544_v41  ;;  %v6297_v50 = vadd.f32 %v13583_v40, %v6232_v1 }
 0x5e3   :  { %v13547_v6 = vpop.f32.mrf.mxu0 }
 0x5e4   :  { %v13591_v3 = vpop.f32.mrf.mxu1  ;;  %v6237_v56 = vadd.f32 %v13546_v58, %v11941_v52 }
 0x5e5   :  { %v13548_v9 = vpop.f32.mrf.mxu0  ;;  %v13592_v24 = vadd.f32 %v13591_v3, %v13590_v60 }
 0x5e6   :  { %v13593_v0 = vpop.f32.mrf.mxu1  ;;  %v13549_v59 = vadd.f32 %v13548_v9, %v13547_v6  ;;  %v6302_v26 = vadd.f32 %v13586_v23, %v6237_v56 }
 0x5e7   :  { %v13550_v53 = vpop.f32.mrf.mxu0 }
 0x5e8   :  { %v13594_v43 = vpop.f32.mrf.mxu1  ;;  %v6240_v55 = vadd.f32 %v13549_v59, %v11941_v52 }
 0x5e9   :  { %v13551_v46 = vpop.f32.mrf.mxu0  ;;  %v13595_v33 = vadd.f32 %v13594_v43, %v13593_v0 }
 0x5ea   :  { %v13552_v7 = vadd.f32 %v13551_v46, %v13550_v53  ;;  %v6305_v46 = vadd.f32 %v13589_v45, %v6240_v55 }
 0x5eb   :  { %v13553_v48 = vpop.f32.mrf.mxu0 }
 0x5ec   :  { %v6245_v62 = vadd.f32 %v13552_v7, %v11941_v52 }
 0x5ed   :  { %v13554_v38 = vpop.f32.mrf.mxu0 }
 0x5ee   :  { %v13555_v22 = vadd.f32 %v13554_v38, %v13553_v48  ;;  %v6310_v51 = vadd.f32 %v13592_v24, %v6245_v62 }
 0x5ef   :  { %v14247_v47 = vpop.f32.mrf.mxu0 }
 0x5f0   :  { %v6359_v17 = vadd.f32 %v14247_v47, %v6294_v13  ;;  %v6248_v27 = vadd.f32 %v13555_v22, %v11941_v52 }
 0x5f1   :  { %v6350_v14 = vpop.f32.mrf.mxu0 }
 0x5f2   :  { %v6391_v39 = vmul.f32 0.1, %v6359_v17  ;;  %v6351_v15 = vadd.f32 %v6350_v14, %v6286_v8  ;;  %vm6383_vm9 = vcmp.ge.f32.partialorder %v6359_v17, 0.0  ;;  %v6313_v52 = vadd.f32 %v13595_v33, %v6248_v27 }
 0x5f3   :  { %v14248_v31 = vpop.f32.mrf.mxu0 }
 0x5f4   :  { %vm6381_vm14 = vcmp.ge.f32.partialorder %v6351_v15, 0.0  ;;  %v6389_v57 = vmul.f32 0.1, %v6351_v15  ;;  %v6362_v4 = vadd.f32 %v14248_v31, %v6297_v50  ;;  %v6399_v44 = vsel %vm6383_vm9, %v6359_v17, %v6391_v39 }
 0x5f5   :  { %v6353_v19 = vpop.f32.mrf.mxu0  ;;  %v6407_v53 = vrot.slane %v6399_v44, 1 }
 0x5f6   :  { %vm6384_vm15 = vcmp.ge.f32.partialorder %v6362_v4, 0.0  ;;  %v6392_v30 = vmul.f32 0.1, %v6362_v4  ;;  %v6354_v25 = vadd.f32 %v6353_v19, %v6289_v11  ;;  %v6397_v61 = vsel %vm6381_vm14, %v6351_v15, %v6389_v57 }
 0x5f7   :  { %v14251_v41 = vpop.f32.mrf.mxu0  ;;  %v6405_v49 = vrot.slane %v6397_v61, 1  ;;  %v17732_v11 = vadd.s32 24, %v15626_v28 }
 0x5f8   :  { %v6400_v6 = vsel %vm6384_vm15, %v6362_v4, %v6392_v30  ;;  %vm6382_vm7 = vcmp.ge.f32.partialorder %v6354_v25, 0.0  ;;  %v6390_v9 = vmul.f32 0.1, %v6354_v25  ;;  %v6375_v35 = vadd.f32 %v14251_v41, %v6310_v51 }
 0x5f9   :  { %v6408_v36 = vrot.slane %v6400_v6, 1  ;;  %v6366_v20 = vpop.f32.mrf.mxu0 }
 0x5fa   :  { %v6398_v63 = vsel %vm6382_vm7, %v6354_v25, %v6390_v9  ;;  %v6367_v60 = vadd.f32 %v6366_v20, %v6302_v26  ;;  %v6395_v34 = vmul.f32 0.1, %v6375_v35  ;;  %vm6387_vm8 = vcmp.ge.f32.partialorder %v6375_v35, 0.0 }
 0x5fb   :  { %v6417_v18 = vsel %vm820_vm2, %v6407_v53, %v6408_v36  ;;  %v6406_v37 = vrot.slane %v6398_v63, 1  ;;  %v14252_v48 = vpop.f32.mrf.mxu0 }
 0x5fc   :  { %v6431_v32 = vmax.f32 %v6399_v44, %v6417_v18  ;;  %vm6385_vm11 = vcmp.ge.f32.partialorder %v6367_v60, 0.0  ;;  %v6393_v29 = vmul.f32 0.1, %v6367_v60  ;;  %v6378_v7 = vadd.f32 %v14252_v48, %v6313_v52 }
 0x5fd   :  { %v6418_v12 = vsel %vm820_vm2, %v6406_v37, %v6407_v53  ;;  %v6419_v3 = vsel %vm820_vm2, %v6405_v49, %v6406_v37  ;;  %v6369_v38 = vpop.f32.mrf.mxu0  ;;  %v6403_v47 = vsel %vm6387_vm8, %v6375_v35, %v6395_v34  ;;  %vm12573_vm8 = vcmp.lt.s32.totalorder %v17732_v11, 30 }
 0x5fe   :  { %6439 = vst [vmem:[#allocation2 + $0x10] sm:$0xff] %v6431_v32  ;;  %v6429_v10 = vmax.f32 %v6397_v61, %v6419_v3  ;;  %v6430_v1 = vmax.f32 %v6398_v63, %v6418_v12  ;;  %v6401_v13 = vsel %vm6385_vm11, %v6367_v60, %v6393_v29  ;;  %v6370_v58 = vadd.f32 %v6369_v38, %v6305_v46  ;;  %v14823_v29 = vld [vmem:[#allocation17 + $0x3b0] sm:$0xff]   ;;  %vm17804_vm11 = vmpackc.low %vm12573_vm8, %vm15507_vm0 }
 0x5ff   :  { %v6409_v54 = vrot.slane %v6401_v13, 1  ;;  %vm6388_vm9 = vcmp.ge.f32.partialorder %v6378_v7, 0.0  ;;  %v6396_v40 = vmul.f32 0.1, %v6378_v7  ;;  %v6411_v59 = vrot.slane %v6403_v47, 1 }
 0x600   :  { %6437 = vst [vmem:[#allocation2] sm:$0xff] %v6429_v10  ;;  %6438 = vst [vmem:[#allocation2 + $0x8] sm:$0xff] %v6430_v1  ;;  %vm6386_vm14 = vcmp.ge.f32.partialorder %v6370_v58, 0.0  ;;  %v6394_v0 = vmul.f32 0.1, %v6370_v58  ;;  %v14824_v10 = vld [vmem:[#allocation17 + $0x3a8] sm:$0xff]  }
 0x601   :  { %v6416_v17 = vsel %vm820_vm2, %v6408_v36, %v6409_v54  ;;  %v6404_v8 = vsel %vm6388_vm9, %v6378_v7, %v6396_v40 }
 0x602   :  { %v6432_v62 = vmax.f32 %v6400_v6, %v6416_v17  ;;  %v6412_v22 = vrot.slane %v6404_v8, 1  ;;  %v6402_v14 = vsel %vm6386_vm14, %v6370_v58, %v6394_v0  ;;  %v14825_v17 = vld [vmem:[#allocation17 + $0x3a0] sm:$0xff]  }
 0x603   :  { %v6410_v5 = vrot.slane %v6402_v14, 1 }
 0x604   :  { %6440 = vst [vmem:[#allocation2 + $0x18] sm:$0xff] %v6432_v62  ;;  %v6413_v39 = vsel %vm820_vm2, %v6411_v59, %v6412_v22  ;;  %v6420_v15 = vsel %vm820_vm2, %v6412_v22, %v6405_v49  ;;  %v14827_v62 = vld [vmem:[#allocation17 + $0x390] sm:$0xff]   ;;  %v14828_v22 = vld [vmem:[#allocation17 + $0x388] sm:$0xff]  }
 0x605   :  { %v6428_v50 = vsel %vm5227_vm5, 0.0, %v6420_v15  ;;  %v6435_v56 = vmax.f32 %v6403_v47, %v6413_v39  ;;  %v6414_v24 = vsel %vm820_vm2, %v6410_v5, %v6411_v59  ;;  %v6415_v31 = vsel %vm820_vm2, %v6409_v54, %v6410_v5  ;;  %v14826_v59 = vld [vmem:[#allocation17 + $0x398] sm:$0xff]  }
 0x606   :  { %v6436_v43 = vmax.f32 %v6404_v8, %v6428_v50  ;;  %v6433_v57 = vmax.f32 %v6401_v13, %v6415_v31  ;;  %v6434_v4 = vmax.f32 %v6402_v14, %v6414_v24  ;;  %vm6576_vm5 = vcmp.ge.s32.totalorder %v17732_v11, 31  ;;  %v14829_v14 = vld [vmem:[#allocation17 + $0x380] sm:$0xff]   ;;  %v14830_v24 = vld [vmem:[#allocation17 + $0x438] sm:$0xff]   ;;  %v14881_v50 = vld [vmem:[#allocation17 + $0x5a8] sm:$0xff]  }
 0x607   :  { %6443 = vst [vmem:[#allocation2 + $0x30] sm:$0xff] %v6435_v56  ;;  %v17734_v23 = vld [vmem:[#allocation2] ss:$2 sm:$0xff]  ;;  %vm12047_vm15 = vmneg %vm6576_vm5  ;;  %13674 = vmatprep.subr.bf16.mxu0 %v14830_v24 }
 0x608   :  { %6444 = vst [vmem:[#allocation2 + $0x38] sm:$0xff] %v6436_v43  ;;  %6441 = vst [vmem:[#allocation2 + $0x20] sm:$0xff] %v6433_v57  ;;  %v6549_v51 = vrot.slane %v17734_v23, 7  ;;  %v6535_v30 = vrot.slane %v17734_v23, 6  ;;  %v6565_v45 = vrot.slane %v17734_v23, 1  ;;  %v6583_v47 = vrot.slane %v17734_v23, 2 }
 0x609   :  { %6442 = vst [vmem:[#allocation2 + $0x28] sm:$0xff] %v6434_v4  ;;  %vm17775_vm7 = vmpackc.low %vm12047_vm15, %vm15507_vm0  ;;  %v14831_v31 = vld [vmem:[#allocation17 + $0x3f8] sm:$0xff]   ;;  %v14834_v4 = vld [vmem:[#allocation17 + $0x430] sm:$0xff]  }
 0x60a   :  { %v14832_v43 = vld [vmem:[#allocation17 + $0x4b8] sm:$0xff]  }
 0x60b   :  { %v6447_v42 = vld [vmem:[#allocation2 + $0x10] ss:$2 sm:$0xff] }
 0x60c   :  { %v6550_v55 = vrot.slane %v6447_v42, 7  ;;  %v6536_v27 = vrot.slane %v6447_v42, 6  ;;  %v6566_v19 = vrot.slane %v6447_v42, 1  ;;  %v6563_v34 = vpack.c.bf16 %v6447_v42, %v17734_v23  ;;  %v14833_v57 = vld [vmem:[#allocation17 + $0x478] sm:$0xff]   ;;  %v14836_v23 = vld [vmem:[#allocation17 + $0x4b0] sm:$0xff]  }
 0x60d   :  { %v6584_v1 = vrot.slane %v6447_v42, 2  ;;  %v14835_v42 = vld [vmem:[#allocation17 + $0x3f0] sm:$0xff]  }
 0x60e   :  { %v6555_v6 = vsel %vm667_vm1, %v6549_v51, %v6550_v55  ;;  %v6541_v9 = vsel %vm3885_vm4, %v6535_v30, %v6536_v27  ;;  %v6571_v35 = vsel %vm820_vm2, %v6565_v45, %v6566_v19 }
 0x60f   :  { %v17738_v44 = vld [vmem:[#allocation2 + $0x30] ss:$2 sm:$0xff]  ;;  %v6589_v0 = vsel %vm4108_vm10, %v6583_v47, %v6584_v1 }
 0x610   :  { %v17741_v25 = vld [vmem:[#allocation2 + $0x20] ss:$2 sm:$0xff]  ;;  %v6538_v33 = vrot.slane %v17738_v44, 6  ;;  %v6552_v61 = vrot.slane %v17738_v44, 7  ;;  %v6568_v53 = vrot.slane %v17738_v44, 1  ;;  %v6586_v5 = vrot.slane %v17738_v44, 2 }
 0x611   :  { %v6567_v41 = vrot.slane %v17741_v25, 1  ;;  %v6551_v26 = vrot.slane %v17741_v25, 7  ;;  %v6537_v3 = vrot.slane %v17741_v25, 6  ;;  %v6585_v38 = vrot.slane %v17741_v25, 2 }
 0x612   :  { %v6556_v36 = vsel %vm667_vm1, %v6552_v61, %v6549_v51  ;;  %v6542_v20 = vsel %vm3885_vm4, %v6538_v33, %v6535_v30  ;;  %v6572_v32 = vsel %vm820_vm2, %v6568_v53, %v6565_v45  ;;  %v6564_v40 = vpack.c.bf16 %v17738_v44, %v17741_v25  ;;  %v14839_v51 = vld [vmem:[#allocation17 + $0x3e8] sm:$0xff]   ;;  %v14842_v30 = vld [vmem:[#allocation17 + $0x420] sm:$0xff]  }
 0x613   :  { %v6570_v63 = vsel %vm820_vm2, %v6566_v19, %v6567_v41  ;;  %v6553_v60 = vsel %vm667_vm1, %v6551_v26, %v6552_v61  ;;  %v12041_v52 = vpack.c.bf16 %v6555_v6, %v6556_v36  ;;  %v12045_v46 = vpack.c.bf16 %v6541_v9, %v6542_v20  ;;  %v14840_v19 = vld [vmem:[#allocation17 + $0x4a8] sm:$0xff]   ;;  %v14844_v25 = vld [vmem:[#allocation17 + $0x4a0] sm:$0xff]   ;;  %v14846_v61 = vld [vmem:[#allocation17 + $0x418] sm:$0xff]  }
 0x614   :  { %v6581_v49 = vpack.c.bf16 %v6570_v63, %v6571_v35  ;;  %v6554_v18 = vsel %vm667_vm1, %v6550_v55, %v6551_v26  ;;  %v6569_v48 = vsel %vm820_vm2, %v6567_v41, %v6568_v53  ;;  %v6539_v13 = vsel %vm3885_vm4, %v6537_v3, %v6538_v33  ;;  %v14837_v55 = vld [vmem:[#allocation17 + $0x470] sm:$0xff]   ;;  %v14841_v44 = vld [vmem:[#allocation17 + $0x468] sm:$0xff]   ;;  %v14843_v45 = vld [vmem:[#allocation17 + $0x3e0] sm:$0xff]  }
 0x615   :  { %v6562_v37 = vpack.c.bf16 %v6553_v60, %v6554_v18  ;;  %12042 = vmatprep.mubr.msk.bf16.mxu1 %vm16694_vm6, %v12041_v52  ;;  %v12049_v7 = vpack.c.bf16 %v6572_v32, %v6569_v48  ;;  %v6540_v58 = vsel %vm3885_vm4, %v6536_v27, %v6537_v3  ;;  %v6588_v54 = vsel %vm4108_vm10, %v6584_v1, %v6585_v38  ;;  %v14838_v27 = vld [vmem:[#allocation17 + $0x428] sm:$0xff]   ;;  %v14845_v33 = vld [vmem:[#allocation17 + $0x460] sm:$0xff]   ;;  %v14847_v41 = vld [vmem:[#allocation17 + $0x3d8] sm:$0xff]  }
 0x616   :  { %6928 = vmatprep.mubr.bf16.mxu0 %v6581_v49  ;;  %12046 = vmatmul.mubr.msk.bf16.vlgmr.msra.gmra.mxu1 %vm16681_vm3, %v12045_v46  ;;  %v6599_v8 = vpack.c.bf16 %v6588_v54, %v6589_v0  ;;  %v6587_v39 = vsel %vm4108_vm10, %v6585_v38, %v6586_v5  ;;  %v6590_v15 = vsel %vm4108_vm10, %v6586_v5, %v6583_v47  ;;  %v14848_v26 = vld [vmem:[#allocation17 + $0x498] sm:$0xff]   ;;  %v14850_v9 = vld [vmem:[#allocation17 + $0x410] sm:$0xff]   ;;  %v14854_v20 = vld [vmem:[#allocation17 + $0x408] sm:$0xff]  }
 0x617   :  { %6929 = vmatmul.mubr.bf16.vlgmr.msra.gmra.mxu0 %v6563_v34  ;;  %14254 = vmatpush3.bf16.msra.mxu1 %v17710_v16  ;;  %v6548_v16 = vpack.c.bf16 %v6539_v13, %v6540_v58  ;;  %v12053_v56 = vpack.c.bf16 %v6590_v15, %v6587_v39  ;;  %v14849_v6 = vld [vmem:[#allocation17 + $0x458] sm:$0xff]   ;;  %v14851_v35 = vld [vmem:[#allocation17 + $0x3d0] sm:$0xff]   ;;  %v14856_v63 = vld [vmem:[#allocation17 + $0x488] sm:$0xff]  }
 0x618   :  { %6887 = vmatprep.mubr.bf16.mxu1 %v6562_v37  ;;  %12050 = vmatprep.mubr.msk.bf16.mxu0 %vm17775_vm7, %v12049_v7  ;;  %v14852_v53 = vld [vmem:[#allocation17 + $0x490] sm:$0xff]   ;;  %v14855_v60 = vld [vmem:[#allocation17 + $0x3c8] sm:$0xff]   ;;  %v14858_v46 = vld [vmem:[#allocation17 + $0x400] sm:$0xff]  }
 0x619   :  { %14255 = vmatprep.subr.bf16.mxu1 %v14823_v29  ;;  %13675 = vmatpush3.bf16.msra.mxu0 %v14831_v31  ;;  %v14853_v36 = vld [vmem:[#allocation17 + $0x450] sm:$0xff]   ;;  %v14857_v52 = vld [vmem:[#allocation17 + $0x448] sm:$0xff]   ;;  %v14860_v49 = vld [vmem:[#allocation17 + $0x480] sm:$0xff]  }
 0x61a   :  { %13676 = vmatprep.subr.bf16.mxu0 %v14834_v4  ;;  %v14859_v18 = vld [vmem:[#allocation17 + $0x3c0] sm:$0xff]   ;;  %v17810_v34 = vld [vmem:[#allocation17 + $0x4f8] sm:$0xff]  }
 0x61b   :  { %14256 = vmatpush3.bf16.msra.mxu1 %v14823_v29  ;;  %v14861_v37 = vld [vmem:[#allocation17 + $0x440] sm:$0xff]  }
 0x61c   :  { %14257 = vmatprep.subr.bf16.mxu1 %v14824_v10 }
 0x61d   :  { %13677 = vmatpush3.bf16.msra.mxu0 %v14835_v42 }
 0x61e   :  { %6888 = vmatmul.mubr.bf16.gmra.mxu1 %v6548_v16  ;;  %13678 = vmatprep.subr.bf16.mxu0 %v14838_v27 }
 0x61f   :  { %6937 = vmatmul.mubr.bf16.gmra.mxu0 %v6564_v40  ;;  %14258 = vmatpush3.bf16.msra.mxu1 %v14824_v10 }
 0x620   :  { %14269 = vmatprep.mubr.bf16.mxu1 %v6599_v8  ;;  %14259 = vmatprep.subr.bf16.mxu1 %v14825_v17 }
 0x621   :  { %13679 = vmatpush3.bf16.msra.mxu0 %v14839_v51 }
 0x622   :  { %13680 = vmatprep.subr.bf16.mxu0 %v14842_v30 }
 0x623   :  { %14260 = vmatpush3.bf16.msra.mxu1 %v14825_v17 }
 0x624   :  { %14261 = vmatprep.subr.bf16.mxu1 %v14826_v59 }
 0x625   :  { %13681 = vmatpush3.bf16.msra.mxu0 %v14843_v45 }
 0x626   :  { %13682 = vmatprep.subr.bf16.mxu0 %v14846_v61 }
 0x627   :  { %14262 = vmatpush3.bf16.msra.mxu1 %v14826_v59  ;;  %v11998_v59 = vld [vmem:[#allocation18 + $0x2] ss:$0 sm:$0xff] }
 0x628   :  { %14263 = vmatprep.subr.bf16.mxu1 %v14827_v62 }
 0x629   :  { %13683 = vmatpush3.bf16.msra.mxu0 %v14847_v41 }
 0x62a   :  { %13684 = vmatprep.subr.bf16.mxu0 %v14850_v9 }
 0x62b   :  { %14264 = vmatpush3.bf16.msra.mxu1 %v14827_v62 }
 0x62c   :  { %14265 = vmatprep.subr.bf16.mxu1 %v14828_v22 }
 0x62d   :  { %13685 = vmatpush3.bf16.msra.mxu0 %v14851_v35 }
 0x62e   :  { %13686 = vmatprep.subr.bf16.mxu0 %v14854_v20 }
 0x62f   :  { %14266 = vmatpush3.bf16.msra.mxu1 %v14828_v22 }
 0x630   :  { %14267 = vmatprep.subr.bf16.mxu1 %v14829_v14 }
 0x631   :  { %13687 = vmatpush3.bf16.msra.mxu0 %v14855_v60 }
 0x632   :  { %13688 = vmatprep.subr.bf16.mxu0 %v14858_v46 }
 0x633   :  { %14268 = vmatpush3.bf16.msra.mxu1 %v14829_v14 }
 0x634   :  { %13702 = vmatprep.subr.bf16.mxu1 %v14832_v43 }
 0x635   :  { %13689 = vmatpush3.bf16.msra.mxu0 %v14859_v18 }
 0x636   :  { %14270 = vmatmul.mubr.msk.bf16.vlgmr.msra.gmra.mxu1 %vm17804_vm11, %v12053_v56  ;;  %14273 = vmatprep.subr.bf16.mxu0 %v17810_v34 }
 0x637   :  { %13703 = vmatpush3.bf16.msra.mxu1 %v14833_v57 }
 0x638   :  { %13704 = vmatprep.subr.bf16.mxu1 %v14836_v23 }
 0x63b   :  { %13705 = vmatpush3.bf16.msra.mxu1 %v14837_v55 }
 0x63c   :  { %13706 = vmatprep.subr.bf16.mxu1 %v14840_v19 }
 0x63f   :  { %13707 = vmatpush3.bf16.msra.mxu1 %v14841_v44 }
 0x640   :  { %13708 = vmatprep.subr.bf16.mxu1 %v14844_v25 }
 0x643   :  { %13709 = vmatpush3.bf16.msra.mxu1 %v14845_v33 }
 0x644   :  { %13710 = vmatprep.subr.bf16.mxu1 %v14848_v26 }
 0x647   :  { %13711 = vmatpush3.bf16.msra.mxu1 %v14849_v6 }
 0x648   :  { %13712 = vmatprep.subr.bf16.mxu1 %v14852_v53 }
 0x64b   :  { %13713 = vmatpush3.bf16.msra.mxu1 %v14853_v36 }
 0x64c   :  { %13714 = vmatprep.subr.bf16.mxu1 %v14856_v63 }
 0x64f   :  { %13715 = vmatpush3.bf16.msra.mxu1 %v14857_v52 }
 0x650   :  { %13716 = vmatprep.subr.bf16.mxu1 %v14860_v49 }
 0x653   :  { %13717 = vmatpush3.bf16.msra.mxu1 %v14861_v37 }
 0x6d6   :  { %v13624_v48 = vpop.f32.mrf.mxu1 }
 0x6d7   :  { %v13652_v32 = vpop.f32.mrf.mxu0 }
 0x6d8   :  { %v13625_v29 = vpop.f32.mrf.mxu1 }
 0x6d9   :  { %v13653_v3 = vpop.f32.mrf.mxu0  ;;  %v13626_v8 = vadd.f32 %v13625_v29, %v13624_v48 }
 0x6da   :  { %v13627_v7 = vpop.f32.mrf.mxu1  ;;  %v13654_v56 = vadd.f32 %v13653_v3, %v13652_v32 }
 0x6db   :  { %v13655_v38 = vpop.f32.mrf.mxu0  ;;  %v6882_v15 = vadd.f32 %v13626_v8, %v11998_v59 }
 0x6dc   :  { %v13628_v10 = vpop.f32.mrf.mxu1 }
 0x6dd   :  { %v13656_v1 = vpop.f32.mrf.mxu0  ;;  %v13629_v5 = vadd.f32 %v13628_v10, %v13627_v7  ;;  %v6931_v55 = vadd.f32 %v13654_v56, %v6882_v15 }
 0x6de   :  { %v13630_v13 = vpop.f32.mrf.mxu1  ;;  %v13657_v4 = vadd.f32 %v13656_v1, %v13655_v38 }
 0x6df   :  { %v13658_v58 = vpop.f32.mrf.mxu0  ;;  %v6885_v57 = vadd.f32 %v13629_v5, %v11998_v59 }
 0x6e0   :  { %v13631_v47 = vpop.f32.mrf.mxu1 }
 0x6e1   :  { %v13659_v54 = vpop.f32.mrf.mxu0  ;;  %v13632_v40 = vadd.f32 %v13631_v47, %v13630_v13  ;;  %v6934_v25 = vadd.f32 %v13657_v4, %v6885_v57  ;;  %v14865_v57 = vld [vmem:[#allocation17 + $0x4e0] sm:$0xff]  }
 0x6e2   :  { %v13633_v16 = vpop.f32.mrf.mxu1  ;;  %v13660_v22 = vadd.f32 %v13659_v54, %v13658_v58 }
 0x6e3   :  { %v13661_v0 = vpop.f32.mrf.mxu0  ;;  %v6890_v62 = vadd.f32 %v13632_v40, %v11998_v59 }
 0x6e4   :  { %v13634_v17 = vpop.f32.mrf.mxu1 }
 0x6e5   :  { %v13635_v14 = vadd.f32 %v13634_v17, %v13633_v16  ;;  %v13662_v39 = vpop.f32.mrf.mxu0  ;;  %v6939_v43 = vadd.f32 %v13660_v22, %v6890_v62 }
 0x6e6   :  { %v13663_v31 = vadd.f32 %v13662_v39, %v13661_v0  ;;  %v14864_v39 = vld [vmem:[#allocation17 + $0x4e8] sm:$0xff]  }
 0x6e7   :  { %v6893_v24 = vadd.f32 %v13635_v14, %v11998_v59  ;;  %v14863_v59 = vld [vmem:[#allocation17 + $0x4f0] sm:$0xff]  }
 0x6e9   :  { %v6942_v51 = vadd.f32 %v13663_v31, %v6893_v24 }
 0x6f6   :  { %v14271_v23 = vpop.f32.mrf.mxu1 }
 0x6f7   :  { %v6988_v42 = vadd.f32 %v14271_v23, %v6939_v43 }
 0x6f8   :  { %v6979_v27 = vpop.f32.mrf.mxu1 }
 0x6f9   :  { %v6980_v19 = vadd.f32 %v6979_v27, %v6931_v55  ;;  %v7000_v44 = vmul.f32 0.1, %v6988_v42  ;;  %vm6996_vm9 = vcmp.ge.f32.partialorder %v6988_v42, 0.0  ;;  %v14867_v55 = vld [vmem:[#allocation17 + $0x4d0] sm:$0xff]   ;;  %v14868_v27 = vld [vmem:[#allocation17 + $0x4c8] sm:$0xff]  }
 0x6fa   :  { %v14272_v30 = vpop.f32.mrf.mxu1 }
 0x6fb   :  { %vm6994_vm14 = vcmp.ge.f32.partialorder %v6980_v19, 0.0  ;;  %v6998_v45 = vmul.f32 0.1, %v6980_v19  ;;  %v6991_v33 = vadd.f32 %v14272_v30, %v6942_v51  ;;  %v17813_v6 = vsel %vm6996_vm9, %v6988_v42, %v7000_v44  ;;  %v14866_v42 = vld [vmem:[#allocation17 + $0x4d8] sm:$0xff]  }
 0x6fc   :  { %v6982_v61 = vpop.f32.mrf.mxu1  ;;  %v7121_v49 = vrot.slane %v17813_v6, 1  ;;  %v7105_v32 = vrot.slane %v17813_v6, 7  ;;  %v7091_v14 = vrot.slane %v17813_v6, 6  ;;  %v7135_v24 = vrot.slane %v17813_v6, 2 }
 0x6fd   :  { %vm6997_vm15 = vcmp.ge.f32.partialorder %v6991_v33, 0.0  ;;  %v7001_v41 = vmul.f32 0.1, %v6991_v33  ;;  %v6983_v26 = vadd.f32 %v6982_v61, %v6934_v25  ;;  %v17815_v9 = vsel %vm6994_vm14, %v6980_v19, %v6998_v45  ;;  %v14869_v19 = vld [vmem:[#allocation17 + $0x4c0] sm:$0xff]   ;;  %v14870_v45 = vld [vmem:[#allocation17 + $0x578] sm:$0xff]  }
 0x6fe   :  { %v7089_v60 = vrot.slane %v17815_v9, 6  ;;  %v7103_v52 = vrot.slane %v17815_v9, 7  ;;  %v7119_v48 = vrot.slane %v17815_v9, 1  ;;  %v7133_v56 = vrot.slane %v17815_v9, 2  ;;  %v14872_v61 = vld [vmem:[#allocation17 + $0x5f8] sm:$0xff]   ;;  %13740 = vmatprep.subr.bf16.mxu1 %v14870_v45 }
 0x6ff   :  { %v17817_v35 = vsel %vm6997_vm15, %v6991_v33, %v7001_v41  ;;  %vm6995_vm8 = vcmp.ge.f32.partialorder %v6983_v26, 0.0  ;;  %v6999_v53 = vmul.f32 0.1, %v6983_v26  ;;  %v14871_v33 = vld [vmem:[#allocation17 + $0x538] sm:$0xff]  }
 0x700   :  { %v7092_v36 = vrot.slane %v17817_v35, 6  ;;  %v7106_v20 = vrot.slane %v17817_v35, 7  ;;  %v7122_v63 = vrot.slane %v17817_v35, 1  ;;  %v7118_v4 = vpack.c.bf16 %v17817_v35, %v17813_v6  ;;  %v14873_v41 = vld [vmem:[#allocation17 + $0x5b8] sm:$0xff]   ;;  %v14875_v6 = vld [vmem:[#allocation17 + $0x530] sm:$0xff]  }
 0x701   :  { %v7003_v46 = vsel %vm6995_vm8, %v6983_v26, %v6999_v53  ;;  %v7136_v51 = vrot.slane %v17817_v35, 2  ;;  %v14874_v26 = vld [vmem:[#allocation17 + $0x570] sm:$0xff]   ;;  %v14878_v53 = vld [vmem:[#allocation17 + $0x568] sm:$0xff]  }
 0x702   :  { %v7090_v18 = vrot.slane %v7003_v46, 6  ;;  %v7104_v37 = vrot.slane %v7003_v46, 7  ;;  %v7096_v29 = vsel %vm3885_vm4, %v7092_v36, %v7089_v60  ;;  %v7110_v3 = vsel %vm667_vm1, %v7106_v20, %v7103_v52  ;;  %v14877_v35 = vld [vmem:[#allocation17 + $0x5b0] sm:$0xff]  }
 0x703   :  { %v7120_v7 = vrot.slane %v7003_v46, 1  ;;  %v7123_v38 = vsel %vm820_vm2, %v7121_v49, %v7122_v63  ;;  %v7126_v58 = vsel %vm820_vm2, %v7122_v63, %v7119_v48  ;;  %v7117_v17 = vpack.c.bf16 %v7003_v46, %v17815_v9  ;;  %v14876_v9 = vld [vmem:[#allocation17 + $0x5f0] sm:$0xff]   ;;  %v14882_v63 = vld [vmem:[#allocation17 + $0x560] sm:$0xff]  }
 0x704   :  { %v7095_v10 = vsel %vm3885_vm4, %v7089_v60, %v7090_v18  ;;  %v7109_v1 = vsel %vm667_vm1, %v7103_v52, %v7104_v37  ;;  %v7108_v13 = vsel %vm667_vm1, %v7104_v37, %v7105_v32  ;;  %v7107_v8 = vsel %vm667_vm1, %v7105_v32, %v7106_v20  ;;  %v14880_v20 = vld [vmem:[#allocation17 + $0x5e8] sm:$0xff]   ;;  %v14884_v60 = vld [vmem:[#allocation17 + $0x5e0] sm:$0xff]   ;;  %v14887_v37 = vld [vmem:[#allocation17 + $0x518] sm:$0xff]  }
 0x705   :  { %v12102_v47 = vpack.c.bf16 %v7095_v10, %v7096_v29  ;;  %v12098_v54 = vpack.c.bf16 %v7109_v1, %v7110_v3  ;;  %v7124_v16 = vsel %vm820_vm2, %v7120_v7, %v7121_v49  ;;  %v7125_v40 = vsel %vm820_vm2, %v7119_v48, %v7120_v7  ;;  %v14883_v52 = vld [vmem:[#allocation17 + $0x520] sm:$0xff]   ;;  %v14890_v48 = vld [vmem:[#allocation17 + $0x550] sm:$0xff]   ;;  %v14889_v32 = vld [vmem:[#allocation17 + $0x598] sm:$0xff]  }
 0x706   :  { %v7131_v0 = vpack.c.bf16 %v7124_v16, %v7125_v40  ;;  %v7116_v62 = vpack.c.bf16 %v7107_v8, %v7108_v13  ;;  %v12106_v22 = vpack.c.bf16 %v7126_v58, %v7123_v38  ;;  %v7134_v5 = vrot.slane %v7003_v46, 2  ;;  %v14886_v46 = vld [vmem:[#allocation17 + $0x558] sm:$0xff]   ;;  %v14885_v49 = vld [vmem:[#allocation17 + $0x5a0] sm:$0xff]   ;;  %v14892_v29 = vld [vmem:[#allocation17 + $0x5d0] sm:$0xff]  }
 0x707   :  { %12099 = vmatprep.mubr.msk.bf16.mxu0 %vm16694_vm6, %v12098_v54  ;;  %v7094_v15 = vsel %vm3885_vm4, %v7090_v18, %v7091_v14  ;;  %v7093_v31 = vsel %vm3885_vm4, %v7091_v14, %v7092_v36  ;;  %v7137_v44 = vsel %vm4108_vm10, %v7135_v24, %v7136_v51  ;;  %v7140_v30 = vsel %vm4108_vm10, %v7136_v51, %v7133_v56  ;;  %v14879_v36 = vld [vmem:[#allocation17 + $0x528] sm:$0xff]   ;;  %v14888_v18 = vld [vmem:[#allocation17 + $0x5d8] sm:$0xff]   ;;  %v14891_v3 = vld [vmem:[#allocation17 + $0x510] sm:$0xff]  }
 0x708   :  { %7474 = vmatprep.mubr.bf16.mxu1 %v7131_v0  ;;  %12103 = vmatmul.mubr.msk.bf16.vlgmr.msra.gmra.mxu0 %vm16681_vm3, %v12102_v47  ;;  %v7139_v12 = vsel %vm4108_vm10, %v7133_v56, %v7134_v5  ;;  %v7102_v43 = vpack.c.bf16 %v7093_v31, %v7094_v15  ;;  %v12110_v25 = vpack.c.bf16 %v7140_v30, %v7137_v44  ;;  %v14894_v7 = vld [vmem:[#allocation17 + $0x548] sm:$0xff]   ;;  %v14893_v38 = vld [vmem:[#allocation17 + $0x590] sm:$0xff]   ;;  %v14898_v13 = vld [vmem:[#allocation17 + $0x540] sm:$0xff]   ;;  %v15508_v40 = vmov 0.0  }
 0x709   :  { %7475 = vmatmul.mubr.bf16.vlgmr.msra.gmra.mxu1 %v7117_v17  ;;  %14274 = vmatpush3.bf16.msra.mxu0 %v17810_v34  ;;  %v7138_v34 = vsel %vm4108_vm10, %v7134_v5, %v7135_v24  ;;  %v14896_v10 = vld [vmem:[#allocation17 + $0x5c8] sm:$0xff]   ;;  %v14900_v47 = vld [vmem:[#allocation17 + $0x5c0] sm:$0xff]  }
 0x70a   :  { %7433 = vmatprep.mubr.bf16.mxu0 %v7116_v62  ;;  %12107 = vmatprep.mubr.msk.bf16.mxu1 %vm17775_vm7, %v12106_v22  ;;  %v7145_v23 = vpack.c.bf16 %v7138_v34, %v7139_v12  ;;  %v14895_v1 = vld [vmem:[#allocation17 + $0x508] sm:$0xff]   ;;  %v14899_v54 = vld [vmem:[#allocation17 + $0x500] sm:$0xff]  }
 0x70b   :  { %14275 = vmatprep.subr.bf16.mxu0 %v14863_v59  ;;  %13741 = vmatpush3.bf16.msra.mxu1 %v14871_v33  ;;  %v14897_v58 = vld [vmem:[#allocation17 + $0x588] sm:$0xff]   ;;  %v14901_v16 = vld [vmem:[#allocation17 + $0x580] sm:$0xff]  }
 0x70c   :  { %13742 = vmatprep.subr.bf16.mxu1 %v14874_v26 }
 0x70d   :  { %14276 = vmatpush3.bf16.msra.mxu0 %v14863_v59 }
 0x70e   :  { %14277 = vmatprep.subr.bf16.mxu0 %v14864_v39 }
 0x70f   :  { %13743 = vmatpush3.bf16.msra.mxu1 %v14875_v6 }
 0x710   :  { %7434 = vmatmul.mubr.bf16.gmra.mxu0 %v7102_v43  ;;  %13744 = vmatprep.subr.bf16.mxu1 %v14878_v53 }
 0x711   :  { %7483 = vmatmul.mubr.bf16.gmra.mxu1 %v7118_v4  ;;  %14278 = vmatpush3.bf16.msra.mxu0 %v14864_v39 }
 0x712   :  { %14289 = vmatprep.mubr.bf16.mxu0 %v7145_v23  ;;  %14279 = vmatprep.subr.bf16.mxu0 %v14865_v57 }
 0x713   :  { %13745 = vmatpush3.bf16.msra.mxu1 %v14879_v36 }
 0x714   :  { %13746 = vmatprep.subr.bf16.mxu1 %v14882_v63 }
 0x715   :  { %14280 = vmatpush3.bf16.msra.mxu0 %v14865_v57  ;;  %v12055_v57 = vld [vmem:[#allocation18 + $0x3] ss:$0 sm:$0xff] }
 0x716   :  { %14281 = vmatprep.subr.bf16.mxu0 %v14866_v42 }
 0x717   :  { %13747 = vmatpush3.bf16.msra.mxu1 %v14883_v52 }
 0x718   :  { %13748 = vmatprep.subr.bf16.mxu1 %v14886_v46 }
 0x719   :  { %14282 = vmatpush3.bf16.msra.mxu0 %v14866_v42 }
 0x71a   :  { %14283 = vmatprep.subr.bf16.mxu0 %v14867_v55 }
 0x71b   :  { %13749 = vmatpush3.bf16.msra.mxu1 %v14887_v37 }
 0x71c   :  { %13750 = vmatprep.subr.bf16.mxu1 %v14890_v48 }
 0x71d   :  { %14284 = vmatpush3.bf16.msra.mxu0 %v14867_v55 }
 0x71e   :  { %14285 = vmatprep.subr.bf16.mxu0 %v14868_v27 }
 0x71f   :  { %13751 = vmatpush3.bf16.msra.mxu1 %v14891_v3 }
 0x720   :  { %13752 = vmatprep.subr.bf16.mxu1 %v14894_v7 }
 0x721   :  { %14286 = vmatpush3.bf16.msra.mxu0 %v14868_v27 }
 0x722   :  { %14287 = vmatprep.subr.bf16.mxu0 %v14869_v19 }
 0x723   :  { %13753 = vmatpush3.bf16.msra.mxu1 %v14895_v1 }
 0x724   :  { %13754 = vmatprep.subr.bf16.mxu1 %v14898_v13 }
 0x725   :  { %14288 = vmatpush3.bf16.msra.mxu0 %v14869_v19 }
 0x726   :  { %13762 = vmatprep.subr.bf16.mxu0 %v14872_v61 }
 0x727   :  { %13755 = vmatpush3.bf16.msra.mxu1 %v14899_v54 }
 0x728   :  { %14290 = vmatmul.mubr.msk.bf16.vlgmr.msra.gmra.mxu0 %vm17804_vm11, %v12110_v25  ;;  %14293 = vmatprep.subr.bf16.mxu1 %v15508_v40 }
 0x729   :  { %13763 = vmatpush3.bf16.msra.mxu0 %v14873_v41 }
 0x72a   :  { %13764 = vmatprep.subr.bf16.mxu0 %v14876_v9 }
 0x72d   :  { %13765 = vmatpush3.bf16.msra.mxu0 %v14877_v35 }
 0x72e   :  { %13766 = vmatprep.subr.bf16.mxu0 %v14880_v20 }
 0x731   :  { %13767 = vmatpush3.bf16.msra.mxu0 %v14881_v50 }
 0x732   :  { %13768 = vmatprep.subr.bf16.mxu0 %v14884_v60 }
 0x735   :  { %13769 = vmatpush3.bf16.msra.mxu0 %v14885_v49 }
 0x736   :  { %13770 = vmatprep.subr.bf16.mxu0 %v14888_v18 }
 0x739   :  { %13771 = vmatpush3.bf16.msra.mxu0 %v14889_v32 }
 0x73a   :  { %13772 = vmatprep.subr.bf16.mxu0 %v14892_v29 }
 0x73d   :  { %13773 = vmatpush3.bf16.msra.mxu0 %v14893_v38 }
 0x73e   :  { %13774 = vmatprep.subr.bf16.mxu0 %v14896_v10 }
 0x741   :  { %13775 = vmatpush3.bf16.msra.mxu0 %v14897_v58 }
 0x742   :  { %13776 = vmatprep.subr.bf16.mxu0 %v14900_v47 }
 0x745   :  { %13777 = vmatpush3.bf16.msra.mxu0 %v14901_v16 }
 0x7c8   :  { %v13690_v0 = vpop.f32.mrf.mxu0 }
 0x7c9   :  { %v13718_v17 = vpop.f32.mrf.mxu1 }
 0x7ca   :  { %v13691_v8 = vpop.f32.mrf.mxu0 }
 0x7cb   :  { %v13719_v62 = vpop.f32.mrf.mxu1  ;;  %v13692_v43 = vadd.f32 %v13691_v8, %v13690_v0 }
 0x7cc   :  { %v13693_v59 = vpop.f32.mrf.mxu0  ;;  %v13720_v44 = vadd.f32 %v13719_v62, %v13718_v17 }
 0x7cd   :  { %v13721_v14 = vpop.f32.mrf.mxu1  ;;  %v7428_v55 = vadd.f32 %v13692_v43, %v12055_v57  ;;  %v14947_v43 = vld [vmem:[#allocation17 + $0x750] sm:$0xff]  }
 0x7ce   :  { %v13694_v22 = vpop.f32.mrf.mxu0 }
 0x7cf   :  { %v13722_v39 = vpop.f32.mrf.mxu1  ;;  %v13695_v27 = vadd.f32 %v13694_v22, %v13693_v59  ;;  %v7477_v26 = vadd.f32 %v13720_v44, %v7428_v55  ;;  %v17887_v59 = vadd.s32 8, %v15626_v28  ;;  %v14902_v55 = vld [vmem:[#allocation17 + $0x638] sm:$0xff]   ;;  %v14904_v44 = vld [vmem:[#allocation17 + $0x628] sm:$0xff]  }
 0x7d0   :  { %v13696_v5 = vpop.f32.mrf.mxu0  ;;  %v13723_v6 = vadd.f32 %v13722_v39, %v13721_v14 }
 0x7d1   :  { %v13724_v56 = vpop.f32.mrf.mxu1  ;;  %v7431_v33 = vadd.f32 %v13695_v27, %v12055_v57  ;;  %vm7677_vm15 = vcmp.ge.s32.totalorder %v17887_v59, 15 }
 0x7d2   :  { %v13697_v15 = vpop.f32.mrf.mxu0 }
 0x7d3   :  { %v13725_v31 = vpop.f32.mrf.mxu1  ;;  %v13698_v34 = vadd.f32 %v13697_v15, %v13696_v5  ;;  %v7480_v60 = vadd.f32 %v13723_v6, %v7431_v33  ;;  %v14908_v33 = vld [vmem:[#allocation17 + $0x608] sm:$0xff]  }
 0x7d4   :  { %v13699_v24 = vpop.f32.mrf.mxu0  ;;  %v13726_v19 = vadd.f32 %v13725_v31, %v13724_v56 }
 0x7d5   :  { %v13727_v4 = vpop.f32.mrf.mxu1  ;;  %v7436_v23 = vadd.f32 %v13698_v34, %v12055_v57 }
 0x7d6   :  { %v13700_v12 = vpop.f32.mrf.mxu0 }
 0x7d7   :  { %v13701_v42 = vadd.f32 %v13700_v12, %v13699_v24  ;;  %v13728_v51 = vpop.f32.mrf.mxu1  ;;  %v7485_v25 = vadd.f32 %v13726_v19, %v7436_v23 }
 0x7d8   :  { %v13729_v61 = vadd.f32 %v13728_v51, %v13727_v4  ;;  %v14903_v51 = vld [vmem:[#allocation17 + $0x630] sm:$0xff]  }
 0x7d9   :  { %v7439_v30 = vadd.f32 %v13701_v42, %v12055_v57 }
 0x7db   :  { %v7488_v36 = vadd.f32 %v13729_v61, %v7439_v30  ;;  %v14905_v30 = vld [vmem:[#allocation17 + $0x620] sm:$0xff]  }
 0x7e8   :  { %v14291_v45 = vpop.f32.mrf.mxu0 }
 0x7e9   :  { %v7534_v41 = vadd.f32 %v14291_v45, %v7485_v25  ;;  %v14906_v25 = vld [vmem:[#allocation17 + $0x618] sm:$0xff]   ;;  %v14907_v45 = vld [vmem:[#allocation17 + $0x610] sm:$0xff]  }
 0x7ea   :  { %v7525_v9 = vpop.f32.mrf.mxu0 }
 0x7eb   :  { %vm7542_vm7 = vcmp.ge.f32.partialorder %v7534_v41, 0.0  ;;  %v7546_v35 = vmul.f32 0.1, %v7534_v41  ;;  %v7526_v53 = vadd.f32 %v7525_v9, %v7477_v26  ;;  %v14909_v26 = vld [vmem:[#allocation17 + $0x600] sm:$0xff]  }
 0x7ec   :  { %v14292_v20 = vpop.f32.mrf.mxu0 }
 0x7ed   :  { %vm7540_vm11 = vcmp.ge.f32.partialorder %v7526_v53, 0.0  ;;  %v7544_v50 = vmul.f32 0.1, %v7526_v53  ;;  %v7537_v63 = vadd.f32 %v14292_v20, %v7488_v36  ;;  %v7550_v52 = vsel %vm7542_vm7, %v7534_v41, %v7546_v35  ;;  %v14910_v36 = vld [vmem:[#allocation17 + $0x6b8] sm:$0xff]   ;;  %v14960_v35 = vld [vmem:[#allocation17 + $0x868] sm:$0xff]  }
 0x7ee   :  { %v7528_v46 = vpop.f32.mrf.mxu0  ;;  %v7554_v29 = vrot.slane %v7550_v52, 1  ;;  %vm15509_vm7 = vmmov 0   ;;  %v14911_v20 = vld [vmem:[#allocation17 + $0x678] sm:$0xff]   ;;  %13793 = vmatprep.subr.bf16.mxu0 %v14910_v36 }
 0x7ef   :  { %v7548_v49 = vsel %vm7540_vm11, %v7526_v53, %v7544_v50  ;;  %vm7543_vm9 = vcmp.ge.f32.partialorder %v7537_v63, 0.0  ;;  %v7547_v18 = vmul.f32 0.1, %v7537_v63  ;;  %v7529_v37 = vadd.f32 %v7528_v46, %v7480_v60  ;;  %v14912_v50 = vld [vmem:[#allocation17 + $0x738] sm:$0xff]   ;;  %v14914_v60 = vld [vmem:[#allocation17 + $0x6b0] sm:$0xff]  }
 0x7f0   :  { %v7552_v3 = vrot.slane %v7548_v49, 1  ;;  %vm12574_vm11 = vcmp.lt.s32.totalorder %v17887_v59, 14  ;;  %v14915_v46 = vld [vmem:[#allocation17 + $0x670] sm:$0xff]  }
 0x7f1   :  { %v7551_v48 = vsel %vm7543_vm9, %v7537_v63, %v7547_v18  ;;  %vm7541_vm14 = vcmp.ge.f32.partialorder %v7529_v37, 0.0  ;;  %v7545_v32 = vmul.f32 0.1, %v7529_v37  ;;  %vm17930_vm9 = vmpackc.low %vm12574_vm11, %vm15507_vm0  ;;  %v14913_v63 = vld [vmem:[#allocation17 + $0x6f8] sm:$0xff]   ;;  %v14918_v18 = vld [vmem:[#allocation17 + $0x6a8] sm:$0xff]   ;;  %vm9586_vm11 = vcmask 1041408  }
 0x7f2   :  { %v7555_v7 = vrot.slane %v7551_v48, 1 }
 0x7f3   :  { %v7549_v38 = vsel %vm7541_vm14, %v7529_v37, %v7545_v32  ;;  %v14920_v37 = vld [vmem:[#allocation17 + $0x728] sm:$0xff]  }
 0x7f4   :  { %v7556_v10 = vsel %vm820_vm2, %v7554_v29, %v7555_v7  ;;  %v7559_v1 = vsel %vm820_vm2, %v7555_v7, %v7552_v3  ;;  %v7553_v13 = vrot.slane %v7549_v38, 1  ;;  %v14921_v32 = vld [vmem:[#allocation17 + $0x6e8] sm:$0xff]   ;;  %v14923_v7 = vld [vmem:[#allocation17 + $0x660] sm:$0xff]  }
 0x7f5   :  { %v7563_v58 = vsel %vm6576_vm5, 0.0, %v7559_v1  ;;  %v7566_v47 = vmax.f32 %v7550_v52, %v7556_v10  ;;  %vm12161_vm5 = vmneg %vm7677_vm15  ;;  %v14916_v52 = vld [vmem:[#allocation17 + $0x730] sm:$0xff]   ;;  %v14926_v10 = vld [vmem:[#allocation17 + $0x698] sm:$0xff]  }
 0x7f6   :  { %v7567_v54 = vmax.f32 %v7551_v48, %v7563_v58  ;;  %v7557_v16 = vsel %vm820_vm2, %v7553_v13, %v7554_v29  ;;  %v7558_v0 = vsel %vm820_vm2, %v7552_v3, %v7553_v13  ;;  %vm17901_vm8 = vmpackc.low %vm12161_vm5, %vm15507_vm0  ;;  %v14919_v48 = vld [vmem:[#allocation17 + $0x668] sm:$0xff]   ;;  %v14922_v29 = vld [vmem:[#allocation17 + $0x6a0] sm:$0xff]  }
 0x7f7   :  { %7570 = vst [vmem:[#allocation2 + $0x10] sm:$0xff] %v7566_v47  ;;  %v7564_v17 = vmax.f32 %v7548_v49, %v7558_v0  ;;  %v7565_v8 = vmax.f32 %v7549_v38, %v7557_v16  ;;  %v14917_v49 = vld [vmem:[#allocation17 + $0x6f0] sm:$0xff]   ;;  %v14924_v3 = vld [vmem:[#allocation17 + $0x720] sm:$0xff]   ;;  %v14927_v1 = vld [vmem:[#allocation17 + $0x658] sm:$0xff]  }
 0x7f8   :  { %7571 = vst [vmem:[#allocation2 + $0x18] sm:$0xff] %v7567_v54  ;;  %v14925_v38 = vld [vmem:[#allocation17 + $0x6e0] sm:$0xff]   ;;  %v14928_v13 = vld [vmem:[#allocation17 + $0x718] sm:$0xff]   ;;  %v14930_v47 = vld [vmem:[#allocation17 + $0x690] sm:$0xff]  }
 0x7f9   :  { %7568 = vst [vmem:[#allocation2] sm:$0xff] %v7564_v17  ;;  %7569 = vst [vmem:[#allocation2 + $0x8] sm:$0xff] %v7565_v8  ;;  %v14929_v58 = vld [vmem:[#allocation17 + $0x6d8] sm:$0xff]   ;;  %v14931_v54 = vld [vmem:[#allocation17 + $0x650] sm:$0xff]  }
 0x7fa   :  { %v14932_v16 = vld [vmem:[#allocation17 + $0x710] sm:$0xff]   ;;  %v14934_v17 = vld [vmem:[#allocation17 + $0x688] sm:$0xff]   ;;  %vm12274_vm5 = vmpackc.low %vm16594_vm12, %vm16594_vm12 }
 0x7fb   :  { %v14933_v0 = vld [vmem:[#allocation17 + $0x6d0] sm:$0xff]   ;;  %v14936_v8 = vld [vmem:[#allocation17 + $0x708] sm:$0xff]  }
 0x7ff   :  { %v7573_v11 = vld [vmem:[#allocation2 + $0x10] ss:$2 sm:$0xff] }
 0x800   :  { %v7572_v62 = vld [vmem:[#allocation2] ss:$2 sm:$0xff]  ;;  %v7658_v22 = vrot.slane %v7573_v11, 6  ;;  %v7665_v14 = vrot.slane %v7573_v11, 7  ;;  %v7673_v5 = vrot.slane %v7573_v11, 1  ;;  %v7682_v41 = vrot.slane %v7573_v11, 2 }
 0x801   :  { %v7664_v39 = vrot.slane %v7572_v62, 7  ;;  %v7672_v15 = vrot.slane %v7572_v62, 1  ;;  %v7657_v56 = vrot.slane %v7572_v62, 6  ;;  %v7671_v19 = vpack.c.bf16 %v7573_v11, %v7572_v62  ;;  %v14935_v11 = vld [vmem:[#allocation17 + $0x648] sm:$0xff]  }
 0x802   :  { %v7681_v61 = vrot.slane %v7572_v62, 2  ;;  %v14937_v62 = vld [vmem:[#allocation17 + $0x6c8] sm:$0xff]  }
 0x803   :  { %v7666_v24 = vsel %vm667_vm1, %v7664_v39, %v7665_v14  ;;  %v7667_v31 = vsel %vm667_vm1, %v7665_v14, %v7664_v39  ;;  %v7674_v34 = vsel %vm820_vm2, %v7672_v15, %v7673_v5  ;;  %v7675_v12 = vsel %vm820_vm2, %v7673_v5, %v7672_v15  ;;  %v14940_v14 = vld [vmem:[#allocation17 + $0x700] sm:$0xff]  }
 0x804   :  { %v12155_v57 = vpack.c.bf16 %v7666_v24, %v7667_v31  ;;  %v12163_v4 = vpack.c.bf16 %v7675_v12, %v7674_v34  ;;  %v7659_v23 = vsel %vm3885_vm4, %v7657_v56, %v7658_v22  ;;  %v7660_v42 = vsel %vm3885_vm4, %v7658_v22, %v7657_v56  ;;  %v14938_v22 = vld [vmem:[#allocation17 + $0x680] sm:$0xff]  }
 0x805   :  { %v12159_v27 = vpack.c.bf16 %v7659_v23, %v7660_v42  ;;  %v7683_v6 = vsel %vm4108_vm10, %v7681_v61, %v7682_v41  ;;  %v7684_v9 = vsel %vm4108_vm10, %v7682_v41, %v7681_v61  ;;  %v14939_v5 = vld [vmem:[#allocation17 + $0x640] sm:$0xff]  }
 0x806   :  { %12156 = vmatprep.mubr.msk.bf16.mxu1 %vm16694_vm6, %v12155_v57  ;;  %12164 = vmatprep.mubr.msk.bf16.mxu0 %vm17901_vm8, %v12163_v4  ;;  %v12167_v53 = vpack.c.bf16 %v7684_v9, %v7683_v6  ;;  %v14941_v39 = vld [vmem:[#allocation17 + $0x6c0] sm:$0xff]  }
 0x807   :  { %12160 = vmatmul.mubr.msk.bf16.vlgmr.msra.gmra.mxu1 %vm16681_vm3, %v12159_v27  ;;  %8010 = vmatmul.mubr.bf16.vlgmr.msra.gmra.mxu0 %v7671_v19  ;;  %v12112_v57 = vld [vmem:[#allocation18 + $0x4] ss:$0 sm:$0xff] }
 0x808   :  { %14294 = vmatpush3.bf16.msra.mxu1 %v14902_v55  ;;  %14309 = vmatprep.mubr.msk.bf16.mxu1 %vm15509_vm7, %v15508_v40 }
 0x809   :  { %14295 = vmatprep.subr.bf16.mxu1 %v15508_v40  ;;  %13794 = vmatpush3.bf16.msra.mxu0 %v14911_v20 }
 0x80a   :  { %13795 = vmatprep.subr.bf16.mxu0 %v14914_v60 }
 0x80c   :  { %14296 = vmatpush3.bf16.msra.mxu1 %v14903_v51 }
 0x80d   :  { %14297 = vmatprep.subr.bf16.mxu1 %v15508_v40  ;;  %13796 = vmatpush3.bf16.msra.mxu0 %v14915_v46 }
 0x80e   :  { %13797 = vmatprep.subr.bf16.mxu0 %v14918_v18 }
 0x810   :  { %14298 = vmatpush3.bf16.msra.mxu1 %v14904_v44 }
 0x811   :  { %14299 = vmatprep.subr.bf16.mxu1 %v15508_v40  ;;  %13798 = vmatpush3.bf16.msra.mxu0 %v14919_v48 }
 0x812   :  { %13799 = vmatprep.subr.bf16.mxu0 %v14922_v29 }
 0x814   :  { %14300 = vmatpush3.bf16.msra.mxu1 %v14905_v30 }
 0x815   :  { %14301 = vmatprep.subr.bf16.mxu1 %v15508_v40  ;;  %13800 = vmatpush3.bf16.msra.mxu0 %v14923_v7  ;;  %v14942_v7 = vld [vmem:[#allocation17 + $0x778] sm:$0xff]  }
 0x816   :  { %13801 = vmatprep.subr.bf16.mxu0 %v14926_v10 }
 0x818   :  { %14302 = vmatpush3.bf16.msra.mxu1 %v14906_v25 }
 0x819   :  { %14303 = vmatprep.subr.bf16.mxu1 %v15508_v40  ;;  %13802 = vmatpush3.bf16.msra.mxu0 %v14927_v1 }
 0x81a   :  { %13803 = vmatprep.subr.bf16.mxu0 %v14930_v47  ;;  %v14944_v47 = vld [vmem:[#allocation17 + $0x768] sm:$0xff]  }
 0x81c   :  { %14304 = vmatpush3.bf16.msra.mxu1 %v14907_v45 }
 0x81d   :  { %14305 = vmatprep.subr.bf16.mxu1 %v15508_v40  ;;  %13804 = vmatpush3.bf16.msra.mxu0 %v14931_v54  ;;  %v14948_v54 = vld [vmem:[#allocation17 + $0x748] sm:$0xff]  }
 0x81e   :  { %13805 = vmatprep.subr.bf16.mxu0 %v14934_v17  ;;  %v14949_v17 = vld [vmem:[#allocation17 + $0x740] sm:$0xff]  }
 0x820   :  { %14306 = vmatpush3.bf16.msra.mxu1 %v14908_v33 }
 0x821   :  { %14307 = vmatprep.subr.bf16.mxu1 %v15508_v40  ;;  %13806 = vmatpush3.bf16.msra.mxu0 %v14935_v11 }
 0x822   :  { %13807 = vmatprep.subr.bf16.mxu0 %v14938_v22  ;;  %v14950_v22 = vld [vmem:[#allocation17 + $0x7f8] sm:$0xff]  }
 0x824   :  { %14308 = vmatpush3.bf16.msra.mxu1 %v14909_v26 }
 0x825   :  { %13815 = vmatprep.subr.bf16.mxu1 %v14912_v50  ;;  %13808 = vmatpush3.bf16.msra.mxu0 %v14939_v5  ;;  %v14952_v5 = vld [vmem:[#allocation17 + $0x878] sm:$0xff]  }
 0x826   :  { %14313 = vmatprep.subr.bf16.mxu0 %v15508_v40 }
 0x827   :  { %14310 = vmatmul.mubr.msk.bf16.vlgmr.msra.gmra.mxu1 %vm17930_vm9, %v12167_v53 }
 0x828   :  { %13816 = vmatpush3.bf16.msra.mxu1 %v14913_v63 }
 0x829   :  { %13817 = vmatprep.subr.bf16.mxu1 %v14916_v52 }
 0x82c   :  { %13818 = vmatpush3.bf16.msra.mxu1 %v14917_v49 }
 0x82d   :  { %13819 = vmatprep.subr.bf16.mxu1 %v14920_v37 }
 0x830   :  { %13820 = vmatpush3.bf16.msra.mxu1 %v14921_v32 }
 0x831   :  { %13821 = vmatprep.subr.bf16.mxu1 %v14924_v3 }
 0x834   :  { %13822 = vmatpush3.bf16.msra.mxu1 %v14925_v38 }
 0x835   :  { %13823 = vmatprep.subr.bf16.mxu1 %v14928_v13 }
 0x838   :  { %13824 = vmatpush3.bf16.msra.mxu1 %v14929_v58  ;;  %v14943_v58 = vld [vmem:[#allocation17 + $0x770] sm:$0xff]  }
 0x839   :  { %13825 = vmatprep.subr.bf16.mxu1 %v14932_v16 }
 0x83c   :  { %13826 = vmatpush3.bf16.msra.mxu1 %v14933_v0 }
 0x83d   :  { %13827 = vmatprep.subr.bf16.mxu1 %v14936_v8 }
 0x840   :  { %13828 = vmatpush3.bf16.msra.mxu1 %v14937_v62 }
 0x841   :  { %13829 = vmatprep.subr.bf16.mxu1 %v14940_v14  ;;  %v14951_v14 = vld [vmem:[#allocation17 + $0x7b8] sm:$0xff]  }
 0x844   :  { %13830 = vmatpush3.bf16.msra.mxu1 %v14941_v39  ;;  %v14953_v39 = vld [vmem:[#allocation17 + $0x838] sm:$0xff]  }
 0x845   :  { %13846 = vmatprep.subr.bf16.mxu1 %v14950_v22 }
 0x8c7   :  { %v13756_v15 = vpop.f32.mrf.mxu1  ;;  %v13778_v24 = vpop.f32.mrf.mxu0 }
 0x8c9   :  { %v13757_v56 = vpop.f32.mrf.mxu1  ;;  %v13779_v34 = vpop.f32.mrf.mxu0 }
 0x8ca   :  { %v13758_v12 = vadd.f32 %v13757_v56, %v13756_v15  ;;  %v13780_v27 = vadd.f32 %v13779_v34, %v13778_v24  ;;  %v14954_v15 = vld [vmem:[#allocation17 + $0x7f0] sm:$0xff]   ;;  %v14958_v34 = vld [vmem:[#allocation17 + $0x7e8] sm:$0xff]  }
 0x8cb   :  { %v13759_v31 = vpop.f32.mrf.mxu1  ;;  %v13781_v23 = vpop.f32.mrf.mxu0  ;;  %v14955_v56 = vld [vmem:[#allocation17 + $0x7b0] sm:$0xff]  }
 0x8cc   :  { %v7971_v42 = vadd.f32 %v13758_v12, %v12112_v57  ;;  %v14956_v24 = vld [vmem:[#allocation17 + $0x870] sm:$0xff]   ;;  %v14959_v12 = vld [vmem:[#allocation17 + $0x7a8] sm:$0xff]  }
 0x8cd   :  { %v13760_v4 = vpop.f32.mrf.mxu1  ;;  %v13782_v19 = vpop.f32.mrf.mxu0 }
 0x8ce   :  { %v13761_v55 = vadd.f32 %v13760_v4, %v13759_v31  ;;  %v8012_v44 = vadd.f32 %v13780_v27, %v7971_v42  ;;  %v13783_v25 = vadd.f32 %v13782_v19, %v13781_v23  ;;  %v14957_v31 = vld [vmem:[#allocation17 + $0x830] sm:$0xff]   ;;  %v14962_v4 = vld [vmem:[#allocation17 + $0x7e0] sm:$0xff]   ;;  %v14966_v27 = vld [vmem:[#allocation17 + $0x7d8] sm:$0xff]  }
 0x8cf   :  { %v14964_v23 = vld [vmem:[#allocation17 + $0x860] sm:$0xff]   ;;  %v14968_v19 = vld [vmem:[#allocation17 + $0x858] sm:$0xff]  }
 0x8d0   :  { %v7974_v51 = vadd.f32 %v13761_v55, %v12112_v57  ;;  %v14961_v57 = vld [vmem:[#allocation17 + $0x828] sm:$0xff]   ;;  %v14963_v42 = vld [vmem:[#allocation17 + $0x7a0] sm:$0xff]  }
 0x8d1   :  { %v14965_v55 = vld [vmem:[#allocation17 + $0x820] sm:$0xff]  }
 0x8d2   :  { %v8015_v41 = vadd.f32 %v13783_v25, %v7974_v51  ;;  %v14967_v51 = vld [vmem:[#allocation17 + $0x798] sm:$0xff]   ;;  %v14972_v25 = vld [vmem:[#allocation17 + $0x850] sm:$0xff]  }
 0x8e7   :  { %v8052_v30 = vpop.f32.mrf.mxu1 }
 0x8e8   :  { %v8053_v45 = vadd.f32 %v8052_v30, %v8012_v44  ;;  %v14969_v44 = vld [vmem:[#allocation17 + $0x818] sm:$0xff]   ;;  %v14970_v30 = vld [vmem:[#allocation17 + $0x7d0] sm:$0xff]  }
 0x8e9   :  { %v14311_v33 = vpop.f32.mrf.mxu1 }
 0x8ea   :  { %vm8059_vm0 = vcmp.ge.f32.partialorder %v8053_v45, 0.0  ;;  %v8061_v61 = vmul.f32 0.1, %v8053_v45  ;;  %v14973_v33 = vld [vmem:[#allocation17 + $0x810] sm:$0xff]  }
 0x8eb   :  { %v8055_v26 = vpop.f32.mrf.mxu1 }
 0x8ec   :  { %v8056_v6 = vadd.f32 %v8055_v26, %v8015_v41  ;;  %v8063_v9 = vsel %vm8059_vm0, %v8053_v45, %v8061_v61  ;;  %v14971_v45 = vld [vmem:[#allocation17 + $0x790] sm:$0xff]   ;;  %v14974_v61 = vld [vmem:[#allocation17 + $0x7c8] sm:$0xff]   ;;  %vm9597_vm0 = vcmask 1042432  }
 0x8ed   :  { %v14312_v53 = vpop.f32.mrf.mxu1  ;;  %v8148_v20 = vrot.slane %v8063_v9, 6  ;;  %v8155_v63 = vrot.slane %v8063_v9, 7  ;;  %v8163_v49 = vrot.slane %v8063_v9, 1  ;;  %v8170_v0 = vrot.slane %v8063_v9, 2  ;;  %v14976_v41 = vld [vmem:[#allocation17 + $0x848] sm:$0xff]  }
 0x8ee   :  { %vm8060_vm14 = vcmp.ge.f32.partialorder %v8056_v6, 0.0  ;;  %v8062_v36 = vmul.f32 0.1, %v8056_v6  ;;  %v14975_v26 = vld [vmem:[#allocation17 + $0x788] sm:$0xff]   ;;  %v14980_v53 = vld [vmem:[#allocation17 + $0x840] sm:$0xff]  }
 0x8f0   :  { %v8064_v50 = vsel %vm8060_vm14, %v8056_v6, %v8062_v36  ;;  %v14977_v6 = vld [vmem:[#allocation17 + $0x808] sm:$0xff]   ;;  %v14979_v36 = vld [vmem:[#allocation17 + $0x780] sm:$0xff]   ;;  %vm18058_vm14 = vmneg %vm9586_vm11 }
 0x8f1   :  { %v8149_v60 = vrot.slane %v8064_v50, 6  ;;  %v8156_v52 = vrot.slane %v8064_v50, 7  ;;  %v8164_v46 = vrot.slane %v8064_v50, 1  ;;  %v8162_v13 = vpack.c.bf16 %v8064_v50, %v8063_v9  ;;  %v14978_v9 = vld [vmem:[#allocation17 + $0x7c0] sm:$0xff]  }
 0x8f2   :  { %v8171_v16 = vrot.slane %v8064_v50, 2 }
 0x8f3   :  { %v8150_v18 = vsel %vm3885_vm4, %v8148_v20, %v8149_v60  ;;  %v8151_v37 = vsel %vm3885_vm4, %v8149_v60, %v8148_v20  ;;  %v8157_v48 = vsel %vm667_vm1, %v8155_v63, %v8156_v52  ;;  %v8158_v32 = vsel %vm667_vm1, %v8156_v52, %v8155_v63  ;;  %v14981_v20 = vld [vmem:[#allocation17 + $0x800] sm:$0xff]  }
 0x8f4   :  { %v12216_v29 = vpack.c.bf16 %v8150_v18, %v8151_v37  ;;  %v12212_v3 = vpack.c.bf16 %v8157_v48, %v8158_v32  ;;  %v8165_v38 = vsel %vm820_vm2, %v8163_v49, %v8164_v46  ;;  %v8166_v10 = vsel %vm820_vm2, %v8164_v46, %v8163_v49  ;;  %v12169_v18 = vld [vmem:[#allocation18 + $0x5] ss:$0 sm:$0xff] }
 0x8f5   :  { %v12220_v1 = vpack.c.bf16 %v8166_v10, %v8165_v38  ;;  %v8172_v8 = vsel %vm4108_vm10, %v8170_v0, %v8171_v16  ;;  %v8173_v11 = vsel %vm4108_vm10, %v8171_v16, %v8170_v0 }
 0x8f6   :  { %12213 = vmatprep.mubr.msk.bf16.mxu0 %vm16694_vm6, %v12212_v3  ;;  %v12224_v62 = vpack.c.bf16 %v8173_v11, %v8172_v8 }
 0x8f7   :  { %12217 = vmatmul.mubr.msk.bf16.vlgmr.msra.gmra.mxu0 %vm16681_vm3, %v12216_v29  ;;  %12221 = vmatprep.mubr.msk.bf16.mxu1 %vm17901_vm8, %v12220_v1  ;;  %vm8654_vm3 = vcmp.ge.s32.totalorder %v15626_v28, 7  ;;  %vm18020_vm8 = vmpackc.low %vm4108_vm10, %vm4108_vm10 }
 0x8f8   :  { %14314 = vmatpush3.bf16.msra.mxu0 %v14942_v7  ;;  %8497 = vmatmul.mubr.bf16.vlgmr.msra.gmra.mxu1 %v8162_v13  ;;  %vm17980_vm6 = vmneg %vm8654_vm3 }
 0x8f9   :  { %14315 = vmatprep.subr.bf16.mxu0 %v15508_v40  ;;  %14329 = vmatprep.mubr.msk.bf16.mxu0 %vm15509_vm7, %v15508_v40 }
 0x8fa   :  { %13847 = vmatpush3.bf16.msra.mxu1 %v14951_v14 }
 0x8fb   :  { %13848 = vmatprep.subr.bf16.mxu1 %v14954_v15 }
 0x8fc   :  { %14316 = vmatpush3.bf16.msra.mxu0 %v14943_v58 }
 0x8fd   :  { %14317 = vmatprep.subr.bf16.mxu0 %v15508_v40 }
 0x8fe   :  { %13849 = vmatpush3.bf16.msra.mxu1 %v14955_v56  ;;  %v15025_v56 = vld [vmem:[#allocation17 + $0x9e0] sm:$0xff]  }
 0x8ff   :  { %13850 = vmatprep.subr.bf16.mxu1 %v14958_v34  ;;  %v15024_v34 = vld [vmem:[#allocation17 + $0x9e8] sm:$0xff]  }
 0x900   :  { %14318 = vmatpush3.bf16.msra.mxu0 %v14944_v47 }
 0x901   :  { %14319 = vmatprep.subr.bf16.mxu0 %v15508_v40 }
 0x902   :  { %13851 = vmatpush3.bf16.msra.mxu1 %v14959_v12 }
 0x903   :  { %13852 = vmatprep.subr.bf16.mxu1 %v14962_v4  ;;  %v15026_v4 = vld [vmem:[#allocation17 + $0x9d8] sm:$0xff]  }
 0x904   :  { %14320 = vmatpush3.bf16.msra.mxu0 %v14945_v2 }
 0x905   :  { %14321 = vmatprep.subr.bf16.mxu0 %v15508_v40 }
 0x906   :  { %13853 = vmatpush3.bf16.msra.mxu1 %v14963_v42  ;;  %v14982_v42 = vld [vmem:[#allocation17 + $0x8b8] sm:$0xff]  }
 0x907   :  { %13854 = vmatprep.subr.bf16.mxu1 %v14966_v27  ;;  %v14983_v27 = vld [vmem:[#allocation17 + $0x8b0] sm:$0xff]  }
 0x908   :  { %14322 = vmatpush3.bf16.msra.mxu0 %v14946_v21 }
 0x909   :  { %14323 = vmatprep.subr.bf16.mxu0 %v15508_v40 }
 0x90a   :  { %13855 = vmatpush3.bf16.msra.mxu1 %v14967_v51  ;;  %v14985_v51 = vld [vmem:[#allocation17 + $0x8a0] sm:$0xff]  }
 0x90b   :  { %13856 = vmatprep.subr.bf16.mxu1 %v14970_v30  ;;  %v14987_v30 = vld [vmem:[#allocation17 + $0x890] sm:$0xff]  }
 0x90c   :  { %14324 = vmatpush3.bf16.msra.mxu0 %v14947_v43 }
 0x90d   :  { %14325 = vmatprep.subr.bf16.mxu0 %v15508_v40 }
 0x90e   :  { %13857 = vmatpush3.bf16.msra.mxu1 %v14971_v45  ;;  %v14989_v45 = vld [vmem:[#allocation17 + $0x880] sm:$0xff]  }
 0x90f   :  { %13858 = vmatprep.subr.bf16.mxu1 %v14974_v61  ;;  %v15039_v61 = vld [vmem:[#allocation17 + $0xa28] sm:$0xff]  }
 0x910   :  { %14326 = vmatpush3.bf16.msra.mxu0 %v14948_v54 }
 0x911   :  { %14327 = vmatprep.subr.bf16.mxu0 %v15508_v40 }
 0x912   :  { %13859 = vmatpush3.bf16.msra.mxu1 %v14975_v26  ;;  %v14990_v26 = vld [vmem:[#allocation17 + $0x938] sm:$0xff]  }
 0x913   :  { %13860 = vmatprep.subr.bf16.mxu1 %v14978_v9  ;;  %v14992_v9 = vld [vmem:[#allocation17 + $0x9b8] sm:$0xff]  }
 0x914   :  { %14328 = vmatpush3.bf16.msra.mxu0 %v14949_v17 }
 0x915   :  { %13868 = vmatprep.subr.bf16.mxu0 %v14952_v5 }
 0x916   :  { %13861 = vmatpush3.bf16.msra.mxu1 %v14979_v36  ;;  %v14994_v36 = vld [vmem:[#allocation17 + $0x930] sm:$0xff]  }
 0x917   :  { %14330 = vmatmul.mubr.msk.bf16.vlgmr.msra.gmra.mxu0 %vm17930_vm9, %v12224_v62  ;;  %14333 = vmatprep.subr.bf16.mxu1 %v15508_v40 }
 0x918   :  { %13869 = vmatpush3.bf16.msra.mxu0 %v14953_v39 }
 0x919   :  { %13870 = vmatprep.subr.bf16.mxu0 %v14956_v24 }
 0x91c   :  { %13871 = vmatpush3.bf16.msra.mxu0 %v14957_v31 }
 0x91d   :  { %13872 = vmatprep.subr.bf16.mxu0 %v14960_v35 }
 0x920   :  { %13873 = vmatpush3.bf16.msra.mxu0 %v14961_v57 }
 0x921   :  { %13874 = vmatprep.subr.bf16.mxu0 %v14964_v23 }
 0x924   :  { %13875 = vmatpush3.bf16.msra.mxu0 %v14965_v55 }
 0x925   :  { %13876 = vmatprep.subr.bf16.mxu0 %v14968_v19  ;;  %v14984_v19 = vld [vmem:[#allocation17 + $0x8a8] sm:$0xff]  }
 0x928   :  { %13877 = vmatpush3.bf16.msra.mxu0 %v14969_v44  ;;  %v14986_v44 = vld [vmem:[#allocation17 + $0x898] sm:$0xff]  }
 0x929   :  { %13878 = vmatprep.subr.bf16.mxu0 %v14972_v25  ;;  %v14988_v25 = vld [vmem:[#allocation17 + $0x888] sm:$0xff]  }
 0x92c   :  { %13879 = vmatpush3.bf16.msra.mxu0 %v14973_v33 }
 0x92d   :  { %13880 = vmatprep.subr.bf16.mxu0 %v14976_v41 }
 0x930   :  { %13881 = vmatpush3.bf16.msra.mxu0 %v14977_v6  ;;  %v14991_v6 = vld [vmem:[#allocation17 + $0x8f8] sm:$0xff]  }
 0x931   :  { %13882 = vmatprep.subr.bf16.mxu0 %v14980_v53  ;;  %v14993_v53 = vld [vmem:[#allocation17 + $0x978] sm:$0xff]  }
 0x934   :  { %13883 = vmatpush3.bf16.msra.mxu0 %v14981_v20  ;;  %v14996_v20 = vld [vmem:[#allocation17 + $0x9b0] sm:$0xff]  }
 0x935   :  { %13899 = vmatprep.subr.bf16.mxu0 %v14990_v26 }
 0x9b7   :  { %v13809_v50 = vpop.f32.mrf.mxu0 }
 0x9b8   :  { %v13831_v60 = vpop.f32.mrf.mxu1 }
 0x9b9   :  { %v13810_v63 = vpop.f32.mrf.mxu0 }
 0x9ba   :  { %v13832_v46 = vpop.f32.mrf.mxu1  ;;  %v13811_v49 = vadd.f32 %v13810_v63, %v13809_v50  ;;  %v14995_v50 = vld [vmem:[#allocation17 + $0x8f0] sm:$0xff]  }
 0x9bb   :  { %v13812_v52 = vpop.f32.mrf.mxu0  ;;  %v13833_v3 = vadd.f32 %v13832_v46, %v13831_v60  ;;  %v14997_v63 = vld [vmem:[#allocation17 + $0x970] sm:$0xff]   ;;  %v14998_v60 = vld [vmem:[#allocation17 + $0x928] sm:$0xff]  }
 0x9bc   :  { %v13834_v48 = vpop.f32.mrf.mxu1  ;;  %v8458_v32 = vadd.f32 %v13811_v49, %v12169_v18  ;;  %v14999_v46 = vld [vmem:[#allocation17 + $0x8e8] sm:$0xff]  }
 0x9bd   :  { %v13813_v37 = vpop.f32.mrf.mxu0  ;;  %v15001_v49 = vld [vmem:[#allocation17 + $0x968] sm:$0xff]  }
 0x9be   :  { %v13814_v29 = vadd.f32 %v13813_v37, %v13812_v52  ;;  %v13835_v7 = vpop.f32.mrf.mxu1  ;;  %v8499_v10 = vadd.f32 %v13833_v3, %v8458_v32  ;;  %v15000_v52 = vld [vmem:[#allocation17 + $0x9a8] sm:$0xff]   ;;  %v15004_v37 = vld [vmem:[#allocation17 + $0x9a0] sm:$0xff]   ;;  %v15008_v3 = vld [vmem:[#allocation17 + $0x998] sm:$0xff]  }
 0x9bf   :  { %v13836_v13 = vadd.f32 %v13835_v7, %v13834_v48  ;;  %v15003_v48 = vld [vmem:[#allocation17 + $0x8e0] sm:$0xff]   ;;  %v15007_v7 = vld [vmem:[#allocation17 + $0x8d8] sm:$0xff]  }
 0x9c0   :  { %v8461_v38 = vadd.f32 %v13814_v29, %v12169_v18  ;;  %v15002_v18 = vld [vmem:[#allocation17 + $0x920] sm:$0xff]   ;;  %v15006_v29 = vld [vmem:[#allocation17 + $0x918] sm:$0xff]  }
 0x9c1   :  { %v15005_v32 = vld [vmem:[#allocation17 + $0x960] sm:$0xff]  }
 0x9c2   :  { %v8502_v21 = vadd.f32 %v13836_v13, %v8461_v38  ;;  %v15009_v38 = vld [vmem:[#allocation17 + $0x958] sm:$0xff]   ;;  %v15011_v13 = vld [vmem:[#allocation17 + $0x8d0] sm:$0xff]  }
 0x9d7   :  { %v8539_v1 = vpop.f32.mrf.mxu0 }
 0x9d8   :  { %v8540_v58 = vadd.f32 %v8539_v1, %v8499_v10  ;;  %v15010_v10 = vld [vmem:[#allocation17 + $0x910] sm:$0xff]  }
 0x9d9   :  { %v14331_v47 = vpop.f32.mrf.mxu0  ;;  %v15012_v1 = vld [vmem:[#allocation17 + $0x990] sm:$0xff]  }
 0x9da   :  { %v8548_v2 = vmul.f32 0.1, %v8540_v58  ;;  %vm8546_vm1 = vcmp.ge.f32.partialorder %v8540_v58, 0.0  ;;  %v15014_v47 = vld [vmem:[#allocation17 + $0x908] sm:$0xff]  }
 0x9db   :  { %v8542_v43 = vpop.f32.mrf.mxu0 }
 0x9dc   :  { %v8543_v54 = vadd.f32 %v8542_v43, %v8502_v21  ;;  %v8550_v0 = vsel %vm8546_vm1, %v8540_v58, %v8548_v2  ;;  %v15013_v58 = vld [vmem:[#allocation17 + $0x950] sm:$0xff]   ;;  %v15015_v2 = vld [vmem:[#allocation17 + $0x8c8] sm:$0xff]   ;;  %v15018_v43 = vld [vmem:[#allocation17 + $0x900] sm:$0xff]  }
 0x9dd   :  { %v14332_v16 = vpop.f32.mrf.mxu0  ;;  %v8552_v11 = vrot.slane %v8550_v0, 1  ;;  %v15016_v21 = vld [vmem:[#allocation17 + $0x988] sm:$0xff]  }
 0x9de   :  { %vm8547_vm4 = vcmp.ge.f32.partialorder %v8543_v54, 0.0  ;;  %v8549_v17 = vmul.f32 0.1, %v8543_v54  ;;  %v15019_v16 = vld [vmem:[#allocation17 + $0x8c0] sm:$0xff]  }
 0x9e0   :  { %v8551_v8 = vsel %vm8547_vm4, %v8543_v54, %v8549_v17  ;;  %v15017_v54 = vld [vmem:[#allocation17 + $0x948] sm:$0xff]   ;;  %v15021_v17 = vld [vmem:[#allocation17 + $0x940] sm:$0xff]   ;;  %vm18068_vm4 = vmpackc.low %vm9597_vm0, %vm9597_vm0 }
 0x9e1   :  { %v8553_v62 = vrot.slane %v8551_v8, 1 }
 0x9e3   :  { %v8554_v22 = vsel %vm820_vm2, %v8552_v11, %v8553_v62  ;;  %v8555_v14 = vsel %vm820_vm2, %v8553_v62, %v8552_v11  ;;  %vm12269_vm2 = vmpackc.low %vm16631_vm13, %vm16631_vm13  ;;  %vm9591_vm13 = vcmask 1040384  }
 0x9e4   :  { %v8557_v5 = vsel %vm7677_vm15, 0.0, %v8555_v14  ;;  %v8558_v39 = vmax.f32 %v8550_v0, %v8554_v22  ;;  %vm12279_vm15 = vmpackc.low %vm17980_vm6, %vm17980_vm6  ;;  %v15020_v0 = vld [vmem:[#allocation17 + $0x980] sm:$0xff]  }
 0x9e5   :  { %v8559_v15 = vmax.f32 %v8551_v8, %v8557_v5  ;;  %vm12389_vm9 = vmneg %vm9591_vm13 }
 0x9e6   :  { %8560 = vst [vmem:[#allocation2] sm:$0xff] %v8558_v39  ;;  %vm18062_vm1 = vmpackc.low %vm12389_vm9, %vm12389_vm9 }
 0x9e7   :  { %8561 = vst [vmem:[#allocation2 + $0x8] sm:$0xff] %v8559_v15  ;;  %vm18095_vm6 = vmpackc.low %vm9586_vm11, %vm9586_vm11 }
 0x9ee   :  { %v8562_v24 = vld [vmem:[#allocation2] ss:$2 sm:$0xff] }
 0x9ef   :  { %v8649_v31 = vrot.slane %v8562_v24, 7  ;;  %v8653_v59 = vrot.slane %v8562_v24, 1  ;;  %v8646_v12 = vrot.slane %v8562_v24, 6  ;;  %v8652_v55 = vpack.c.bf16 %v8562_v24, %v8562_v24 }
 0x9f0   :  { %v8657_v33 = vrot.slane %v8562_v24, 2 }
 0x9f1   :  { %v12270_v35 = vpack.c.bf16 %v8649_v31, %v8649_v31  ;;  %v12280_v57 = vpack.c.bf16 %v8653_v59, %v8653_v59  ;;  %v12275_v23 = vpack.c.bf16 %v8646_v12, %v8646_v12  ;;  %v12226_v31 = vld [vmem:[#allocation18 + $0x6] ss:$0 sm:$0xff] }
 0x9f2   :  { %v12285_v41 = vpack.c.bf16 %v8657_v33, %v8657_v33 }
 0x9f3   :  { %12271 = vmatprep.mubr.msk.bf16.mxu1 %vm12269_vm2, %v12270_v35  ;;  %12281 = vmatprep.mubr.msk.bf16.mxu0 %vm12279_vm15, %v12280_v57 }
 0x9f4   :  { %12276 = vmatmul.mubr.msk.bf16.vlgmr.msra.gmra.mxu1 %vm12274_vm5, %v12275_v23  ;;  %8980 = vmatmul.mubr.bf16.vlgmr.msra.gmra.mxu0 %v8652_v55 }
 0x9f5   :  { %14334 = vmatpush3.bf16.msra.mxu1 %v14982_v42  ;;  %14349 = vmatprep.mubr.msk.bf16.mxu1 %vm15509_vm7, %v15508_v40 }
 0x9f6   :  { %14335 = vmatprep.subr.bf16.mxu1 %v15508_v40  ;;  %13900 = vmatpush3.bf16.msra.mxu0 %v14991_v6 }
 0x9f7   :  { %13901 = vmatprep.subr.bf16.mxu0 %v14994_v36  ;;  %v15028_v36 = vld [vmem:[#allocation17 + $0x9c8] sm:$0xff]  }
 0x9f9   :  { %14336 = vmatpush3.bf16.msra.mxu1 %v14983_v27 }
 0x9fa   :  { %14337 = vmatprep.subr.bf16.mxu1 %v15508_v40  ;;  %13902 = vmatpush3.bf16.msra.mxu0 %v14995_v50 }
 0x9fb   :  { %13903 = vmatprep.subr.bf16.mxu0 %v14998_v60  ;;  %v15030_v60 = vld [vmem:[#allocation17 + $0xa78] sm:$0xff]  }
 0x9fd   :  { %14338 = vmatpush3.bf16.msra.mxu1 %v14984_v19 }
 0x9fe   :  { %14339 = vmatprep.subr.bf16.mxu1 %v15508_v40  ;;  %13904 = vmatpush3.bf16.msra.mxu0 %v14999_v46  ;;  %v15032_v46 = vld [vmem:[#allocation17 + $0xaf8] sm:$0xff]  }
 0x9ff   :  { %13905 = vmatprep.subr.bf16.mxu0 %v15002_v18  ;;  %v15034_v18 = vld [vmem:[#allocation17 + $0xa70] sm:$0xff]  }
 0xa01   :  { %14340 = vmatpush3.bf16.msra.mxu1 %v14985_v51 }
 0xa02   :  { %14341 = vmatprep.subr.bf16.mxu1 %v15508_v40  ;;  %13906 = vmatpush3.bf16.msra.mxu0 %v15003_v48  ;;  %v15035_v48 = vld [vmem:[#allocation17 + $0xa30] sm:$0xff]  }
 0xa03   :  { %13907 = vmatprep.subr.bf16.mxu0 %v15006_v29  ;;  %v15038_v29 = vld [vmem:[#allocation17 + $0xa68] sm:$0xff]  }
 0xa05   :  { %14342 = vmatpush3.bf16.msra.mxu1 %v14986_v44 }
 0xa06   :  { %14343 = vmatprep.subr.bf16.mxu1 %v15508_v40  ;;  %13908 = vmatpush3.bf16.msra.mxu0 %v15007_v7  ;;  %v15041_v7 = vld [vmem:[#allocation17 + $0xaa8] sm:$0xff]  }
 0xa07   :  { %13909 = vmatprep.subr.bf16.mxu0 %v15010_v10  ;;  %v15044_v10 = vld [vmem:[#allocation17 + $0xae0] sm:$0xff]  }
 0xa09   :  { %14344 = vmatpush3.bf16.msra.mxu1 %v14987_v30 }
 0xa0a   :  { %14345 = vmatprep.subr.bf16.mxu1 %v15508_v40  ;;  %13910 = vmatpush3.bf16.msra.mxu0 %v15011_v13  ;;  %v15045_v13 = vld [vmem:[#allocation17 + $0xaa0] sm:$0xff]  }
 0xa0b   :  { %13911 = vmatprep.subr.bf16.mxu0 %v15014_v47  ;;  %v15048_v47 = vld [vmem:[#allocation17 + $0xad8] sm:$0xff]  }
 0xa0d   :  { %14346 = vmatpush3.bf16.msra.mxu1 %v14988_v25 }
 0xa0e   :  { %14347 = vmatprep.subr.bf16.mxu1 %v15508_v40  ;;  %13912 = vmatpush3.bf16.msra.mxu0 %v15015_v2  ;;  %v15047_v2 = vld [vmem:[#allocation17 + $0xa18] sm:$0xff]  }
 0xa0f   :  { %13913 = vmatprep.subr.bf16.mxu0 %v15018_v43  ;;  %v15050_v43 = vld [vmem:[#allocation17 + $0xa50] sm:$0xff]  }
 0xa11   :  { %14348 = vmatpush3.bf16.msra.mxu1 %v14989_v45 }
 0xa12   :  { %13921 = vmatprep.subr.bf16.mxu1 %v14992_v9  ;;  %13914 = vmatpush3.bf16.msra.mxu0 %v15019_v16  ;;  %v15023_v9 = vld [vmem:[#allocation17 + $0x9f0] sm:$0xff]  }
 0xa13   :  { %14353 = vmatprep.subr.bf16.mxu0 %v15508_v40  ;;  %v15051_v16 = vld [vmem:[#allocation17 + $0xa10] sm:$0xff]  }
 0xa14   :  { %14350 = vmatmul.mubr.msk.bf16.vlgmr.msra.gmra.mxu1 %vm18020_vm8, %v12285_v41  ;;  %v15022_v41 = vld [vmem:[#allocation17 + $0x9f8] sm:$0xff]  }
 0xa15   :  { %13922 = vmatpush3.bf16.msra.mxu1 %v14993_v53  ;;  %v15027_v53 = vld [vmem:[#allocation17 + $0x9d0] sm:$0xff]  }
 0xa16   :  { %13923 = vmatprep.subr.bf16.mxu1 %v14996_v20  ;;  %v15029_v20 = vld [vmem:[#allocation17 + $0x9c0] sm:$0xff]  }
 0xa19   :  { %13924 = vmatpush3.bf16.msra.mxu1 %v14997_v63 }
 0xa1a   :  { %13925 = vmatprep.subr.bf16.mxu1 %v15000_v52  ;;  %v15031_v52 = vld [vmem:[#allocation17 + $0xa38] sm:$0xff]  }
 0xa1d   :  { %13926 = vmatpush3.bf16.msra.mxu1 %v15001_v49  ;;  %v15033_v49 = vld [vmem:[#allocation17 + $0xab8] sm:$0xff]  }
 0xa1e   :  { %13927 = vmatprep.subr.bf16.mxu1 %v15004_v37  ;;  %v15036_v37 = vld [vmem:[#allocation17 + $0xaf0] sm:$0xff]  }
 0xa21   :  { %13928 = vmatpush3.bf16.msra.mxu1 %v15005_v32  ;;  %v15037_v32 = vld [vmem:[#allocation17 + $0xab0] sm:$0xff]  }
 0xa22   :  { %13929 = vmatprep.subr.bf16.mxu1 %v15008_v3  ;;  %v15040_v3 = vld [vmem:[#allocation17 + $0xae8] sm:$0xff]  }
 0xa25   :  { %13930 = vmatpush3.bf16.msra.mxu1 %v15009_v38  ;;  %v15042_v38 = vld [vmem:[#allocation17 + $0xa60] sm:$0xff]  }
 0xa26   :  { %13931 = vmatprep.subr.bf16.mxu1 %v15012_v1  ;;  %v15043_v1 = vld [vmem:[#allocation17 + $0xa20] sm:$0xff]  }
 0xa29   :  { %13932 = vmatpush3.bf16.msra.mxu1 %v15013_v58  ;;  %v15046_v58 = vld [vmem:[#allocation17 + $0xa58] sm:$0xff]  }
 0xa2a   :  { %13933 = vmatprep.subr.bf16.mxu1 %v15016_v21  ;;  %v15049_v21 = vld [vmem:[#allocation17 + $0xa98] sm:$0xff]  }
 0xa2d   :  { %13934 = vmatpush3.bf16.msra.mxu1 %v15017_v54  ;;  %v15052_v54 = vld [vmem:[#allocation17 + $0xad0] sm:$0xff]  }
 0xa2e   :  { %13935 = vmatprep.subr.bf16.mxu1 %v15020_v0  ;;  %v15053_v0 = vld [vmem:[#allocation17 + $0xa90] sm:$0xff]  }
 0xa31   :  { %13936 = vmatpush3.bf16.msra.mxu1 %v15021_v17  ;;  %v15054_v17 = vld [vmem:[#allocation17 + $0xa48] sm:$0xff]  }
 0xa32   :  { %13952 = vmatprep.subr.bf16.mxu1 %v15030_v60 }
 0xab4   :  { %v13862_v8 = vpop.f32.mrf.mxu1  ;;  %v13884_v11 = vpop.f32.mrf.mxu0 }
 0xab6   :  { %v13863_v62 = vpop.f32.mrf.mxu1  ;;  %v13885_v22 = vpop.f32.mrf.mxu0 }
 0xab7   :  { %v13864_v24 = vadd.f32 %v13863_v62, %v13862_v8  ;;  %v13886_v12 = vadd.f32 %v13885_v22, %v13884_v11  ;;  %v15056_v8 = vld [vmem:[#allocation17 + $0xac8] sm:$0xff]   ;;  %v15058_v22 = vld [vmem:[#allocation17 + $0xa40] sm:$0xff]  }
 0xab8   :  { %v13865_v14 = vpop.f32.mrf.mxu1  ;;  %v13887_v5 = vpop.f32.mrf.mxu0  ;;  %v15055_v11 = vld [vmem:[#allocation17 + $0xa08] sm:$0xff]  }
 0xab9   :  { %v8942_v59 = vadd.f32 %v13864_v24, %v12226_v31  ;;  %v15057_v62 = vld [vmem:[#allocation17 + $0xa88] sm:$0xff]   ;;  %v15060_v14 = vld [vmem:[#allocation17 + $0xac0] sm:$0xff]  }
 0xaba   :  { %v13866_v39 = vpop.f32.mrf.mxu1  ;;  %v13888_v15 = vpop.f32.mrf.mxu0  ;;  %v15059_v5 = vld [vmem:[#allocation17 + $0xa00] sm:$0xff]  }
 0xabb   :  { %v8982_v35 = vadd.f32 %v13886_v12, %v8942_v59  ;;  %v15061_v39 = vld [vmem:[#allocation17 + $0xa80] sm:$0xff]  }
 0xad4   :  { %v9021_v57 = vpop.f32.mrf.mxu1 }
 0xad5   :  { %v9022_v23 = vadd.f32 %v9021_v57, %v8982_v35 }
 0xad6   :  { %v14351_v42 = vpop.f32.mrf.mxu1 }
 0xad7   :  { %vm9027_vm10 = vcmp.ge.f32.partialorder %v9022_v23, 0.0  ;;  %v9028_v55 = vmul.f32 0.1, %v9022_v23 }
 0xad8   :  { %v9024_v27 = vpop.f32.mrf.mxu1 }
 0xad9   :  { %v9029_v19 = vsel %vm9027_vm10, %v9022_v23, %v9028_v55  ;;  %v12287_v55 = vld [vmem:[#allocation18 + $0x7] ss:$0 sm:$0xff]  ;;  %vm11492_vm10 = vcmask 123904  }
 0xada   :  { %v9113_v51 = vrot.slane %v9029_v19, 6  ;;  %v14352_v44 = vpop.f32.mrf.mxu1  ;;  %v9116_v30 = vrot.slane %v9029_v19, 7  ;;  %v9120_v25 = vrot.slane %v9029_v19, 1  ;;  %v9119_v6 = vpack.c.bf16 %v9029_v19, %v9029_v19 }
 0xadb   :  { %v9123_v50 = vrot.slane %v9029_v19, 2 }
 0xadc   :  { %v12336_v45 = vpack.c.bf16 %v9113_v51, %v9113_v51  ;;  %v12331_v33 = vpack.c.bf16 %v9116_v30, %v9116_v30  ;;  %v12341_v26 = vpack.c.bf16 %v9120_v25, %v9120_v25 }
 0xadd   :  { %v12346_v63 = vpack.c.bf16 %v9123_v50, %v9123_v50  ;;  %v15105_v50 = vld [vmem:[#allocation17 + $0xc60] sm:$0xff]  }
 0xade   :  { %12332 = vmatprep.mubr.msk.bf16.mxu0 %vm12269_vm2, %v12331_v33  ;;  %12342 = vmatprep.mubr.msk.bf16.mxu1 %vm12279_vm15, %v12341_v26 }
 0xadf   :  { %12337 = vmatmul.mubr.msk.bf16.vlgmr.msra.gmra.mxu0 %vm12274_vm5, %v12336_v45  ;;  %9445 = vmatmul.mubr.bf16.vlgmr.msra.gmra.mxu1 %v9119_v6  ;;  %vm18126_vm5 = vmpackc.low %vm9591_vm13, %vm9591_vm13 }
 0xae0   :  { %14354 = vmatpush3.bf16.msra.mxu0 %v15022_v41  ;;  %14369 = vmatprep.mubr.msk.bf16.mxu0 %vm15509_vm7, %v15508_v40 }
 0xae1   :  { %14355 = vmatprep.subr.bf16.mxu0 %v15508_v40  ;;  %13953 = vmatpush3.bf16.msra.mxu1 %v15031_v52 }
 0xae2   :  { %13954 = vmatprep.subr.bf16.mxu1 %v15034_v18  ;;  %v15063_v18 = vld [vmem:[#allocation17 + $0xb30] sm:$0xff]  }
 0xae4   :  { %14356 = vmatpush3.bf16.msra.mxu0 %v15023_v9 }
 0xae5   :  { %14357 = vmatprep.subr.bf16.mxu0 %v15508_v40  ;;  %13955 = vmatpush3.bf16.msra.mxu1 %v15035_v48  ;;  %v15065_v48 = vld [vmem:[#allocation17 + $0xb20] sm:$0xff]  }
 0xae6   :  { %13956 = vmatprep.subr.bf16.mxu1 %v15038_v29  ;;  %v15067_v29 = vld [vmem:[#allocation17 + $0xb10] sm:$0xff]  }
 0xae8   :  { %14358 = vmatpush3.bf16.msra.mxu0 %v15024_v34 }
 0xae9   :  { %14359 = vmatprep.subr.bf16.mxu0 %v15508_v40  ;;  %13957 = vmatpush3.bf16.msra.mxu1 %v15039_v61  ;;  %v15068_v61 = vld [vmem:[#allocation17 + $0xb08] sm:$0xff]  }
 0xaea   :  { %13958 = vmatprep.subr.bf16.mxu1 %v15042_v38  ;;  %v15119_v38 = vld [vmem:[#allocation17 + $0xca8] sm:$0xff]  }
 0xaec   :  { %14360 = vmatpush3.bf16.msra.mxu0 %v15025_v56 }
 0xaed   :  { %14361 = vmatprep.subr.bf16.mxu0 %v15508_v40  ;;  %13959 = vmatpush3.bf16.msra.mxu1 %v15043_v1  ;;  %v15070_v1 = vld [vmem:[#allocation17 + $0xbb8] sm:$0xff]  }
 0xaee   :  { %13960 = vmatprep.subr.bf16.mxu1 %v15046_v58  ;;  %v15072_v58 = vld [vmem:[#allocation17 + $0xc38] sm:$0xff]  }
 0xaf0   :  { %14362 = vmatpush3.bf16.msra.mxu0 %v15026_v4  ;;  %v15106_v4 = vld [vmem:[#allocation17 + $0xc58] sm:$0xff]  }
 0xaf1   :  { %14363 = vmatprep.subr.bf16.mxu0 %v15508_v40  ;;  %13961 = vmatpush3.bf16.msra.mxu1 %v15047_v2  ;;  %v15074_v2 = vld [vmem:[#allocation17 + $0xbb0] sm:$0xff]  }
 0xaf2   :  { %13962 = vmatprep.subr.bf16.mxu1 %v15050_v43  ;;  %v15075_v43 = vld [vmem:[#allocation17 + $0xb70] sm:$0xff]  }
 0xaf4   :  { %14364 = vmatpush3.bf16.msra.mxu0 %v15027_v53 }
 0xaf5   :  { %14365 = vmatprep.subr.bf16.mxu0 %v15508_v40  ;;  %13963 = vmatpush3.bf16.msra.mxu1 %v15051_v16  ;;  %v15078_v16 = vld [vmem:[#allocation17 + $0xba8] sm:$0xff]  }
 0xaf6   :  { %13964 = vmatprep.subr.bf16.mxu1 %v15054_v17  ;;  %v15079_v17 = vld [vmem:[#allocation17 + $0xb68] sm:$0xff]  }
 0xaf8   :  { %14366 = vmatpush3.bf16.msra.mxu0 %v15028_v36  ;;  %v15185_v36 = vld [vmem:[#allocation17 + $0xee0] sm:$0xff]  }
 0xaf9   :  { %14367 = vmatprep.subr.bf16.mxu0 %v15508_v40  ;;  %13965 = vmatpush3.bf16.msra.mxu1 %v15055_v11  ;;  %v15082_v11 = vld [vmem:[#allocation17 + $0xba0] sm:$0xff]  }
 0xafa   :  { %13966 = vmatprep.subr.bf16.mxu1 %v15058_v22  ;;  %v15083_v22 = vld [vmem:[#allocation17 + $0xb60] sm:$0xff]  }
 0xafc   :  { %14368 = vmatpush3.bf16.msra.mxu0 %v15029_v20 }
 0xafd   :  { %13974 = vmatprep.subr.bf16.mxu0 %v15032_v46  ;;  %13967 = vmatpush3.bf16.msra.mxu1 %v15059_v5  ;;  %v15062_v46 = vld [vmem:[#allocation17 + $0xb38] sm:$0xff]  }
 0xafe   :  { %14373 = vmatprep.subr.bf16.mxu1 %v15508_v40  ;;  %v15086_v5 = vld [vmem:[#allocation17 + $0xb98] sm:$0xff]  }
 0xaff   :  { %14370 = vmatmul.mubr.msk.bf16.vlgmr.msra.gmra.mxu0 %vm18020_vm8, %v12346_v63 }
 0xb00   :  { %13975 = vmatpush3.bf16.msra.mxu0 %v15033_v49 }
 0xb01   :  { %13976 = vmatprep.subr.bf16.mxu0 %v15036_v37  ;;  %v15064_v37 = vld [vmem:[#allocation17 + $0xb28] sm:$0xff]  }
 0xb04   :  { %13977 = vmatpush3.bf16.msra.mxu0 %v15037_v32  ;;  %v15066_v32 = vld [vmem:[#allocation17 + $0xb18] sm:$0xff]  }
 0xb05   :  { %13978 = vmatprep.subr.bf16.mxu0 %v15040_v3  ;;  %v15069_v3 = vld [vmem:[#allocation17 + $0xb00] sm:$0xff]  }
 0xb08   :  { %13979 = vmatpush3.bf16.msra.mxu0 %v15041_v7 }
 0xb09   :  { %13980 = vmatprep.subr.bf16.mxu0 %v15044_v10 }
 0xb0c   :  { %13981 = vmatpush3.bf16.msra.mxu0 %v15045_v13  ;;  %v15071_v13 = vld [vmem:[#allocation17 + $0xb78] sm:$0xff]  }
 0xb0d   :  { %13982 = vmatprep.subr.bf16.mxu0 %v15048_v47  ;;  %v15073_v47 = vld [vmem:[#allocation17 + $0xbf8] sm:$0xff]  }
 0xb10   :  { %13983 = vmatpush3.bf16.msra.mxu0 %v15049_v21  ;;  %v15076_v21 = vld [vmem:[#allocation17 + $0xc30] sm:$0xff]  }
 0xb11   :  { %13984 = vmatprep.subr.bf16.mxu0 %v15052_v54  ;;  %v15077_v54 = vld [vmem:[#allocation17 + $0xbf0] sm:$0xff]  }
 0xb14   :  { %13985 = vmatpush3.bf16.msra.mxu0 %v15053_v0  ;;  %v15080_v0 = vld [vmem:[#allocation17 + $0xc28] sm:$0xff]  }
 0xb15   :  { %13986 = vmatprep.subr.bf16.mxu0 %v15056_v8  ;;  %v15081_v8 = vld [vmem:[#allocation17 + $0xbe8] sm:$0xff]  }
 0xb18   :  { %13987 = vmatpush3.bf16.msra.mxu0 %v15057_v62  ;;  %v15084_v62 = vld [vmem:[#allocation17 + $0xc20] sm:$0xff]  }
 0xb19   :  { %13988 = vmatprep.subr.bf16.mxu0 %v15060_v14  ;;  %v15085_v14 = vld [vmem:[#allocation17 + $0xbe0] sm:$0xff]  }
 0xb1c   :  { %13989 = vmatpush3.bf16.msra.mxu0 %v15061_v39  ;;  %v15088_v39 = vld [vmem:[#allocation17 + $0xc18] sm:$0xff]  }
 0xb1d   :  { %14005 = vmatprep.subr.bf16.mxu0 %v15070_v1 }
 0xb9f   :  { %v13915_v15 = vpop.f32.mrf.mxu0  ;;  %v13937_v24 = vpop.f32.mrf.mxu1 }
 0xba1   :  { %v13916_v31 = vpop.f32.mrf.mxu0  ;;  %v13938_v59 = vpop.f32.mrf.mxu1 }
 0xba2   :  { %v13917_v42 = vadd.f32 %v13916_v31, %v13915_v15  ;;  %v13939_v19 = vadd.f32 %v13938_v59, %v13937_v24  ;;  %v15087_v15 = vld [vmem:[#allocation17 + $0xb58] sm:$0xff]   ;;  %v15090_v31 = vld [vmem:[#allocation17 + $0xb90] sm:$0xff]  }
 0xba3   :  { %v13918_v12 = vpop.f32.mrf.mxu0  ;;  %v13940_v35 = vpop.f32.mrf.mxu1  ;;  %v15089_v24 = vld [vmem:[#allocation17 + $0xbd8] sm:$0xff]   ;;  %v15092_v59 = vld [vmem:[#allocation17 + $0xc10] sm:$0xff]  }
 0xba4   :  { %v9407_v27 = vadd.f32 %v13917_v42, %v12287_v55  ;;  %v15091_v12 = vld [vmem:[#allocation17 + $0xb50] sm:$0xff]   ;;  %v15096_v42 = vld [vmem:[#allocation17 + $0xc08] sm:$0xff]   ;;  %v15098_v55 = vld [vmem:[#allocation17 + $0xb80] sm:$0xff]  }
 0xba5   :  { %v13919_v57 = vpop.f32.mrf.mxu0  ;;  %v13941_v23 = vpop.f32.mrf.mxu1  ;;  %v15093_v35 = vld [vmem:[#allocation17 + $0xbd0] sm:$0xff]  }
 0xba6   :  { %v9447_v51 = vadd.f32 %v13939_v19, %v9407_v27  ;;  %v15094_v57 = vld [vmem:[#allocation17 + $0xb88] sm:$0xff]   ;;  %v15099_v19 = vld [vmem:[#allocation17 + $0xb40] sm:$0xff]  }
 0xba7   :  { %v15095_v23 = vld [vmem:[#allocation17 + $0xb48] sm:$0xff]  }
 0xba8   :  { %v15097_v27 = vld [vmem:[#allocation17 + $0xbc8] sm:$0xff]  }
 0xbbf   :  { %v9486_v44 = vpop.f32.mrf.mxu0 }
 0xbc0   :  { %v9487_v30 = vadd.f32 %v9486_v44, %v9447_v51  ;;  %v15100_v51 = vld [vmem:[#allocation17 + $0xc00] sm:$0xff]  }
 0xbc1   :  { %v14371_v25 = vpop.f32.mrf.mxu0  ;;  %v15101_v44 = vld [vmem:[#allocation17 + $0xbc0] sm:$0xff]  }
 0xbc2   :  { %vm9492_vm12 = vcmp.ge.f32.partialorder %v9487_v30, 0.0  ;;  %v9493_v45 = vmul.f32 0.1, %v9487_v30 }
 0xbc3   :  { %v9489_v33 = vpop.f32.mrf.mxu0 }
 0xbc4   :  { %v9494_v41 = vsel %vm9492_vm12, %v9487_v30, %v9493_v45 }
 0xbc5   :  { %v9495_v26 = vrot.slane %v9494_v41, 1  ;;  %v14372_v6 = vpop.f32.mrf.mxu0 }
 0xbc7   :  { %v9496_v9 = vsel %vm8654_vm3, 0.0, %v9495_v26  ;;  %vm12396_vm3 = vmpackc.low %vm18058_vm14, %vm18058_vm14 }
 0xbc8   :  { %v9497_v34 = vmax.f32 %v9494_v41, %v9496_v9 }
 0xbca   :  { %9498 = vst [vmem:[#allocation2] sm:$0xff] %v9497_v34 }
 0xbd1   :  { %v9499_v56 = vld [vmem:[#allocation2] ss:$2 sm:$0xf] }
 0xbd2   :  { %v9589_v53 = vrot.slane %v9499_v56, 7  ;;  %v9595_v28 = vrot.slane %v9499_v56, 1  ;;  %v9584_v20 = vrot.slane %v9499_v56, 6  ;;  %v9594_v49 = vpack.c.bf16 %v9499_v56, %v9499_v56 }
 0xbd3   :  { %v9600_v7 = vrot.slane %v9499_v56, 2  ;;  %v12348_v56 = vld [vmem:[#allocation18 + $0x8] ss:$0 sm:$0xff] }
 0xbd4   :  { %v12392_v63 = vpack.c.bf16 %v9589_v53, %v9589_v53  ;;  %v12400_v60 = vpack.c.bf16 %v9595_v28, %v9595_v28  ;;  %v12397_v52 = vpack.c.bf16 %v9584_v20, %v9584_v20 }
 0xbd5   :  { %v12403_v10 = vpack.c.bf16 %v9600_v7, %v9600_v7  ;;  %v15102_v7 = vld [vmem:[#allocation17 + $0xc78] sm:$0xff]  }
 0xbd6   :  { %12393 = vmatprep.mubr.msk.bf16.mxu1 %vm18062_vm1, %v12392_v63  ;;  %12401 = vmatprep.mubr.msk.bf16.mxu0 %vm18068_vm4, %v12400_v60 }
 0xbd7   :  { %12398 = vmatmul.mubr.msk.bf16.vlgmr.msra.gmra.mxu1 %vm12396_vm3, %v12397_v52  ;;  %9923 = vmatmul.mubr.bf16.vlgmr.msra.gmra.mxu0 %v9594_v49 }
 0xbd8   :  { %14374 = vmatpush3.bf16.msra.mxu1 %v15062_v46  ;;  %14389 = vmatprep.mubr.msk.bf16.mxu1 %vm15509_vm7, %v15508_v40 }
 0xbd9   :  { %14375 = vmatprep.subr.bf16.mxu1 %v15508_v40  ;;  %14006 = vmatpush3.bf16.msra.mxu0 %v15071_v13  ;;  %v15103_v13 = vld [vmem:[#allocation17 + $0xc70] sm:$0xff]  }
 0xbda   :  { %14007 = vmatprep.subr.bf16.mxu0 %v15074_v2  ;;  %v15108_v2 = vld [vmem:[#allocation17 + $0xc48] sm:$0xff]  }
 0xbdc   :  { %14376 = vmatpush3.bf16.msra.mxu1 %v15063_v18 }
 0xbdd   :  { %14377 = vmatprep.subr.bf16.mxu1 %v15508_v40  ;;  %14008 = vmatpush3.bf16.msra.mxu0 %v15075_v43 }
 0xbde   :  { %14009 = vmatprep.subr.bf16.mxu0 %v15078_v16  ;;  %v15110_v16 = vld [vmem:[#allocation17 + $0xcf8] sm:$0xff]  }
 0xbe0   :  { %14378 = vmatpush3.bf16.msra.mxu1 %v15064_v37 }
 0xbe1   :  { %14379 = vmatprep.subr.bf16.mxu1 %v15508_v40  ;;  %14010 = vmatpush3.bf16.msra.mxu0 %v15079_v17  ;;  %v15112_v17 = vld [vmem:[#allocation17 + $0xd78] sm:$0xff]  }
 0xbe2   :  { %14011 = vmatprep.subr.bf16.mxu0 %v15082_v11  ;;  %v15114_v11 = vld [vmem:[#allocation17 + $0xcf0] sm:$0xff]  }
 0xbe4   :  { %14380 = vmatpush3.bf16.msra.mxu1 %v15065_v48 }
 0xbe5   :  { %14381 = vmatprep.subr.bf16.mxu1 %v15508_v40  ;;  %14012 = vmatpush3.bf16.msra.mxu0 %v15083_v22  ;;  %v15115_v22 = vld [vmem:[#allocation17 + $0xcb0] sm:$0xff]  }
 0xbe6   :  { %14013 = vmatprep.subr.bf16.mxu0 %v15086_v5  ;;  %v15118_v5 = vld [vmem:[#allocation17 + $0xce8] sm:$0xff]  }
 0xbe8   :  { %14382 = vmatpush3.bf16.msra.mxu1 %v15066_v32 }
 0xbe9   :  { %14383 = vmatprep.subr.bf16.mxu1 %v15508_v40  ;;  %14014 = vmatpush3.bf16.msra.mxu0 %v15087_v15  ;;  %v15121_v15 = vld [vmem:[#allocation17 + $0xd28] sm:$0xff]  }
 0xbea   :  { %14015 = vmatprep.subr.bf16.mxu0 %v15090_v31  ;;  %v15124_v31 = vld [vmem:[#allocation17 + $0xd60] sm:$0xff]  }
 0xbec   :  { %14384 = vmatpush3.bf16.msra.mxu1 %v15067_v29 }
 0xbed   :  { %14385 = vmatprep.subr.bf16.mxu1 %v15508_v40  ;;  %14016 = vmatpush3.bf16.msra.mxu0 %v15091_v12  ;;  %v15125_v12 = vld [vmem:[#allocation17 + $0xd20] sm:$0xff]  }
 0xbee   :  { %14017 = vmatprep.subr.bf16.mxu0 %v15094_v57  ;;  %v15128_v57 = vld [vmem:[#allocation17 + $0xd58] sm:$0xff]  }
 0xbf0   :  { %14386 = vmatpush3.bf16.msra.mxu1 %v15068_v61 }
 0xbf1   :  { %14387 = vmatprep.subr.bf16.mxu1 %v15508_v40  ;;  %14018 = vmatpush3.bf16.msra.mxu0 %v15095_v23  ;;  %v15127_v23 = vld [vmem:[#allocation17 + $0xc98] sm:$0xff]  }
 0xbf2   :  { %14019 = vmatprep.subr.bf16.mxu0 %v15098_v55  ;;  %v15130_v55 = vld [vmem:[#allocation17 + $0xcd0] sm:$0xff]  }
 0xbf4   :  { %14388 = vmatpush3.bf16.msra.mxu1 %v15069_v3 }
 0xbf5   :  { %14027 = vmatprep.subr.bf16.mxu1 %v15072_v58  ;;  %14020 = vmatpush3.bf16.msra.mxu0 %v15099_v19  ;;  %v15104_v58 = vld [vmem:[#allocation17 + $0xc68] sm:$0xff]   ;;  %v15131_v19 = vld [vmem:[#allocation17 + $0xc90] sm:$0xff]  }
 0xbf6   :  { %14393 = vmatprep.subr.bf16.mxu0 %v15508_v40 }
 0xbf7   :  { %14390 = vmatmul.mubr.msk.bf16.vlgmr.msra.gmra.mxu1 %vm18095_vm6, %v12403_v10 }
 0xbf8   :  { %14028 = vmatpush3.bf16.msra.mxu1 %v15073_v47  ;;  %v15107_v47 = vld [vmem:[#allocation17 + $0xc50] sm:$0xff]  }
 0xbf9   :  { %14029 = vmatprep.subr.bf16.mxu1 %v15076_v21  ;;  %v15109_v21 = vld [vmem:[#allocation17 + $0xc40] sm:$0xff]  }
 0xbfc   :  { %14030 = vmatpush3.bf16.msra.mxu1 %v15077_v54 }
 0xbfd   :  { %14031 = vmatprep.subr.bf16.mxu1 %v15080_v0  ;;  %v15111_v0 = vld [vmem:[#allocation17 + $0xcb8] sm:$0xff]  }
 0xc00   :  { %14032 = vmatpush3.bf16.msra.mxu1 %v15081_v8  ;;  %v15113_v8 = vld [vmem:[#allocation17 + $0xd38] sm:$0xff]  }
 0xc01   :  { %14033 = vmatprep.subr.bf16.mxu1 %v15084_v62  ;;  %v15116_v62 = vld [vmem:[#allocation17 + $0xd70] sm:$0xff]  }
 0xc04   :  { %14034 = vmatpush3.bf16.msra.mxu1 %v15085_v14  ;;  %v15117_v14 = vld [vmem:[#allocation17 + $0xd30] sm:$0xff]  }
 0xc05   :  { %14035 = vmatprep.subr.bf16.mxu1 %v15088_v39  ;;  %v15120_v39 = vld [vmem:[#allocation17 + $0xd68] sm:$0xff]  }
 0xc08   :  { %14036 = vmatpush3.bf16.msra.mxu1 %v15089_v24  ;;  %v15122_v24 = vld [vmem:[#allocation17 + $0xce0] sm:$0xff]  }
 0xc09   :  { %14037 = vmatprep.subr.bf16.mxu1 %v15092_v59  ;;  %v15123_v59 = vld [vmem:[#allocation17 + $0xca0] sm:$0xff]  }
 0xc0c   :  { %14038 = vmatpush3.bf16.msra.mxu1 %v15093_v35  ;;  %v15126_v35 = vld [vmem:[#allocation17 + $0xcd8] sm:$0xff]  }
 0xc0d   :  { %14039 = vmatprep.subr.bf16.mxu1 %v15096_v42  ;;  %v15129_v42 = vld [vmem:[#allocation17 + $0xd18] sm:$0xff]  }
 0xc10   :  { %14040 = vmatpush3.bf16.msra.mxu1 %v15097_v27  ;;  %v15132_v27 = vld [vmem:[#allocation17 + $0xd50] sm:$0xff]  }
 0xc11   :  { %14041 = vmatprep.subr.bf16.mxu1 %v15100_v51  ;;  %v15133_v51 = vld [vmem:[#allocation17 + $0xd10] sm:$0xff]  }
 0xc14   :  { %14042 = vmatpush3.bf16.msra.mxu1 %v15101_v44  ;;  %v15134_v44 = vld [vmem:[#allocation17 + $0xcc8] sm:$0xff]  }
 0xc15   :  { %14058 = vmatprep.subr.bf16.mxu1 %v15110_v16 }
 0xc97   :  { %v13968_v30 = vpop.f32.mrf.mxu1  ;;  %v13990_v25 = vpop.f32.mrf.mxu0 }
 0xc99   :  { %v13969_v45 = vpop.f32.mrf.mxu1  ;;  %v13991_v33 = vpop.f32.mrf.mxu0 }
 0xc9a   :  { %v13970_v34 = vadd.f32 %v13969_v45, %v13968_v30  ;;  %v13992_v28 = vadd.f32 %v13991_v33, %v13990_v25  ;;  %v15136_v30 = vld [vmem:[#allocation17 + $0xd48] sm:$0xff]   ;;  %v15138_v33 = vld [vmem:[#allocation17 + $0xcc0] sm:$0xff]  }
 0xc9b   :  { %v13971_v41 = vpop.f32.mrf.mxu1  ;;  %v13993_v26 = vpop.f32.mrf.mxu0  ;;  %v15135_v25 = vld [vmem:[#allocation17 + $0xc88] sm:$0xff]  }
 0xc9c   :  { %v9885_v53 = vadd.f32 %v13970_v34, %v12348_v56  ;;  %v15137_v45 = vld [vmem:[#allocation17 + $0xd08] sm:$0xff]   ;;  %v15140_v41 = vld [vmem:[#allocation17 + $0xd40] sm:$0xff]  }
 0xc9d   :  { %v13972_v6 = vpop.f32.mrf.mxu1  ;;  %v13994_v9 = vpop.f32.mrf.mxu0  ;;  %v15139_v26 = vld [vmem:[#allocation17 + $0xc80] sm:$0xff]  }
 0xc9e   :  { %v9925_v20 = vadd.f32 %v13992_v28, %v9885_v53  ;;  %v15141_v6 = vld [vmem:[#allocation17 + $0xd00] sm:$0xff]  }
 0xcb7   :  { %v9964_v63 = vpop.f32.mrf.mxu1 }
 0xcb8   :  { %v9965_v60 = vadd.f32 %v9964_v63, %v9925_v20 }
 0xcb9   :  { %v14391_v52 = vpop.f32.mrf.mxu1 }
 0xcba   :  { %vm9970_vm2 = vcmp.ge.f32.partialorder %v9965_v60, 0.0  ;;  %v9971_v46 = vmul.f32 0.1, %v9965_v60 }
 0xcbb   :  { %v9967_v49 = vpop.f32.mrf.mxu1 }
 0xcbc   :  { %v9972_v18 = vsel %vm9970_vm2, %v9965_v60, %v9971_v46  ;;  %v12405_v46 = vld [vmem:[#allocation18 + $0x9] ss:$0 sm:$0xff] }
 0xcbd   :  { %v10057_v37 = vrot.slane %v9972_v18, 6  ;;  %v14392_v48 = vpop.f32.mrf.mxu1  ;;  %v10061_v32 = vrot.slane %v9972_v18, 7  ;;  %v10066_v29 = vrot.slane %v9972_v18, 1  ;;  %v10065_v1 = vpack.c.bf16 %v9972_v18, %v9972_v18 }
 0xcbe   :  { %v10070_v43 = vrot.slane %v9972_v18, 2 }
 0xcbf   :  { %v12454_v61 = vpack.c.bf16 %v10057_v37, %v10057_v37  ;;  %v12449_v3 = vpack.c.bf16 %v10061_v32, %v10061_v32  ;;  %v12457_v10 = vpack.c.bf16 %v10066_v29, %v10066_v29 }
 0xcc0   :  { %v12460_v54 = vpack.c.bf16 %v10070_v43, %v10070_v43 }
 0xcc1   :  { %12450 = vmatprep.mubr.msk.bf16.mxu0 %vm18062_vm1, %v12449_v3  ;;  %12458 = vmatprep.mubr.msk.bf16.mxu1 %vm18068_vm4, %v12457_v10 }
 0xcc2   :  { %12455 = vmatmul.mubr.msk.bf16.vlgmr.msra.gmra.mxu0 %vm12396_vm3, %v12454_v61  ;;  %10393 = vmatmul.mubr.bf16.vlgmr.msra.gmra.mxu1 %v10065_v1 }
 0xcc3   :  { %14394 = vmatpush3.bf16.msra.mxu0 %v15102_v7  ;;  %14409 = vmatprep.mubr.msk.bf16.mxu0 %vm15509_vm7, %v15508_v40 }
 0xcc4   :  { %14395 = vmatprep.subr.bf16.mxu0 %v15508_v40  ;;  %14059 = vmatpush3.bf16.msra.mxu1 %v15111_v0  ;;  %v15510_v0 = vmov 0  }
 0xcc5   :  { %14060 = vmatprep.subr.bf16.mxu1 %v15114_v11  ;;  %v15145_v11 = vld [vmem:[#allocation17 + $0xda0] sm:$0xff]  }
 0xcc7   :  { %14396 = vmatpush3.bf16.msra.mxu0 %v15103_v13 }
 0xcc8   :  { %14397 = vmatprep.subr.bf16.mxu0 %v15508_v40  ;;  %14061 = vmatpush3.bf16.msra.mxu1 %v15115_v22  ;;  %v15147_v22 = vld [vmem:[#allocation17 + $0xd90] sm:$0xff]  }
 0xcc9   :  { %14062 = vmatprep.subr.bf16.mxu1 %v15118_v5  ;;  %v15149_v5 = vld [vmem:[#allocation17 + $0xd80] sm:$0xff]  }
 0xccb   :  { %14398 = vmatpush3.bf16.msra.mxu0 %v15104_v58 }
 0xccc   :  { %14399 = vmatprep.subr.bf16.mxu0 %v15508_v40  ;;  %14063 = vmatpush3.bf16.msra.mxu1 %v15119_v38  ;;  %v15150_v38 = vld [vmem:[#allocation17 + $0xe38] sm:$0xff]  }
 0xccd   :  { %14064 = vmatprep.subr.bf16.mxu1 %v15122_v24  ;;  %v15153_v24 = vld [vmem:[#allocation17 + $0xe78] sm:$0xff]  }
 0xccf   :  { %14400 = vmatpush3.bf16.msra.mxu0 %v15105_v50 }
 0xcd0   :  { %14401 = vmatprep.subr.bf16.mxu0 %v15508_v40  ;;  %14065 = vmatpush3.bf16.msra.mxu1 %v15123_v59  ;;  %v15156_v59 = vld [vmem:[#allocation17 + $0xeb0] sm:$0xff]  }
 0xcd1   :  { %14066 = vmatprep.subr.bf16.mxu1 %v15126_v35  ;;  %v15157_v35 = vld [vmem:[#allocation17 + $0xe70] sm:$0xff]  }
 0xcd3   :  { %14402 = vmatpush3.bf16.msra.mxu0 %v15106_v4 }
 0xcd4   :  { %14403 = vmatprep.subr.bf16.mxu0 %v15508_v40  ;;  %14067 = vmatpush3.bf16.msra.mxu1 %v15127_v23  ;;  %v15160_v23 = vld [vmem:[#allocation17 + $0xea8] sm:$0xff]  }
 0xcd5   :  { %14068 = vmatprep.subr.bf16.mxu1 %v15130_v55  ;;  %v15161_v55 = vld [vmem:[#allocation17 + $0xe68] sm:$0xff]  }
 0xcd7   :  { %14404 = vmatpush3.bf16.msra.mxu0 %v15107_v47 }
 0xcd8   :  { %14405 = vmatprep.subr.bf16.mxu0 %v15508_v40  ;;  %14069 = vmatpush3.bf16.msra.mxu1 %v15131_v19  ;;  %v15164_v19 = vld [vmem:[#allocation17 + $0xea0] sm:$0xff]  }
 0xcd9   :  { %14070 = vmatprep.subr.bf16.mxu1 %v15134_v44  ;;  %v15165_v44 = vld [vmem:[#allocation17 + $0xe60] sm:$0xff]  }
 0xcdb   :  { %14406 = vmatpush3.bf16.msra.mxu0 %v15108_v2  ;;  %v15186_v2 = vld [vmem:[#allocation17 + $0xed8] sm:$0xff]  }
 0xcdc   :  { %14407 = vmatprep.subr.bf16.mxu0 %v15508_v40  ;;  %14071 = vmatpush3.bf16.msra.mxu1 %v15135_v25  ;;  %v15168_v25 = vld [vmem:[#allocation17 + $0xe98] sm:$0xff]  }
 0xcdd   :  { %14072 = vmatprep.subr.bf16.mxu1 %v15138_v33  ;;  %v15169_v33 = vld [vmem:[#allocation17 + $0xe58] sm:$0xff]  }
 0xcdf   :  { %14408 = vmatpush3.bf16.msra.mxu0 %v15109_v21 }
 0xce0   :  { %14080 = vmatprep.subr.bf16.mxu0 %v15112_v17  ;;  %14073 = vmatpush3.bf16.msra.mxu1 %v15139_v26  ;;  %v15143_v17 = vld [vmem:[#allocation17 + $0xdb0] sm:$0xff]  }
 0xce1   :  { %14413 = vmatprep.subr.bf16.mxu1 %v15508_v40  ;;  %v15172_v26 = vld [vmem:[#allocation17 + $0xe90] sm:$0xff]  }
 0xce2   :  { %14410 = vmatmul.mubr.msk.bf16.vlgmr.msra.gmra.mxu0 %vm18095_vm6, %v12460_v54  ;;  %v15142_v54 = vld [vmem:[#allocation17 + $0xdb8] sm:$0xff]  }
 0xce3   :  { %14081 = vmatpush3.bf16.msra.mxu0 %v15113_v8  ;;  %v15144_v8 = vld [vmem:[#allocation17 + $0xda8] sm:$0xff]  }
 0xce4   :  { %14082 = vmatprep.subr.bf16.mxu0 %v15116_v62  ;;  %v15146_v62 = vld [vmem:[#allocation17 + $0xd98] sm:$0xff]  }
 0xce7   :  { %14083 = vmatpush3.bf16.msra.mxu0 %v15117_v14  ;;  %v15148_v14 = vld [vmem:[#allocation17 + $0xd88] sm:$0xff]  }
 0xce8   :  { %14084 = vmatprep.subr.bf16.mxu0 %v15120_v39  ;;  %v15151_v39 = vld [vmem:[#allocation17 + $0xdf8] sm:$0xff]  }
 0xceb   :  { %14085 = vmatpush3.bf16.msra.mxu0 %v15121_v15  ;;  %v15152_v15 = vld [vmem:[#allocation17 + $0xeb8] sm:$0xff]  }
 0xcec   :  { %14086 = vmatprep.subr.bf16.mxu0 %v15124_v31  ;;  %v15154_v31 = vld [vmem:[#allocation17 + $0xe30] sm:$0xff]  }
 0xcef   :  { %14087 = vmatpush3.bf16.msra.mxu0 %v15125_v12  ;;  %v15155_v12 = vld [vmem:[#allocation17 + $0xdf0] sm:$0xff]  }
 0xcf0   :  { %14088 = vmatprep.subr.bf16.mxu0 %v15128_v57  ;;  %v15158_v57 = vld [vmem:[#allocation17 + $0xe28] sm:$0xff]  }
 0xcf3   :  { %14089 = vmatpush3.bf16.msra.mxu0 %v15129_v42  ;;  %v15159_v42 = vld [vmem:[#allocation17 + $0xde8] sm:$0xff]  }
 0xcf4   :  { %14090 = vmatprep.subr.bf16.mxu0 %v15132_v27  ;;  %v15162_v27 = vld [vmem:[#allocation17 + $0xe20] sm:$0xff]  }
 0xcf7   :  { %14091 = vmatpush3.bf16.msra.mxu0 %v15133_v51  ;;  %v15163_v51 = vld [vmem:[#allocation17 + $0xde0] sm:$0xff]  }
 0xcf8   :  { %14092 = vmatprep.subr.bf16.mxu0 %v15136_v30  ;;  %v15166_v30 = vld [vmem:[#allocation17 + $0xe18] sm:$0xff]  }
 0xcfb   :  { %14093 = vmatpush3.bf16.msra.mxu0 %v15137_v45  ;;  %v15167_v45 = vld [vmem:[#allocation17 + $0xdd8] sm:$0xff]  }
 0xcfc   :  { %14094 = vmatprep.subr.bf16.mxu0 %v15140_v41  ;;  %v15170_v41 = vld [vmem:[#allocation17 + $0xe10] sm:$0xff]  }
 0xcff   :  { %14095 = vmatpush3.bf16.msra.mxu0 %v15141_v6  ;;  %v15171_v6 = vld [vmem:[#allocation17 + $0xdd0] sm:$0xff]  }
 0xd00   :  { %14111 = vmatprep.subr.bf16.mxu0 %v15150_v38  ;;  %v15187_v38 = vld [vmem:[#allocation17 + $0xed0] sm:$0xff]  }
 0xd82   :  { %v14021_v9 = vpop.f32.mrf.mxu0  ;;  %v14043_v34 = vpop.f32.mrf.mxu1 }
 0xd84   :  { %v14022_v56 = vpop.f32.mrf.mxu0  ;;  %v14044_v53 = vpop.f32.mrf.mxu1 }
 0xd85   :  { %v14023_v52 = vadd.f32 %v14022_v56, %v14021_v9  ;;  %v14045_v18 = vadd.f32 %v14044_v53, %v14043_v34  ;;  %v15173_v9 = vld [vmem:[#allocation17 + $0xe50] sm:$0xff]   ;;  %v15174_v34 = vld [vmem:[#allocation17 + $0xe08] sm:$0xff]  }
 0xd86   :  { %v14024_v28 = vpop.f32.mrf.mxu0  ;;  %v14046_v20 = vpop.f32.mrf.mxu1  ;;  %v15175_v56 = vld [vmem:[#allocation17 + $0xdc8] sm:$0xff]  }
 0xd87   :  { %v10355_v49 = vadd.f32 %v14023_v52, %v12405_v46  ;;  %v15176_v53 = vld [vmem:[#allocation17 + $0xe88] sm:$0xff]   ;;  %v15178_v28 = vld [vmem:[#allocation17 + $0xe00] sm:$0xff]  }
 0xd88   :  { %v14025_v63 = vpop.f32.mrf.mxu0  ;;  %v14047_v60 = vpop.f32.mrf.mxu1  ;;  %v15177_v20 = vld [vmem:[#allocation17 + $0xe48] sm:$0xff]   ;;  %v15181_v52 = vld [vmem:[#allocation17 + $0xe40] sm:$0xff]  }
 0xd89   :  { %v10395_v37 = vadd.f32 %v14045_v18, %v10355_v49  ;;  %v15179_v63 = vld [vmem:[#allocation17 + $0xdc0] sm:$0xff]  }
 0xd8a   :  { %v15180_v60 = vld [vmem:[#allocation17 + $0xe80] sm:$0xff]  }
 0xda2   :  { %v10434_v48 = vpop.f32.mrf.mxu0 }
 0xda3   :  { %v10435_v32 = vadd.f32 %v10434_v48, %v10395_v37 }
 0xda4   :  { %v14411_v29 = vpop.f32.mrf.mxu0 }
 0xda5   :  { %vm10440_vm15 = vcmp.ge.f32.partialorder %v10435_v32, 0.0  ;;  %v10441_v61 = vmul.f32 0.1, %v10435_v32 }
 0xda6   :  { %v10437_v3 = vpop.f32.mrf.mxu0 }
 0xda7   :  { %v10442_v7 = vsel %vm10440_vm15, %v10435_v32, %v10441_v61 }
 0xda8   :  { %v10444_v10 = vrot.slane %v10442_v7, 1  ;;  %v14412_v1 = vpop.f32.mrf.mxu0 }
 0xdaa   :  { %v10446_v13 = vsel %vm9597_vm0, %v10444_v10, 0.0 }
 0xdab   :  { %v10447_v58 = vmax.f32 %v10442_v7, %v10446_v13  ;;  %v12462_v7 = vld [vmem:[#allocation18 + $0xa] ss:$0 sm:$0xff] }
 0xdad   :  { %10448 = vst [vmem:[#allocation2] sm:$0xf] %v10447_v58 }
 0xdb4   :  { %v10449_v50 = vld [vmem:[#allocation2] ss:$2 sm:$0x3] }
 0xdb5   :  { %v10534_v4 = vrot.slane %v10449_v50, 7  ;;  %v10539_v47 = vrot.slane %v10449_v50, 1  ;;  %v10538_v16 = vpack.c.bf16 %v10449_v50, %v10449_v50 }
 0xdb7   :  { %v12506_v21 = vpack.c.bf16 %v10534_v4, %v10534_v4  ;;  %v12509_v43 = vpack.c.bf16 %v10539_v47, %v10539_v47 }
 0xdb9   :  { %12507 = vmatprep.mubr.msk.bf16.mxu1 %vm18062_vm1, %v12506_v21  ;;  %12510 = vmatprep.mubr.msk.bf16.mxu0 %vm18126_vm5, %v12509_v43 }
 0xdba   :  { %10822 = vmatmul.mubr.bf16.vlgmr.msra.gmra.mxu1 %v15510_v0  ;;  %10862 = vmatmul.mubr.bf16.vlgmr.msra.gmra.mxu0 %v10538_v16 }
 0xdbb   :  { %14414 = vmatpush3.bf16.msra.mxu1 %v15142_v54  ;;  %14429 = vmatprep.mubr.msk.bf16.mxu1 %vm15509_vm7, %v15508_v40 }
 0xdbc   :  { %14415 = vmatprep.subr.bf16.mxu1 %v15508_v40  ;;  %14112 = vmatpush3.bf16.msra.mxu0 %v15151_v39  ;;  %v15188_v39 = vld [vmem:[#allocation17 + $0xec8] sm:$0xff]  }
 0xdbd   :  { %14113 = vmatprep.subr.bf16.mxu0 %v15154_v31  ;;  %v15191_v31 = vld [vmem:[%s18208_s10 + $0x30] sm:$0xff]  }
 0xdbf   :  { %14416 = vmatpush3.bf16.msra.mxu1 %v15143_v17 }
 0xdc0   :  { %14417 = vmatprep.subr.bf16.mxu1 %v15508_v40  ;;  %14114 = vmatpush3.bf16.msra.mxu0 %v15155_v12  ;;  %v15194_v12 = vld [vmem:[%s18208_s10 + $0x18] sm:$0xff]  }
 0xdc1   :  { %14115 = vmatprep.subr.bf16.mxu0 %v15158_v57  ;;  %v15196_v57 = vld [vmem:[%s18208_s10 + $0x8] sm:$0xff]  }
 0xdc3   :  { %14418 = vmatpush3.bf16.msra.mxu1 %v15144_v8 }
 0xdc4   :  { %14419 = vmatprep.subr.bf16.mxu1 %v15508_v40  ;;  %14116 = vmatpush3.bf16.msra.mxu0 %v15159_v42 }
 0xdc5   :  { %14117 = vmatprep.subr.bf16.mxu0 %v15162_v27 }
 0xdc7   :  { %14420 = vmatpush3.bf16.msra.mxu1 %v15145_v11 }
 0xdc8   :  { %14421 = vmatprep.subr.bf16.mxu1 %v15508_v40  ;;  %14118 = vmatpush3.bf16.msra.mxu0 %v15163_v51 }
 0xdc9   :  { %14119 = vmatprep.subr.bf16.mxu0 %v15166_v30 }
 0xdcb   :  { %14422 = vmatpush3.bf16.msra.mxu1 %v15146_v62  ;;  %v15182_v62 = vld [vmem:[#allocation17 + $0xef8] sm:$0xff]  }
 0xdcc   :  { %14423 = vmatprep.subr.bf16.mxu1 %v15508_v40  ;;  %14120 = vmatpush3.bf16.msra.mxu0 %v15167_v45 }
 0xdcd   :  { %14121 = vmatprep.subr.bf16.mxu0 %v15170_v41 }
 0xdcf   :  { %14424 = vmatpush3.bf16.msra.mxu1 %v15147_v22 }
 0xdd0   :  { %14425 = vmatprep.subr.bf16.mxu1 %v15508_v40  ;;  %14122 = vmatpush3.bf16.msra.mxu0 %v15171_v6 }
 0xdd1   :  { %14123 = vmatprep.subr.bf16.mxu0 %v15174_v34 }
 0xdd3   :  { %14426 = vmatpush3.bf16.msra.mxu1 %v15148_v14  ;;  %v15183_v14 = vld [vmem:[#allocation17 + $0xef0] sm:$0xff]  }
 0xdd4   :  { %14427 = vmatprep.subr.bf16.mxu1 %v15508_v40  ;;  %14124 = vmatpush3.bf16.msra.mxu0 %v15175_v56 }
 0xdd5   :  { %14125 = vmatprep.subr.bf16.mxu0 %v15178_v28 }
 0xdd7   :  { %14428 = vmatpush3.bf16.msra.mxu1 %v15149_v5  ;;  %v15184_v5 = vld [vmem:[#allocation17 + $0xee8] sm:$0xff]  }
 0xdd8   :  { %14133 = vmatprep.subr.bf16.mxu1 %v15152_v15  ;;  %14126 = vmatpush3.bf16.msra.mxu0 %v15179_v63  ;;  %v15189_v15 = vld [vmem:[#allocation17 + $0xec0] sm:$0xff]  }
 0xdd9   :  { %14433 = vmatprep.subr.bf16.mxu0 %v15508_v40 }
 0xdda   :  { %14430 = vmatmul.mubr.bf16.vlgmr.msra.gmra.mxu1 %v15510_v0 }
 0xddb   :  { %14134 = vmatpush3.bf16.msra.mxu1 %v15153_v24  ;;  %v15190_v24 = vld [vmem:[%s18208_s10 + $0x38] sm:$0xff]  }
 0xddc   :  { %14135 = vmatprep.subr.bf16.mxu1 %v15156_v59  ;;  %v15192_v59 = vld [vmem:[%s18208_s10 + $0x28] sm:$0xff]  }
 0xddf   :  { %14136 = vmatpush3.bf16.msra.mxu1 %v15157_v35  ;;  %v15195_v35 = vld [vmem:[%s18208_s10 + $0x10] sm:$0xff]  }
 0xde0   :  { %14137 = vmatprep.subr.bf16.mxu1 %v15160_v23  ;;  %v15197_v23 = vld [vmem:[%s18208_s10] sm:$0xff]  }
 0xde3   :  { %14138 = vmatpush3.bf16.msra.mxu1 %v15161_v55 }
 0xde4   :  { %14139 = vmatprep.subr.bf16.mxu1 %v15164_v19 }
 0xde7   :  { %14140 = vmatpush3.bf16.msra.mxu1 %v15165_v44 }
 0xde8   :  { %14141 = vmatprep.subr.bf16.mxu1 %v15168_v25 }
 0xdeb   :  { %14142 = vmatpush3.bf16.msra.mxu1 %v15169_v33  ;;  %v12511_v33 = vld [vmem:[#allocation18 + $0xb] ss:$0 sm:$0xff] }
 0xdec   :  { %14143 = vmatprep.subr.bf16.mxu1 %v15172_v26 }
 0xdef   :  { %14144 = vmatpush3.bf16.msra.mxu1 %v15173_v9 }
 0xdf0   :  { %14145 = vmatprep.subr.bf16.mxu1 %v15176_v53 }
 0xdf3   :  { %14146 = vmatpush3.bf16.msra.mxu1 %v15177_v20 }
 0xdf4   :  { %14147 = vmatprep.subr.bf16.mxu1 %v15180_v60  ;;  %v12560_v60 = vld [vmem:[#allocation20] ss:$0 sm:$0xff] }
 0xdf7   :  { %14148 = vmatpush3.bf16.msra.mxu1 %v15181_v52 }
 0xdf8   :  { %14453 = vmatprep.subr.bf16.mxu1 %v15508_v40 }
 0xe7a   :  { %v14074_v46 = vpop.f32.mrf.mxu1  ;;  %v14096_v49 = vpop.f32.mrf.mxu0 }
 0xe7c   :  { %v14075_v18 = vpop.f32.mrf.mxu1  ;;  %v14097_v37 = vpop.f32.mrf.mxu0 }
 0xe7d   :  { %v14076_v3 = vadd.f32 %v14075_v18, %v14074_v46  ;;  %v14098_v1 = vadd.f32 %v14097_v37, %v14096_v49 }
 0xe7e   :  { %v14077_v48 = vpop.f32.mrf.mxu1  ;;  %v14099_v32 = vpop.f32.mrf.mxu0 }
 0xe7f   :  { %v10824_v10 = vadd.f32 %v14076_v3, %v12462_v7 }
 0xe80   :  { %v14078_v29 = vpop.f32.mrf.mxu1  ;;  %v14100_v61 = vpop.f32.mrf.mxu0 }
 0xe81   :  { %v10864_v13 = vadd.f32 %v14098_v1, %v10824_v10 }
 0xe9a   :  { %v10903_v58 = vpop.f32.mrf.mxu1 }
 0xe9b   :  { %v10904_v50 = vadd.f32 %v10903_v58, %v10864_v13 }
 0xe9c   :  { %v14431_v4 = vpop.f32.mrf.mxu1 }
 0xe9d   :  { %vm10909_vm8 = vcmp.ge.f32.partialorder %v10904_v50, 0.0  ;;  %v10910_v47 = vmul.f32 0.1, %v10904_v50 }
 0xe9e   :  { %v10906_v21 = vpop.f32.mrf.mxu1 }
 0xe9f   :  { %v10911_v43 = vsel %vm10909_vm8, %v10904_v50, %v10910_v47 }
 0xea0   :  { %v10996_v54 = vrot.slane %v10911_v43, 7  ;;  %v11001_v16 = vrot.slane %v10911_v43, 1  ;;  %v14432_v17 = vpop.f32.mrf.mxu1  ;;  %v11000_v22 = vpack.c.bf16 %v10911_v43, %v10911_v43 }
 0xea2   :  { %v12555_v8 = vpack.c.bf16 %v10996_v54, %v10996_v54  ;;  %v12558_v11 = vpack.c.bf16 %v11001_v16, %v11001_v16 }
 0xea4   :  { %12556 = vmatprep.mubr.msk.bf16.mxu0 %vm18062_vm1, %v12555_v8  ;;  %12559 = vmatprep.mubr.msk.bf16.mxu1 %vm18126_vm5, %v12558_v11 }
 0xea5   :  { %11284 = vmatmul.mubr.bf16.vlgmr.msra.gmra.mxu0 %v15510_v0  ;;  %11324 = vmatmul.mubr.bf16.vlgmr.msra.gmra.mxu1 %v11000_v22 }
 0xea6   :  { %14434 = vmatpush3.bf16.msra.mxu0 %v15182_v62  ;;  %14449 = vmatprep.mubr.msk.bf16.mxu0 %vm15509_vm7, %v15508_v40 }
 0xea7   :  { %14435 = vmatprep.subr.bf16.mxu0 %v15508_v40  ;;  %14469 = vmatprep.mubr.msk.bf16.mxu1 %vm15509_vm7, %v15508_v40 }
 0xea8   :  { %14454 = vmatpush3.bf16.msra.mxu1 %v15190_v24 }
 0xea9   :  { %14455 = vmatprep.subr.bf16.mxu1 %v15508_v40 }
 0xeaa   :  { %14436 = vmatpush3.bf16.msra.mxu0 %v15183_v14 }
 0xeab   :  { %14437 = vmatprep.subr.bf16.mxu0 %v15508_v40 }
 0xeac   :  { %14456 = vmatpush3.bf16.msra.mxu1 %v15191_v31 }
 0xead   :  { %14457 = vmatprep.subr.bf16.mxu1 %v15508_v40 }
 0xeae   :  { %14438 = vmatpush3.bf16.msra.mxu0 %v15184_v5 }
 0xeaf   :  { %14439 = vmatprep.subr.bf16.mxu0 %v15508_v40 }
 0xeb0   :  { %14458 = vmatpush3.bf16.msra.mxu1 %v15192_v59 }
 0xeb1   :  { %14459 = vmatprep.subr.bf16.mxu1 %v15508_v40 }
 0xeb2   :  { %14440 = vmatpush3.bf16.msra.mxu0 %v15185_v36 }
 0xeb3   :  { %14441 = vmatprep.subr.bf16.mxu0 %v15508_v40 }
 0xeb6   :  { %14442 = vmatpush3.bf16.msra.mxu0 %v15186_v2 }
 0xeb7   :  { %14443 = vmatprep.subr.bf16.mxu0 %v15508_v40 }
 0xeba   :  { %14444 = vmatpush3.bf16.msra.mxu0 %v15187_v38 }
 0xebb   :  { %14445 = vmatprep.subr.bf16.mxu0 %v15508_v40 }
 0xebe   :  { %14446 = vmatpush3.bf16.msra.mxu0 %v15188_v39 }
 0xebf   :  { %14447 = vmatprep.subr.bf16.mxu0 %v15508_v40 }
 0xec2   :  { %14448 = vmatpush3.bf16.msra.mxu0 %v15189_v15 }
 0xec5   :  { %14450 = vmatmul.mubr.bf16.vlgmr.msra.gmra.mxu0 %v15510_v0  ;;  %v15193_v0 = vld [vmem:[%s18208_s10 + $0x20] sm:$0xff]   ;;  %s15511_s10 = smov [#allocation21]  }
 0xec6   :  { %14460 = vmatpush3.bf16.msra.mxu1 %v15193_v0  ;;  %s11500_s2 = sshll.u32 %s15511_s10, 4  ;;  %s11501_s2 = int_to_ptr.vmem [resolvable:$true] %s11500_s2 }
 0xec7   :  { %14461 = vmatprep.subr.bf16.mxu1 %v15508_v40  ;;  %s15457_s28 = scalar_lea.vmem %s11501_s2, 32  ;;  %p15462_p0 = scmp.lt.s32.totalorder %s11501_s2, %s11501_s2 }
 0xec8   :  { %p15458_p13 = scmp.ne.s32.totalorder %s11501_s2, %s15457_s28  ;;  %p15463_p1 = scmp.lt.s32.totalorder %s15457_s28, %s15457_s28 }
 0xeca   :  { %14462 = vmatpush3.bf16.msra.mxu1 %v15194_v12  ;;  %p15464_p2 = por %p15463_p1, %p15462_p0 }
 0xecb   :  { %14463 = vmatprep.subr.bf16.mxu1 %v15508_v40 }
 0xecc   :  { %p15465_p3 = pnand %p15464_p2, %p15458_p13 }
 0xece   :  { %14464 = vmatpush3.bf16.msra.mxu1 %v15195_v35 }
 0xecf   :  { %14465 = vmatprep.subr.bf16.mxu1 %v15508_v40 }
 0xed2   :  { %14466 = vmatpush3.bf16.msra.mxu1 %v15196_v57 }
 0xed3   :  { %14467 = vmatprep.subr.bf16.mxu1 %v15508_v40 }
 0xed6   :  { %14468 = vmatpush3.bf16.msra.mxu1 %v15197_v23 }
 0xf65   :  { %v14127_v42 = vpop.f32.mrf.mxu0  ;;  %v14149_v55 = vpop.f32.mrf.mxu1 }
 0xf67   :  { %v14128_v27 = vpop.f32.mrf.mxu0  ;;  %v14150_v19 = vpop.f32.mrf.mxu1 }
 0xf68   :  { %v14129_v45 = vadd.f32 %v14128_v27, %v14127_v42  ;;  %v14151_v26 = vadd.f32 %v14150_v19, %v14149_v55 }
 0xf69   :  { %v14130_v51 = vpop.f32.mrf.mxu0  ;;  %v14152_v44 = vpop.f32.mrf.mxu1 }
 0xf6a   :  { %v11286_v41 = vadd.f32 %v14129_v45, %v12511_v33 }
 0xf6b   :  { %v14131_v30 = vpop.f32.mrf.mxu0  ;;  %v14153_v25 = vpop.f32.mrf.mxu1 }
 0xf6c   :  { %v11326_v6 = vadd.f32 %v14151_v26, %v11286_v41 }
 0xf85   :  { %v11365_v9 = vpop.f32.mrf.mxu0 }
 0xf86   :  { %v11366_v34 = vadd.f32 %v11365_v9, %v11326_v6 }
 0xf87   :  { %v14451_v56 = vpop.f32.mrf.mxu0 }
 0xf88   :  { %vm11371_vm7 = vcmp.ge.f32.partialorder %v11366_v34, 0.0  ;;  %v11372_v53 = vmul.f32 0.1, %v11366_v34 }
 0xf89   :  { %v11368_v40 = vpop.f32.mrf.mxu0 }
 0xf8a   :  { %v11373_v28 = vsel %vm11371_vm7, %v11366_v34, %v11372_v53 }
 0xf8b   :  { %v11374_v20 = vpack.c.bf16 %v11373_v28, %v11373_v28  ;;  %v14452_v63 = vpop.f32.mrf.mxu0 }
 0xf8d   :  { %14470 = vmatmul.mubr.bf16.vlgmr.msra.gmra.mxu1 %v11374_v20 }
0x104d   :  { %v11480_v52 = vpop.f32.mrf.mxu1 }
0x104e   :  { %v11481_v46 = vadd.f32 %v12560_v60, %v11480_v52 }
0x104f   :  { %v14471_v49 = vpop.f32.mrf.mxu1 }
0x1050   :  { %v12569_v18 = vmul.f32 -1.442695, %v11481_v46 }
0x1051   :  { %v11483_v37 = vpop.f32.mrf.mxu1 }
0x1052   :  { %15198 = vpow2.f32 %v12569_v18 }
0x1053   :  { %v14472_v48 = vpop.f32.mrf.mxu1 }
0x105f   :  { %v15199_v32 = vpop.eup %15198 }
0x1060   :  { %v11489_v29 = vadd.f32 1.0, %v15199_v32 }
0x1062   :  { %15200 = vrcp.f32 %v11489_v29 }
0x106f   :  { %v15201_v61 = vpop.eup %15200 }
0x1070   :  { %11493 = vst.msk [vmem:[#allocation21] sm:$0x3] %vm11492_vm10, %v15201_v61 }
0x1071   :  { %15468 = shalt.err (!%p15465_p3)
}
0x1072   :  { %11503 = dma.vmem_to_hbm [thread:$0]  %s11501_s2, 32, %s18210_s12, [#allocation5]  }
0x1073   :  { %15489 = dma.done.wait [#allocation5], 32  }
0x1074   :  { %15490 = vsyncadd [#allocation5], 4294967264 }
0x1075   :  { %11507 = vsyncpa [#allocation4], 1 }
0x1076   :  { %11508 = vsyncpa [#allocation7], 1 }
0x1077   :  { %11509 = vsyncpa [#allocation10], 1 }
0x1078   :  { %11510 = vsyncpa [#allocation13], 1 }
0x1079   :  { %11511 = vsyncpa [#allocation16], 1 }
0x107a   :  { %11512 = vsyncpa [#allocation19], 1 }
0x107b   :  { %11513 = vsyncpa [#allocation5], 1 }

</bundles_post_ra>
